<compile_context>
chip_gen: v7x
topology: tpu7x:2x2x1
jax: 0.10.0
libtpu: 0.0.40
codegen_flags: <defaults>
</compile_context>

<pallas_src>
import functools

import jax
import jax.numpy as jnp
from jax import lax
from jax.experimental import pallas as pl
from jax.experimental.pallas import tpu as pltpu

EPS = 1e-5
VMEM_LIMIT = 48 * 1024 * 1024     # scoped-VMEM budget (fits v5e/v6e/v7x)


def _compiler_params():
    return pltpu.CompilerParams(dimension_semantics=("parallel",),
                                vmem_limit_bytes=VMEM_LIMIT)


def _pick_row_tile(m, *, max_tile=2048):
    """Largest 8-aligned row tile <= max_tile dividing m, preferring >=4 grid
    steps (pipelined steady state on both megacore TCs), then >=2, then 1."""
    for min_steps in (4, 2, 1):
        for t in range(min(max_tile, m), 7, -1):
            if m % t == 0 and t % 8 == 0 and m // t >= min_steps:
                return t
    return m   # fallback: single full block (always layout-legal)


def _pick_group_tile(rows, row_mult, *, max_rows=2048):
    """Divisor t of `rows` with t*row_mult <= max_rows and (t*row_mult) % 8 == 0,
    preferring >=4 (then >=2) grid steps; falls back to the full extent."""
    for min_steps in (4, 2, 1):
        for t in range(rows, 0, -1):
            if rows % t:
                continue
            if t * row_mult > max_rows or (t * row_mult) % 8:
                continue
            if rows // t >= min_steps:
                return t
    return rows


# ----------------------------- Pallas kernels ------------------------------ #

def _mm_bn_stats_kernel(x_ref, sc_ref, sh_ref, w_ref, y_ref, s_ref, ss_ref,
                        *, input_act, cdt):
    """(optional BN-affine+ReLU prologue) -> 1x1-conv matmul -> store (possibly
    bf16) + per-tile BN partial statistics taken from the f32 accumulator."""
    a = x_ref[...].astype(jnp.float32)
    if input_act:
        a = jnp.maximum(a * sc_ref[...] + sh_ref[...], 0.0)
    y = jnp.dot(a.astype(cdt), w_ref[...], preferred_element_type=jnp.float32)
    y_ref[...] = y.astype(y_ref.dtype)
    s_ref[...] = jnp.sum(y, axis=0, keepdims=True).reshape(1, 1, -1)
    ss_ref[...] = jnp.sum(y * y, axis=0, keepdims=True).reshape(1, 1, -1)


def matmul_bn_stats(x, scale, shift, w, *, input_act, cdt, store_dtype):
    m, k = x.shape
    cout = w.shape[1]
    tm = _pick_row_tile(m)
    gm = m // tm
    kernel = functools.partial(_mm_bn_stats_kernel, input_act=input_act, cdt=cdt)
    return pl.pallas_call(
        kernel,
        out_shape=(jax.ShapeDtypeStruct((m, cout), store_dtype),
                   jax.ShapeDtypeStruct((gm, 1, cout), jnp.float32),
                   jax.ShapeDtypeStruct((gm, 1, cout), jnp.float32)),
        grid=(gm,),
        in_specs=[
            pl.BlockSpec((tm, k), lambda i: (i, 0)),
            pl.BlockSpec((1, k), lambda i: (0, 0)),
            pl.BlockSpec((1, k), lambda i: (0, 0)),
            pl.BlockSpec((k, cout), lambda i: (0, 0)),
        ],
        out_specs=(
            pl.BlockSpec((tm, cout), lambda i: (i, 0)),
            pl.BlockSpec((1, 1, cout), lambda i: (i, 0, 0)),
            pl.BlockSpec((1, 1, cout), lambda i: (i, 0, 0)),
        ),
        compiler_params=_compiler_params(),
    )(x, scale, shift, w)


def _conv3x3_kernel(y1_ref, sc_ref, sh_ref, w_ref, ww_ref,
                    y2_ref, s_ref, ss_ref, halo_ref, acc_ref, *, W, pad, cdt):
    """BN1+ReLU prologue, then 3x3/pad=1 conv for one image entirely in VMEM.

    The activation is copied once into a halo-padded VMEM scratch (`pad` zero
    rows above/below), so the 9 taps are plain shifted slices (no XLU rolls);
    vertically out-of-image taps read halo zeros, horizontally out-of-image
    taps are killed by the two edge masks built from the column index."""
    HW, C = y1_ref.shape
    act = jnp.maximum(y1_ref[...].astype(jnp.float32) * sc_ref[...] + sh_ref[...],
                      0.0)
    # halo scratch: zero the halos, place the activation in the middle
    halo_ref[pl.ds(0, pad), :] = jnp.zeros((pad, C), jnp.float32)
    halo_ref[pl.ds(pad + HW, pad), :] = jnp.zeros((pad, C), jnp.float32)
    halo_ref[pl.ds(pad, HW), :] = act

    ww = ww_ref[...]                                     # (HW, 1) int32
    m_left = (ww >= 1).astype(jnp.float32)               # valid for dx = -1
    m_right = (ww <= W - 2).astype(jnp.float32)          # valid for dx = +1

    acc_ref[...] = jnp.zeros((HW, C), jnp.float32)
    t = 0
    for ky in range(3):
        for kx in range(3):
            dy, dx = ky - 1, kx - 1
            off = dy * W + dx                            # flattened row offset
            tap = halo_ref[pl.ds(pad + off, HW), :]
            if dx == -1:
                tap = tap * m_left
            elif dx == 1:
                tap = tap * m_right
            acc_ref[...] += jnp.dot(tap.astype(cdt), w_ref[t],
                                    preferred_element_type=jnp.float32)
            t += 1

    acc = acc_ref[...]
    y2_ref[...] = acc.astype(y2_ref.dtype)
    s_ref[...] = jnp.sum(acc, axis=0, keepdims=True).reshape(1, 1, -1)
    ss_ref[...] = jnp.sum(acc * acc, axis=0, keepdims=True).reshape(1, 1, -1)


def conv3x3_fused(y1, scale, shift, w9, ww_col, *, N, H, W, cdt, store_dtype):
    m, c = y1.shape
    hw = H * W
    pad = ((W + 1 + 7) // 8) * 8          # halo rows per side (>= W+1, 8-aligned)
    kernel = functools.partial(_conv3x3_kernel, W=W, pad=pad, cdt=cdt)
    return pl.pallas_call(
        kernel,
        out_shape=(jax.ShapeDtypeStruct((m, c), store_dtype),
                   jax.ShapeDtypeStruct((N, 1, c), jnp.float32),
                   jax.ShapeDtypeStruct((N, 1, c), jnp.float32)),
        grid=(N,),
        in_specs=[
            pl.BlockSpec((hw, c), lambda n: (n, 0)),
            pl.BlockSpec((1, c), lambda n: (0, 0)),
            pl.BlockSpec((1, c), lambda n: (0, 0)),
            pl.BlockSpec((9, c, c), lambda n: (0, 0, 0)),
            pl.BlockSpec((hw, 1), lambda n: (0, 0)),
        ],
        out_specs=(
            pl.BlockSpec((hw, c), lambda n: (n, 0)),
            pl.BlockSpec((1, 1, c), lambda n: (n, 0, 0)),
            pl.BlockSpec((1, 1, c), lambda n: (n, 0, 0)),
        ),
        scratch_shapes=[pltpu.VMEM((hw + 2 * pad, c), jnp.float32),
                        pltpu.VMEM((hw, c), jnp.float32)],
        compiler_params=_compiler_params(),
    )(y1, scale, shift, w9, ww_col)


def _tail_kernel(y_ref, x_ref, sc_ref, sh_ref, wt_ref, wb_ref, o_ref, *, cdt):
    """BN3 prologue + residual add + fused 2x2/stride-2 downsample + ReLU.

    Inputs are pre-reshaped (pure metadata) to (rows, 2, W/2, 2*C): the
    even/odd input-row pair is dim 1 and the two horizontal taps are folded
    into the lane dim, so the strided conv becomes two matmuls against
    (2C, C) weight slabs."""
    tr, _, wo, c2 = y_ref.shape
    sc = sc_ref[...]
    sh = sh_ref[...]
    se = (y_ref[:, 0, :, :].astype(jnp.float32) * sc + sh
          + x_ref[:, 0, :, :]).reshape(tr * wo, c2)
    so = (y_ref[:, 1, :, :].astype(jnp.float32) * sc + sh
          + x_ref[:, 1, :, :]).reshape(tr * wo, c2)
    acc = jnp.dot(se.astype(cdt), wt_ref[...], preferred_element_type=jnp.float32)
    acc = acc + jnp.dot(so.astype(cdt), wb_ref[...],
                        preferred_element_type=jnp.float32)
    o_ref[...] = jnp.maximum(acc, 0.0)


def downsample_add_relu(y3r, xr, scale_d, shift_d, wtop, wbot, *, cdt):
    rows, _, wo, c2 = y3r.shape
    c = wtop.shape[1]
    tr = _pick_group_tile(rows, wo)
    gr = rows // tr
    kernel = functools.partial(_tail_kernel, cdt=cdt)
    return pl.pallas_call(
        kernel,
        out_shape=jax.ShapeDtypeStruct((rows * wo, c), jnp.float32),
        grid=(gr,),
        in_specs=[
            pl.BlockSpec((tr, 2, wo, c2), lambda i: (i, 0, 0, 0)),
            pl.BlockSpec((tr, 2, wo, c2), lambda i: (i, 0, 0, 0)),
            pl.BlockSpec((1, c2), lambda i: (0, 0)),
            pl.BlockSpec((1, c2), lambda i: (0, 0)),
            pl.BlockSpec((c2, c), lambda i: (0, 0)),
            pl.BlockSpec((c2, c), lambda i: (0, 0)),
        ],
        out_specs=pl.BlockSpec((tr * wo, c), lambda i: (i, 0)),
        compiler_params=_compiler_params(),
    )(y3r, xr, scale_d, shift_d, wtop, wbot)


# ------------------------------- JAX glue ---------------------------------- #

def _bn_scale_shift(s_part, ss_part, gamma, beta, m_rows):
    """Finalize training-mode BN (biased variance) from per-tile partial stats."""
    s = jnp.sum(s_part[:, 0, :], axis=0)
    ss = jnp.sum(ss_part[:, 0, :], axis=0)
    mean = s / m_rows
    var = jnp.maximum(ss / m_rows - mean * mean, 0.0)
    scale = gamma.astype(jnp.float32) * lax.rsqrt(var + EPS)
    shift = beta.astype(jnp.float32) - mean * scale
    return scale[None, :], shift[None, :]


def bottleneck_forward(x_nchw, p, *, compute_dtype=jnp.float32, store_dtype=None):
    """Pallas implementation of BottleNeck.forward (down=True, separable=False)."""
    if store_dtype is None:
        store_dtype = compute_dtype
    N, Cin, H, W = x_nchw.shape
    Ch = p["w1"].shape[0]
    Ce = p["w3"].shape[0]
    assert Cin == Ce, "residual add requires in_channels == expansion*hidden"
    assert H % 2 == 0 and W % 2 == 0

    M = N * H * W
    cdt = compute_dtype

    # activations at their real channel widths (no 128-lane padding, no pad pass)
    x2d = jnp.transpose(x_nchw, (0, 2, 3, 1)).astype(jnp.float32).reshape(M, Cin)

    # weights at real widths, cast to the MXU compute dtype
    w1 = p["w1"][:, :, 0, 0].T.astype(cdt)                                # (Cin, Ch)
    w2 = jnp.stack([p["w2"][:, :, ky, kx].T
                    for ky in range(3) for kx in range(3)]).astype(cdt)   # (9, Ch, Ch)
    w3 = p["w3"][:, :, 0, 0].T.astype(cdt)                                # (Ch, Ce)
    wd = {(ky, kx): p["wd"][:, :, ky, kx].T
          for ky in range(2) for kx in range(2)}
    wtop = jnp.concatenate([wd[(0, 0)], wd[(0, 1)]], axis=0).astype(cdt)  # (2Ce, Ce)
    wbot = jnp.concatenate([wd[(1, 0)], wd[(1, 1)]], axis=0).astype(cdt)

    ones = jnp.ones((1, Cin), jnp.float32)
    zeros = jnp.zeros((1, Cin), jnp.float32)

    # stage 1: conv1 (1x1) + bn1 partial stats
    y1, s1, ss1 = matmul_bn_stats(x2d, ones, zeros, w1, input_act=False,
                                  cdt=cdt, store_dtype=store_dtype)
    sc1, sh1 = _bn_scale_shift(s1, ss1, p["g1"], p["b1"], M)

    # stage 2: bn1+relu -> 3x3 conv (halo-scratch im2col in VMEM) + bn2 stats
    ww_col = (jnp.arange(H * W, dtype=jnp.int32) % W).reshape(H * W, 1)
    y2, s2, ss2 = conv3x3_fused(y1, sc1, sh1, w2, ww_col, N=N, H=H, W=W,
                                cdt=cdt, store_dtype=store_dtype)
    sc2, sh2 = _bn_scale_shift(s2, ss2, p["g2"], p["b2"], M)

    # stage 3: bn2+relu -> conv3 (1x1) + bn3 partial stats
    y3, s3, ss3 = matmul_bn_stats(y2, sc2, sh2, w3, input_act=True,
                                  cdt=cdt, store_dtype=store_dtype)
    sc3, sh3 = _bn_scale_shift(s3, ss3, p["g3"], p["b3"], M)

    # stage 4: bn3 -> (+ identity) -> shared 2x2/stride-2 downsample -> relu
    # (pure row-major reshapes; no data movement)
    Ho, Wo = H // 2, W // 2
    y3r = y3.reshape(N * Ho, 2, Wo, 2 * Ce)
    xr = x2d.reshape(N * Ho, 2, Wo, 2 * Cin)
    sc3d = jnp.concatenate([sc3, sc3], axis=1)
    sh3d = jnp.concatenate([sh3, sh3], axis=1)
    out = downsample_add_relu(y3r, xr, sc3d, sh3d, wtop, wbot, cdt=cdt)

    out = out.reshape(N, Ho, Wo, Ce)
    return jnp.transpose(out, (0, 3, 1, 2))                    # back to NCHW


# --------------------------- pure-JAX reference ----------------------------- #

def _ref_bn(x, g, b):
    m = x.mean(axis=(0, 2, 3), keepdims=True)
    v = ((x - m) ** 2).mean(axis=(0, 2, 3), keepdims=True)
    return (x - m) / jnp.sqrt(v + EPS) * g.reshape(1, -1, 1, 1) + b.reshape(1, -1, 1, 1)


def _ref_conv(x, w, stride, pad):
    return lax.conv_general_dilated(
        x, w, (stride, stride), pad, dimension_numbers=("NCHW", "OIHW", "NCHW"))


def ref_forward(x, p):
    out = jax.nn.relu(_ref_bn(_ref_conv(x, p["w1"], 1, "VALID"), p["g1"], p["b1"]))
    out = jax.nn.relu(_ref_bn(_ref_conv(out, p["w2"], 1, [(1, 1), (1, 1)]),
                              p["g2"], p["b2"]))
    out = _ref_bn(_ref_conv(out, p["w3"], 1, "VALID"), p["g3"], p["b3"])
    out = _ref_conv(out, p["wd"], 2, "VALID")
    idn = _ref_conv(x, p["wd"], 2, "VALID")
    return jax.nn.relu(out + idn)


# ---------------------------------- main ------------------------------------ #

if __name__ == "__main__":
    key = jax.random.PRNGKey(0)
    N, H, W = 2, 16, 16
    hidden, expansion = 4, 4
    in_c = expansion * hidden          # = 16 (required for the residual add)
    Ce = expansion * hidden

    ks = jax.random.split(key, 10)
    x = jax.random.normal(ks[0], (N, in_c, H, W), jnp.float32)

    params = {
        "w1": 0.2 * jax.random.normal(ks[1], (hidden, in_c, 1, 1), jnp.float32),
        "w2": 0.2 * jax.random.normal(ks[2], (hidden, hidden, 3, 3), jnp.float32),
        "w3": 0.2 * jax.random.normal(ks[3], (Ce, hidden, 1, 1), jnp.float32),
        "wd": 0.2 * jax.random.normal(ks[4], (Ce, Ce, 2, 2), jnp.float32),
        "g1": 1.0 + 0.1 * jax.random.normal(ks[5], (hidden,), jnp.float32),
        "b1": 0.1 * jax.random.normal(ks[6], (hidden,), jnp.float32),
        "g2": 1.0 + 0.1 * jax.random.normal(ks[7], (hidden,), jnp.float32),
        "b2": 0.1 * jax.random.normal(ks[8], (hidden,), jnp.float32),
        "g3": jnp.ones((Ce,), jnp.float32),
        "b3": jnp.zeros((Ce,), jnp.float32),
    }

    y_ref = jax.block_until_ready(ref_forward(x, params))

    # f32 compute + f32 storage (exact path): tight check against the reference.
    fwd_f32 = jax.jit(functools.partial(bottleneck_forward,
                                        compute_dtype=jnp.float32))
    y = jax.block_until_ready(fwd_f32(x, params))
    assert y.shape == (N, Ce, H // 2, W // 2), y.shape
    assert jnp.allclose(y, y_ref, atol=2e-3, rtol=2e-3), \
        float(jnp.max(jnp.abs(y - y_ref)))

    # bf16 MXU inputs + bf16 HBM intermediates (throughput path on all chips):
    # loose numerical check.
    fwd_bf16 = jax.jit(functools.partial(bottleneck_forward,
                                         compute_dtype=jnp.bfloat16))
    y16 = jax.block_until_ready(fwd_bf16(x, params))
    assert jnp.allclose(y16, y_ref, atol=0.25, rtol=0.25), \
        float(jnp.max(jnp.abs(y16 - y_ref)))

    print("KERNEL_OK")
</pallas_src>

<mosaic_0001>
module attributes {stable_mosaic.version = 11 : i64} {
  func.func @_mm_bn_stats_kernel(%arg0: i32, %arg1: memref<128x16xf32, #tpu.memory_space<vmem>>, %arg2: memref<1x16xf32, #tpu.memory_space<vmem>>, %arg3: memref<1x16xf32, #tpu.memory_space<vmem>>, %arg4: memref<16x4xf32, #tpu.memory_space<vmem>>, %arg5: memref<128x4xf32, #tpu.memory_space<vmem>>, %arg6: memref<1x1x4xf32, #tpu.memory_space<vmem>>, %arg7: memref<1x1x4xf32, #tpu.memory_space<vmem>>) attributes {dimension_semantics = [#tpu.dimension_semantics<parallel>], iteration_bounds = array<i64: 4>, scalar_prefetch = 0 : i64, scratch_operands = 0 : i64, tpu.core_type = #tpu.core_type<tc>, window_params = [{transform_indices = @transform_0, window_bounds = array<i64: 128, 16>}, {pipeline_mode = #tpu.pipeline_mode<synchronous>, transform_indices = @transform_1, window_bounds = array<i64: 1, 16>}, {pipeline_mode = #tpu.pipeline_mode<synchronous>, transform_indices = @transform_2, window_bounds = array<i64: 1, 16>}, {pipeline_mode = #tpu.pipeline_mode<synchronous>, transform_indices = @transform_3, window_bounds = array<i64: 16, 4>}, {transform_indices = @transform_4, window_bounds = array<i64: 128, 4>}, {transform_indices = @transform_5, window_bounds = array<i64: 1, 1, 4>}, {transform_indices = @transform_6, window_bounds = array<i64: 1, 1, 4>}]} {
    %c0 = arith.constant 0 : index
    %c0_0 = arith.constant 0 : index
    %0 = vector.load %arg1[%c0, %c0_0] : memref<128x16xf32, #tpu.memory_space<vmem>>, vector<128x16xf32>
    %c0_1 = arith.constant 0 : index
    %c0_2 = arith.constant 0 : index
    %1 = vector.load %arg4[%c0_1, %c0_2] : memref<16x4xf32, #tpu.memory_space<vmem>>, vector<16x4xf32>
    %cst = arith.constant dense<0.000000e+00> : vector<128x4xf32>
    %2 = tpu.matmul %0, %1, %cst {dimension_numbers = #tpu.dot_dimension_numbers<[1], [0], [0], [1], [0, 0, 1, 1], [], []>} : vector<128x16xf32>, vector<16x4xf32>, vector<128x4xf32> -> vector<128x4xf32>
    %c0_3 = arith.constant 0 : index
    %c0_4 = arith.constant 0 : index
    %3 = vector.load %arg5[%c0_3, %c0_4] : memref<128x4xf32, #tpu.memory_space<vmem>>, vector<128x4xf32>
    tpu.vector_store %arg5[%c0_3, %c0_4], %2 {strides = array<i32>} : memref<128x4xf32, #tpu.memory_space<vmem>>, vector<128x4xf32>,
    %cst_5 = arith.constant dense<0.000000e+00> : vector<4xf32>
    %4 = vector.multi_reduction <add>, %2, %cst_5 [0] : vector<128x4xf32> to vector<4xf32>
    %5 = vector.shape_cast %4 : vector<4xf32> to vector<1x4xf32>
    %6 = vector.shape_cast %5 : vector<1x4xf32> to vector<1x1x4xf32>
    %c0_6 = arith.constant 0 : index
    %c0_7 = arith.constant 0 : index
    %c0_8 = arith.constant 0 : index
    %7 = vector.load %arg6[%c0_6, %c0_7, %c0_8] : memref<1x1x4xf32, #tpu.memory_space<vmem>>, vector<1x1x4xf32>
    tpu.vector_store %arg6[%c0_6, %c0_7, %c0_8], %6 {strides = array<i32>} : memref<1x1x4xf32, #tpu.memory_space<vmem>>, vector<1x1x4xf32>,
    %8 = arith.mulf %2, %2 : vector<128x4xf32>
    %cst_9 = arith.constant dense<0.000000e+00> : vector<4xf32>
    %9 = vector.multi_reduction <add>, %8, %cst_9 [0] : vector<128x4xf32> to vector<4xf32>
    %10 = vector.shape_cast %9 : vector<4xf32> to vector<1x4xf32>
    %11 = vector.shape_cast %10 : vector<1x4xf32> to vector<1x1x4xf32>
    %c0_10 = arith.constant 0 : index
    %c0_11 = arith.constant 0 : index
    %c0_12 = arith.constant 0 : index
    %12 = vector.load %arg7[%c0_10, %c0_11, %c0_12] : memref<1x1x4xf32, #tpu.memory_space<vmem>>, vector<1x1x4xf32>
    tpu.vector_store %arg7[%c0_10, %c0_11, %c0_12], %11 {strides = array<i32>} : memref<1x1x4xf32, #tpu.memory_space<vmem>>, vector<1x1x4xf32>,
    return
  }
  func.func @transform_0(%arg0: i32) -> (i32, i32) {
    %c0_i32 = arith.constant 0 : i32
    %c0_i32_0 = arith.constant 0 : i32
    return %arg0, %c0_i32 : i32, i32
  }
  func.func @transform_1(%arg0: i32) -> (i32, i32) {
    %c0_i32 = arith.constant 0 : i32
    %c0_i32_0 = arith.constant 0 : i32
    %c0_i32_1 = arith.constant 0 : i32
    return %c0_i32, %c0_i32_0 : i32, i32
  }
  func.func @transform_2(%arg0: i32) -> (i32, i32) {
    %c0_i32 = arith.constant 0 : i32
    %c0_i32_0 = arith.constant 0 : i32
    %c0_i32_1 = arith.constant 0 : i32
    return %c0_i32, %c0_i32_0 : i32, i32
  }
  func.func @transform_3(%arg0: i32) -> (i32, i32) {
    %c0_i32 = arith.constant 0 : i32
    %c0_i32_0 = arith.constant 0 : i32
    %c0_i32_1 = arith.constant 0 : i32
    return %c0_i32, %c0_i32_0 : i32, i32
  }
  func.func @transform_4(%arg0: i32) -> (i32, i32) {
    %c0_i32 = arith.constant 0 : i32
    %c0_i32_0 = arith.constant 0 : i32
    return %arg0, %c0_i32 : i32, i32
  }
  func.func @transform_5(%arg0: i32) -> (i32, i32, i32) {
    %c0_i32 = arith.constant 0 : i32
    %c0_i32_0 = arith.constant 0 : i32
    %c0_i32_1 = arith.constant 0 : i32
    return %arg0, %c0_i32, %c0_i32_0 : i32, i32, i32
  }
  func.func @transform_6(%arg0: i32) -> (i32, i32, i32) {
    %c0_i32 = arith.constant 0 : i32
    %c0_i32_0 = arith.constant 0 : i32
    %c0_i32_1 = arith.constant 0 : i32
    return %arg0, %c0_i32, %c0_i32_0 : i32, i32, i32
  }
}

module attributes {stable_mosaic.version = 11 : i64} {
  func.func @_conv3x3_kernel(%arg0: i32, %arg1: memref<256x4xf32, #tpu.memory_space<vmem>>, %arg2: memref<1x4xf32, #tpu.memory_space<vmem>>, %arg3: memref<1x4xf32, #tpu.memory_space<vmem>>, %arg4: memref<9x4x4xf32, #tpu.memory_space<vmem>>, %arg5: memref<256x1xi32, #tpu.memory_space<vmem>>, %arg6: memref<256x4xf32, #tpu.memory_space<vmem>>, %arg7: memref<1x1x4xf32, #tpu.memory_space<vmem>>, %arg8: memref<1x1x4xf32, #tpu.memory_space<vmem>>, %arg9: memref<304x4xf32, #tpu.memory_space<vmem>>, %arg10: memref<256x4xf32, #tpu.memory_space<vmem>>) attributes {dimension_semantics = [#tpu.dimension_semantics<parallel>], iteration_bounds = array<i64: 2>, scalar_prefetch = 0 : i64, scratch_operands = 2 : i64, tpu.core_type = #tpu.core_type<tc>, window_params = [{transform_indices = @transform_0, window_bounds = array<i64: 256, 4>}, {pipeline_mode = #tpu.pipeline_mode<synchronous>, transform_indices = @transform_1, window_bounds = array<i64: 1, 4>}, {pipeline_mode = #tpu.pipeline_mode<synchronous>, transform_indices = @transform_2, window_bounds = array<i64: 1, 4>}, {pipeline_mode = #tpu.pipeline_mode<synchronous>, transform_indices = @transform_3, window_bounds = array<i64: 9, 4, 4>}, {pipeline_mode = #tpu.pipeline_mode<synchronous>, transform_indices = @transform_4, window_bounds = array<i64: 256, 1>}, {transform_indices = @transform_5, window_bounds = array<i64: 256, 4>}, {transform_indices = @transform_6, window_bounds = array<i64: 1, 1, 4>}, {transform_indices = @transform_7, window_bounds = array<i64: 1, 1, 4>}]} {
    %c0 = arith.constant 0 : index
    %c0_0 = arith.constant 0 : index
    %0 = vector.load %arg1[%c0, %c0_0] : memref<256x4xf32, #tpu.memory_space<vmem>>, vector<256x4xf32>
    %c0_1 = arith.constant 0 : index
    %c0_2 = arith.constant 0 : index
    %1 = vector.load %arg2[%c0_1, %c0_2] : memref<1x4xf32, #tpu.memory_space<vmem>>, vector<1x4xf32>
    %2 = vector.broadcast %1 : vector<1x4xf32> to vector<256x4xf32>
    %3 = arith.mulf %0, %2 : vector<256x4xf32>
    %c0_3 = arith.constant 0 : index
    %c0_4 = arith.constant 0 : index
    %4 = vector.load %arg3[%c0_3, %c0_4] : memref<1x4xf32, #tpu.memory_space<vmem>>, vector<1x4xf32>
    %5 = vector.broadcast %4 : vector<1x4xf32> to vector<256x4xf32>
    %6 = arith.addf %3, %5 : vector<256x4xf32>
    %cst = arith.constant 0.000000e+00 : f32
    %7 = vector.broadcast %cst : f32 to vector<256x4xf32>
    %8 = arith.maximumf %6, %7 : vector<256x4xf32>
    %cst_5 = arith.constant 0.000000e+00 : f32
    %9 = vector.broadcast %cst_5 : f32 to vector<24x4xf32>
    %c0_6 = arith.constant 0 : index
    %c0_7 = arith.constant 0 : index
    %10 = vector.load %arg9[%c0_6, %c0_7] : memref<304x4xf32, #tpu.memory_space<vmem>>, vector<24x4xf32>
    tpu.vector_store %arg9[%c0_6, %c0_7], %9 {strides = array<i32>} : memref<304x4xf32, #tpu.memory_space<vmem>>, vector<24x4xf32>,
    %cst_8 = arith.constant 0.000000e+00 : f32
    %11 = vector.broadcast %cst_8 : f32 to vector<24x4xf32>
    %c280 = arith.constant 280 : index
    %c0_9 = arith.constant 0 : index
    %12 = vector.load %arg9[%c280, %c0_9] : memref<304x4xf32, #tpu.memory_space<vmem>>, vector<24x4xf32>
    tpu.vector_store %arg9[%c280, %c0_9], %11 {strides = array<i32>} : memref<304x4xf32, #tpu.memory_space<vmem>>, vector<24x4xf32>,
    %c24 = arith.constant 24 : index
    %c0_10 = arith.constant 0 : index
    %13 = vector.load %arg9[%c24, %c0_10] : memref<304x4xf32, #tpu.memory_space<vmem>>, vector<256x4xf32>
    tpu.vector_store %arg9[%c24, %c0_10], %8 {strides = array<i32>} : memref<304x4xf32, #tpu.memory_space<vmem>>, vector<256x4xf32>,
    %c0_11 = arith.constant 0 : index
    %c0_12 = arith.constant 0 : index
    %14 = vector.load %arg5[%c0_11, %c0_12] : memref<256x1xi32, #tpu.memory_space<vmem>>, vector<256x1xi32>
    %c1_i32 = arith.constant 1 : i32
    %15 = vector.broadcast %c1_i32 : i32 to vector<256x1xi32>
    %16 = arith.cmpi sge, %14, %15 : vector<256x1xi32>
    %17 = arith.extui %16 : vector<256x1xi1> to vector<256x1xi32>
    %18 = arith.sitofp %17 : vector<256x1xi32> to vector<256x1xf32>
    %c14_i32 = arith.constant 14 : i32
    %19 = vector.broadcast %c14_i32 : i32 to vector<256x1xi32>
    %20 = arith.cmpi sle, %14, %19 : vector<256x1xi32>
    %21 = arith.extui %20 : vector<256x1xi1> to vector<256x1xi32>
    %22 = arith.sitofp %21 : vector<256x1xi32> to vector<256x1xf32>
    %cst_13 = arith.constant 0.000000e+00 : f32
    %23 = vector.broadcast %cst_13 : f32 to vector<256x4xf32>
    %c0_14 = arith.constant 0 : index
    %c0_15 = arith.constant 0 : index
    %24 = vector.load %arg10[%c0_14, %c0_15] : memref<256x4xf32, #tpu.memory_space<vmem>>, vector<256x4xf32>
    tpu.vector_store %arg10[%c0_14, %c0_15], %23 {strides = array<i32>} : memref<256x4xf32, #tpu.memory_space<vmem>>, vector<256x4xf32>,
    %c7 = arith.constant 7 : index
    %c0_16 = arith.constant 0 : index
    %25 = vector.load %arg9[%c7, %c0_16] : memref<304x4xf32, #tpu.memory_space<vmem>>, vector<256x4xf32>
    %26 = vector.broadcast %18 : vector<256x1xf32> to vector<256x4xf32>
    %27 = arith.mulf %25, %26 : vector<256x4xf32>
    %c0_17 = arith.constant 0 : index
    %c0_18 = arith.constant 0 : index
    %28 = vector.load %arg10[%c0_17, %c0_18] : memref<256x4xf32, #tpu.memory_space<vmem>>, vector<256x4xf32>
    %c0_19 = arith.constant 0 : index
    %c0_20 = arith.constant 0 : index
    %c0_21 = arith.constant 0 : index
    %29 = vector.load %arg4[%c0_19, %c0_20, %c0_21] : memref<9x4x4xf32, #tpu.memory_space<vmem>>, vector<1x4x4xf32>
    %30 = vector.shape_cast %29 : vector<1x4x4xf32> to vector<4x4xf32>
    %cst_22 = arith.constant dense<0.000000e+00> : vector<256x4xf32>
    %31 = tpu.matmul %27, %30, %cst_22 {dimension_numbers = #tpu.dot_dimension_numbers<[1], [0], [0], [1], [0, 0, 1, 1], [], []>} : vector<256x4xf32>, vector<4x4xf32>, vector<256x4xf32> -> vector<256x4xf32>
    %32 = arith.addf %28, %31 : vector<256x4xf32>
    %c0_23 = arith.constant 0 : index
    %c0_24 = arith.constant 0 : index
    %33 = vector.load %arg10[%c0_23, %c0_24] : memref<256x4xf32, #tpu.memory_space<vmem>>, vector<256x4xf32>
    tpu.vector_store %arg10[%c0_23, %c0_24], %32 {strides = array<i32>} : memref<256x4xf32, #tpu.memory_space<vmem>>, vector<256x4xf32>,
    %c8 = arith.constant 8 : index
    %c0_25 = arith.constant 0 : index
    %34 = vector.load %arg9[%c8, %c0_25] : memref<304x4xf32, #tpu.memory_space<vmem>>, vector<256x4xf32>
    %c0_26 = arith.constant 0 : index
    %c0_27 = arith.constant 0 : index
    %35 = vector.load %arg10[%c0_26, %c0_27] : memref<256x4xf32, #tpu.memory_space<vmem>>, vector<256x4xf32>
    %c1 = arith.constant 1 : index
    %c0_28 = arith.constant 0 : index
    %c0_29 = arith.constant 0 : index
    %36 = vector.load %arg4[%c1, %c0_28, %c0_29] : memref<9x4x4xf32, #tpu.memory_space<vmem>>, vector<1x4x4xf32>
    %37 = vector.shape_cast %36 : vector<1x4x4xf32> to vector<4x4xf32>
    %cst_30 = arith.constant dense<0.000000e+00> : vector<256x4xf32>
    %38 = tpu.matmul %34, %37, %cst_30 {dimension_numbers = #tpu.dot_dimension_numbers<[1], [0], [0], [1], [0, 0, 1, 1], [], []>} : vector<256x4xf32>, vector<4x4xf32>, vector<256x4xf32> -> vector<256x4xf32>
    %39 = arith.addf %35, %38 : vector<256x4xf32>
    %c0_31 = arith.constant 0 : index
    %c0_32 = arith.constant 0 : index
    %40 = vector.load %arg10[%c0_31, %c0_32] : memref<256x4xf32, #tpu.memory_space<vmem>>, vector<256x4xf32>
    tpu.vector_store %arg10[%c0_31, %c0_32], %39 {strides = array<i32>} : memref<256x4xf32, #tpu.memory_space<vmem>>, vector<256x4xf32>,
    %c9 = arith.constant 9 : index
    %c0_33 = arith.constant 0 : index
    %41 = vector.load %arg9[%c9, %c0_33] : memref<304x4xf32, #tpu.memory_space<vmem>>, vector<256x4xf32>
    %42 = vector.broadcast %22 : vector<256x1xf32> to vector<256x4xf32>
    %43 = arith.mulf %41, %42 : vector<256x4xf32>
    %c0_34 = arith.constant 0 : index
    %c0_35 = arith.constant 0 : index
    %44 = vector.load %arg10[%c0_34, %c0_35] : memref<256x4xf32, #tpu.memory_space<vmem>>, vector<256x4xf32>
    %c2 = arith.constant 2 : index
    %c0_36 = arith.constant 0 : index
    %c0_37 = arith.constant 0 : index
    %45 = vector.load %arg4[%c2, %c0_36, %c0_37] : memref<9x4x4xf32, #tpu.memory_space<vmem>>, vector<1x4x4xf32>
    %46 = vector.shape_cast %45 : vector<1x4x4xf32> to vector<4x4xf32>
    %cst_38 = arith.constant dense<0.000000e+00> : vector<256x4xf32>
    %47 = tpu.matmul %43, %46, %cst_38 {dimension_numbers = #tpu.dot_dimension_numbers<[1], [0], [0], [1], [0, 0, 1, 1], [], []>} : vector<256x4xf32>, vector<4x4xf32>, vector<256x4xf32> -> vector<256x4xf32>
    %48 = arith.addf %44, %47 : vector<256x4xf32>
    %c0_39 = arith.constant 0 : index
    %c0_40 = arith.constant 0 : index
    %49 = vector.load %arg10[%c0_39, %c0_40] : memref<256x4xf32, #tpu.memory_space<vmem>>, vector<256x4xf32>
    tpu.vector_store %arg10[%c0_39, %c0_40], %48 {strides = array<i32>} : memref<256x4xf32, #tpu.memory_space<vmem>>, vector<256x4xf32>,
    %c23 = arith.constant 23 : index
    %c0_41 = arith.constant 0 : index
    %50 = vector.load %arg9[%c23, %c0_41] : memref<304x4xf32, #tpu.memory_space<vmem>>, vector<256x4xf32>
    %51 = vector.broadcast %18 : vector<256x1xf32> to vector<256x4xf32>
    %52 = arith.mulf %50, %51 : vector<256x4xf32>
    %c0_42 = arith.constant 0 : index
    %c0_43 = arith.constant 0 : index
    %53 = vector.load %arg10[%c0_42, %c0_43] : memref<256x4xf32, #tpu.memory_space<vmem>>, vector<256x4xf32>
    %c3 = arith.constant 3 : index
    %c0_44 = arith.constant 0 : index
    %c0_45 = arith.constant 0 : index
    %54 = vector.load %arg4[%c3, %c0_44, %c0_45] : memref<9x4x4xf32, #tpu.memory_space<vmem>>, vector<1x4x4xf32>
    %55 = vector.shape_cast %54 : vector<1x4x4xf32> to vector<4x4xf32>
    %cst_46 = arith.constant dense<0.000000e+00> : vector<256x4xf32>
    %56 = tpu.matmul %52, %55, %cst_46 {dimension_numbers = #tpu.dot_dimension_numbers<[1], [0], [0], [1], [0, 0, 1, 1], [], []>} : vector<256x4xf32>, vector<4x4xf32>, vector<256x4xf32> -> vector<256x4xf32>
    %57 = arith.addf %53, %56 : vector<256x4xf32>
    %c0_47 = arith.constant 0 : index
    %c0_48 = arith.constant 0 : index
    %58 = vector.load %arg10[%c0_47, %c0_48] : memref<256x4xf32, #tpu.memory_space<vmem>>, vector<256x4xf32>
    tpu.vector_store %arg10[%c0_47, %c0_48], %57 {strides = array<i32>} : memref<256x4xf32, #tpu.memory_space<vmem>>, vector<256x4xf32>,
    %c24_49 = arith.constant 24 : index
    %c0_50 = arith.constant 0 : index
    %59 = vector.load %arg9[%c24_49, %c0_50] : memref<304x4xf32, #tpu.memory_space<vmem>>, vector<256x4xf32>
    %c0_51 = arith.constant 0 : index
    %c0_52 = arith.constant 0 : index
    %60 = vector.load %arg10[%c0_51, %c0_52] : memref<256x4xf32, #tpu.memory_space<vmem>>, vector<256x4xf32>
    %c4 = arith.constant 4 : index
    %c0_53 = arith.constant 0 : index
    %c0_54 = arith.constant 0 : index
    %61 = vector.load %arg4[%c4, %c0_53, %c0_54] : memref<9x4x4xf32, #tpu.memory_space<vmem>>, vector<1x4x4xf32>
    %62 = vector.shape_cast %61 : vector<1x4x4xf32> to vector<4x4xf32>
    %cst_55 = arith.constant dense<0.000000e+00> : vector<256x4xf32>
    %63 = tpu.matmul %59, %62, %cst_55 {dimension_numbers = #tpu.dot_dimension_numbers<[1], [0], [0], [1], [0, 0, 1, 1], [], []>} : vector<256x4xf32>, vector<4x4xf32>, vector<256x4xf32> -> vector<256x4xf32>
    %64 = arith.addf %60, %63 : vector<256x4xf32>
    %c0_56 = arith.constant 0 : index
    %c0_57 = arith.constant 0 : index
    %65 = vector.load %arg10[%c0_56, %c0_57] : memref<256x4xf32, #tpu.memory_space<vmem>>, vector<256x4xf32>
    tpu.vector_store %arg10[%c0_56, %c0_57], %64 {strides = array<i32>} : memref<256x4xf32, #tpu.memory_space<vmem>>, vector<256x4xf32>,
    %c25 = arith.constant 25 : index
    %c0_58 = arith.constant 0 : index
    %66 = vector.load %arg9[%c25, %c0_58] : memref<304x4xf32, #tpu.memory_space<vmem>>, vector<256x4xf32>
    %67 = vector.broadcast %22 : vector<256x1xf32> to vector<256x4xf32>
    %68 = arith.mulf %66, %67 : vector<256x4xf32>
    %c0_59 = arith.constant 0 : index
    %c0_60 = arith.constant 0 : index
    %69 = vector.load %arg10[%c0_59, %c0_60] : memref<256x4xf32, #tpu.memory_space<vmem>>, vector<256x4xf32>
    %c5 = arith.constant 5 : index
    %c0_61 = arith.constant 0 : index
    %c0_62 = arith.constant 0 : index
    %70 = vector.load %arg4[%c5, %c0_61, %c0_62] : memref<9x4x4xf32, #tpu.memory_space<vmem>>, vector<1x4x4xf32>
    %71 = vector.shape_cast %70 : vector<1x4x4xf32> to vector<4x4xf32>
    %cst_63 = arith.constant dense<0.000000e+00> : vector<256x4xf32>
    %72 = tpu.matmul %68, %71, %cst_63 {dimension_numbers = #tpu.dot_dimension_numbers<[1], [0], [0], [1], [0, 0, 1, 1], [], []>} : vector<256x4xf32>, vector<4x4xf32>, vector<256x4xf32> -> vector<256x4xf32>
    %73 = arith.addf %69, %72 : vector<256x4xf32>
    %c0_64 = arith.constant 0 : index
    %c0_65 = arith.constant 0 : index
    %74 = vector.load %arg10[%c0_64, %c0_65] : memref<256x4xf32, #tpu.memory_space<vmem>>, vector<256x4xf32>
    tpu.vector_store %arg10[%c0_64, %c0_65], %73 {strides = array<i32>} : memref<256x4xf32, #tpu.memory_space<vmem>>, vector<256x4xf32>,
    %c39 = arith.constant 39 : index
    %c0_66 = arith.constant 0 : index
    %75 = vector.load %arg9[%c39, %c0_66] : memref<304x4xf32, #tpu.memory_space<vmem>>, vector<256x4xf32>
    %76 = vector.broadcast %18 : vector<256x1xf32> to vector<256x4xf32>
    %77 = arith.mulf %75, %76 : vector<256x4xf32>
    %c0_67 = arith.constant 0 : index
    %c0_68 = arith.constant 0 : index
    %78 = vector.load %arg10[%c0_67, %c0_68] : memref<256x4xf32, #tpu.memory_space<vmem>>, vector<256x4xf32>
    %c6 = arith.constant 6 : index
    %c0_69 = arith.constant 0 : index
    %c0_70 = arith.constant 0 : index
    %79 = vector.load %arg4[%c6, %c0_69, %c0_70] : memref<9x4x4xf32, #tpu.memory_space<vmem>>, vector<1x4x4xf32>
    %80 = vector.shape_cast %79 : vector<1x4x4xf32> to vector<4x4xf32>
    %cst_71 = arith.constant dense<0.000000e+00> : vector<256x4xf32>
    %81 = tpu.matmul %77, %80, %cst_71 {dimension_numbers = #tpu.dot_dimension_numbers<[1], [0], [0], [1], [0, 0, 1, 1], [], []>} : vector<256x4xf32>, vector<4x4xf32>, vector<256x4xf32> -> vector<256x4xf32>
    %82 = arith.addf %78, %81 : vector<256x4xf32>
    %c0_72 = arith.constant 0 : index
    %c0_73 = arith.constant 0 : index
    %83 = vector.load %arg10[%c0_72, %c0_73] : memref<256x4xf32, #tpu.memory_space<vmem>>, vector<256x4xf32>
    tpu.vector_store %arg10[%c0_72, %c0_73], %82 {strides = array<i32>} : memref<256x4xf32, #tpu.memory_space<vmem>>, vector<256x4xf32>,
    %c40 = arith.constant 40 : index
    %c0_74 = arith.constant 0 : index
    %84 = vector.load %arg9[%c40, %c0_74] : memref<304x4xf32, #tpu.memory_space<vmem>>, vector<256x4xf32>
    %c0_75 = arith.constant 0 : index
    %c0_76 = arith.constant 0 : index
    %85 = vector.load %arg10[%c0_75, %c0_76] : memref<256x4xf32, #tpu.memory_space<vmem>>, vector<256x4xf32>
    %c7_77 = arith.constant 7 : index
    %c0_78 = arith.constant 0 : index
    %c0_79 = arith.constant 0 : index
    %86 = vector.load %arg4[%c7_77, %c0_78, %c0_79] : memref<9x4x4xf32, #tpu.memory_space<vmem>>, vector<1x4x4xf32>
    %87 = vector.shape_cast %86 : vector<1x4x4xf32> to vector<4x4xf32>
    %cst_80 = arith.constant dense<0.000000e+00> : vector<256x4xf32>
    %88 = tpu.matmul %84, %87, %cst_80 {dimension_numbers = #tpu.dot_dimension_numbers<[1], [0], [0], [1], [0, 0, 1, 1], [], []>} : vector<256x4xf32>, vector<4x4xf32>, vector<256x4xf32> -> vector<256x4xf32>
    %89 = arith.addf %85, %88 : vector<256x4xf32>
    %c0_81 = arith.constant 0 : index
    %c0_82 = arith.constant 0 : index
    %90 = vector.load %arg10[%c0_81, %c0_82] : memref<256x4xf32, #tpu.memory_space<vmem>>, vector<256x4xf32>
    tpu.vector_store %arg10[%c0_81, %c0_82], %89 {strides = array<i32>} : memref<256x4xf32, #tpu.memory_space<vmem>>, vector<256x4xf32>,
    %c41 = arith.constant 41 : index
    %c0_83 = arith.constant 0 : index
    %91 = vector.load %arg9[%c41, %c0_83] : memref<304x4xf32, #tpu.memory_space<vmem>>, vector<256x4xf32>
    %92 = vector.broadcast %22 : vector<256x1xf32> to vector<256x4xf32>
    %93 = arith.mulf %91, %92 : vector<256x4xf32>
    %c0_84 = arith.constant 0 : index
    %c0_85 = arith.constant 0 : index
    %94 = vector.load %arg10[%c0_84, %c0_85] : memref<256x4xf32, #tpu.memory_space<vmem>>, vector<256x4xf32>
    %c8_86 = arith.constant 8 : index
    %c0_87 = arith.constant 0 : index
    %c0_88 = arith.constant 0 : index
    %95 = vector.load %arg4[%c8_86, %c0_87, %c0_88] : memref<9x4x4xf32, #tpu.memory_space<vmem>>, vector<1x4x4xf32>
    %96 = vector.shape_cast %95 : vector<1x4x4xf32> to vector<4x4xf32>
    %cst_89 = arith.constant dense<0.000000e+00> : vector<256x4xf32>
    %97 = tpu.matmul %93, %96, %cst_89 {dimension_numbers = #tpu.dot_dimension_numbers<[1], [0], [0], [1], [0, 0, 1, 1], [], []>} : vector<256x4xf32>, vector<4x4xf32>, vector<256x4xf32> -> vector<256x4xf32>
    %98 = arith.addf %94, %97 : vector<256x4xf32>
    %c0_90 = arith.constant 0 : index
    %c0_91 = arith.constant 0 : index
    %99 = vector.load %arg10[%c0_90, %c0_91] : memref<256x4xf32, #tpu.memory_space<vmem>>, vector<256x4xf32>
    tpu.vector_store %arg10[%c0_90, %c0_91], %98 {strides = array<i32>} : memref<256x4xf32, #tpu.memory_space<vmem>>, vector<256x4xf32>,
    %c0_92 = arith.constant 0 : index
    %c0_93 = arith.constant 0 : index
    %100 = vector.load %arg10[%c0_92, %c0_93] : memref<256x4xf32, #tpu.memory_space<vmem>>, vector<256x4xf32>
    %c0_94 = arith.constant 0 : index
    %c0_95 = arith.constant 0 : index
    %101 = vector.load %arg6[%c0_94, %c0_95] : memref<256x4xf32, #tpu.memory_space<vmem>>, vector<256x4xf32>
    tpu.vector_store %arg6[%c0_94, %c0_95], %100 {strides = array<i32>} : memref<256x4xf32, #tpu.memory_space<vmem>>, vector<256x4xf32>,
    %cst_96 = arith.constant dense<0.000000e+00> : vector<4xf32>
    %102 = vector.multi_reduction <add>, %100, %cst_96 [0] : vector<256x4xf32> to vector<4xf32>
    %103 = vector.shape_cast %102 : vector<4xf32> to vector<1x4xf32>
    %104 = vector.shape_cast %103 : vector<1x4xf32> to vector<1x1x4xf32>
    %c0_97 = arith.constant 0 : index
    %c0_98 = arith.constant 0 : index
    %c0_99 = arith.constant 0 : index
    %105 = vector.load %arg7[%c0_97, %c0_98, %c0_99] : memref<1x1x4xf32, #tpu.memory_space<vmem>>, vector<1x1x4xf32>
    tpu.vector_store %arg7[%c0_97, %c0_98, %c0_99], %104 {strides = array<i32>} : memref<1x1x4xf32, #tpu.memory_space<vmem>>, vector<1x1x4xf32>,
    %106 = arith.mulf %100, %100 : vector<256x4xf32>
    %cst_100 = arith.constant dense<0.000000e+00> : vector<4xf32>
    %107 = vector.multi_reduction <add>, %106, %cst_100 [0] : vector<256x4xf32> to vector<4xf32>
    %108 = vector.shape_cast %107 : vector<4xf32> to vector<1x4xf32>
    %109 = vector.shape_cast %108 : vector<1x4xf32> to vector<1x1x4xf32>
    %c0_101 = arith.constant 0 : index
    %c0_102 = arith.constant 0 : index
    %c0_103 = arith.constant 0 : index
    %110 = vector.load %arg8[%c0_101, %c0_102, %c0_103] : memref<1x1x4xf32, #tpu.memory_space<vmem>>, vector<1x1x4xf32>
    tpu.vector_store %arg8[%c0_101, %c0_102, %c0_103], %109 {strides = array<i32>} : memref<1x1x4xf32, #tpu.memory_space<vmem>>, vector<1x1x4xf32>,
    return
  }
  func.func @transform_0(%arg0: i32) -> (i32, i32) {
    %c0_i32 = arith.constant 0 : i32
    %c0_i32_0 = arith.constant 0 : i32
    return %arg0, %c0_i32 : i32, i32
  }
  func.func @transform_1(%arg0: i32) -> (i32, i32) {
    %c0_i32 = arith.constant 0 : i32
    %c0_i32_0 = arith.constant 0 : i32
    %c0_i32_1 = arith.constant 0 : i32
    return %c0_i32, %c0_i32_0 : i32, i32
  }
  func.func @transform_2(%arg0: i32) -> (i32, i32) {
    %c0_i32 = arith.constant 0 : i32
    %c0_i32_0 = arith.constant 0 : i32
    %c0_i32_1 = arith.constant 0 : i32
    return %c0_i32, %c0_i32_0 : i32, i32
  }
  func.func @transform_3(%arg0: i32) -> (i32, i32, i32) {
    %c0_i32 = arith.constant 0 : i32
    %c0_i32_0 = arith.constant 0 : i32
    %c0_i32_1 = arith.constant 0 : i32
    %c0_i32_2 = arith.constant 0 : i32
    return %c0_i32, %c0_i32_0, %c0_i32_1 : i32, i32, i32
  }
  func.func @transform_4(%arg0: i32) -> (i32, i32) {
    %c0_i32 = arith.constant 0 : i32
    %c0_i32_0 = arith.constant 0 : i32
    %c0_i32_1 = arith.constant 0 : i32
    return %c0_i32, %c0_i32_0 : i32, i32
  }
  func.func @transform_5(%arg0: i32) -> (i32, i32) {
    %c0_i32 = arith.constant 0 : i32
    %c0_i32_0 = arith.constant 0 : i32
    return %arg0, %c0_i32 : i32, i32
  }
  func.func @transform_6(%arg0: i32) -> (i32, i32, i32) {
    %c0_i32 = arith.constant 0 : i32
    %c0_i32_0 = arith.constant 0 : i32
    %c0_i32_1 = arith.constant 0 : i32
    return %arg0, %c0_i32, %c0_i32_0 : i32, i32, i32
  }
  func.func @transform_7(%arg0: i32) -> (i32, i32, i32) {
    %c0_i32 = arith.constant 0 : i32
    %c0_i32_0 = arith.constant 0 : i32
    %c0_i32_1 = arith.constant 0 : i32
    return %arg0, %c0_i32, %c0_i32_0 : i32, i32, i32
  }
}

module attributes {stable_mosaic.version = 11 : i64} {
  func.func @_mm_bn_stats_kernel(%arg0: i32, %arg1: memref<128x4xf32, #tpu.memory_space<vmem>>, %arg2: memref<1x4xf32, #tpu.memory_space<vmem>>, %arg3: memref<1x4xf32, #tpu.memory_space<vmem>>, %arg4: memref<4x16xf32, #tpu.memory_space<vmem>>, %arg5: memref<128x16xf32, #tpu.memory_space<vmem>>, %arg6: memref<1x1x16xf32, #tpu.memory_space<vmem>>, %arg7: memref<1x1x16xf32, #tpu.memory_space<vmem>>) attributes {dimension_semantics = [#tpu.dimension_semantics<parallel>], iteration_bounds = array<i64: 4>, scalar_prefetch = 0 : i64, scratch_operands = 0 : i64, tpu.core_type = #tpu.core_type<tc>, window_params = [{transform_indices = @transform_0, window_bounds = array<i64: 128, 4>}, {pipeline_mode = #tpu.pipeline_mode<synchronous>, transform_indices = @transform_1, window_bounds = array<i64: 1, 4>}, {pipeline_mode = #tpu.pipeline_mode<synchronous>, transform_indices = @transform_2, window_bounds = array<i64: 1, 4>}, {pipeline_mode = #tpu.pipeline_mode<synchronous>, transform_indices = @transform_3, window_bounds = array<i64: 4, 16>}, {transform_indices = @transform_4, window_bounds = array<i64: 128, 16>}, {transform_indices = @transform_5, window_bounds = array<i64: 1, 1, 16>}, {transform_indices = @transform_6, window_bounds = array<i64: 1, 1, 16>}]} {
    %c0 = arith.constant 0 : index
    %c0_0 = arith.constant 0 : index
    %0 = vector.load %arg1[%c0, %c0_0] : memref<128x4xf32, #tpu.memory_space<vmem>>, vector<128x4xf32>
    %c0_1 = arith.constant 0 : index
    %c0_2 = arith.constant 0 : index
    %1 = vector.load %arg2[%c0_1, %c0_2] : memref<1x4xf32, #tpu.memory_space<vmem>>, vector<1x4xf32>
    %2 = vector.broadcast %1 : vector<1x4xf32> to vector<128x4xf32>
    %3 = arith.mulf %0, %2 : vector<128x4xf32>
    %c0_3 = arith.constant 0 : index
    %c0_4 = arith.constant 0 : index
    %4 = vector.load %arg3[%c0_3, %c0_4] : memref<1x4xf32, #tpu.memory_space<vmem>>, vector<1x4xf32>
    %5 = vector.broadcast %4 : vector<1x4xf32> to vector<128x4xf32>
    %6 = arith.addf %3, %5 : vector<128x4xf32>
    %cst = arith.constant 0.000000e+00 : f32
    %7 = vector.broadcast %cst : f32 to vector<128x4xf32>
    %8 = arith.maximumf %6, %7 : vector<128x4xf32>
    %c0_5 = arith.constant 0 : index
    %c0_6 = arith.constant 0 : index
    %9 = vector.load %arg4[%c0_5, %c0_6] : memref<4x16xf32, #tpu.memory_space<vmem>>, vector<4x16xf32>
    %cst_7 = arith.constant dense<0.000000e+00> : vector<128x16xf32>
    %10 = tpu.matmul %8, %9, %cst_7 {dimension_numbers = #tpu.dot_dimension_numbers<[1], [0], [0], [1], [0, 0, 1, 1], [], []>} : vector<128x4xf32>, vector<4x16xf32>, vector<128x16xf32> -> vector<128x16xf32>
    %c0_8 = arith.constant 0 : index
    %c0_9 = arith.constant 0 : index
    %11 = vector.load %arg5[%c0_8, %c0_9] : memref<128x16xf32, #tpu.memory_space<vmem>>, vector<128x16xf32>
    tpu.vector_store %arg5[%c0_8, %c0_9], %10 {strides = array<i32>} : memref<128x16xf32, #tpu.memory_space<vmem>>, vector<128x16xf32>,
    %cst_10 = arith.constant dense<0.000000e+00> : vector<16xf32>
    %12 = vector.multi_reduction <add>, %10, %cst_10 [0] : vector<128x16xf32> to vector<16xf32>
    %13 = vector.shape_cast %12 : vector<16xf32> to vector<1x16xf32>
    %14 = vector.shape_cast %13 : vector<1x16xf32> to vector<1x1x16xf32>
    %c0_11 = arith.constant 0 : index
    %c0_12 = arith.constant 0 : index
    %c0_13 = arith.constant 0 : index
    %15 = vector.load %arg6[%c0_11, %c0_12, %c0_13] : memref<1x1x16xf32, #tpu.memory_space<vmem>>, vector<1x1x16xf32>
    tpu.vector_store %arg6[%c0_11, %c0_12, %c0_13], %14 {strides = array<i32>} : memref<1x1x16xf32, #tpu.memory_space<vmem>>, vector<1x1x16xf32>,
    %16 = arith.mulf %10, %10 : vector<128x16xf32>
    %cst_14 = arith.constant dense<0.000000e+00> : vector<16xf32>
    %17 = vector.multi_reduction <add>, %16, %cst_14 [0] : vector<128x16xf32> to vector<16xf32>
    %18 = vector.shape_cast %17 : vector<16xf32> to vector<1x16xf32>
    %19 = vector.shape_cast %18 : vector<1x16xf32> to vector<1x1x16xf32>
    %c0_15 = arith.constant 0 : index
    %c0_16 = arith.constant 0 : index
    %c0_17 = arith.constant 0 : index
    %20 = vector.load %arg7[%c0_15, %c0_16, %c0_17] : memref<1x1x16xf32, #tpu.memory_space<vmem>>, vector<1x1x16xf32>
    tpu.vector_store %arg7[%c0_15, %c0_16, %c0_17], %19 {strides = array<i32>} : memref<1x1x16xf32, #tpu.memory_space<vmem>>, vector<1x1x16xf32>,
    return
  }
  func.func @transform_0(%arg0: i32) -> (i32, i32) {
    %c0_i32 = arith.constant 0 : i32
    %c0_i32_0 = arith.constant 0 : i32
    return %arg0, %c0_i32 : i32, i32
  }
  func.func @transform_1(%arg0: i32) -> (i32, i32) {
    %c0_i32 = arith.constant 0 : i32
    %c0_i32_0 = arith.constant 0 : i32
    %c0_i32_1 = arith.constant 0 : i32
    return %c0_i32, %c0_i32_0 : i32, i32
  }
  func.func @transform_2(%arg0: i32) -> (i32, i32) {
    %c0_i32 = arith.constant 0 : i32
    %c0_i32_0 = arith.constant 0 : i32
    %c0_i32_1 = arith.constant 0 : i32
    return %c0_i32, %c0_i32_0 : i32, i32
  }
  func.func @transform_3(%arg0: i32) -> (i32, i32) {
    %c0_i32 = arith.constant 0 : i32
    %c0_i32_0 = arith.constant 0 : i32
    %c0_i32_1 = arith.constant 0 : i32
    return %c0_i32, %c0_i32_0 : i32, i32
  }
  func.func @transform_4(%arg0: i32) -> (i32, i32) {
    %c0_i32 = arith.constant 0 : i32
    %c0_i32_0 = arith.constant 0 : i32
    return %arg0, %c0_i32 : i32, i32
  }
  func.func @transform_5(%arg0: i32) -> (i32, i32, i32) {
    %c0_i32 = arith.constant 0 : i32
    %c0_i32_0 = arith.constant 0 : i32
    %c0_i32_1 = arith.constant 0 : i32
    return %arg0, %c0_i32, %c0_i32_0 : i32, i32, i32
  }
  func.func @transform_6(%arg0: i32) -> (i32, i32, i32) {
    %c0_i32 = arith.constant 0 : i32
    %c0_i32_0 = arith.constant 0 : i32
    %c0_i32_1 = arith.constant 0 : i32
    return %arg0, %c0_i32, %c0_i32_0 : i32, i32, i32
  }
}

module attributes {stable_mosaic.version = 11 : i64} {
  func.func @_tail_kernel(%arg0: i32, %arg1: memref<4x2x8x32xf32, #tpu.memory_space<vmem>>, %arg2: memref<4x2x8x32xf32, #tpu.memory_space<vmem>>, %arg3: memref<1x32xf32, #tpu.memory_space<vmem>>, %arg4: memref<1x32xf32, #tpu.memory_space<vmem>>, %arg5: memref<32x16xf32, #tpu.memory_space<vmem>>, %arg6: memref<32x16xf32, #tpu.memory_space<vmem>>, %arg7: memref<32x16xf32, #tpu.memory_space<vmem>>) attributes {dimension_semantics = [#tpu.dimension_semantics<parallel>], iteration_bounds = array<i64: 4>, scalar_prefetch = 0 : i64, scratch_operands = 0 : i64, tpu.core_type = #tpu.core_type<tc>, window_params = [{transform_indices = @transform_0, window_bounds = array<i64: 4, 2, 8, 32>}, {transform_indices = @transform_1, window_bounds = array<i64: 4, 2, 8, 32>}, {pipeline_mode = #tpu.pipeline_mode<synchronous>, transform_indices = @transform_2, window_bounds = array<i64: 1, 32>}, {pipeline_mode = #tpu.pipeline_mode<synchronous>, transform_indices = @transform_3, window_bounds = array<i64: 1, 32>}, {pipeline_mode = #tpu.pipeline_mode<synchronous>, transform_indices = @transform_4, window_bounds = array<i64: 32, 16>}, {pipeline_mode = #tpu.pipeline_mode<synchronous>, transform_indices = @transform_5, window_bounds = array<i64: 32, 16>}, {transform_indices = @transform_6, window_bounds = array<i64: 32, 16>}]} {
    %c0 = arith.constant 0 : index
    %c0_0 = arith.constant 0 : index
    %0 = vector.load %arg3[%c0, %c0_0] : memref<1x32xf32, #tpu.memory_space<vmem>>, vector<1x32xf32>
    %c0_1 = arith.constant 0 : index
    %c0_2 = arith.constant 0 : index
    %1 = vector.load %arg4[%c0_1, %c0_2] : memref<1x32xf32, #tpu.memory_space<vmem>>, vector<1x32xf32>
    %c0_3 = arith.constant 0 : index
    %c0_4 = arith.constant 0 : index
    %c0_5 = arith.constant 0 : index
    %c0_6 = arith.constant 0 : index
    %2 = vector.load %arg1[%c0_3, %c0_4, %c0_5, %c0_6] : memref<4x2x8x32xf32, #tpu.memory_space<vmem>>, vector<4x1x8x32xf32>
    %3 = vector.shape_cast %2 : vector<4x1x8x32xf32> to vector<4x8x32xf32>
    %4 = vector.shape_cast %0 : vector<1x32xf32> to vector<1x1x32xf32>
    %5 = vector.broadcast %4 : vector<1x1x32xf32> to vector<4x8x32xf32>
    %6 = arith.mulf %3, %5 : vector<4x8x32xf32>
    %7 = vector.shape_cast %1 : vector<1x32xf32> to vector<1x1x32xf32>
    %8 = vector.broadcast %7 : vector<1x1x32xf32> to vector<4x8x32xf32>
    %9 = arith.addf %6, %8 : vector<4x8x32xf32>
    %c0_7 = arith.constant 0 : index
    %c0_8 = arith.constant 0 : index
    %c0_9 = arith.constant 0 : index
    %c0_10 = arith.constant 0 : index
    %10 = vector.load %arg2[%c0_7, %c0_8, %c0_9, %c0_10] : memref<4x2x8x32xf32, #tpu.memory_space<vmem>>, vector<4x1x8x32xf32>
    %11 = vector.shape_cast %10 : vector<4x1x8x32xf32> to vector<4x8x32xf32>
    %12 = arith.addf %9, %11 : vector<4x8x32xf32>
    %13 = vector.shape_cast %12 : vector<4x8x32xf32> to vector<32x32xf32>
    %c0_11 = arith.constant 0 : index
    %c1 = arith.constant 1 : index
    %c0_12 = arith.constant 0 : index
    %c0_13 = arith.constant 0 : index
    %14 = vector.load %arg1[%c0_11, %c1, %c0_12, %c0_13] : memref<4x2x8x32xf32, #tpu.memory_space<vmem>>, vector<4x1x8x32xf32>
    %15 = vector.shape_cast %14 : vector<4x1x8x32xf32> to vector<4x8x32xf32>
    %16 = vector.shape_cast %0 : vector<1x32xf32> to vector<1x1x32xf32>
    %17 = vector.broadcast %16 : vector<1x1x32xf32> to vector<4x8x32xf32>
    %18 = arith.mulf %15, %17 : vector<4x8x32xf32>
    %19 = vector.shape_cast %1 : vector<1x32xf32> to vector<1x1x32xf32>
    %20 = vector.broadcast %19 : vector<1x1x32xf32> to vector<4x8x32xf32>
    %21 = arith.addf %18, %20 : vector<4x8x32xf32>
    %c0_14 = arith.constant 0 : index
    %c1_15 = arith.constant 1 : index
    %c0_16 = arith.constant 0 : index
    %c0_17 = arith.constant 0 : index
    %22 = vector.load %arg2[%c0_14, %c1_15, %c0_16, %c0_17] : memref<4x2x8x32xf32, #tpu.memory_space<vmem>>, vector<4x1x8x32xf32>
    %23 = vector.shape_cast %22 : vector<4x1x8x32xf32> to vector<4x8x32xf32>
    %24 = arith.addf %21, %23 : vector<4x8x32xf32>
    %25 = vector.shape_cast %24 : vector<4x8x32xf32> to vector<32x32xf32>
    %c0_18 = arith.constant 0 : index
    %c0_19 = arith.constant 0 : index
    %26 = vector.load %arg5[%c0_18, %c0_19] : memref<32x16xf32, #tpu.memory_space<vmem>>, vector<32x16xf32>
    %cst = arith.constant dense<0.000000e+00> : vector<32x16xf32>
    %27 = tpu.matmul %13, %26, %cst {dimension_numbers = #tpu.dot_dimension_numbers<[1], [0], [0], [1], [0, 0, 1, 1], [], []>} : vector<32x32xf32>, vector<32x16xf32>, vector<32x16xf32> -> vector<32x16xf32>
    %c0_20 = arith.constant 0 : index
    %c0_21 = arith.constant 0 : index
    %28 = vector.load %arg6[%c0_20, %c0_21] : memref<32x16xf32, #tpu.memory_space<vmem>>, vector<32x16xf32>
    %cst_22 = arith.constant dense<0.000000e+00> : vector<32x16xf32>
    %29 = tpu.matmul %25, %28, %cst_22 {dimension_numbers = #tpu.dot_dimension_numbers<[1], [0], [0], [1], [0, 0, 1, 1], [], []>} : vector<32x32xf32>, vector<32x16xf32>, vector<32x16xf32> -> vector<32x16xf32>
    %30 = arith.addf %27, %29 : vector<32x16xf32>
    %cst_23 = arith.constant 0.000000e+00 : f32
    %31 = vector.broadcast %cst_23 : f32 to vector<32x16xf32>
    %32 = arith.maximumf %30, %31 : vector<32x16xf32>
    %c0_24 = arith.constant 0 : index
    %c0_25 = arith.constant 0 : index
    %33 = vector.load %arg7[%c0_24, %c0_25] : memref<32x16xf32, #tpu.memory_space<vmem>>, vector<32x16xf32>
    tpu.vector_store %arg7[%c0_24, %c0_25], %32 {strides = array<i32>} : memref<32x16xf32, #tpu.memory_space<vmem>>, vector<32x16xf32>,
    return
  }
  func.func @transform_0(%arg0: i32) -> (i32, i32, i32, i32) {
    %c0_i32 = arith.constant 0 : i32
    %c0_i32_0 = arith.constant 0 : i32
    %c0_i32_1 = arith.constant 0 : i32
    %c0_i32_2 = arith.constant 0 : i32
    return %arg0, %c0_i32, %c0_i32_0, %c0_i32_1 : i32, i32, i32, i32
  }
  func.func @transform_1(%arg0: i32) -> (i32, i32, i32, i32) {
    %c0_i32 = arith.constant 0 : i32
    %c0_i32_0 = arith.constant 0 : i32
    %c0_i32_1 = arith.constant 0 : i32
    %c0_i32_2 = arith.constant 0 : i32
    return %arg0, %c0_i32, %c0_i32_0, %c0_i32_1 : i32, i32, i32, i32
  }
  func.func @transform_2(%arg0: i32) -> (i32, i32) {
    %c0_i32 = arith.constant 0 : i32
    %c0_i32_0 = arith.constant 0 : i32
    %c0_i32_1 = arith.constant 0 : i32
    return %c0_i32, %c0_i32_0 : i32, i32
  }
  func.func @transform_3(%arg0: i32) -> (i32, i32) {
    %c0_i32 = arith.constant 0 : i32
    %c0_i32_0 = arith.constant 0 : i32
    %c0_i32_1 = arith.constant 0 : i32
    return %c0_i32, %c0_i32_0 : i32, i32
  }
  func.func @transform_4(%arg0: i32) -> (i32, i32) {
    %c0_i32 = arith.constant 0 : i32
    %c0_i32_0 = arith.constant 0 : i32
    %c0_i32_1 = arith.constant 0 : i32
    return %c0_i32, %c0_i32_0 : i32, i32
  }
  func.func @transform_5(%arg0: i32) -> (i32, i32) {
    %c0_i32 = arith.constant 0 : i32
    %c0_i32_0 = arith.constant 0 : i32
    %c0_i32_1 = arith.constant 0 : i32
    return %c0_i32, %c0_i32_0 : i32, i32
  }
  func.func @transform_6(%arg0: i32) -> (i32, i32) {
    %c0_i32 = arith.constant 0 : i32
    %c0_i32_0 = arith.constant 0 : i32
    return %arg0, %c0_i32 : i32, i32
  }
}

</mosaic_0001>

<bundles_post_ra>
// kernel: bottleneck_forward.4
= control target key start
LH: loop header
LB: loop body
LE: loop exit
PB: predicated region body
PF: predicated region fallthrough
CT: control target
= control target key end

     0   :  { %s830_s21 = smov 0   ;;  %s965_s0 = inlined_call_operand.vmem [shape: f32[512,16], index: 0, kind: input, shape index: {}]   ;;  %s966_s1 = inlined_call_operand.vmem [shape: f32[1,16], index: 1, kind: input, shape index: {}]   ;;  %s967_s2 = inlined_call_operand.vmem [shape: f32[1,16], index: 2, kind: input, shape index: {}]   ;;  %s968_s3 = inlined_call_operand.vmem [shape: f32[16,4], index: 3, kind: input, shape index: {}]   ;;  %s969_s4 = inlined_call_operand.vmem [shape: f32[512,4], index: 4, kind: output, shape index: {0}]   ;;  %s970_s5 = inlined_call_operand.vmem [shape: f32[4,1,4], index: 5, kind: output, shape index: {1}]   ;;  %s971_s6 = inlined_call_operand.vmem [shape: f32[4,1,4], index: 6, kind: output, shape index: {2}]  }
   0x1 LB: > { %s836_s1 = sadd.s32 4294967295, %s793_s21   ;;  %p704_p0 = scmp.ge.s32.totalorder %s793_s21, 1  ;;  %s793_s21 = sphi %s830_s21, %s17_s21  }
   0x2   : > { %p218_p1 = scmp.lt.s32.totalorder %s793_s21, 5 }
   0x4   : > { %p219_p2 = pnand %p704_p0, %p218_p1 }
   0x5   : > { %v288_v0 = vld [vmem:[%s968_s3] sm:$0xff] (!%p219_p2)  ;;  %v289_v1 = vld [vmem:[%s968_s3 + $0x8] sm:$0xff] (!%p219_p2)  ;;  %s705_s25 = sshll.u32 (!%p219_p2), %s836_s1, 4  ;;  %vm290_vm0 = vcmask (!%p219_p2), 130048   ;;  %vm484_vm1 = vcmask (!%p219_p2), 31744   ;;  %p266_p4 = scmp.lt.s32.totalorder (!%p219_p2), %s836_s1, 3 }
   0x6   : > { %222 = sbr.rel (%p219_p2) target bundleno = 279 (0x117), region = 36  ;;  %v773_v2 = vpack.c.bf16 (!%p219_p2), %v289_v1, %v288_v0  ;;  %p255_p3 = scmp.lt.s32.totalorder (!%p219_p2), %s705_s25, 63  ;;  %vm538_vm2 = vcmask (!%p219_p2), 24576  }
   0x8   : > { %774 = vmatprep.subr.bf16.mxu0 (!%p219_p2), %v773_v2  ;;  %777 = vmatprep.subr.bf16.mxu1 (!%p219_p2), %v773_v2 }
   0x9   : > { %776 = vmatpush3.bf16.msra.mxu0 (!%p219_p2), %v773_v2  ;;  %778 = vmatpush3.bf16.msra.mxu1 (!%p219_p2), %v773_v2 }
   0xd   : > { %s973_s25 = smov (!%p255_p3, %s705_s25), 63  ;;  %s975_s1 = smov (!%p266_p4, %s836_s1), 3 }
   0xe   : > { %s706_s26 = sshll.u32 %s973_s25, 3  ;;  %s268_s11 = scalar_lea.vmem %s970_s5, %s975_s1 }
   0xf   : > { %s258_s29 = scalar_lea.vmem %s965_s0, %s706_s26  ;;  %s876_s8 = scalar_lea.vmem %s969_s4, %s706_s26 }
  0x10   : > { %v272_v3 = vld [vmem:[%s258_s29] sm:$0xff]  ;;  %v273_v4 = vld [vmem:[%s258_s29 + $0x8] sm:$0xff]  ;;  %v274_v5 = vld [vmem:[%s258_s29 + $0x10] sm:$0xff]  ;;  %s271_s14 = scalar_lea.vmem %s971_s6, %s975_s1 }
  0x11   : > { %749 = vmatprep.mubr.msk.f32.mxu0 %vm290_vm0, %v272_v3  ;;  %v280_v6 = vld [vmem:[%s258_s29 + $0x40] sm:$0xff]  ;;  %v275_v7 = vld [vmem:[%s258_s29 + $0x18] sm:$0xff]  ;;  %v281_v8 = vld [vmem:[%s258_s29 + $0x48] sm:$0xff] }
  0x12   : > { %750 = vmatmul.mubr.msk.f32.vlgmr.msra.gmra.mrb[0].mxu0 %vm290_vm0, %v273_v4  ;;  %761 = vmatprep.mubr.msk.f32.mxu1 %vm290_vm0, %v280_v6  ;;  %v282_v9 = vld [vmem:[%s258_s29 + $0x50] sm:$0xff]  ;;  %v276_v10 = vld [vmem:[%s258_s29 + $0x20] sm:$0xff]  ;;  %v283_v11 = vld [vmem:[%s258_s29 + $0x58] sm:$0xff] }
  0x13   : > { %752 = vmatprep.mubr.msk.f32.mxu0 %vm290_vm0, %v274_v5  ;;  %762 = vmatmul.mubr.msk.f32.vlgmr.msra.gmra.mrb[0].mxu1 %vm290_vm0, %v281_v8  ;;  %v284_v12 = vld [vmem:[%s258_s29 + $0x60] sm:$0xff]  ;;  %v277_v13 = vld [vmem:[%s258_s29 + $0x28] sm:$0xff]  ;;  %v278_v14 = vld [vmem:[%s258_s29 + $0x30] sm:$0xff] }
  0x14   : > { %764 = vmatprep.mubr.msk.f32.mxu1 %vm290_vm0, %v282_v9  ;;  %v285_v15 = vld [vmem:[%s258_s29 + $0x68] sm:$0xff]  ;;  %v286_v16 = vld [vmem:[%s258_s29 + $0x70] sm:$0xff]  ;;  %v279_v17 = vld [vmem:[%s258_s29 + $0x38] sm:$0xff] }
  0x15   : > { %v287_v18 = vld [vmem:[%s258_s29 + $0x78] sm:$0xff] }
  0x16   : > { %753 = vmatmul.mubr.msk.f32.gmra.mrb[2].mxu0 %vm290_vm0, %v275_v7 }
  0x17   : > { %755 = vmatprep.mubr.msk.f32.mxu0 %vm290_vm0, %v276_v10  ;;  %765 = vmatmul.mubr.msk.f32.gmra.mrb[2].mxu1 %vm290_vm0, %v283_v11 }
  0x18   : > { %767 = vmatprep.mubr.msk.f32.mxu1 %vm290_vm0, %v284_v12 }
  0x1a   : > { %756 = vmatmul.mubr.msk.f32.gmra.mrb[4].mxu0 %vm290_vm0, %v277_v13 }
  0x1b   : > { %758 = vmatprep.mubr.msk.f32.mxu0 %vm290_vm0, %v278_v14  ;;  %768 = vmatmul.mubr.msk.f32.gmra.mrb[4].mxu1 %vm290_vm0, %v285_v15 }
  0x1c   : > { %770 = vmatprep.mubr.msk.f32.mxu1 %vm290_vm0, %v286_v16 }
  0x1e   : > { %759 = vmatmul.mubr.msk.f32.gmra.mrb[6].mxu0 %vm290_vm0, %v279_v17 }
  0x1f   : > { %771 = vmatmul.mubr.msk.f32.gmra.mrb[6].mxu1 %vm290_vm0, %v287_v18 }
  0xe5   : > { %v751_v19 = vpop.f32.mrb[0].mxu0 }
  0xe6   : > { %486 = vst.msk [vmem:[%s876_s8 + $0x8] sm:$0xff] %vm484_vm1, %v751_v19  ;;  %v502_v20 = vsel %vm484_vm1, %v751_v19, 0.0  ;;  %v541_v21 = vmul.f32 %v751_v19, %v751_v19  ;;  %v405_v22 = vpop.f32.mrb[1].mxu0  ;;  %v884_v25 = vpop.f32.mrb[0].mxu1 }
  0xe7   : > { %485 = vst.msk [vmem:[%s876_s8] sm:$0xff] %vm484_vm1, %v405_v22  ;;  %v501_v23 = vsel %vm484_vm1, %v405_v22, 0.0  ;;  %v540_v24 = vmul.f32 %v405_v22, %v405_v22  ;;  %494 = vst.msk [vmem:[%s876_s8 + $0x48] sm:$0xff] %vm484_vm1, %v884_v25  ;;  %v445_v28 = vpop.f32.mrb[1].mxu1  ;;  %v549_v10 = vmul.f32 %v884_v25, %v884_v25  ;;  %v518_v15 = vsel %vm484_vm1, %v884_v25, 0.0 }
  0xe8   : > { %v557_v26 = vsel %vm484_vm1, %v541_v21, 0.0  ;;  %v503_v27 = vadd.f32 %v502_v20, %v501_v23  ;;  %493 = vst.msk [vmem:[%s876_s8 + $0x40] sm:$0xff] %vm484_vm1, %v445_v28  ;;  %v548_v59 = vmul.f32 %v445_v28, %v445_v28  ;;  %v516_v6 = vsel %vm484_vm1, %v445_v28, 0.0 }
  0xe9   : > { %v556_v29 = vsel %vm484_vm1, %v540_v24, 0.0  ;;  %v754_v30 = vpop.f32.mrb[2].mxu0  ;;  %v573_v19 = vsel %vm484_vm1, %v549_v10, 0.0 }
  0xea   : > { %v558_v31 = vadd.f32 %v557_v26, %v556_v29  ;;  %488 = vst.msk [vmem:[%s876_s8 + $0x18] sm:$0xff] %vm484_vm1, %v754_v30  ;;  %v415_v32 = vpop.f32.mrb[3].mxu0  ;;  %v543_v33 = vmul.f32 %v754_v30, %v754_v30  ;;  %v898_v36 = vpop.f32.mrb[2].mxu1  ;;  %v506_v39 = vsel %vm484_vm1, %v754_v30, 0.0  ;;  %v571_v11 = vsel %vm484_vm1, %v548_v59, 0.0 }
  0xeb   : > { %487 = vst.msk [vmem:[%s876_s8 + $0x10] sm:$0xff] %vm484_vm1, %v415_v32  ;;  %v504_v34 = vsel %vm484_vm1, %v415_v32, 0.0  ;;  %v542_v35 = vmul.f32 %v415_v32, %v415_v32  ;;  %496 = vst.msk [vmem:[%s876_s8 + $0x58] sm:$0xff] %vm484_vm1, %v898_v36  ;;  %v455_v38 = vpop.f32.mrb[3].mxu1  ;;  %v551_v20 = vmul.f32 %v898_v36, %v898_v36  ;;  %v522_v26 = vsel %vm484_vm1, %v898_v36, 0.0 }
  0xec   : > { %v505_v37 = vadd.f32 %v504_v34, %v503_v27  ;;  %495 = vst.msk [vmem:[%s876_s8 + $0x50] sm:$0xff] %vm484_vm1, %v455_v38  ;;  %v561_v45 = vsel %vm484_vm1, %v543_v33, 0.0  ;;  %v550_v12 = vmul.f32 %v455_v38, %v455_v38  ;;  %v520_v16 = vsel %vm484_vm1, %v455_v38, 0.0 }
  0xed   : > { %v559_v40 = vsel %vm484_vm1, %v542_v35, 0.0  ;;  %v757_v41 = vpop.f32.mrb[4].mxu0  ;;  %v577_v29 = vsel %vm484_vm1, %v551_v20, 0.0 }
  0xee   : > { %v560_v42 = vadd.f32 %v559_v40, %v558_v31  ;;  %490 = vst.msk [vmem:[%s876_s8 + $0x28] sm:$0xff] %vm484_vm1, %v757_v41  ;;  %v425_v43 = vpop.f32.mrb[5].mxu0  ;;  %v507_v44 = vadd.f32 %v506_v39, %v505_v37  ;;  %v545_v46 = vmul.f32 %v757_v41, %v757_v41  ;;  %v769_v49 = vpop.f32.mrb[4].mxu1  ;;  %v510_v53 = vsel %vm484_vm1, %v757_v41, 0.0 }
  0xef   : > { %489 = vst.msk [vmem:[%s876_s8 + $0x20] sm:$0xff] %vm484_vm1, %v425_v43  ;;  %v508_v47 = vsel %vm484_vm1, %v425_v43, 0.0  ;;  %v544_v48 = vmul.f32 %v425_v43, %v425_v43  ;;  %498 = vst.msk [vmem:[%s876_s8 + $0x68] sm:$0xff] %vm484_vm1, %v769_v49  ;;  %v465_v52 = vpop.f32.mrb[5].mxu1  ;;  %v575_v21 = vsel %vm484_vm1, %v550_v12, 0.0  ;;  %v553_v30 = vmul.f32 %v769_v49, %v769_v49 }
  0xf0   : > { %v509_v50 = vadd.f32 %v508_v47, %v507_v44  ;;  %v562_v51 = vadd.f32 %v561_v45, %v560_v42  ;;  %497 = vst.msk [vmem:[%s876_s8 + $0x60] sm:$0xff] %vm484_vm1, %v465_v52  ;;  %v565_v60 = vsel %vm484_vm1, %v545_v46, 0.0  ;;  %v552_v22 = vmul.f32 %v465_v52, %v465_v52 }
  0xf1   : > { %v563_v54 = vsel %vm484_vm1, %v544_v48, 0.0  ;;  %v760_v55 = vpop.f32.mrb[6].mxu0  ;;  %v524_v27 = vsel %vm484_vm1, %v465_v52, 0.0  ;;  %v526_v35 = vsel %vm484_vm1, %v769_v49, 0.0  ;;  %v581_v36 = vsel %vm484_vm1, %v553_v30, 0.0 }
  0xf2   : > { %v564_v56 = vadd.f32 %v563_v54, %v562_v51  ;;  %492 = vst.msk [vmem:[%s876_s8 + $0x38] sm:$0xff] %vm484_vm1, %v760_v55  ;;  %v435_v57 = vpop.f32.mrb[7].mxu0  ;;  %v511_v58 = vadd.f32 %v510_v53, %v509_v50  ;;  %v547_v61 = vmul.f32 %v760_v55, %v760_v55  ;;  %v772_v0 = vpop.f32.mrb[6].mxu1  ;;  %v514_v4 = vsel %vm484_vm1, %v760_v55, 0.0 }
  0xf3   : > { %491 = vst.msk [vmem:[%s876_s8 + $0x30] sm:$0xff] %vm484_vm1, %v435_v57  ;;  %v512_v62 = vsel %vm484_vm1, %v435_v57, 0.0  ;;  %v546_v63 = vmul.f32 %v435_v57, %v435_v57  ;;  %500 = vst.msk [vmem:[%s876_s8 + $0x78] sm:$0xff] %vm484_vm1, %v772_v0  ;;  %v475_v3 = vpop.f32.mrb[7].mxu1  ;;  %v579_v31 = vsel %vm484_vm1, %v552_v22, 0.0  ;;  %v555_v40 = vmul.f32 %v772_v0, %v772_v0 }
  0xf4   : > { %v513_v1 = vadd.f32 %v512_v62, %v511_v58  ;;  %v566_v2 = vadd.f32 %v565_v60, %v564_v56  ;;  %499 = vst.msk [vmem:[%s876_s8 + $0x70] sm:$0xff] %vm484_vm1, %v475_v3  ;;  %v569_v9 = vsel %vm484_vm1, %v547_v61, 0.0  ;;  %v554_v32 = vmul.f32 %v475_v3, %v475_v3 }
  0xf5   : > { %v567_v5 = vsel %vm484_vm1, %v546_v63, 0.0  ;;  %v528_v37 = vsel %vm484_vm1, %v475_v3, 0.0  ;;  %v530_v44 = vsel %vm484_vm1, %v772_v0, 0.0  ;;  %v585_v47 = vsel %vm484_vm1, %v555_v40, 0.0 }
  0xf6   : > { %v515_v7 = vadd.f32 %v514_v4, %v513_v1  ;;  %v568_v8 = vadd.f32 %v567_v5, %v566_v2  ;;  %v583_v41 = vsel %vm484_vm1, %v554_v32, 0.0 }
  0xf8   : > { %v570_v13 = vadd.f32 %v569_v9, %v568_v8  ;;  %v517_v14 = vadd.f32 %v516_v6, %v515_v7 }
  0xfa   : > { %v572_v17 = vadd.f32 %v571_v11, %v570_v13  ;;  %v519_v18 = vadd.f32 %v518_v15, %v517_v14 }
  0xfc   : > { %v521_v23 = vadd.f32 %v520_v16, %v519_v18  ;;  %v574_v24 = vadd.f32 %v573_v19, %v572_v17 }
  0xfe   : > { %v576_v25 = vadd.f32 %v575_v21, %v574_v24  ;;  %v523_v28 = vadd.f32 %v522_v26, %v521_v23 }
 0x100   : > { %v525_v33 = vadd.f32 %v524_v27, %v523_v28  ;;  %v578_v34 = vadd.f32 %v577_v29, %v576_v25 }
 0x102   : > { %v580_v38 = vadd.f32 %v579_v31, %v578_v34  ;;  %v527_v39 = vadd.f32 %v526_v35, %v525_v33 }
 0x104   : > { %v529_v42 = vadd.f32 %v528_v37, %v527_v39  ;;  %v582_v43 = vadd.f32 %v581_v36, %v580_v38 }
 0x106   : > { %v531_v45 = vadd.f32 %v530_v44, %v529_v42  ;;  %v584_v46 = vadd.f32 %v583_v41, %v582_v43 }
 0x108   : > { %v532_v48 = vrot.slane %v531_v45, 4  ;;  %v586_v49 = vadd.f32 %v585_v47, %v584_v46 }
 0x10a   : > { %v533_v50 = vadd.f32 %v532_v48, %v531_v45  ;;  %v587_v51 = vrot.slane %v586_v49, 4 }
 0x10c   : > { %v534_v52 = vrot.slane %v533_v50, 2  ;;  %v588_v53 = vadd.f32 %v587_v51, %v586_v49 }
 0x10e   : > { %v535_v54 = vadd.f32 %v534_v52, %v533_v50  ;;  %v589_v55 = vrot.slane %v588_v53, 2 }
 0x110   : > { %v536_v56 = vrot.slane %v535_v54, 1  ;;  %v590_v57 = vadd.f32 %v589_v55, %v588_v53 }
 0x112   : > { %v537_v58 = vadd.f32 %v536_v56, %v535_v54  ;;  %v591_v59 = vrot.slane %v590_v57, 1 }
 0x114   : > { %539 = vst.msk [vmem:[%s268_s11] sm:$0x1] %vm538_vm2, %v537_v58  ;;  %v592_v60 = vadd.f32 %v591_v59, %v590_v57 }
 0x116   : > { %593 = vst.msk [vmem:[%s271_s14] sm:$0x1] %vm538_vm2, %v592_v60 }
 0x117 PF: > { %s17_s21 = sadd.s32 1, %s793_s21  }
 0x118   : > { %p14_p5 = scmp.ge.s32.totalorder %s17_s21, 6  }
 0x11a   :  { %16 = sbr.rel (!%p14_p5) target bundleno = 1 (0x1), region = 90 }

// kernel: bottleneck_forward.6
= control target key start
LH: loop header
LB: loop body
LE: loop exit
PB: predicated region body
PF: predicated region fallthrough
CT: control target
= control target key end

     0   :  { %s891_s21 = smov 0   ;;  %s1071_s0 = inlined_call_operand.vmem [shape: f32[512,4], index: 0, kind: input, shape index: {}]   ;;  %s1072_s1 = inlined_call_operand.vmem [shape: f32[1,4], index: 1, kind: input, shape index: {}]   ;;  %s1073_s2 = inlined_call_operand.vmem [shape: f32[1,4], index: 2, kind: input, shape index: {}]   ;;  %s1074_s3 = inlined_call_operand.vmem [shape: f32[4,16], index: 3, kind: input, shape index: {}]   ;;  %s1075_s4 = inlined_call_operand.vmem [shape: f32[512,16], index: 4, kind: output, shape index: {0}]   ;;  %s1076_s5 = inlined_call_operand.vmem [shape: f32[4,1,16], index: 5, kind: output, shape index: {1}]   ;;  %s1077_s6 = inlined_call_operand.vmem [shape: f32[4,1,16], index: 6, kind: output, shape index: {2}]  }
   0x1 LB: > { %s897_s22 = sadd.s32 4294967295, %s854_s21   ;;  %p769_p0 = scmp.ge.s32.totalorder %s854_s21, 1  ;;  %s854_s21 = sphi %s891_s21, %s17_s21  }
   0x2   : > { %p218_p1 = scmp.lt.s32.totalorder %s854_s21, 5 }
   0x4   : > { %p219_p2 = pnand %p769_p0, %p218_p1 }
   0x5   : > { %v350_v0 = vld [vmem:[%s1074_s3] sm:$0xf] (!%p219_p2)  ;;  %vm400_vm0 = vcmask (!%p219_p2), 1043456   ;;  %s770_s25 = sshll.u32 (!%p219_p2), %s897_s22, 4  ;;  %vm351_vm1 = vcmask (!%p219_p2), 31744   ;;  %vm549_vm2 = vcmask (!%p219_p2), 130048  }
   0x6   : > { %222 = sbr.rel (%p219_p2) target bundleno = 285 (0x11d), region = 36  ;;  %812 = vmatprep.subr.msk.mxu0 (!%p219_p2), %vm400_vm0, %v350_v0  ;;  %p255_p3 = scmp.lt.s32.totalorder (!%p219_p2), %s770_s25, 63  ;;  %838 = vmatprep.subr.msk.mxu1 (!%p219_p2), %vm400_vm0, %v350_v0  ;;  %v911_v1 = vld [vmem:[%s1072_s1] ss:$0 sm:$0xff] (!%p219_p2)  ;;  %vm603_vm3 = vcmask (!%p219_p2), 122880  }
   0x7   : > { %813 = vmatpush3.msk.msra.mxu0 (!%p219_p2), %vm400_vm0, %v350_v0  ;;  %839 = vmatpush3.msk.msra.mxu1 (!%p219_p2), %vm400_vm0, %v350_v0  ;;  %v923_v2 = vld [vmem:[%s1073_s2] ss:$0 sm:$0xff] (!%p219_p2)  ;;  %p266_p4 = scmp.lt.s32.totalorder (!%p219_p2), %s897_s22, 3 }
   0xd   : > { %s1079_s25 = smov (!%p255_p3, %s770_s25), 63  ;;  %s1081_s22 = smov (!%p266_p4, %s897_s22), 3 }
   0xe   : > { %s771_s26 = sshll.u32 %s1079_s25, 3  ;;  %s268_s15 = scalar_lea.vmem %s1076_s5, %s1081_s22 }
   0xf   : > { %s918_s7 = scalar_lea.vmem %s1071_s0, %s771_s26  ;;  %s994_s12 = scalar_lea.vmem %s1075_s4, %s771_s26 }
  0x10   : > { %v272_v3 = vld [vmem:[%s918_s7] sm:$0xff]  ;;  %v273_v4 = vld [vmem:[%s918_s7 + $0x8] sm:$0xff]  ;;  %v274_v5 = vld [vmem:[%s918_s7 + $0x10] sm:$0xff]  ;;  %s271_s18 = scalar_lea.vmem %s1077_s6, %s1081_s22 }
  0x11   : > { %v295_v6 = vmul.f32 %v911_v1, %v272_v3  ;;  %v296_v7 = vmul.f32 %v911_v1, %v273_v4  ;;  %v297_v8 = vmul.f32 %v911_v1, %v274_v5  ;;  %v275_v9 = vld [vmem:[%s918_s7 + $0x18] sm:$0xff]  ;;  %v276_v10 = vld [vmem:[%s918_s7 + $0x20] sm:$0xff]  ;;  %v277_v11 = vld [vmem:[%s918_s7 + $0x28] sm:$0xff] }
  0x12   : > { %v298_v12 = vmul.f32 %v911_v1, %v275_v9  ;;  %v299_v13 = vmul.f32 %v911_v1, %v276_v10  ;;  %v300_v14 = vmul.f32 %v911_v1, %v277_v11  ;;  %v278_v15 = vld [vmem:[%s918_s7 + $0x30] sm:$0xff]  ;;  %v279_v19 = vld [vmem:[%s918_s7 + $0x38] sm:$0xff]  ;;  %v280_v22 = vld [vmem:[%s918_s7 + $0x40] sm:$0xff] }
  0x13   : > { %v318_v16 = vadd.f32 %v923_v2, %v295_v6  ;;  %v319_v17 = vadd.f32 %v923_v2, %v296_v7  ;;  %v320_v18 = vadd.f32 %v923_v2, %v297_v8  ;;  %v301_v21 = vmul.f32 %v911_v1, %v278_v15  ;;  %v281_v23 = vld [vmem:[%s918_s7 + $0x48] sm:$0xff]  ;;  %v282_v24 = vld [vmem:[%s918_s7 + $0x50] sm:$0xff]  ;;  %v283_v29 = vld [vmem:[%s918_s7 + $0x58] sm:$0xff] }
  0x14   : > { %v321_v20 = vadd.f32 %v923_v2, %v298_v12  ;;  %v322_v28 = vadd.f32 %v923_v2, %v299_v13  ;;  %v284_v30 = vld [vmem:[%s918_s7 + $0x60] sm:$0xff]  ;;  %v323_v31 = vadd.f32 %v923_v2, %v300_v14  ;;  %v302_v32 = vmul.f32 %v911_v1, %v279_v19  ;;  %v285_v36 = vld [vmem:[%s918_s7 + $0x68] sm:$0xff]  ;;  %v286_v37 = vld [vmem:[%s918_s7 + $0x70] sm:$0xff] }
  0x15   : > { %v334_v25 = vmax.f32 %v318_v16, 0.0  ;;  %v335_v26 = vmax.f32 %v319_v17, 0.0  ;;  %v336_v27 = vmax.f32 %v320_v18, 0.0  ;;  %v303_v33 = vmul.f32 %v911_v1, %v280_v22  ;;  %v287_v53 = vld [vmem:[%s918_s7 + $0x78] sm:$0xff] }
  0x16   : > { %v304_v34 = vmul.f32 %v911_v1, %v281_v23  ;;  %v305_v35 = vmul.f32 %v911_v1, %v282_v24  ;;  %v337_v38 = vmax.f32 %v321_v20, 0.0  ;;  %v324_v39 = vadd.f32 %v923_v2, %v301_v21 }
  0x17   : > { %814 = vmatprep.mubr.msk.f32.mxu0 %vm351_vm1, %v334_v25  ;;  %v306_v40 = vmul.f32 %v911_v1, %v283_v29  ;;  %v307_v41 = vmul.f32 %v911_v1, %v284_v30  ;;  %v338_v42 = vmax.f32 %v322_v28, 0.0  ;;  %v326_v43 = vadd.f32 %v923_v2, %v303_v33 }
  0x18   : > { %815 = vmatmul.mubr.msk.f32.vlgmr.msra.gmra.mrb[0].mxu0 %vm351_vm1, %v335_v26  ;;  %v327_v44 = vadd.f32 %v923_v2, %v304_v34  ;;  %v328_v45 = vadd.f32 %v923_v2, %v305_v35  ;;  %v308_v47 = vmul.f32 %v911_v1, %v285_v36  ;;  %v309_v48 = vmul.f32 %v911_v1, %v286_v37 }
  0x19   : > { %817 = vmatprep.mubr.msk.f32.mxu0 %vm351_vm1, %v336_v27  ;;  %v329_v46 = vadd.f32 %v923_v2, %v306_v40  ;;  %v342_v49 = vmax.f32 %v326_v43, 0.0  ;;  %v330_v52 = vadd.f32 %v923_v2, %v307_v41  ;;  %v339_v54 = vmax.f32 %v323_v31, 0.0 }
  0x1a   : > { %v343_v50 = vmax.f32 %v327_v44, 0.0  ;;  %v344_v51 = vmax.f32 %v328_v45, 0.0  ;;  %v325_v55 = vadd.f32 %v923_v2, %v302_v32  ;;  %v340_v56 = vmax.f32 %v324_v39, 0.0 }
  0x1b   : > { %826 = vmatprep.mubr.msk.f32.mxu1 %vm351_vm1, %v342_v49  ;;  %v345_v57 = vmax.f32 %v329_v46, 0.0  ;;  %v331_v58 = vadd.f32 %v923_v2, %v308_v47  ;;  %v310_v59 = vmul.f32 %v911_v1, %v287_v53  ;;  %v346_v60 = vmax.f32 %v330_v52, 0.0 }
  0x1c   : > { %818 = vmatmul.mubr.msk.f32.gmra.mrb[2].mxu0 %vm351_vm1, %v337_v38  ;;  %827 = vmatmul.mubr.msk.f32.vlgmr.msra.gmra.mrb[0].mxu1 %vm351_vm1, %v343_v50  ;;  %v332_v61 = vadd.f32 %v923_v2, %v309_v48  ;;  %v341_v62 = vmax.f32 %v325_v55, 0.0 }
  0x1d   : > { %820 = vmatprep.mubr.msk.f32.mxu0 %vm351_vm1, %v338_v42  ;;  %829 = vmatprep.mubr.msk.f32.mxu1 %vm351_vm1, %v344_v51  ;;  %v347_v63 = vmax.f32 %v331_v58, 0.0  ;;  %v333_v0 = vadd.f32 %v923_v2, %v310_v59 }
  0x1e   : > { %v348_v3 = vmax.f32 %v332_v61, 0.0 }
  0x1f   : > { %v349_v1 = vmax.f32 %v333_v0, 0.0 }
  0x20   : > { %821 = vmatmul.mubr.msk.f32.gmra.mrb[4].mxu0 %vm351_vm1, %v339_v54  ;;  %830 = vmatmul.mubr.msk.f32.gmra.mrb[2].mxu1 %vm351_vm1, %v345_v57 }
  0x21   : > { %823 = vmatprep.mubr.msk.f32.mxu0 %vm351_vm1, %v340_v56  ;;  %832 = vmatprep.mubr.msk.f32.mxu1 %vm351_vm1, %v346_v60 }
  0x24   : > { %824 = vmatmul.mubr.msk.f32.gmra.mrb[6].mxu0 %vm351_vm1, %v341_v62  ;;  %833 = vmatmul.mubr.msk.f32.gmra.mrb[4].mxu1 %vm351_vm1, %v347_v63 }
  0x25   : > { %835 = vmatprep.mubr.msk.f32.mxu1 %vm351_vm1, %v348_v3 }
  0x28   : > { %836 = vmatmul.mubr.msk.f32.gmra.mrb[6].mxu1 %vm351_vm1, %v349_v1 }
  0xeb   : > { %v816_v2 = vpop.f32.mrb[0].mxu0 }
  0xec   : > { %551 = vst.msk [vmem:[%s994_s12 + $0x8] sm:$0xff] %vm549_vm2, %v816_v2  ;;  %v567_v4 = vsel %vm549_vm2, %v816_v2, 0.0  ;;  %v606_v5 = vmul.f32 %v816_v2, %v816_v2  ;;  %v470_v6 = vpop.f32.mrb[1].mxu0 }
  0xed   : > { %550 = vst.msk [vmem:[%s994_s12] sm:$0xff] %vm549_vm2, %v470_v6  ;;  %v566_v7 = vsel %vm549_vm2, %v470_v6, 0.0  ;;  %v605_v8 = vmul.f32 %v470_v6, %v470_v6 }
  0xee   : > { %v622_v9 = vsel %vm549_vm2, %v606_v5, 0.0  ;;  %v568_v10 = vadd.f32 %v567_v4, %v566_v7 }
  0xef   : > { %v621_v11 = vsel %vm549_vm2, %v605_v8, 0.0  ;;  %v819_v12 = vpop.f32.mrb[2].mxu0  ;;  %v828_v18 = vpop.f32.mrb[0].mxu1 }
  0xf0   : > { %v623_v13 = vadd.f32 %v622_v9, %v621_v11  ;;  %553 = vst.msk [vmem:[%s994_s12 + $0x18] sm:$0xff] %vm549_vm2, %v819_v12  ;;  %v480_v14 = vpop.f32.mrb[3].mxu0  ;;  %v608_v15 = vmul.f32 %v819_v12, %v819_v12  ;;  %559 = vst.msk [vmem:[%s994_s12 + $0x48] sm:$0xff] %vm549_vm2, %v828_v18  ;;  %v510_v20 = vpop.f32.mrb[1].mxu1  ;;  %v571_v21 = vsel %vm549_vm2, %v819_v12, 0.0  ;;  %v614_v56 = vmul.f32 %v828_v18, %v828_v18 }
  0xf1   : > { %552 = vst.msk [vmem:[%s994_s12 + $0x10] sm:$0xff] %vm549_vm2, %v480_v14  ;;  %v569_v16 = vsel %vm549_vm2, %v480_v14, 0.0  ;;  %v607_v17 = vmul.f32 %v480_v14, %v480_v14  ;;  %558 = vst.msk [vmem:[%s994_s12 + $0x40] sm:$0xff] %vm549_vm2, %v510_v20  ;;  %v613_v41 = vmul.f32 %v510_v20, %v510_v20  ;;  %v581_v52 = vsel %vm549_vm2, %v510_v20, 0.0 }
  0xf2   : > { %v570_v19 = vadd.f32 %v569_v16, %v568_v10  ;;  %v626_v27 = vsel %vm549_vm2, %v608_v15, 0.0  ;;  %v583_v63 = vsel %vm549_vm2, %v828_v18, 0.0  ;;  %v638_v2 = vsel %vm549_vm2, %v614_v56, 0.0 }
  0xf3   : > { %v624_v22 = vsel %vm549_vm2, %v607_v17, 0.0  ;;  %v822_v23 = vpop.f32.mrb[4].mxu0  ;;  %v831_v31 = vpop.f32.mrb[2].mxu1  ;;  %v636_v57 = vsel %vm549_vm2, %v613_v41, 0.0 }
  0xf4   : > { %v625_v24 = vadd.f32 %v624_v22, %v623_v13  ;;  %555 = vst.msk [vmem:[%s994_s12 + $0x28] sm:$0xff] %vm549_vm2, %v822_v23  ;;  %v490_v25 = vpop.f32.mrb[5].mxu0  ;;  %v572_v26 = vadd.f32 %v571_v21, %v570_v19  ;;  %v610_v28 = vmul.f32 %v822_v23, %v822_v23  ;;  %561 = vst.msk [vmem:[%s994_s12 + $0x58] sm:$0xff] %vm549_vm2, %v831_v31  ;;  %v520_v34 = vpop.f32.mrb[3].mxu1  ;;  %v575_v35 = vsel %vm549_vm2, %v822_v23, 0.0 }
  0xf5   : > { %554 = vst.msk [vmem:[%s994_s12 + $0x20] sm:$0xff] %vm549_vm2, %v490_v25  ;;  %v573_v29 = vsel %vm549_vm2, %v490_v25, 0.0  ;;  %v609_v30 = vmul.f32 %v490_v25, %v490_v25  ;;  %560 = vst.msk [vmem:[%s994_s12 + $0x50] sm:$0xff] %vm549_vm2, %v520_v34  ;;  %v615_v58 = vmul.f32 %v520_v34, %v520_v34  ;;  %v585_v0 = vsel %vm549_vm2, %v520_v34, 0.0 }
  0xf6   : > { %v574_v32 = vadd.f32 %v573_v29, %v572_v26  ;;  %v627_v33 = vadd.f32 %v626_v27, %v625_v24  ;;  %v630_v42 = vsel %vm549_vm2, %v610_v28, 0.0  ;;  %v616_v4 = vmul.f32 %v831_v31, %v831_v31 }
  0xf7   : > { %v628_v36 = vsel %vm549_vm2, %v609_v30, 0.0  ;;  %v825_v37 = vpop.f32.mrb[6].mxu0  ;;  %v834_v46 = vpop.f32.mrb[4].mxu1  ;;  %v640_v5 = vsel %vm549_vm2, %v615_v58, 0.0  ;;  %v587_v9 = vsel %vm549_vm2, %v831_v31, 0.0 }
  0xf8   : > { %v629_v38 = vadd.f32 %v628_v36, %v627_v33  ;;  %557 = vst.msk [vmem:[%s994_s12 + $0x38] sm:$0xff] %vm549_vm2, %v825_v37  ;;  %v500_v39 = vpop.f32.mrb[7].mxu0  ;;  %v576_v40 = vadd.f32 %v575_v35, %v574_v32  ;;  %v612_v43 = vmul.f32 %v825_v37, %v825_v37  ;;  %563 = vst.msk [vmem:[%s994_s12 + $0x68] sm:$0xff] %vm549_vm2, %v834_v46  ;;  %v530_v49 = vpop.f32.mrb[5].mxu1  ;;  %v579_v50 = vsel %vm549_vm2, %v825_v37, 0.0 }
  0xf9   : > { %556 = vst.msk [vmem:[%s994_s12 + $0x30] sm:$0xff] %vm549_vm2, %v500_v39  ;;  %v577_v44 = vsel %vm549_vm2, %v500_v39, 0.0  ;;  %v611_v45 = vmul.f32 %v500_v39, %v500_v39  ;;  %562 = vst.msk [vmem:[%s994_s12 + $0x60] sm:$0xff] %vm549_vm2, %v530_v49  ;;  %v617_v6 = vmul.f32 %v530_v49, %v530_v49  ;;  %v589_v10 = vsel %vm549_vm2, %v530_v49, 0.0 }
  0xfa   : > { %v578_v47 = vadd.f32 %v577_v44, %v576_v40  ;;  %v631_v48 = vadd.f32 %v630_v42, %v629_v38  ;;  %v634_v55 = vsel %vm549_vm2, %v612_v43, 0.0  ;;  %v642_v13 = vsel %vm549_vm2, %v616_v4, 0.0 }
  0xfb   : > { %v632_v51 = vsel %vm549_vm2, %v611_v45, 0.0  ;;  %v837_v59 = vpop.f32.mrb[6].mxu1  ;;  %v618_v14 = vmul.f32 %v834_v46, %v834_v46  ;;  %v644_v15 = vsel %vm549_vm2, %v617_v6, 0.0  ;;  %v591_v19 = vsel %vm549_vm2, %v834_v46, 0.0 }
  0xfc   : > { %v580_v53 = vadd.f32 %v579_v50, %v578_v47  ;;  %v633_v54 = vadd.f32 %v632_v51, %v631_v48  ;;  %565 = vst.msk [vmem:[%s994_s12 + $0x78] sm:$0xff] %vm549_vm2, %v837_v59  ;;  %v540_v62 = vpop.f32.mrb[7].mxu1  ;;  %v620_v24 = vmul.f32 %v837_v59, %v837_v59  ;;  %v595_v28 = vsel %vm549_vm2, %v837_v59, 0.0 }
  0xfd   : > { %564 = vst.msk [vmem:[%s994_s12 + $0x70] sm:$0xff] %vm549_vm2, %v540_v62  ;;  %v619_v16 = vmul.f32 %v540_v62, %v540_v62  ;;  %v593_v20 = vsel %vm549_vm2, %v540_v62, 0.0  ;;  %v646_v23 = vsel %vm549_vm2, %v618_v14, 0.0 }
  0xfe   : > { %v635_v60 = vadd.f32 %v634_v55, %v633_v54  ;;  %v582_v61 = vadd.f32 %v581_v52, %v580_v53  ;;  %v650_v31 = vsel %vm549_vm2, %v620_v24, 0.0 }
  0xff   : > { %v648_v25 = vsel %vm549_vm2, %v619_v16, 0.0 }
 0x100   : > { %v637_v3 = vadd.f32 %v636_v57, %v635_v60  ;;  %v584_v1 = vadd.f32 %v583_v63, %v582_v61 }
 0x102   : > { %v586_v7 = vadd.f32 %v585_v0, %v584_v1  ;;  %v639_v8 = vadd.f32 %v638_v2, %v637_v3 }
 0x104   : > { %v641_v11 = vadd.f32 %v640_v5, %v639_v8  ;;  %v588_v12 = vadd.f32 %v587_v9, %v586_v7 }
 0x106   : > { %v590_v17 = vadd.f32 %v589_v10, %v588_v12  ;;  %v643_v18 = vadd.f32 %v642_v13, %v641_v11 }
 0x108   : > { %v645_v21 = vadd.f32 %v644_v15, %v643_v18  ;;  %v592_v22 = vadd.f32 %v591_v19, %v590_v17 }
 0x10a   : > { %v594_v26 = vadd.f32 %v593_v20, %v592_v22  ;;  %v647_v27 = vadd.f32 %v646_v23, %v645_v21 }
 0x10c   : > { %v596_v29 = vadd.f32 %v595_v28, %v594_v26  ;;  %v649_v30 = vadd.f32 %v648_v25, %v647_v27 }
 0x10e   : > { %v597_v32 = vrot.slane %v596_v29, 4  ;;  %v651_v33 = vadd.f32 %v650_v31, %v649_v30 }
 0x110   : > { %v598_v34 = vadd.f32 %v597_v32, %v596_v29  ;;  %v652_v35 = vrot.slane %v651_v33, 4 }
 0x112   : > { %v599_v36 = vrot.slane %v598_v34, 2  ;;  %v653_v37 = vadd.f32 %v652_v35, %v651_v33 }
 0x114   : > { %v600_v38 = vadd.f32 %v599_v36, %v598_v34  ;;  %v654_v39 = vrot.slane %v653_v37, 2 }
 0x116   : > { %v601_v40 = vrot.slane %v600_v38, 1  ;;  %v655_v41 = vadd.f32 %v654_v39, %v653_v37 }
 0x118   : > { %v602_v42 = vadd.f32 %v601_v40, %v600_v38  ;;  %v656_v43 = vrot.slane %v655_v41, 1 }
 0x11a   : > { %604 = vst.msk [vmem:[%s268_s15] sm:$0x1] %vm603_vm3, %v602_v42  ;;  %v657_v44 = vadd.f32 %v656_v43, %v655_v41 }
 0x11c   : > { %658 = vst.msk [vmem:[%s271_s18] sm:$0x1] %vm603_vm3, %v657_v44 }
 0x11d PF: > { %s17_s21 = sadd.s32 1, %s854_s21  }
 0x11e   : > { %p14_p5 = scmp.ge.s32.totalorder %s17_s21, 6  }
 0x120   :  { %16 = sbr.rel (!%p14_p5) target bundleno = 1 (0x1), region = 90 }

// kernel: bottleneck_forward.7
= control target key start
LH: loop header
LB: loop body
LE: loop exit
PB: predicated region body
PF: predicated region fallthrough
CT: control target
= control target key end

     0   :  { %11 = vsyncpa [#allocation3], 0  ;;  %s1038_s0 = inlined_call_operand.vmem [shape: f32[16,2,8,32], index: 0, kind: input, shape index: {}]   ;;  %s1039_s1 = inlined_call_operand.vmem [shape: f32[16,2,8,32], index: 1, kind: input, shape index: {}]   ;;  %s1040_s2 = inlined_call_operand.vmem [shape: f32[1,32], index: 2, kind: input, shape index: {}]   ;;  %s1041_s3 = inlined_call_operand.vmem [shape: f32[1,32], index: 3, kind: input, shape index: {}]   ;;  %s1042_s4 = inlined_call_operand.vmem [shape: f32[32,16], index: 4, kind: input, shape index: {}]   ;;  %s1043_s5 = inlined_call_operand.vmem [shape: f32[32,16], index: 5, kind: input, shape index: {}]   ;;  %s1044_s6 = inlined_call_operand.hbm [shape: f32[128,16], index: 6, kind: output, shape index: {}]  }
   0x1   :  { %13 = vsyncpa [#allocation3 + $0x1], 0  ;;  %s881_s21 = smov 0   ;;  %s883_s22 = smov 0  }
   0x2   :  { %s885_s23 = smov 0   ;;  %s887_s24 = smov 0  }
   0x3 LB: > { %s902_s25 = sadd.s32 4294967295, %s841_s24   ;;  %s637_s26 = sadd.s32 4294967294, %s841_s24   ;;  %s841_s24 = sphi %s887_s24, %s1050_s24   ;;  %s837_s23 = sphi %s885_s23, %s1049_s23   ;;  %s833_s22 = sphi %s883_s22, %s1048_s22   ;;  %s829_s21 = sphi %s881_s21, %s1047_s21  }
   0x4   : > { %s906_s27 = sadd.s32 1, %s841_s24   ;;  %s162_s28 = sadd.s32 1, %s837_s23 }
   0x5   : > { %s159_s29 = ssub.s32 %s841_s24, %s906_s27  ;;  %p172_p0 = scmp.ne.s32.totalorder %s837_s23, %s833_s22 }
   0x6   : > { %p160_p1 = scmp.eq.s32.totalorder %s159_s29, 0  ;;  %p173_p2 = scmp.eq.s32.totalorder %s902_s25, 3 }
   0x7   : > { %p178_p3 = scmp.ne.s32.totalorder %s833_s22, %s829_s21  ;;  %p179_p4 = scmp.eq.s32.totalorder %s637_s26, 3 }
   0x8   : > { %s917_s30 = scalar_select %p160_p1, %s837_s23, %s162_s28  }
   0x9   : > { %p919_p5 = por %p173_p2, %p172_p0  ;;  %p923_p6 = por %p179_p4, %p178_p3 }
   0xa   : > { %p640_p7 = scmp.ge.s32.totalorder %s841_s24, 1  ;;  %p229_p8 = scmp.lt.s32.totalorder %s841_s24, 5 }
   0xc   : > { %p230_p9 = pnand %p640_p7, %p229_p8 }
   0xd   : > { %v341_v0 = vld [vmem:[%s1043_s5] sm:$0xff] (!%p230_p9)  ;;  %v342_v1 = vld [vmem:[%s1043_s5 + $0x8] sm:$0xff] (!%p230_p9)  ;;  %s642_s15 = sshll.u32 (!%p230_p9), %s902_s25, 2  ;;  %v343_v5 = vld [vmem:[%s1043_s5 + $0x10] sm:$0xff] (!%p230_p9)  ;;  %vm345_vm0 = vcmask (!%p230_p9), 261120   ;;  %vm544_vm1 = vcmask (!%p230_p9), 130048  }
   0xe   : > { %233 = sbr.rel (%p230_p9) target bundleno = 268 (0x10c), region = 44  ;;  %v337_v2 = vld [vmem:[%s1042_s4] sm:$0xff] (!%p230_p9)  ;;  %v718_v3 = vpack.c.bf16 (!%p230_p9), %v342_v1, %v341_v0  ;;  %v338_v4 = vld [vmem:[%s1042_s4 + $0x8] sm:$0xff] (!%p230_p9)  ;;  %v344_v6 = vld [vmem:[%s1043_s5 + $0x18] sm:$0xff] (!%p230_p9)  ;;  %p267_p10 = scmp.lt.s32.totalorder (!%p230_p9), %s642_s15, 15 }
   0xf   : > { %v726_v7 = vpack.c.bf16 (!%p230_p9), %v338_v4, %v337_v2  ;;  %v722_v8 = vpack.c.bf16 (!%p230_p9), %v344_v6, %v343_v5  ;;  %v339_v9 = vld [vmem:[%s1042_s4 + $0x10] sm:$0xff] (!%p230_p9)  ;;  %v340_v10 = vld [vmem:[%s1042_s4 + $0x18] sm:$0xff] (!%p230_p9)  ;;  %v648_v12 = vld [vmem:[%s1040_s2] ss:$0 sm:$0xff] (!%p230_p9) }
  0x10   : > { %719 = vmatprep.subr.bf16.mxu1 (!%p230_p9), %v718_v3  ;;  %v730_v11 = vpack.c.bf16 (!%p230_p9), %v340_v10, %v339_v9  ;;  %v649_v13 = vld [vmem:[%s1041_s3] ss:$0 sm:$0xff] (!%p230_p9) }
  0x11   : > { %727 = vmatprep.subr.bf16.mxu0 (!%p230_p9), %v726_v7  ;;  %721 = vmatpush3.bf16.msra.mxu1 (!%p230_p9), %v718_v3 }
  0x12   : > { %729 = vmatpush3.bf16.msra.mxu0 (!%p230_p9), %v726_v7  ;;  %723 = vmatprep.subr.bf16.mxu1 (!%p230_p9), %v722_v8 }
  0x13   : > { %731 = vmatprep.subr.bf16.mxu0 (!%p230_p9), %v730_v11 }
  0x15   : > { %s1052_s15 = smov (!%p267_p10, %s642_s15), 15  ;;  %725 = vmatpush3.bf16.msra.mxu1 %v722_v8 }
  0x16   : > { %s671_s11 = sshll.u32 %s1052_s15, 4  ;;  %733 = vmatpush3.bf16.msra.mxu0 %v730_v11  ;;  %s263_s15 = sand.u32 1, %s833_s22  }
  0x17   : > { %s271_s17 = scalar_lea.vmem %s1038_s0, %s671_s11  ;;  %s963_s20 = scalar_lea.vmem %s1039_s1, %s671_s11 }
  0x18   : > { %v650_v14 = vld [vmem:[%s271_s17 + $0x8] sm:$0xff]  ;;  %v283_v15 = vld [vmem:[%s271_s17] sm:$0xff]  ;;  %v651_v19 = vld [vmem:[%s271_s17 + $0x18] sm:$0xff]  ;;  %s641_s29 = sshll.u32 %s263_s15, 5  ;;  %s673_s11 = sshll.u32 %s902_s25, 9 }
  0x19   : > { %v320_v16 = vmul.f32 %v650_v14, %v648_v12  ;;  %v654_v17 = vld [vmem:[%s963_s20 + $0x8] sm:$0xff]  ;;  %v293_v18 = vmul.f32 %v648_v12, %v283_v15  ;;  %v307_v20 = vld [vmem:[%s963_s20] sm:$0xff]  ;;  %v321_v21 = vmul.f32 %v651_v19, %v648_v12  ;;  %v284_v22 = vld [vmem:[%s271_s17 + $0x10] sm:$0xff]  ;;  %s265_s9 = scalar_lea.vmem [#allocation2], %s641_s29  ;;  %s993_s14 = scalar_lea.hbm %s1044_s6, %s673_s11 }
  0x1a   : > { %v652_v23 = vld [vmem:[%s271_s17 + $0x28] sm:$0xff]  ;;  %v655_v26 = vld [vmem:[%s963_s20 + $0x18] sm:$0xff]  ;;  %v294_v27 = vmul.f32 %v648_v12, %v284_v22  ;;  %v308_v28 = vld [vmem:[%s963_s20 + $0x10] sm:$0xff]  ;;  %s563_s10 = sshll.u32 %s265_s9, 4  ;;  %s997_s25 = scalar_lea.sflag [#allocation3], %s263_s15  ;;  %s988_s10 = int_to_ptr.vmem [resolvable:$true] %s563_s10 }
  0x1b   : > { %v324_v24 = vadd.f32 %v649_v13, %v320_v16  ;;  %v303_v25 = vadd.f32 %v649_v13, %v293_v18  ;;  %v322_v29 = vmul.f32 %v652_v23, %v648_v12  ;;  %v285_v30 = vld [vmem:[%s271_s17 + $0x20] sm:$0xff]  ;;  %v325_v31 = vadd.f32 %v649_v13, %v321_v21  ;;  %v656_v32 = vld [vmem:[%s963_s20 + $0x28] sm:$0xff]  ;;  %v653_v34 = vld [vmem:[%s271_s17 + $0x38] sm:$0xff]  ;;  %s779_s16 = scalar_lea.vmem %s988_s10, 512 }
  0x1c   : > { %v295_v33 = vmul.f32 %v648_v12, %v285_v30  ;;  %v286_v35 = vld [vmem:[%s271_s17 + $0x30] sm:$0xff]  ;;  %v304_v38 = vadd.f32 %v649_v13, %v294_v27  ;;  %v309_v40 = vld [vmem:[%s963_s20 + $0x20] sm:$0xff]  ;;  %v323_v43 = vmul.f32 %v653_v34, %v648_v12  ;;  %v657_v47 = vld [vmem:[%s963_s20 + $0x38] sm:$0xff]  ;;  %p780_p11 = scmp.ne.s32.totalorder %s988_s10, %s779_s16  ;;  %s843_s17 = smov [#allocation2]  }
  0x1d   : > { %v333_v36 = vadd.f32 %v654_v17, %v324_v24  ;;  %v311_v37 = vadd.f32 %v307_v20, %v303_v25  ;;  %v326_v39 = vadd.f32 %v649_v13, %v322_v29  ;;  %v334_v41 = vadd.f32 %v655_v26, %v325_v31  ;;  %v310_v48 = vld [vmem:[%s963_s20 + $0x30] sm:$0xff]  ;;  %s783_s18 = sshll.u32 %s843_s17, 4  ;;  %s784_s18 = int_to_ptr.vmem [resolvable:$false] %s783_s18 }
  0x1e   : > { %v305_v42 = vadd.f32 %v649_v13, %v295_v33  ;;  %v296_v44 = vmul.f32 %v648_v12, %v286_v35  ;;  %v312_v45 = vadd.f32 %v308_v28, %v304_v38  ;;  %v327_v50 = vadd.f32 %v649_v13, %v323_v43  ;;  %p781_p12 = pnand %p780_p11, %p919_p5  ;;  %s785_s19 = scalar_lea.vmem %s784_s18, 1024 }
  0x1f   : > { %698 = vmatprep.mubr.msk.f32.mxu1 %vm345_vm0, %v333_v36  ;;  %712 = vmatprep.mubr.msk.f32.mxu0 %vm345_vm0, %v311_v37  ;;  %v335_v46 = vadd.f32 %v656_v32, %v326_v39  ;;  %p786_p0 = scmp.lt.s32.totalorder %s988_s10, %s784_s18  ;;  %p787_p1 = scmp.lt.s32.totalorder %s785_s19, %s779_s16 }
  0x20   : > { %699 = vmatmul.mubr.msk.f32.vlgmr.msra.gmra.mrb[0].mxu1 %vm345_vm0, %v334_v41  ;;  %v313_v49 = vadd.f32 %v309_v40, %v305_v42  ;;  %v306_v51 = vadd.f32 %v649_v13, %v296_v44  ;;  %713 = vmatmul.mubr.msk.f32.vlgmr.msra.gmra.mrb[0].mxu0 %vm345_vm0, %v312_v45  ;;  %v336_v52 = vadd.f32 %v657_v47, %v327_v50  ;;  %p782_p13 = pneg %p781_p12 }
  0x21   : > { %701 = vmatprep.mubr.msk.f32.mxu1 %vm345_vm0, %v335_v46  ;;  %p788_p2 = por %p787_p1, %p786_p0 }
  0x22   : > { %715 = vmatprep.mubr.msk.f32.mxu0 %vm345_vm0, %v313_v49  ;;  %v314_v53 = vadd.f32 %v310_v48, %v306_v51 }
  0x23   : > { %p789_p3 = pnand %p788_p2, %p782_p13 }
  0x24   : > { %702 = vmatmul.mubr.msk.f32.gmra.mrb[2].mxu1 %vm345_vm0, %v336_v52  ;;  %716 = vmatmul.mubr.msk.f32.gmra.mrb[2].mxu0 %vm345_vm0, %v314_v53 }
  0xf3   : > { %v700_v54 = vpop.f32.mrb[0].mxu1  ;;  %v714_v55 = vpop.f32.mrb[0].mxu0 }
  0xf4   : > { %v424_v56 = vpop.f32.mrb[1].mxu1  ;;  %v527_v57 = vadd.f32 %v714_v55, %v700_v54  ;;  %v521_v58 = vpop.f32.mrb[1].mxu0 }
  0xf5   : > { %v522_v59 = vadd.f32 %v521_v58, %v424_v56 }
  0xf6   : > { %v541_v60 = vmax.f32 %v527_v57, 0.0 }
  0xf7   : > { %v703_v61 = vpop.f32.mrb[2].mxu1  ;;  %v540_v62 = vmax.f32 %v522_v59, 0.0  ;;  %v717_v63 = vpop.f32.mrb[2].mxu0 }
  0xf8   : > { %v434_v0 = vpop.f32.mrb[3].mxu1  ;;  %546 = vst.msk [vmem:[%s265_s9 + $0x8] sm:$0xff] %vm544_vm1, %v541_v60  ;;  %v537_v1 = vadd.f32 %v717_v63, %v703_v61  ;;  %v531_v2 = vpop.f32.mrb[3].mxu0 }
  0xf9   : > { %545 = vst.msk [vmem:[%s265_s9] sm:$0xff] %vm544_vm1, %v540_v62  ;;  %v532_v3 = vadd.f32 %v531_v2, %v434_v0 }
  0xfa   : > { %v543_v4 = vmax.f32 %v537_v1, 0.0 }
  0xfb   : > { %v542_v5 = vmax.f32 %v532_v3, 0.0 }
  0xfc   : > { %548 = vst.msk [vmem:[%s265_s9 + $0x18] sm:$0xff] %vm544_vm1, %v543_v4 }
  0xfd   : > { %547 = vst.msk [vmem:[%s265_s9 + $0x10] sm:$0xff] %vm544_vm1, %v542_v5 }
  0xfe   : > { %792 = shalt.err (!%p789_p3)
}
  0xff   : > { %s793_s20 = scalar_lea.hbm %s993_s14, 512  ;;  %s797_s15 = scalar_lea.hbm %s1044_s6, 2048 }
 0x100   : > { %p794_p4 = scmp.ne.s32.totalorder %s993_s14, %s793_s20  ;;  %p798_p9 = scmp.lt.u32.totalorder %s993_s14, %s1044_s6 }
 0x101   : > { %p799_p10 = scmp.lt.u32.totalorder %s797_s15, %s793_s20  ;;  %p801_p12 = scmp.lt.u32.totalorder %s793_s20, %s993_s14 }
 0x102   : > { %p795_p7 = pnand %p794_p4, %p919_p5 }
 0x103   : > { %p800_p11 = por %p799_p10, %p798_p9 }
 0x104   : > { %p796_p8 = pneg %p795_p7 }
 0x105   : > { %p802_p13 = por %p801_p12, %p800_p11 }
 0x107   : > { %p803_p0 = pnand %p802_p13, %p796_p8 }
 0x109   : > { %806 = shalt.err (!%p803_p0)
}
 0x10a   : > { %s844_s11 = smov 128   ;;  %s845_s12 = smov 8  }
 0x10b   : > { %738 = dma.vmem_to_hbm [thread:$0]  (%p919_p5), %s988_s10, 512, %s993_s14, %s997_s25, %s844_s11, %s844_s11, %s845_s12  }
 0x10c PF: > { %p744_p1 = scmp.ge.s32.totalorder %s841_s24, 2  ;;  %s578_s13 = sand.u32 1, %s829_s21  }
 0x10d   : > { %s579_s16 = scalar_lea.sflag [#allocation3], %s578_s13 }
 0x10e   : > { %p741_p2 = pnand %p744_p1, %p923_p6 }
 0x110   : > { %824 = dma.done.wait (!%p741_p2), %s579_s16, 512  }
 0x111   : > { %826 = vsyncadd (!%p741_p2), %s579_s16, 4294966784  ;;  %p16_p3 = scmp.ge.s32.totalorder %s906_s27, 6   ;;  %s1047_s21 = smov %s833_s22 }
 0x112   : > { %s1048_s22 = smov %s837_s23  ;;  %s1049_s23 = smov %s917_s30 }
 0x113   : > { %s1050_s24 = smov %s906_s27  ;;  %18 = sbr.rel (!%p16_p3) target bundleno = 3 (0x3), region = 84 }
 0x11a   :  { %584 = vsyncpa [#allocation3], 1 }
 0x11b   :  { %586 = vsyncpa [#allocation3 + $0x1], 1 }

// kernel: bottleneck_forward.5
= control target key start
LH: loop header
LB: loop body
LE: loop exit
PB: predicated region body
PF: predicated region fallthrough
CT: control target
= control target key end

     0   :  { %s7030_s24 = smov 0   ;;  %s9510_s0 = inlined_call_operand.vmem [shape: f32[512,4], index: 0, kind: input, shape index: {}]   ;;  %s9511_s1 = inlined_call_operand.vmem [shape: f32[1,4], index: 1, kind: input, shape index: {}]   ;;  %s9512_s2 = inlined_call_operand.vmem [shape: f32[1,4], index: 2, kind: input, shape index: {}]   ;;  %s9513_s3 = inlined_call_operand.vmem [shape: f32[9,4,4], index: 3, kind: input, shape index: {}]   ;;  %s9514_s4 = inlined_call_operand.vmem [shape: s32[256,1], index: 4, kind: input, shape index: {}]   ;;  %s9515_s5 = inlined_call_operand.vmem [shape: f32[512,4], index: 5, kind: output, shape index: {0}]   ;;  %s9516_s6 = inlined_call_operand.vmem [shape: f32[2,1,4], index: 6, kind: output, shape index: {1}]   ;;  %s9517_s7 = inlined_call_operand.vmem [shape: f32[2,1,4], index: 7, kind: output, shape index: {2}]  }
   0x1 LB: > { %s7036_s25 = sadd.s32 4294967295, %s6986_s24   ;;  %p5681_p0 = scmp.ge.s32.totalorder %s6986_s24, 1  ;;  %s6986_s24 = sphi %s7030_s24, %s18_s24  }
   0x2   : > { %p243_p1 = scmp.lt.s32.totalorder %s6986_s24, 3 }
   0x4   : > { %p244_p2 = pnand %p5681_p0, %p243_p1 }
   0x6   : > { %247 = sbr.rel (%p244_p2) target bundleno = 697 (0x2b9), region = 40 }
   0xd   : > { %v7043_v0 = vld [vmem:[%s9514_s4 + $0xa0] sm:$0xff]  ;;  %v7048_v1 = vld [vmem:[%s9514_s4 + $0xa8] sm:$0xff]  ;;  %v6988_v3 = vmov 0   ;;  %v7065_v5 = vld [vmem:[%s9514_s4 + $0x90] sm:$0xff]  ;;  %v6989_v6 = vmov 0.0   ;;  %s5682_s27 = sshll.u32 %s7036_s25, 5 }
   0xe   : > { %v7053_v2 = vld [vmem:[%s9514_s4 + $0x80] sm:$0xff]  ;;  %6829 = vset.pattern.permute.xlu1 %v6988_v3  ;;  %6818 = vset.pattern.permute.xlu0 %v6988_v3  ;;  %vm532_vm0 = vcmp.ge.s32.totalorder %v7043_v0, 1  ;;  %vm533_vm1 = vcmp.ge.s32.totalorder %v7048_v1, 1  ;;  %v7060_v4 = vld [vmem:[%s9514_s4 + $0x88] sm:$0xff]  ;;  %v7074_v9 = vld [vmem:[%s9514_s4 + $0x98] sm:$0xff]  ;;  %vm530_vm4 = vcmp.ge.s32.totalorder %v7065_v5, 1 }
   0xf   : > { %v5708_v7 = vsel %vm532_vm0, 1.0, %v6989_v6  ;;  %v5709_v8 = vsel %vm533_vm1, 1.0, %v6989_v6  ;;  %vm528_vm2 = vcmp.ge.s32.totalorder %v7053_v2, 1  ;;  %vm529_vm3 = vcmp.ge.s32.totalorder %v7060_v4, 1  ;;  %v7079_v10 = vld [vmem:[%s9514_s4] sm:$0xff]  ;;  %v7086_v14 = vld [vmem:[%s9514_s4 + $0x8] sm:$0xff] }
  0x10   : > { %v6830_v11 = vpack.i.bf16 %v5709_v8, %v5708_v7  ;;  %v5704_v12 = vsel %vm528_vm2, 1.0, %v6989_v6  ;;  %v5705_v13 = vsel %vm529_vm3, 1.0, %v6989_v6  ;;  %v7091_v15 = vld [vmem:[%s9514_s4 + $0xb0] sm:$0xff]  ;;  %vm531_vm5 = vcmp.ge.s32.totalorder %v7074_v9, 1  ;;  %v7098_v17 = vld [vmem:[%s9514_s4 + $0xb8] sm:$0xff]  ;;  %v7117_v22 = vld [vmem:[%s9514_s4 + $0xc0] sm:$0xff] }
  0x11   : > { %v6819_v16 = vpack.i.bf16 %v5705_v13, %v5704_v12  ;;  %v7103_v18 = vld [vmem:[%s9514_s4 + $0x10] sm:$0xff]  ;;  %v5706_v19 = vsel %vm530_vm4, 1.0, %v6989_v6  ;;  %v5707_v20 = vsel %vm531_vm5, 1.0, %v6989_v6  ;;  %vm512_vm6 = vcmp.ge.s32.totalorder %v7079_v10, 1  ;;  %v7112_v21 = vld [vmem:[%s9514_s4 + $0x18] sm:$0xff]  ;;  %v7125_v26 = vld [vmem:[%s9514_s4 + $0xc8] sm:$0xff] }
  0x12   : > { %6831 = vperm.xlu1 %6829, %v6830_v11   ;;  %vm513_vm7 = vcmp.ge.s32.totalorder %v7086_v14, 1  ;;  %v6824_v23 = vpack.i.bf16 %v5707_v20, %v5706_v19  ;;  %v5688_v24 = vsel %vm512_vm6, 1.0, %v6989_v6  ;;  %vm534_vm8 = vcmp.ge.s32.totalorder %v7091_v15, 1  ;;  %v7133_v29 = vld [vmem:[%s9514_s4 + $0x20] sm:$0xff]  ;;  %v7138_v30 = vld [vmem:[%s9514_s4 + $0x28] sm:$0xff]  ;;  %v7147_v33 = vld [vmem:[%s9514_s4 + $0xd0] sm:$0xff] }
  0x13   : > { %6820 = vperm.xlu0 %6818, %v6819_v16   ;;  %v5689_v25 = vsel %vm513_vm7, 1.0, %v6989_v6  ;;  %vm535_vm9 = vcmp.ge.s32.totalorder %v7098_v17, 1  ;;  %v5710_v28 = vsel %vm534_vm8, 1.0, %v6989_v6  ;;  %vm514_vm10 = vcmp.ge.s32.totalorder %v7103_v18, 1  ;;  %v7155_v37 = vld [vmem:[%s9514_s4 + $0xd8] sm:$0xff]  ;;  %v7160_v38 = vld [vmem:[%s9514_s4 + $0x30] sm:$0xff] }
  0x14   : > { %v6835_v27 = vpack.i.bf16 %v5689_v25, %v5688_v24  ;;  %v5711_v31 = vsel %vm535_vm9, 1.0, %v6989_v6  ;;  %vm515_vm11 = vcmp.ge.s32.totalorder %v7112_v21, 1  ;;  %v5690_v32 = vsel %vm514_vm10, 1.0, %v6989_v6  ;;  %v7168_v41 = vld [vmem:[%s9514_s4 + $0x38] sm:$0xff]  ;;  %v7173_v42 = vld [vmem:[%s9514_s4 + $0xe0] sm:$0xff]  ;;  %v7181_v46 = vld [vmem:[%s9514_s4 + $0xe8] sm:$0xff] }
  0x15   : > { %vm536_vm12 = vcmp.ge.s32.totalorder %v7117_v22, 1  ;;  %v6840_v34 = vpack.i.bf16 %v5711_v31, %v5710_v28  ;;  %v5691_v35 = vsel %vm515_vm11, 1.0, %v6989_v6  ;;  %vm537_vm13 = vcmp.ge.s32.totalorder %v7125_v26, 1  ;;  %v7189_v49 = vld [vmem:[%s9514_s4 + $0x40] sm:$0xff]  ;;  %v7194_v50 = vld [vmem:[%s9514_s4 + $0x48] sm:$0xff]  ;;  %v7203_v53 = vld [vmem:[%s9514_s4 + $0xf0] sm:$0xff] }
  0x16   : > { %6836 = vperm.xlu1 %6829, %v6835_v27   ;;  %v5712_v36 = vsel %vm536_vm12, 1.0, %v6989_v6  ;;  %v6845_v39 = vpack.i.bf16 %v5691_v35, %v5690_v32  ;;  %v5713_v40 = vsel %vm537_vm13, 1.0, %v6989_v6  ;;  %vm516_vm14 = vcmp.ge.s32.totalorder %v7133_v29, 1  ;;  %v7213_v57 = vld [vmem:[%s9514_s4 + $0xf8] sm:$0xff]  ;;  %v7218_v58 = vld [vmem:[%s9514_s4 + $0x50] sm:$0xff]  ;;  %v7231_v62 = vld [vmem:[%s9514_s4 + $0x60] sm:$0xff] }
  0x17   : > { %6825 = vperm.xlu0 %6818, %v6824_v23   ;;  %vm517_vm15 = vcmp.ge.s32.totalorder %v7138_v30, 1  ;;  %v6850_v43 = vpack.i.bf16 %v5713_v40, %v5712_v36  ;;  %v5692_v44 = vsel %vm516_vm14, 1.0, %v6989_v6  ;;  %vm538_vm0 = vcmp.ge.s32.totalorder %v7147_v33, 1  ;;  %v7226_v61 = vld [vmem:[%s9514_s4 + $0x58] sm:$0xff]  ;;  %v7240_v8 = vld [vmem:[%s9514_s4 + $0x68] sm:$0xff]  ;;  %v7250_v13 = vld [vmem:[%s9514_s4 + $0x70] sm:$0xff] }
  0x18   : > { %v5693_v45 = vsel %vm517_vm15, 1.0, %v6989_v6  ;;  %vm539_vm1 = vcmp.ge.s32.totalorder %v7155_v37, 1  ;;  %v5714_v48 = vsel %vm538_vm0, 1.0, %v6989_v6  ;;  %vm518_vm2 = vcmp.ge.s32.totalorder %v7160_v38, 1  ;;  %v7255_v16 = vld [vmem:[%s9514_s4 + $0x78] sm:$0xff]  ;;  %p7297_p3 = scmp.lt.s32.totalorder %s5682_s27, 63 }
  0x19   : > { %v6855_v47 = vpack.i.bf16 %v5693_v45, %v5692_v44  ;;  %v5715_v51 = vsel %vm539_vm1, 1.0, %v6989_v6  ;;  %vm519_vm3 = vcmp.ge.s32.totalorder %v7168_v41, 1  ;;  %v5694_v52 = vsel %vm518_vm2, 1.0, %v6989_v6  ;;  %p293_p4 = scmp.lt.s32.totalorder %s7036_s25, 1 }
  0x1a   : > { %6846 = vperm.xlu1 %6829, %v6845_v39   ;;  %vm540_vm4 = vcmp.ge.s32.totalorder %v7173_v42, 1  ;;  %v6860_v54 = vpack.i.bf16 %v5715_v51, %v5714_v48  ;;  %v5695_v55 = vsel %vm519_vm3, 1.0, %v6989_v6  ;;  %vm541_vm5 = vcmp.ge.s32.totalorder %v7181_v46, 1  ;;  %s9756_s27 = smov (!%p7297_p3, %s5682_s27), 63 }
  0x1b   : > { %6841 = vperm.xlu0 %6818, %v6840_v34   ;;  %v7208_v56 = vsel %vm540_vm4, 1.0, %v6989_v6  ;;  %v6865_v59 = vpack.i.bf16 %v5695_v55, %v5694_v52  ;;  %v5717_v60 = vsel %vm541_vm5, 1.0, %v6989_v6  ;;  %vm520_vm6 = vcmp.ge.s32.totalorder %v7189_v49, 1  ;;  %s5683_s29 = sshll.u32 %s9756_s27, 3  ;;  %s9758_s25 = smov (!%p293_p4, %s7036_s25), 1 }
  0x1c   : > { %vm521_vm7 = vcmp.ge.s32.totalorder %v7194_v50, 1  ;;  %v6870_v63 = vpack.i.bf16 %v5717_v60, %v7208_v56  ;;  %v5696_v3 = vsel %vm520_vm6, 1.0, %v6989_v6  ;;  %vm542_vm8 = vcmp.ge.s32.totalorder %v7203_v53, 1  ;;  %s7413_s9 = scalar_lea.vmem %s9510_s0, %s5683_s29  ;;  %s9295_s15 = scalar_lea.vmem %s9515_s5, %s5683_s29 }
  0x1d   : > { %v5697_v7 = vsel %vm521_vm7, 1.0, %v6989_v6  ;;  %vm543_vm9 = vcmp.ge.s32.totalorder %v7213_v57, 1  ;;  %v7244_v12 = vsel %vm542_vm8, 1.0, %v6989_v6  ;;  %vm522_vm10 = vcmp.ge.s32.totalorder %v7218_v58, 1  ;;  %s295_s16 = scalar_lea.vmem %s9516_s6, %s9758_s25  ;;  %s298_s19 = scalar_lea.vmem %s9517_s7, %s9758_s25 }
  0x1e   : > { %6856 = vperm.xlu1 %6829, %v6855_v47   ;;  %v6875_v11 = vpack.i.bf16 %v5697_v7, %v5696_v3  ;;  %v5719_v19 = vsel %vm543_vm9, 1.0, %v6989_v6  ;;  %vm523_vm11 = vcmp.ge.s32.totalorder %v7226_v61, 1  ;;  %v5698_v20 = vsel %vm522_vm10, 1.0, %v6989_v6  ;;  %v7434_v3 = vld [vmem:[%s9511_s1] ss:$0 sm:$0xff] }
  0x1f   : > { %6851 = vperm.xlu0 %6818, %v6850_v43   ;;  %vm524_vm12 = vcmp.ge.s32.totalorder %v7231_v62, 1  ;;  %v6880_v23 = vpack.i.bf16 %v5719_v19, %v7244_v12  ;;  %v5699_v24 = vsel %vm523_vm11, 1.0, %v6989_v6  ;;  %vm525_vm13 = vcmp.ge.s32.totalorder %v7240_v8, 1  ;;  %v7448_v7 = vld [vmem:[%s9512_s2] ss:$0 sm:$0xff]  ;;  %v318_v12 = vld [vmem:[%s7413_s9 + $0x98] sm:$0xff] }
  0x20   : > { %v7265_v25 = vsel %vm524_vm12, 1.0, %v6989_v6  ;;  %vm624_vm14 = vcmp.le.s32.totalorder %v7053_v2, 14  ;;  %v6885_v27 = vpack.i.bf16 %v5699_v24, %v5698_v20  ;;  %v7269_v28 = vsel %vm525_vm13, 1.0, %v6989_v6  ;;  %v320_v20 = vld [vmem:[%s7413_s9 + $0xa8] sm:$0xff] }
  0x21   : > { %vm526_vm15 = vcmp.ge.s32.totalorder %v7250_v13, 1  ;;  %vm527_vm0 = vcmp.ge.s32.totalorder %v7255_v16, 1  ;;  %vm625_vm1 = vcmp.le.s32.totalorder %v7060_v4, 14  ;;  %v6890_v31 = vpack.i.bf16 %v7269_v28, %v7265_v25 }
  0x22   : > { %6866 = vperm.xlu1 %6829, %v6865_v59   ;;  %v5702_v32 = vsel %vm526_vm15, 1.0, %v6989_v6  ;;  %v5703_v34 = vsel %vm527_vm0, 1.0, %v6989_v6  ;;  %vm608_vm2 = vcmp.le.s32.totalorder %v7079_v10, 14  ;;  %vm628_vm3 = vcmp.le.s32.totalorder %v7043_v0, 14 }
  0x23   : > { %6861 = vperm.xlu0 %6818, %v6860_v54   ;;  %v6895_v35 = vpack.i.bf16 %v5703_v34, %v5702_v32  ;;  %vm609_vm4 = vcmp.le.s32.totalorder %v7086_v14, 14  ;;  %v7283_v36 = vsel %vm608_vm2, 1.0, %v6989_v6  ;;  %vm610_vm5 = vcmp.le.s32.totalorder %v7103_v18, 14 }
  0x24   : > { %vm629_vm6 = vcmp.le.s32.totalorder %v7048_v1, 14  ;;  %v7288_v39 = vsel %vm609_vm4, 1.0, %v6989_v6  ;;  %vm611_vm7 = vcmp.le.s32.totalorder %v7112_v21, 14  ;;  %v7292_v10 = vsel %vm610_vm5, 1.0, %v6989_v6 }
  0x25   : > { %vm612_vm8 = vcmp.le.s32.totalorder %v7133_v29, 14  ;;  %v6900_v14 = vpack.i.bf16 %v7288_v39, %v7283_v36  ;;  %v5723_v18 = vsel %vm611_vm7, 1.0, %v6989_v6  ;;  %vm613_vm9 = vcmp.le.s32.totalorder %v7138_v30, 14 }
  0x26   : > { %v7306_v21 = vsel %vm612_vm8, 1.0, %v6989_v6  ;;  %6876 = vperm.xlu1 %6829, %v6875_v11   ;;  %v6905_v29 = vpack.i.bf16 %v5723_v18, %v7292_v10  ;;  %v7310_v40 = vsel %vm613_vm9, 1.0, %v6989_v6  ;;  %vm614_vm10 = vcmp.le.s32.totalorder %v7160_v38, 14  ;;  %v317_v11 = vld [vmem:[%s7413_s9 + $0x90] sm:$0xff] }
  0x27   : > { %vm615_vm11 = vcmp.le.s32.totalorder %v7168_v41, 14  ;;  %6871 = vperm.xlu0 %6818, %v6870_v63   ;;  %v6910_v43 = vpack.i.bf16 %v7310_v40, %v7306_v21  ;;  %v7317_v30 = vsel %vm614_vm10, 1.0, %v6989_v6  ;;  %vm616_vm12 = vcmp.le.s32.totalorder %v7189_v49, 14  ;;  %v313_v10 = vld [vmem:[%s7413_s9 + $0x70] sm:$0xff]  ;;  %v314_v21 = vld [vmem:[%s7413_s9 + $0x78] sm:$0xff] }
  0x28   : > { %v7320_v44 = vsel %vm615_vm11, 1.0, %v6989_v6  ;;  %vm617_vm13 = vcmp.le.s32.totalorder %v7194_v50, 14  ;;  %v7327_v38 = vsel %vm616_vm12, 1.0, %v6989_v6  ;;  %vm618_vm15 = vcmp.le.s32.totalorder %v7218_v58, 14 }
  0x29   : > { %v6915_v45 = vpack.i.bf16 %v7320_v44, %v7317_v30  ;;  %v7337_v41 = vsel %vm617_vm13, 1.0, %v6989_v6  ;;  %vm619_vm0 = vcmp.le.s32.totalorder %v7226_v61, 14  ;;  %v7341_v47 = vsel %vm618_vm15, 1.0, %v6989_v6 }
  0x2a   : > { %vm620_vm2 = vcmp.le.s32.totalorder %v7231_v62, 14  ;;  %6886 = vperm.xlu1 %6829, %v6885_v27   ;;  %v6920_v48 = vpack.i.bf16 %v7337_v41, %v7327_v38  ;;  %v7347_v49 = vsel %vm619_vm0, 1.0, %v6989_v6  ;;  %vm621_vm4 = vcmp.le.s32.totalorder %v7240_v8, 14 }
  0x2b   : > { %v7351_v50 = vsel %vm620_vm2, 1.0, %v6989_v6  ;;  %6881 = vperm.xlu0 %6818, %v6880_v23   ;;  %v6925_v51 = vpack.i.bf16 %v7347_v49, %v7341_v47  ;;  %v7356_v52 = vsel %vm621_vm4, 1.0, %v6989_v6  ;;  %vm622_vm5 = vcmp.le.s32.totalorder %v7250_v13, 14  ;;  %v319_v13 = vld [vmem:[%s7413_s9 + $0xa0] sm:$0xff]  ;;  %v321_v23 = vld [vmem:[%s7413_s9 + $0xb0] sm:$0xff] }
  0x2c   : > { %vm623_vm7 = vcmp.le.s32.totalorder %v7255_v16, 14  ;;  %v6930_v54 = vpack.i.bf16 %v7356_v52, %v7351_v50  ;;  %v7363_v55 = vsel %vm622_vm5, 1.0, %v6989_v6  ;;  %v7371_v58 = vsel %vm624_vm14, 1.0, %v6989_v6  ;;  %v7667_v50 = vld [vmem:[%s9513_s3 + $0x8] sm:$0xf] }
  0x2d   : > { %v7366_v56 = vsel %vm623_vm7, 1.0, %v6989_v6  ;;  %v7379_v60 = vsel %vm625_vm1, 1.0, %v6989_v6  ;;  %vm626_vm8 = vcmp.le.s32.totalorder %v7065_v5, 14  ;;  %vm627_vm9 = vcmp.le.s32.totalorder %v7074_v9, 14 }
  0x2e   : > { %v6935_v59 = vpack.i.bf16 %v7366_v56, %v7363_v55  ;;  %6896 = vperm.xlu1 %6829, %v6895_v35   ;;  %v6940_v2 = vpack.i.bf16 %v7379_v60, %v7371_v58  ;;  %v7386_v61 = vsel %vm626_vm8, 1.0, %v6989_v6  ;;  %v7389_v62 = vsel %vm627_vm9, 1.0, %v6989_v6 }
  0x2f   : > { %v7394_v4 = vsel %vm628_vm3, 1.0, %v6989_v6  ;;  %6891 = vperm.xlu0 %6818, %v6890_v31   ;;  %v6945_v5 = vpack.i.bf16 %v7389_v62, %v7386_v61  ;;  %v7404_v9 = vsel %vm629_vm6, 1.0, %v6989_v6  ;;  %vm630_vm14 = vcmp.le.s32.totalorder %v7091_v15, 14 }
  0x30   : > { %vm631_vm1 = vcmp.le.s32.totalorder %v7098_v17, 14  ;;  %v6950_v0 = vpack.i.bf16 %v7404_v9, %v7394_v4  ;;  %v7418_v63 = vsel %vm630_vm14, 1.0, %v6989_v6  ;;  %vm632_vm3 = vcmp.le.s32.totalorder %v7117_v22, 14 }
  0x31   : > { %v7421_v1 = vsel %vm631_vm1, 1.0, %v6989_v6  ;;  %vm633_vm6 = vcmp.le.s32.totalorder %v7125_v26, 14  ;;  %v7428_v17 = vsel %vm632_vm3, 1.0, %v6989_v6  ;;  %vm634_vm10 = vcmp.le.s32.totalorder %v7147_v33, 14  ;;  %v316_v33 = vld [vmem:[%s7413_s9 + $0x88] sm:$0xff] }
  0x32   : > { %v6955_v15 = vpack.i.bf16 %v7421_v1, %v7418_v63  ;;  %6906 = vperm.xlu1 %6829, %v6905_v29   ;;  %v7437_v22 = vsel %vm633_vm6, 1.0, %v6989_v6  ;;  %vm635_vm11 = vcmp.le.s32.totalorder %v7155_v37, 14  ;;  %v7441_v26 = vsel %vm634_vm10, 1.0, %v6989_v6 }
  0x33   : > { %vm636_vm12 = vcmp.le.s32.totalorder %v7173_v42, 14  ;;  %6901 = vperm.xlu0 %6818, %v6900_v14   ;;  %v6960_v37 = vpack.i.bf16 %v7437_v22, %v7428_v17  ;;  %v7456_v8 = vsel %vm635_vm11, 1.0, %v6989_v6  ;;  %vm637_vm13 = vcmp.le.s32.totalorder %v7181_v46, 14  ;;  %v322_v46 = vld [vmem:[%s7413_s9 + $0xb8] sm:$0xff] }
  0x34   : > { %v7460_v42 = vsel %vm636_vm12, 1.0, %v6989_v6  ;;  %v6965_v16 = vpack.i.bf16 %v7456_v8, %v7441_v26  ;;  %v7468_v19 = vsel %vm637_vm13, 1.0, %v6989_v6  ;;  %vm638_vm15 = vcmp.le.s32.totalorder %v7203_v53, 14 }
  0x35   : > { %vm639_vm0 = vcmp.le.s32.totalorder %v7213_v57, 14  ;;  %v6970_v24 = vpack.i.bf16 %v7468_v19, %v7460_v42  ;;  %v7478_v25 = vsel %vm638_vm15, 1.0, %v6989_v6  ;;  %v355_v28 = vmul.f32 %v7434_v3, %v316_v33  ;;  %v7602_v33 = vld [vmem:[%s9513_s3] sm:$0xf] }
  0x36   : > { %v7481_v27 = vsel %vm639_vm0, 1.0, %v6989_v6  ;;  %6916 = vperm.xlu1 %6829, %v6915_v45   ;;  %v356_v57 = vmul.f32 %v7434_v3, %v317_v11  ;;  %v357_v31 = vmul.f32 %v7434_v3, %v318_v12  ;;  %v358_v32 = vmul.f32 %v7434_v3, %v319_v13  ;;  %v315_v45 = vld [vmem:[%s7413_s9 + $0x80] sm:$0xff] }
  0x37   : > { %v6975_v53 = vpack.i.bf16 %v7481_v27, %v7478_v25  ;;  %6911 = vperm.xlu0 %6818, %v6910_v43   ;;  %v359_v34 = vmul.f32 %v7434_v3, %v320_v20  ;;  %v360_v35 = vmul.f32 %v7434_v3, %v321_v23  ;;  %v361_v36 = vmul.f32 %v7434_v3, %v322_v46  ;;  %v299_v11 = vld [vmem:[%s7413_s9] sm:$0xff]  ;;  %v300_v23 = vld [vmem:[%s7413_s9 + $0x8] sm:$0xff]  ;;  %v301_v46 = vld [vmem:[%s7413_s9 + $0x10] sm:$0xff] }
  0x38   : > { %v7499_v39 = vadd.f32 %v7448_v7, %v355_v28  ;;  %v7503_v14 = vadd.f32 %v7448_v7, %v356_v57  ;;  %v7506_v18 = vadd.f32 %v7448_v7, %v357_v31  ;;  %v7509_v29 = vadd.f32 %v7448_v7, %v358_v32  ;;  %v302_v28 = vld [vmem:[%s7413_s9 + $0x18] sm:$0xff]  ;;  %v312_v31 = vld [vmem:[%s7413_s9 + $0x68] sm:$0xff]  ;;  %v7633_v32 = vld [vmem:[%s9513_s3 + $0x4] sm:$0xf] }
  0x39   : > { %vm441_vm2 = vcmask 31744   ;;  %v7513_v40 = vadd.f32 %v7448_v7, %v359_v34  ;;  %v7516_v43 = vadd.f32 %v7448_v7, %v360_v35  ;;  %v7519_v30 = vadd.f32 %v7448_v7, %v361_v36 }
  0x3a   : > { %v426_v44 = vmax.f32 %v7499_v39, 0.0  ;;  %442 = vst.msk [vmem:[#allocation2] sm:$0xff] %vm441_vm2, %v6989_v6  ;;  %443 = vst.msk [vmem:[#allocation2 + $0x8] sm:$0xff] %vm441_vm2, %v6989_v6  ;;  %6926 = vperm.xlu1 %6829, %v6925_v51   ;;  %v427_v12 = vmax.f32 %v7503_v14, 0.0  ;;  %v428_v13 = vmax.f32 %v7506_v18, 0.0  ;;  %v429_v20 = vmax.f32 %v7509_v29, 0.0 }
  0x3b   : > { %444 = vst.msk [vmem:[#allocation2 + $0x10] sm:$0xff] %vm441_vm2, %v6989_v6  ;;  %445 = vst.msk [vmem:[#allocation2 + $0x118] sm:$0xff] %vm441_vm2, %v6989_v6  ;;  %6921 = vperm.xlu0 %6818, %v6920_v48   ;;  %v430_v57 = vmax.f32 %v7513_v40, 0.0  ;;  %v431_v47 = vmax.f32 %v7516_v43, 0.0  ;;  %v432_v49 = vmax.f32 %v7519_v30, 0.0  ;;  %v353_v51 = vmul.f32 %v7434_v3, %v314_v21  ;;  %v324_v40 = vld [vmem:[%s7413_s9 + $0xc8] sm:$0xff] }
  0x3c   : > { %446 = vst.msk [vmem:[#allocation2 + $0x120] sm:$0xff] %vm441_vm2, %v6989_v6  ;;  %447 = vst.msk [vmem:[#allocation2 + $0x128] sm:$0xff] %vm441_vm2, %v6989_v6  ;;  %v354_v38 = vmul.f32 %v7434_v3, %v315_v45  ;;  %vm1089_vm4 = vcmask 1043456   ;;  %v338_v48 = vmul.f32 %v7434_v3, %v299_v11  ;;  %v339_v35 = vmul.f32 %v7434_v3, %v300_v23  ;;  %v303_v30 = vld [vmem:[%s7413_s9 + $0x20] sm:$0xff] }
  0x3d   : > { %704 = vst.msk [vmem:[#allocation3] sm:$0xff] %vm441_vm2, %v6989_v6  ;;  %705 = vst.msk [vmem:[#allocation3 + $0x8] sm:$0xff] %vm441_vm2, %v6989_v6  ;;  %v392_v34 = vadd.f32 %v7448_v7, %v353_v51  ;;  %6806 = vmatprep.subr.msk.mxu1 %vm1089_vm4, %v7602_v33  ;;  %v340_v36 = vmul.f32 %v7434_v3, %v301_v46  ;;  %v341_v39 = vmul.f32 %v7434_v3, %v302_v28  ;;  %vm5467_vm5 = vcmask 24576  }
  0x3e   : > { %706 = vst.msk [vmem:[#allocation3 + $0x10] sm:$0xff] %vm441_vm2, %v6989_v6  ;;  %707 = vst.msk [vmem:[#allocation3 + $0x18] sm:$0xff] %vm441_vm2, %v6989_v6  ;;  %6936 = vperm.xlu1 %6829, %v6935_v59   ;;  %v393_v14 = vadd.f32 %v7448_v7, %v354_v38  ;;  %6807 = vmatpush3.msk.msra.mxu1 %vm1089_vm4, %v7602_v33  ;;  %v377_v29 = vadd.f32 %v7448_v7, %v338_v48  ;;  %v327_v38 = vld [vmem:[%s7413_s9 + $0xe0] sm:$0xff]  ;;  %v328_v48 = vld [vmem:[%s7413_s9 + $0xe8] sm:$0xff] }
  0x3f   : > { %708 = vst.msk [vmem:[#allocation3 + $0x20] sm:$0xff] %vm441_vm2, %v6989_v6  ;;  %709 = vst.msk [vmem:[#allocation3 + $0x28] sm:$0xff] %vm441_vm2, %v6989_v6  ;;  %v351_v21 = vmul.f32 %v7434_v3, %v312_v31  ;;  %6931 = vperm.xlu0 %6818, %v6930_v54   ;;  %v424_v43 = vmax.f32 %v392_v34, 0.0  ;;  %v378_v55 = vadd.f32 %v7448_v7, %v339_v35  ;;  %6406 = vmatprep.subr.msk.mxu1 %vm1089_vm4, %v7633_v32 }
  0x40   : > { %710 = vst.msk [vmem:[#allocation3 + $0x30] sm:$0xff] %vm441_vm2, %v6989_v6  ;;  %711 = vst.msk [vmem:[#allocation3 + $0x38] sm:$0xff] %vm441_vm2, %v6989_v6  ;;  %v379_v56 = vadd.f32 %v7448_v7, %v340_v36  ;;  %v380_v59 = vadd.f32 %v7448_v7, %v341_v39  ;;  %v425_v52 = vmax.f32 %v393_v14, 0.0  ;;  %v409_v54 = vmax.f32 %v377_v29, 0.0  ;;  %6356 = vmatprep.subr.msk.mxu0 %vm1089_vm4, %v7602_v33  ;;  %v308_v14 = vld [vmem:[%s7413_s9 + $0x48] sm:$0xff] }
  0x41   : > { %712 = vst.msk [vmem:[#allocation3 + $0x40] sm:$0xff] %vm441_vm2, %v6989_v6  ;;  %713 = vst.msk [vmem:[#allocation3 + $0x48] sm:$0xff] %vm441_vm2, %v6989_v6  ;;  %v390_v45 = vadd.f32 %v7448_v7, %v351_v21  ;;  %v363_v28 = vmul.f32 %v7434_v3, %v324_v40  ;;  %6357 = vmatpush3.msk.msra.mxu0 %vm1089_vm4, %v7602_v33  ;;  %v342_v51 = vmul.f32 %v7434_v3, %v303_v30  ;;  %v310_v30 = vld [vmem:[%s7413_s9 + $0x58] sm:$0xff] }
  0x42   : > { %714 = vst.msk [vmem:[#allocation3 + $0x50] sm:$0xff] %vm441_vm2, %v6989_v6  ;;  %715 = vst.msk [vmem:[#allocation3 + $0x58] sm:$0xff] %vm441_vm2, %v6989_v6  ;;  %v411_v23 = vmax.f32 %v379_v56, 0.0  ;;  %v412_v46 = vmax.f32 %v380_v59, 0.0  ;;  %6946 = vperm.xlu1 %6829, %v6945_v5   ;;  %6456 = vmatprep.subr.msk.mxu0 %vm1089_vm4, %v7667_v50  ;;  %v366_v40 = vmul.f32 %v7434_v3, %v327_v38  ;;  %v309_v56 = vld [vmem:[%s7413_s9 + $0x50] sm:$0xff] }
  0x43   : > { %716 = vst.msk [vmem:[#allocation3 + $0x60] sm:$0xff] %vm441_vm2, %v6989_v6  ;;  %717 = vst.msk [vmem:[#allocation3 + $0x68] sm:$0xff] %vm441_vm2, %v6989_v6  ;;  %6941 = vperm.xlu0 %6818, %v6940_v2   ;;  %v402_v61 = vadd.f32 %v7448_v7, %v363_v28  ;;  %v381_v60 = vadd.f32 %v7448_v7, %v342_v51  ;;  %v367_v59 = vmul.f32 %v7434_v3, %v328_v48 }
  0x44   : > { %718 = vst.msk [vmem:[#allocation3 + $0x70] sm:$0xff] %vm441_vm2, %v6989_v6  ;;  %719 = vst.msk [vmem:[#allocation3 + $0x78] sm:$0xff] %vm441_vm2, %v6989_v6  ;;  %v347_v4 = vmul.f32 %v7434_v3, %v308_v14 }
  0x45   : > { %720 = vst.msk [vmem:[#allocation3 + $0x80] sm:$0xff] %vm441_vm2, %v6989_v6  ;;  %721 = vst.msk [vmem:[#allocation3 + $0x88] sm:$0xff] %vm441_vm2, %v6989_v6  ;;  %v434_v34 = vmax.f32 %v402_v61, 0.0  ;;  %v406_v9 = vadd.f32 %v7448_v7, %v367_v59 }
  0x46   : > { %722 = vst.msk [vmem:[#allocation3 + $0x90] sm:$0xff] %vm441_vm2, %v6989_v6  ;;  %723 = vst.msk [vmem:[#allocation3 + $0x98] sm:$0xff] %vm441_vm2, %v6989_v6  ;;  %6956 = vperm.xlu1 %6829, %v6955_v15  }
  0x47   : > { %724 = vst.msk [vmem:[#allocation3 + $0xa0] sm:$0xff] %vm441_vm2, %v6989_v6  ;;  %725 = vst.msk [vmem:[#allocation3 + $0xa8] sm:$0xff] %vm441_vm2, %v6989_v6  ;;  %6951 = vperm.xlu0 %6818, %v6950_v0  }
  0x48   : > { %726 = vst.msk [vmem:[#allocation3 + $0xb0] sm:$0xff] %vm441_vm2, %v6989_v6  ;;  %727 = vst.msk [vmem:[#allocation3 + $0xb8] sm:$0xff] %vm441_vm2, %v6989_v6 }
  0x49   : > { %728 = vst.msk [vmem:[#allocation3 + $0xc0] sm:$0xff] %vm441_vm2, %v6989_v6  ;;  %729 = vst.msk [vmem:[#allocation3 + $0xc8] sm:$0xff] %vm441_vm2, %v6989_v6 }
  0x4a   : > { %730 = vst.msk [vmem:[#allocation3 + $0xd0] sm:$0xff] %vm441_vm2, %v6989_v6  ;;  %731 = vst.msk [vmem:[#allocation3 + $0xd8] sm:$0xff] %vm441_vm2, %v6989_v6  ;;  %6966 = vperm.xlu1 %6829, %v6965_v16  }
  0x4b   : > { %732 = vst.msk [vmem:[#allocation3 + $0xe0] sm:$0xff] %vm441_vm2, %v6989_v6  ;;  %733 = vst.msk [vmem:[#allocation3 + $0xe8] sm:$0xff] %vm441_vm2, %v6989_v6  ;;  %6961 = vperm.xlu0 %6818, %v6960_v37  }
  0x4c   : > { %734 = vst.msk [vmem:[#allocation3 + $0xf0] sm:$0xff] %vm441_vm2, %v6989_v6  ;;  %735 = vst.msk [vmem:[#allocation3 + $0xf8] sm:$0xff] %vm441_vm2, %v6989_v6  ;;  %v352_v6 = vmul.f32 %v7434_v3, %v313_v10  ;;  %v323_v10 = vld [vmem:[%s7413_s9 + $0xc0] sm:$0xff] }
  0x4d   : > { %465 = vst.msk [vmem:[#allocation2 + $0xa0] sm:$0xff] %vm441_vm2, %v426_v44  ;;  %466 = vst.msk [vmem:[#allocation2 + $0xa8] sm:$0xff] %vm441_vm2, %v427_v12  ;;  %v304_v44 = vld [vmem:[%s7413_s9 + $0x28] sm:$0xff]  ;;  %v362_v11 = vmul.f32 %v7434_v3, %v323_v10  ;;  %v325_v12 = vld [vmem:[%s7413_s9 + $0xd0] sm:$0xff] }
  0x4e   : > { %467 = vst.msk [vmem:[#allocation2 + $0xb0] sm:$0xff] %vm441_vm2, %v428_v13  ;;  %468 = vst.msk [vmem:[#allocation2 + $0xb8] sm:$0xff] %vm441_vm2, %v429_v20  ;;  %v391_v41 = vadd.f32 %v7448_v7, %v352_v6  ;;  %v326_v13 = vld [vmem:[%s7413_s9 + $0xd8] sm:$0xff]  ;;  %v305_v20 = vld [vmem:[%s7413_s9 + $0x30] sm:$0xff]  ;;  %v410_v6 = vmax.f32 %v378_v55, 0.0  ;;  %v343_v31 = vmul.f32 %v7434_v3, %v304_v44  ;;  %v364_v62 = vmul.f32 %v7434_v3, %v325_v12 }
  0x4f   : > { %469 = vst.msk [vmem:[#allocation2 + $0xc0] sm:$0xff] %vm441_vm2, %v430_v57  ;;  %470 = vst.msk [vmem:[#allocation2 + $0xc8] sm:$0xff] %vm441_vm2, %v431_v47  ;;  %v306_v57 = vld [vmem:[%s7413_s9 + $0x38] sm:$0xff]  ;;  %v422_v47 = vmax.f32 %v390_v45, 0.0  ;;  %v365_v5 = vmul.f32 %v7434_v3, %v326_v13  ;;  %v344_v33 = vmul.f32 %v7434_v3, %v305_v20  ;;  %v307_v10 = vld [vmem:[%s7413_s9 + $0x40] sm:$0xff]  ;;  %6976 = vperm.xlu1 %6829, %v6975_v53   ;;  %6971 = vperm.xlu0 %6818, %v6970_v24  }
  0x50   : > { %471 = vst.msk [vmem:[#allocation2 + $0xd0] sm:$0xff] %vm441_vm2, %v432_v49  ;;  %v423_v18 = vmax.f32 %v391_v41, 0.0  ;;  %463 = vst.msk [vmem:[#allocation2 + $0x90] sm:$0xff] %vm441_vm2, %v424_v43  ;;  %v401_v49 = vadd.f32 %v7448_v7, %v362_v11  ;;  %v382_v2 = vadd.f32 %v7448_v7, %v343_v31  ;;  %v345_v41 = vmul.f32 %v7434_v3, %v306_v57  ;;  %v329_v43 = vld [vmem:[%s7413_s9 + $0xf0] sm:$0xff]  ;;  %v330_v55 = vld [vmem:[%s7413_s9 + $0xf8] sm:$0xff] }
  0x51   : > { %464 = vst.msk [vmem:[#allocation2 + $0x98] sm:$0xff] %vm441_vm2, %v425_v52  ;;  %448 = vst.msk [vmem:[#allocation2 + $0x18] sm:$0xff] %vm441_vm2, %v409_v54  ;;  %v403_v35 = vadd.f32 %v7448_v7, %v364_v62  ;;  %v404_v36 = vadd.f32 %v7448_v7, %v365_v5  ;;  %v383_v39 = vadd.f32 %v7448_v7, %v344_v33  ;;  %v311_v12 = vld [vmem:[%s7413_s9 + $0x60] sm:$0xff] }
  0x52   : > { %462 = vst.msk [vmem:[#allocation2 + $0x88] sm:$0xff] %vm441_vm2, %v423_v18  ;;  %449 = vst.msk [vmem:[#allocation2 + $0x20] sm:$0xff] %vm441_vm2, %v410_v6  ;;  %v433_v58 = vmax.f32 %v401_v49, 0.0  ;;  %v413_v18 = vmax.f32 %v381_v60, 0.0  ;;  %v414_v29 = vmax.f32 %v382_v2, 0.0  ;;  %v384_v21 = vadd.f32 %v7448_v7, %v345_v41 }
  0x53   : > { %450 = vst.msk [vmem:[#allocation2 + $0x28] sm:$0xff] %vm441_vm2, %v411_v23  ;;  %451 = vst.msk [vmem:[#allocation2 + $0x30] sm:$0xff] %vm441_vm2, %v412_v46  ;;  %v435_v63 = vmax.f32 %v403_v35, 0.0  ;;  %v436_v1 = vmax.f32 %v404_v36, 0.0  ;;  %v415_v15 = vmax.f32 %v383_v39, 0.0  ;;  %v405_v52 = vadd.f32 %v7448_v7, %v366_v40 }
  0x54   : > { %461 = vst.msk [vmem:[#allocation2 + $0x80] sm:$0xff] %vm441_vm2, %v422_v47  ;;  %472 = vst.msk [vmem:[#allocation2 + $0xd8] sm:$0xff] %vm441_vm2, %v433_v58  ;;  %v416_v44 = vmax.f32 %v384_v21, 0.0  ;;  %v346_v54 = vmul.f32 %v7434_v3, %v307_v10  ;;  %v368_v0 = vmul.f32 %v7434_v3, %v329_v43  ;;  %v369_v45 = vmul.f32 %v7434_v3, %v330_v55  ;;  %v7772_v27 = vld [vmem:[#allocation2 + $0xa7] sm:$0xff] }
  0x55   : > { %473 = vst.msk [vmem:[#allocation2 + $0xe0] sm:$0xff] %vm441_vm2, %v434_v34  ;;  %452 = vst.msk [vmem:[#allocation2 + $0x38] sm:$0xff] %vm441_vm2, %v413_v18  ;;  %v348_v11 = vmul.f32 %v7434_v3, %v309_v56  ;;  %v437_v13 = vmax.f32 %v405_v52, 0.0  ;;  %v386_v6 = vadd.f32 %v7448_v7, %v347_v4  ;;  %v349_v23 = vmul.f32 %v7434_v3, %v310_v30  ;;  %v7774_v53 = vld [vmem:[#allocation2 + $0xaf] sm:$0xff]  ;;  %v7786_v33 = vld [vmem:[#allocation2 + $0xb7] sm:$0xff] }
  0x56   : > { %453 = vst.msk [vmem:[#allocation2 + $0x40] sm:$0xff] %vm441_vm2, %v414_v29  ;;  %474 = vst.msk [vmem:[#allocation2 + $0xe8] sm:$0xff] %vm441_vm2, %v435_v63  ;;  %v385_v20 = vadd.f32 %v7448_v7, %v346_v54  ;;  %v438_v46 = vmax.f32 %v406_v9, 0.0  ;;  %v407_v28 = vadd.f32 %v7448_v7, %v368_v0  ;;  %v408_v57 = vadd.f32 %v7448_v7, %v369_v45  ;;  %v7788_v38 = vld [vmem:[#allocation2 + $0xbf] sm:$0xff]  ;;  %v737_v63 = vld [vmem:[#allocation2 + $0xf] sm:$0xff] }
  0x57   : > { %475 = vst.msk [vmem:[#allocation2 + $0xf0] sm:$0xff] %vm441_vm2, %v436_v1  ;;  %454 = vst.msk [vmem:[#allocation2 + $0x48] sm:$0xff] %vm441_vm2, %v415_v15  ;;  %v387_v26 = vadd.f32 %v7448_v7, %v348_v11  ;;  %v418_v16 = vmax.f32 %v386_v6, 0.0  ;;  %v388_v47 = vadd.f32 %v7448_v7, %v349_v23  ;;  %v350_v49 = vmul.f32 %v7434_v3, %v311_v12  ;;  %v7780_v24 = vld [vmem:[#allocation2 + $0xcf] sm:$0xff] }
  0x58   : > { %455 = vst.msk [vmem:[#allocation2 + $0x50] sm:$0xff] %vm441_vm2, %v416_v44  ;;  %476 = vst.msk [vmem:[#allocation2 + $0xf8] sm:$0xff] %vm441_vm2, %v437_v13  ;;  %v417_v8 = vmax.f32 %v385_v20, 0.0  ;;  %v439_v51 = vmax.f32 %v407_v28, 0.0  ;;  %v440_v17 = vmax.f32 %v408_v57, 0.0  ;;  %v7784_v5 = vld [vmem:[#allocation2 + $0x97] sm:$0xff] }
  0x59   : > { %477 = vst.msk [vmem:[#allocation2 + $0x100] sm:$0xff] %vm441_vm2, %v438_v46  ;;  %v419_v22 = vmax.f32 %v387_v26, 0.0  ;;  %457 = vst.msk [vmem:[#allocation2 + $0x60] sm:$0xff] %vm441_vm2, %v418_v16  ;;  %v420_v37 = vmax.f32 %v388_v47, 0.0  ;;  %v389_v31 = vadd.f32 %v7448_v7, %v350_v49  ;;  %v7776_v7 = vld [vmem:[#allocation2 + $0xc7] sm:$0xff]  ;;  %v7782_v62 = vld [vmem:[#allocation2 + $0x8f] sm:$0xff] }
  0x5a   : > { %456 = vst.msk [vmem:[#allocation2 + $0x58] sm:$0xff] %vm441_vm2, %v417_v8  ;;  %478 = vst.msk [vmem:[#allocation2 + $0x108] sm:$0xff] %vm441_vm2, %v439_v51  ;;  %v7790_v2 = vld [vmem:[#allocation2 + $0x9f] sm:$0xff]  ;;  %v7812_v29 = vld [vmem:[#allocation2 + $0x2f] sm:$0xff] }
  0x5b   : > { %479 = vst.msk [vmem:[#allocation2 + $0x110] sm:$0xff] %vm441_vm2, %v440_v17  ;;  %458 = vst.msk [vmem:[#allocation2 + $0x68] sm:$0xff] %vm441_vm2, %v419_v22  ;;  %v421_v3 = vmax.f32 %v389_v31, 0.0  ;;  %v7799_v34 = vld [vmem:[#allocation2 + $0x87] sm:$0xff]  ;;  %v2483_v18 = vld [vmem:[#allocation2 + $0x1f] sm:$0xff] }
  0x5c   : > { %459 = vst.msk [vmem:[#allocation2 + $0x70] sm:$0xff] %vm441_vm2, %v420_v37  ;;  %v2482_v59 = vld [vmem:[#allocation2 + $0x17] sm:$0xff]  ;;  %v7823_v30 = vld [vmem:[#allocation2 + $0x27] sm:$0xff]  ;;  %v7862_v47 = vld [vmem:[#allocation2 + $0xdf] sm:$0xff] }
  0x5d   : > { %460 = vst.msk [vmem:[#allocation2 + $0x78] sm:$0xff] %vm441_vm2, %v421_v3  ;;  %v736_v13 = vld [vmem:[#allocation2 + $0x7] sm:$0xff]  ;;  %v7860_v16 = vld [vmem:[#allocation2 + $0xd7] sm:$0xff]  ;;  %v7868_v37 = vld [vmem:[#allocation2 + $0x3f] sm:$0xff] }
  0x5e   : > { %v7842_v20 = vld [vmem:[%s9513_s3 + $0xc] sm:$0xf]  ;;  %v7866_v22 = vld [vmem:[#allocation2 + $0x37] sm:$0xff] }
  0x91   : > { %v6832_v25 = vpop.permute.xlu1 %6831 }
  0x92   : > { %v7778_v42 = vunpack.i.h.bf16 %v6832_v25  ;;  %v6833_v19 = vunpack.i.l.bf16 %v6832_v25  ;;  %v6821_v61 = vpop.permute.xlu0 %6820 }
  0x93   : > { %v6823_v58 = vunpack.i.h.bf16 %v6821_v61  ;;  %v6822_v60 = vunpack.i.l.bf16 %v6821_v61 }
  0x94   : > { %v7793_v41 = vmul.f32 %v6833_v19, %v7786_v33  ;;  %v7797_v48 = vmul.f32 %v7778_v42, %v7788_v38  ;;  %v7802_v35 = vmul.f32 %v6833_v19, %v7776_v7  ;;  %v7806_v36 = vmul.f32 %v7778_v42, %v7780_v24 }
  0x95   : > { %v945_v39 = vmul.f32 %v6823_v58, %v7782_v62  ;;  %v7810_v10 = vmul.f32 %v6822_v60, %v7784_v5  ;;  %v6837_v14 = vpop.permute.xlu1 %6836  ;;  %v7815_v21 = vmul.f32 %v6823_v58, %v7790_v2  ;;  %v7818_v40 = vmul.f32 %v6822_v60, %v7772_v27 }
  0x96   : > { %9531 = vst [vmem:[#allocation4_spill] sm:$0xff] %v7793_v41  ;;  %9532 = vst [vmem:[#allocation5_spill] sm:$0xff] %v7797_v48  ;;  %v7821_v43 = vmul.f32 %v6823_v58, %v7774_v53  ;;  %v6826_v55 = vpop.permute.xlu0 %6825  ;;  %v6839_v56 = vunpack.i.h.bf16 %v6837_v14  ;;  %v944_v44 = vmul.f32 %v6822_v60, %v7799_v34  ;;  %v6838_v52 = vunpack.i.l.bf16 %v6837_v14  ;;  %v8307_v41 = vld [vmem:[#allocation2 + $0xb9] sm:$0xff] }
  0x97   : > { %9533 = vst [vmem:[#allocation6_spill] sm:$0xff] %v7802_v35  ;;  %9534 = vst [vmem:[#allocation7_spill] sm:$0xff] %v7806_v36  ;;  %v6828_v1 = vunpack.i.h.bf16 %v6826_v55  ;;  %v6827_v15 = vunpack.i.l.bf16 %v6826_v55 }
  0x98   : > { %9535 = vst [vmem:[#allocation8_spill] sm:$0xff] %v7810_v10  ;;  %9536 = vst [vmem:[#allocation9_spill] sm:$0xff] %v7815_v21  ;;  %v7826_v54 = vmul.f32 %v6839_v56, %v2483_v18  ;;  %v7829_v4 = vmul.f32 %v6839_v56, %v7812_v29  ;;  %v929_v11 = vmul.f32 %v6839_v56, %v737_v63  ;;  %6382 = vmatprep.mubr.msk.f32.mxu1 %vm441_vm2, %v944_v44  ;;  %v7909_v44 = vld [vmem:[#allocation2 + $0xef] sm:$0xff] }
  0x99   : > { %9537 = vst [vmem:[#allocation10_spill] sm:$0xff] %v7818_v40  ;;  %9538 = vst [vmem:[#allocation11_spill] sm:$0xff] %v7821_v43  ;;  %v946_v9 = vmul.f32 %v6827_v15, %v7784_v5  ;;  %v7833_v0 = vmul.f32 %v6827_v15, %v7772_v27  ;;  %v7836_v45 = vmul.f32 %v6828_v1, %v7774_v53  ;;  %v6847_v12 = vpop.permute.xlu1 %6846  ;;  %6383 = vmatmul.mubr.msk.f32.vlgmr.msra.gmra.mrb[0].mxu1 %vm441_vm2, %v945_v39  ;;  %v8328_v10 = vld [vmem:[#allocation2 + $0x48] sm:$0xff] }
  0x9a   : > { %9539 = vst [vmem:[#allocation12_spill] sm:$0xff] %v7829_v4  ;;  %v7845_v6 = vmul.f32 %v6827_v15, %v7786_v33  ;;  %v7848_v23 = vmul.f32 %v6828_v1, %v7788_v38  ;;  %v7850_v46 = vmul.f32 %v6838_v52, %v2482_v59  ;;  %v7853_v28 = vmul.f32 %v6838_v52, %v7823_v30  ;;  %v6842_v57 = vpop.permute.xlu0 %6841  ;;  %v8094_v4 = vld [vmem:[#allocation2 + $0x59] sm:$0xff] }
  0x9b   : > { %9540 = vst [vmem:[#allocation13_spill] sm:$0xff] %v7833_v0  ;;  %9541 = vst [vmem:[#allocation14_spill] sm:$0xff] %v7836_v45  ;;  %6407 = vmatpush3.msk.msra.mxu1 %vm1089_vm4, %v7633_v32  ;;  %v7858_v26 = vunpack.i.h.bf16 %v6842_v57  ;;  %v6843_v8 = vunpack.i.l.bf16 %v6842_v57  ;;  %v6849_v49 = vunpack.i.h.bf16 %v6847_v12  ;;  %v6848_v51 = vunpack.i.l.bf16 %v6847_v12  ;;  %6385 = vmatprep.mubr.msk.f32.mxu1 %vm441_vm2, %v946_v9  ;;  %v3913_v12 = vld [vmem:[#allocation2 + $0x4f] sm:$0xff] }
  0x9c   : > { %9542 = vst [vmem:[#allocation15_spill] sm:$0xff] %v7845_v6  ;;  %9543 = vst [vmem:[#allocation16_spill] sm:$0xff] %v7848_v23  ;;  %v947_v17 = vmul.f32 %v6828_v1, %v7790_v2  ;;  %v928_v31 = vmul.f32 %v6838_v52, %v736_v13  ;;  %6506 = vmatprep.subr.msk.mxu1 %vm1089_vm4, %v7842_v20  ;;  %v948_v32 = vmul.f32 %v6833_v19, %v7772_v27 }
  0x9d   : > { %9544 = vst [vmem:[#allocation17_spill] sm:$0xff] %v7853_v28  ;;  %v7874_v3 = vmul.f32 %v6843_v8, %v7776_v7  ;;  %v7878_v25 = vmul.f32 %v7858_v26, %v7780_v24  ;;  %v6857_v61 = vpop.permute.xlu1 %6856  ;;  %v7881_v58 = vmul.f32 %v6843_v8, %v7860_v16  ;;  %v7885_v60 = vmul.f32 %v7858_v26, %v7862_v47  ;;  %v1837_v28 = vld [vmem:[#allocation2 + $0x11] sm:$0xff] }
  0x9e   : > { %v930_v39 = vmul.f32 %v6848_v51, %v2482_v59  ;;  %v931_v14 = vmul.f32 %v6849_v49, %v2483_v18  ;;  %6358 = vmatprep.mubr.msk.f32.mxu0 %vm441_vm2, %v928_v31  ;;  %v6852_v27 = vpop.permute.xlu0 %6851  ;;  %v7889_v19 = vmul.f32 %v6848_v51, %v7823_v30  ;;  %v7892_v55 = vmul.f32 %v6849_v49, %v7812_v29  ;;  %v7904_v18 = vld [vmem:[%s9513_s3 + $0x10] sm:$0xf]  ;;  %v7907_v59 = vld [vmem:[#allocation2 + $0xe7] sm:$0xff] }
  0x9f   : > { %9545 = vst [vmem:[#allocation18_spill] sm:$0xff] %v7874_v3  ;;  %9546 = vst [vmem:[#allocation19_spill] sm:$0xff] %v7878_v25  ;;  %v7895_v56 = vmul.f32 %v6848_v51, %v7866_v22  ;;  %v7898_v63 = vmul.f32 %v6849_v49, %v7868_v37  ;;  %6359 = vmatmul.mubr.msk.f32.vlgmr.msra.gmra.mrb[0].mxu0 %vm441_vm2, %v929_v11  ;;  %6386 = vmatmul.mubr.msk.f32.gmra.mrb[2].mxu1 %vm441_vm2, %v947_v17  ;;  %v6854_v1 = vunpack.i.h.bf16 %v6852_v27  ;;  %v3912_v11 = vld [vmem:[#allocation2 + $0x47] sm:$0xff] }
  0xa0   : > { %9547 = vst [vmem:[#allocation20_spill] sm:$0xff] %v7881_v58  ;;  %9548 = vst [vmem:[#allocation21_spill] sm:$0xff] %v7885_v60  ;;  %v6853_v15 = vunpack.i.l.bf16 %v6852_v27  ;;  %v6859_v52 = vunpack.i.h.bf16 %v6857_v61  ;;  %v6858_v9 = vunpack.i.l.bf16 %v6857_v61  ;;  %6361 = vmatprep.mubr.msk.f32.mxu0 %vm441_vm2, %v930_v39  ;;  %6388 = vmatprep.mubr.msk.f32.mxu1 %vm441_vm2, %v948_v32  ;;  %v949_v57 = vmul.f32 %v7778_v42, %v7774_v53  ;;  %v3914_v58 = vld [vmem:[#allocation2 + $0x57] sm:$0xff] }
  0xa1   : > { %9549 = vst [vmem:[#allocation22_spill] sm:$0xff] %v7895_v56  ;;  %9550 = vst [vmem:[#allocation23_spill] sm:$0xff] %v7898_v63  ;;  %v6867_v13 = vpop.permute.xlu1 %6866  ;;  %6457 = vmatpush3.msk.msra.mxu0 %vm1089_vm4, %v7667_v50  ;;  %v950_v49 = vmul.f32 %v6843_v8, %v7786_v33  ;;  %v7922_v17 = vmul.f32 %v6854_v1, %v7862_v47  ;;  %v7930_v50 = vmul.f32 %v6854_v1, %v7909_v44  ;;  %v8092_v56 = vld [vmem:[#allocation2 + $0x51] sm:$0xff] }
  0xa2   : > { %v7919_v51 = vmul.f32 %v6853_v15, %v7860_v16  ;;  %v6862_v31 = vpop.permute.xlu0 %6861  ;;  %6556 = vmatprep.subr.msk.mxu0 %vm1089_vm4, %v7904_v18  ;;  %v7927_v32 = vmul.f32 %v6853_v15, %v7907_v59  ;;  %v932_v53 = vmul.f32 %v6858_v9, %v7823_v30  ;;  %v933_v42 = vmul.f32 %v6859_v52, %v7812_v29  ;;  %v7949_v29 = vld [vmem:[#allocation2 + $0xff] sm:$0xff] }
  0xa3   : > { %9552 = vst [vmem:[#allocation25_spill] sm:$0xff] %v7922_v17  ;;  %9554 = vst [vmem:[#allocation27_spill] sm:$0xff] %v7930_v50  ;;  %6362 = vmatmul.mubr.msk.f32.gmra.mrb[2].mxu0 %vm441_vm2, %v931_v14  ;;  %v7936_v33 = vmul.f32 %v6858_v9, %v7866_v22  ;;  %v7939_v8 = vmul.f32 %v6859_v52, %v7868_v37  ;;  %v7941_v61 = vmul.f32 %v6858_v9, %v3912_v11  ;;  %v7947_v50 = vld [vmem:[#allocation2 + $0xf7] sm:$0xff] }
  0xa4   : > { %9551 = vst [vmem:[#allocation24_spill] sm:$0xff] %v7919_v51  ;;  %9553 = vst [vmem:[#allocation26_spill] sm:$0xff] %v7927_v32  ;;  %v7943_v39 = vmul.f32 %v6859_v52, %v3913_v12  ;;  %6389 = vmatmul.mubr.msk.f32.gmra.mrb[4].mxu1 %vm441_vm2, %v949_v57  ;;  %v6864_v27 = vunpack.i.h.bf16 %v6862_v31  ;;  %v6863_v30 = vunpack.i.l.bf16 %v6862_v31  ;;  %v6869_v14 = vunpack.i.h.bf16 %v6867_v13  ;;  %6364 = vmatprep.mubr.msk.f32.mxu0 %vm441_vm2, %v932_v53  ;;  %v3915_v57 = vld [vmem:[#allocation2 + $0x5f] sm:$0xff]  ;;  %v8233_v17 = vld [vmem:[#allocation2 + $0x30] sm:$0xff] }
  0xa5   : > { %9555 = vst [vmem:[#allocation28_spill] sm:$0xff] %v7941_v61  ;;  %6391 = vmatprep.mubr.msk.f32.mxu1 %vm441_vm2, %v950_v49  ;;  %v6868_v32 = vunpack.i.l.bf16 %v6867_v13  ;;  %v6877_v60 = vpop.permute.xlu1 %6876  ;;  %v951_v9 = vmul.f32 %v7858_v26, %v7788_v38  ;;  %v952_v52 = vmul.f32 %v6853_v15, %v7776_v7  ;;  %v953_v31 = vmul.f32 %v6854_v1, %v7780_v24 }
  0xa6   : > { %9556 = vst [vmem:[#allocation29_spill] sm:$0xff] %v7943_v39  ;;  %v6872_v36 = vpop.permute.xlu0 %6871  ;;  %v6879_v49 = vunpack.i.h.bf16 %v6877_v60  ;;  %v6878_v35 = vunpack.i.l.bf16 %v6877_v60  ;;  %v954_v23 = vmul.f32 %v6863_v30, %v7860_v16  ;;  %v7958_v6 = vmul.f32 %v6863_v30, %v7907_v59  ;;  %v3916_v16 = vld [vmem:[#allocation2 + $0x67] sm:$0xff]  ;;  %v3917_v60 = vld [vmem:[#allocation2 + $0x6f] sm:$0xff]  ;;  %9620 = vst [vmem:[#allocation93_spill] sm:$0xff] %v8328_v10 }
  0xa7   : > { %v7961_v13 = vmul.f32 %v6864_v27, %v7909_v44  ;;  %6365 = vmatmul.mubr.msk.f32.gmra.mrb[4].mxu0 %vm441_vm2, %v933_v42  ;;  %v7965_v38 = vmul.f32 %v6863_v30, %v7947_v50  ;;  %v7968_v7 = vmul.f32 %v6864_v27, %v7949_v29  ;;  %v934_v26 = vmul.f32 %v6868_v32, %v7866_v22 }
  0xa8   : > { %9557 = vst [vmem:[#allocation30_spill] sm:$0xff] %v7958_v6  ;;  %v935_v24 = vmul.f32 %v6869_v14, %v7868_v37  ;;  %6392 = vmatmul.mubr.msk.f32.gmra.mrb[6].mxu1 %vm441_vm2, %v951_v9  ;;  %v7973_v1 = vmul.f32 %v6868_v32, %v3912_v11  ;;  %v7975_v15 = vmul.f32 %v6869_v14, %v3913_v12  ;;  %v7984_v22 = vunpack.i.l.bf16 %v6872_v36  ;;  %v8214_v6 = vld [vmem:[#allocation2 + $0x99] sm:$0xff] }
  0xa9   : > { %9558 = vst [vmem:[#allocation31_spill] sm:$0xff] %v7961_v13  ;;  %9559 = vst [vmem:[#allocation32_spill] sm:$0xff] %v7965_v38  ;;  %v7977_v53 = vmul.f32 %v6868_v32, %v3914_v58  ;;  %v7979_v42 = vmul.f32 %v6869_v14, %v3915_v57  ;;  %6394 = vmatprep.mubr.msk.f32.mxu1 %vm441_vm2, %v952_v52  ;;  %v6887_v30 = vpop.permute.xlu1 %6886  ;;  %v936_v37 = vmul.f32 %v6878_v35, %v3912_v11 }
  0xaa   : > { %9560 = vst [vmem:[#allocation33_spill] sm:$0xff] %v7968_v7  ;;  %9561 = vst [vmem:[#allocation34_spill] sm:$0xff] %v7975_v15  ;;  %v7982_v7 = vunpack.i.h.bf16 %v6872_v36  ;;  %v937_v38 = vmul.f32 %v6879_v49, %v3913_v12  ;;  %6367 = vmatprep.mubr.msk.f32.mxu0 %vm441_vm2, %v934_v26  ;;  %v6882_v9 = vpop.permute.xlu0 %6881  ;;  %v7987_v43 = vmul.f32 %v6878_v35, %v3914_v58  ;;  %v6888_v26 = vunpack.i.l.bf16 %v6887_v30 }
  0xab   : > { %9562 = vst [vmem:[#allocation35_spill] sm:$0xff] %v7977_v53  ;;  %9563 = vst [vmem:[#allocation36_spill] sm:$0xff] %v7979_v42  ;;  %v7989_v40 = vmul.f32 %v6879_v49, %v3915_v57  ;;  %v7991_v32 = vmul.f32 %v6878_v35, %v3916_v16  ;;  %v7993_v14 = vmul.f32 %v6879_v49, %v3917_v60  ;;  %6368 = vmatmul.mubr.msk.f32.gmra.mrb[6].mxu0 %vm441_vm2, %v935_v24  ;;  %v3918_v24 = vld [vmem:[#allocation2 + $0x77] sm:$0xff] }
  0xac   : > { %9564 = vst [vmem:[#allocation37_spill] sm:$0xff] %v7982_v7  ;;  %9565 = vst [vmem:[#allocation38_spill] sm:$0xff] %v7984_v22  ;;  %v7998_v52 = vmul.f32 %v7984_v22, %v7947_v50  ;;  %v8002_v36 = vmul.f32 %v7982_v7, %v7949_v29  ;;  %6395 = vmatmul.mubr.msk.f32.gmra.mrb[8].mxu1 %vm441_vm2, %v953_v31  ;;  %6370 = vmatprep.mubr.msk.f32.mxu0 %vm441_vm2, %v936_v37  ;;  %v8008_v12 = vunpack.i.l.bf16 %v6882_v9 }
  0xad   : > { %9566 = vst [vmem:[#allocation39_spill] sm:$0xff] %v7987_v43  ;;  %9567 = vst [vmem:[#allocation40_spill] sm:$0xff] %v7989_v40  ;;  %6397 = vmatprep.mubr.msk.f32.mxu1 %vm441_vm2, %v954_v23  ;;  %v6897_v35 = vpop.permute.xlu1 %6896  ;;  %v955_v11 = vmul.f32 %v6864_v27, %v7862_v47  ;;  %v6889_v49 = vunpack.i.h.bf16 %v6887_v30  ;;  %v956_v42 = vmul.f32 %v7984_v22, %v7907_v59  ;;  %v8050_v22 = vld [vmem:[#allocation2 + $0x21] sm:$0xff] }
  0xae   : > { %9568 = vst [vmem:[#allocation41_spill] sm:$0xff] %v7991_v32  ;;  %9569 = vst [vmem:[#allocation42_spill] sm:$0xff] %v7993_v14  ;;  %v3919_v14 = vld [vmem:[#allocation2 + $0x7f] sm:$0xff]  ;;  %v6892_v32 = vpop.permute.xlu0 %6891  ;;  %v6899_v31 = vunpack.i.h.bf16 %v6897_v35  ;;  %v6898_v53 = vunpack.i.l.bf16 %v6897_v35  ;;  %v957_v23 = vmul.f32 %v7982_v7, %v7909_v44  ;;  %v938_v37 = vmul.f32 %v6888_v26, %v3914_v58 }
  0xaf   : > { %9570 = vst [vmem:[#allocation43_spill] sm:$0xff] %v7998_v52  ;;  %9571 = vst [vmem:[#allocation44_spill] sm:$0xff] %v8002_v36  ;;  %6371 = vmatmul.mubr.msk.f32.gmra.mrb[8].mxu0 %vm441_vm2, %v937_v38  ;;  %v939_v39 = vmul.f32 %v6889_v49, %v3915_v57  ;;  %v8016_v47 = vmul.f32 %v6888_v26, %v3916_v16  ;;  %v8018_v27 = vmul.f32 %v6889_v49, %v3917_v60  ;;  %v8048_v7 = vld [vmem:[#allocation2 + $0x19] sm:$0xff]  ;;  %v8196_v52 = vld [vmem:[#allocation2 + $0x28] sm:$0xff] }
  0xb0   : > { %9572 = vst [vmem:[#allocation45_spill] sm:$0xff] %v8008_v12  ;;  %6398 = vmatmul.mubr.msk.f32.gmra.mrb[10].mxu1 %vm441_vm2, %v955_v11  ;;  %v8020_v30 = vmul.f32 %v6888_v26, %v3918_v24  ;;  %v8022_v61 = vmul.f32 %v6889_v49, %v3919_v14  ;;  %v8025_v38 = vunpack.i.h.bf16 %v6882_v9  ;;  %v958_v44 = vmul.f32 %v8008_v12, %v7947_v50  ;;  %v8194_v12 = vld [vmem:[#allocation2 + $0xa1] sm:$0xff] }
  0xb1   : > { %9573 = vst [vmem:[#allocation46_spill] sm:$0xff] %v8016_v47  ;;  %9574 = vst [vmem:[#allocation47_spill] sm:$0xff] %v8018_v27  ;;  %6400 = vmatprep.mubr.msk.f32.mxu1 %vm441_vm2, %v956_v42  ;;  %v6907_v59 = vpop.permute.xlu1 %6906  ;;  %v6894_v58 = vunpack.i.h.bf16 %v6892_v32  ;;  %v6893_v57 = vunpack.i.l.bf16 %v6892_v32  ;;  %6373 = vmatprep.mubr.msk.f32.mxu0 %vm441_vm2, %v938_v37  ;;  %v8031_v11 = vmul.f32 %v6898_v53, %v7799_v34 }
  0xb2   : > { %9575 = vst [vmem:[#allocation48_spill] sm:$0xff] %v8020_v30  ;;  %9576 = vst [vmem:[#allocation49_spill] sm:$0xff] %v8022_v61  ;;  %v6902_v35 = vpop.permute.xlu0 %6901  ;;  %v8034_v26 = vmul.f32 %v6899_v31, %v7782_v62  ;;  %v8037_v49 = vmul.f32 %v6898_v53, %v7784_v5  ;;  %v8040_v42 = vmul.f32 %v6899_v31, %v7790_v2  ;;  %v8065_v30 = vunpack.i.h.bf16 %v6907_v59 }
  0xb3   : > { %9577 = vst [vmem:[#allocation50_spill] sm:$0xff] %v8025_v38  ;;  %9578 = vst [vmem:[#allocation51_spill] sm:$0xff] %v8031_v11  ;;  %6374 = vmatmul.mubr.msk.f32.gmra.mrb[10].mxu0 %vm441_vm2, %v939_v39  ;;  %v940_v50 = vmul.f32 %v6893_v57, %v3916_v16  ;;  %v941_v9 = vmul.f32 %v6894_v58, %v3917_v60  ;;  %v8043_v32 = vmul.f32 %v6893_v57, %v3918_v24  ;;  %v8059_v60 = vld [vmem:[#allocation2 + $0x29] sm:$0xff]  ;;  %v8346_v11 = vld [vmem:[#allocation2 + $0xe1] sm:$0xff] }
  0xb4   : > { %9579 = vst [vmem:[#allocation52_spill] sm:$0xff] %v8034_v26  ;;  %9580 = vst [vmem:[#allocation53_spill] sm:$0xff] %v8037_v49  ;;  %v8045_v37 = vmul.f32 %v6894_v58, %v3919_v14  ;;  %6401 = vmatmul.mubr.msk.f32.gmra.mrb[12].mxu1 %vm441_vm2, %v957_v23  ;;  %v8053_v5 = vmul.f32 %v6893_v57, %v7799_v34  ;;  %v8056_v2 = vmul.f32 %v6894_v58, %v7782_v62  ;;  %v8067_v57 = vld [vmem:[#allocation2 + $0x39] sm:$0xff]  ;;  %v8069_v62 = vld [vmem:[#allocation2 + $0x41] sm:$0xff] }
  0xb5   : > { %9581 = vst [vmem:[#allocation54_spill] sm:$0xff] %v8040_v42  ;;  %9582 = vst [vmem:[#allocation55_spill] sm:$0xff] %v8043_v32  ;;  %6403 = vmatprep.mubr.msk.f32.mxu1 %vm441_vm2, %v958_v44  ;;  %v6904_v39 = vunpack.i.h.bf16 %v6902_v35  ;;  %v6903_v16 = vunpack.i.l.bf16 %v6902_v35  ;;  %v8061_v42 = vld [vmem:[#allocation2 + $0x31] sm:$0xff]  ;;  %v6917_v49 = vpop.permute.xlu1 %6916  ;;  %v959_v23 = vmul.f32 %v8025_v38, %v7949_v29  ;;  %v942_v61 = vmul.f32 %v6898_v53, %v3918_v24  ;;  %v1836_v58 = vld [vmem:[#allocation2 + $0x9] sm:$0xff] }
  0xb6   : > { %9583 = vst [vmem:[#allocation56_spill] sm:$0xff] %v8045_v37  ;;  %9584 = vst [vmem:[#allocation57_spill] sm:$0xff] %v8053_v5  ;;  %v6908_v34 = vunpack.i.l.bf16 %v6907_v59  ;;  %6376 = vmatprep.mubr.msk.f32.mxu0 %vm441_vm2, %v940_v50  ;;  %v6912_v44 = vpop.permute.xlu0 %6911  ;;  %v8079_v29 = vld [vmem:[#allocation2 + $0x49] sm:$0xff]  ;;  %v8081_v53 = vunpack.i.h.bf16 %v6917_v49  ;;  %v8083_v24 = vunpack.i.l.bf16 %v6917_v49  ;;  %v943_v5 = vmul.f32 %v6899_v31, %v3919_v14 }
  0xb7   : > { %9585 = vst [vmem:[#allocation58_spill] sm:$0xff] %v8056_v2  ;;  %v8073_v35 = vmul.f32 %v6903_v16, %v8048_v7  ;;  %v8076_v2 = vmul.f32 %v6904_v39, %v8050_v22  ;;  %6377 = vmatmul.mubr.msk.f32.gmra.mrb[12].mxu0 %vm441_vm2, %v941_v9  ;;  %v1382_v59 = vld [vmem:[#allocation2 + $0x8] sm:$0xff]  ;;  %v8086_v50 = vmul.f32 %v6903_v16, %v8059_v60  ;;  %v6913_v38 = vunpack.i.l.bf16 %v6912_v44  ;;  %v8365_v37 = vld [vmem:[#allocation2 + $0x50] sm:$0xff] }
  0xb8   : > { %v8089_v63 = vmul.f32 %v6904_v39, %v8061_v42  ;;  %6404 = vmatmul.mubr.msk.f32.gmra.mrb[14].mxu1 %vm441_vm2, %v959_v23  ;;  %v8096_v9 = vld [vmem:[#allocation2 + $0x61] sm:$0xff]  ;;  %v8099_v49 = vmul.f32 %v6908_v34, %v8059_v60  ;;  %v8103_v14 = vmul.f32 %v8065_v30, %v8061_v42  ;;  %v8106_v31 = vmul.f32 %v6908_v34, %v8067_v57 }
  0xb9   : > { %9586 = vst [vmem:[#allocation59_spill] sm:$0xff] %v8073_v35  ;;  %9587 = vst [vmem:[#allocation60_spill] sm:$0xff] %v8076_v2  ;;  %v8110_v23 = vmul.f32 %v8065_v30, %v8069_v62  ;;  %6379 = vmatprep.mubr.msk.f32.mxu0 %vm441_vm2, %v942_v61  ;;  %v2028_v2 = vmul.f32 %v6903_v16, %v1836_v58  ;;  %v8113_v35 = vunpack.i.h.bf16 %v6912_v44  ;;  %6408 = vmatprep.mubr.msk.f32.mxu1 %vm441_vm2, %v1382_v59  ;;  %v8133_v44 = vld [vmem:[#allocation2 + $0x18] sm:$0xff]  ;;  %v8138_v58 = vld [vmem:[%s9513_s3 + $0x14] sm:$0xf] }
  0xba   : > { %9588 = vst [vmem:[#allocation61_spill] sm:$0xff] %v8086_v50  ;;  %9589 = vst [vmem:[#allocation62_spill] sm:$0xff] %v8089_v63  ;;  %v1383_v63 = vld [vmem:[#allocation2 + $0x10] sm:$0xff]  ;;  %v6927_v50 = vpop.permute.xlu1 %6926  ;;  %v8126_v61 = vmul.f32 %v8083_v24, %v8094_v4  ;;  %v8130_v16 = vmul.f32 %v8081_v53, %v8096_v9  ;;  %v2029_v59 = vmul.f32 %v6904_v39, %v1837_v28 }
  0xbb   : > { %9590 = vst [vmem:[#allocation63_spill] sm:$0xff] %v8099_v49  ;;  %9591 = vst [vmem:[#allocation64_spill] sm:$0xff] %v8103_v14  ;;  %v6922_v49 = vpop.permute.xlu0 %6921  ;;  %v8118_v14 = vmul.f32 %v8083_v24, %v8079_v29  ;;  %6380 = vmatmul.mubr.msk.f32.gmra.mrb[14].mxu0 %vm441_vm2, %v943_v5  ;;  %v8153_v5 = vmul.f32 %v8113_v35, %v8092_v56  ;;  %v2031_v13 = vmul.f32 %v8065_v30, %v8050_v22 }
  0xbc   : > { %9592 = vst [vmem:[#allocation65_spill] sm:$0xff] %v8106_v31  ;;  %9593 = vst [vmem:[#allocation66_spill] sm:$0xff] %v8110_v23  ;;  %v8122_v31 = vmul.f32 %v8081_v53, %v8092_v56  ;;  %v8141_v23 = vmul.f32 %v6913_v38, %v8067_v57  ;;  %6409 = vmatmul.mubr.msk.f32.vlgmr.msra.gmra.mrb[16].mxu1 %vm441_vm2, %v1383_v63  ;;  %6458 = vmatprep.mubr.msk.f32.mxu0 %vm441_vm2, %v2028_v2  ;;  %v8158_v28 = vunpack.i.h.bf16 %v6922_v49  ;;  %v8166_v63 = vld [vmem:[#allocation2 + $0x20] sm:$0xff] }
  0xbd   : > { %9594 = vst [vmem:[#allocation67_spill] sm:$0xff] %v8118_v14  ;;  %9596 = vst [vmem:[#allocation69_spill] sm:$0xff] %v8126_v61  ;;  %v8145_v61 = vmul.f32 %v8113_v35, %v8069_v62  ;;  %6507 = vmatpush3.msk.msra.mxu1 %vm1089_vm4, %v7842_v20  ;;  %v8160_v39 = vunpack.i.l.bf16 %v6922_v49  ;;  %v8164_v14 = vld [vmem:[#allocation2 + $0x71] sm:$0xff]  ;;  %v8173_v20 = vld [vmem:[#allocation2 + $0x79] sm:$0xff]  ;;  %6411 = vmatprep.mubr.msk.f32.mxu1 %vm441_vm2, %v8133_v44  ;;  %v2032_v25 = vmul.f32 %v6913_v38, %v8059_v60 }
  0xbe   : > { %9595 = vst [vmem:[#allocation68_spill] sm:$0xff] %v8122_v31  ;;  %9597 = vst [vmem:[#allocation70_spill] sm:$0xff] %v8130_v16  ;;  %v8149_v16 = vmul.f32 %v6913_v38, %v8079_v29  ;;  %v8162_v31 = vld [vmem:[#allocation2 + $0x69] sm:$0xff]  ;;  %v8175_v2 = vld [vmem:[#allocation2 + $0x81] sm:$0xff]  ;;  %6606 = vmatprep.subr.msk.mxu1 %vm1089_vm4, %v8138_v58  ;;  %v2034_v48 = vmul.f32 %v8083_v24, %v8067_v57  ;;  %v2035_v26 = vmul.f32 %v8081_v53, %v8069_v62 }
  0xbf   : > { %9598 = vst [vmem:[#allocation71_spill] sm:$0xff] %v8141_v23  ;;  %9599 = vst [vmem:[#allocation72_spill] sm:$0xff] %v8145_v61  ;;  %v2030_v61 = vmul.f32 %v6908_v34, %v8048_v7  ;;  %v8169_v23 = vunpack.i.h.bf16 %v6927_v50  ;;  %v6932_v49 = vpop.permute.xlu0 %6931  ;;  %v8183_v36 = vmul.f32 %v8160_v39, %v8094_v4  ;;  %v8187_v7 = vmul.f32 %v8158_v28, %v8096_v9 }
  0xc0   : > { %9600 = vst [vmem:[#allocation73_spill] sm:$0xff] %v8149_v16  ;;  %9601 = vst [vmem:[#allocation74_spill] sm:$0xff] %v8153_v5  ;;  %v6937_v16 = vpop.permute.xlu1 %6936  ;;  %v8171_v5 = vunpack.i.l.bf16 %v6927_v50  ;;  %6459 = vmatmul.mubr.msk.f32.vlgmr.msra.gmra.mrb[16].mxu0 %vm441_vm2, %v2029_v59  ;;  %6412 = vmatmul.mubr.msk.f32.gmra.mrb[18].mxu1 %vm441_vm2, %v8166_v63  ;;  %v8212_v59 = vld [vmem:[#allocation2 + $0x91] sm:$0xff]  ;;  %v8238_v3 = vunpack.i.l.bf16 %v6932_v49  ;;  %v2036_v32 = vmul.f32 %v8160_v39, %v8079_v29 }
  0xc1   : > { %9602 = vst [vmem:[#allocation75_spill] sm:$0xff] %v8183_v36  ;;  %9603 = vst [vmem:[#allocation76_spill] sm:$0xff] %v8187_v7  ;;  %v8190_v34 = vunpack.i.h.bf16 %v6937_v16  ;;  %v8192_v50 = vunpack.i.l.bf16 %v6937_v16  ;;  %v8202_v36 = vmul.f32 %v8160_v39, %v8162_v31  ;;  %v8206_v7 = vmul.f32 %v8158_v28, %v8164_v14  ;;  %v8210_v16 = vld [vmem:[#allocation2 + $0x89] sm:$0xff]  ;;  %6461 = vmatprep.mubr.msk.f32.mxu0 %vm441_vm2, %v2030_v61 }
  0xc2   : > { %v8218_v22 = vmul.f32 %v8171_v5, %v8162_v31  ;;  %v8222_v30 = vmul.f32 %v8169_v23, %v8164_v14  ;;  %6414 = vmatprep.mubr.msk.f32.mxu1 %vm441_vm2, %v8196_v52  ;;  %6557 = vmatpush3.msk.msra.mxu0 %vm1089_vm4, %v7904_v18  ;;  %v8266_v18 = vld [vmem:[%s9513_s3 + $0x18] sm:$0xf]  ;;  %9627 = vst [vmem:[#allocation100_spill] sm:$0xff] %v8365_v37 }
  0xc3   : > { %9604 = vst [vmem:[#allocation77_spill] sm:$0xff] %v8202_v36  ;;  %9605 = vst [vmem:[#allocation78_spill] sm:$0xff] %v8206_v7  ;;  %v8226_v7 = vmul.f32 %v8171_v5, %v8173_v20  ;;  %v8230_v36 = vmul.f32 %v8169_v23, %v8175_v2  ;;  %v8248_v61 = vmul.f32 %v8192_v50, %v8210_v16  ;;  %6656 = vmatprep.subr.msk.mxu0 %vm1089_vm4, %v8266_v18 }
  0xc4   : > { %9606 = vst [vmem:[#allocation79_spill] sm:$0xff] %v8218_v22  ;;  %9607 = vst [vmem:[#allocation80_spill] sm:$0xff] %v8222_v30  ;;  %v6947_v51 = vpop.permute.xlu1 %6946  ;;  %v8236_v22 = vunpack.i.h.bf16 %v6932_v49  ;;  %v6942_v30 = vpop.permute.xlu0 %6941  ;;  %v8252_v38 = vmul.f32 %v8190_v34, %v8212_v59  ;;  %v8256_v60 = vmul.f32 %v8192_v50, %v8214_v6  ;;  %v8260_v49 = vmul.f32 %v8190_v34, %v8194_v12 }
  0xc5   : > { %9608 = vst [vmem:[#allocation81_spill] sm:$0xff] %v8226_v7  ;;  %9609 = vst [vmem:[#allocation82_spill] sm:$0xff] %v8230_v36  ;;  %v8244_v7 = vld [vmem:[#allocation2 + $0x38] sm:$0xff]  ;;  %6462 = vmatmul.mubr.msk.f32.gmra.mrb[18].mxu0 %vm441_vm2, %v2031_v13  ;;  %v2033_v36 = vmul.f32 %v8113_v35, %v8061_v42  ;;  %6415 = vmatmul.mubr.msk.f32.gmra.mrb[20].mxu1 %vm441_vm2, %v8233_v17  ;;  %v8282_v13 = vmul.f32 %v8238_v3, %v8210_v16  ;;  %v8289_v42 = vunpack.i.h.bf16 %v6942_v30 }
  0xc6   : > { %9610 = vst [vmem:[#allocation83_spill] sm:$0xff] %v8248_v61  ;;  %9611 = vst [vmem:[#allocation84_spill] sm:$0xff] %v8252_v38  ;;  %v8272_v38 = vmul.f32 %v8238_v3, %v8173_v20  ;;  %6464 = vmatprep.mubr.msk.f32.mxu0 %vm441_vm2, %v2032_v25  ;;  %v8291_v35 = vunpack.i.l.bf16 %v6942_v30  ;;  %v8293_v61 = vld [vmem:[#allocation2 + $0xa9] sm:$0xff]  ;;  %6417 = vmatprep.mubr.msk.f32.mxu1 %vm441_vm2, %v8244_v7  ;;  %v8305_v25 = vunpack.i.l.bf16 %v6947_v51  ;;  %v8309_v30 = vld [vmem:[#allocation2 + $0xc1] sm:$0xff] }
  0xc7   : > { %9612 = vst [vmem:[#allocation85_spill] sm:$0xff] %v8256_v60  ;;  %9613 = vst [vmem:[#allocation86_spill] sm:$0xff] %v8260_v49  ;;  %v8276_v60 = vmul.f32 %v8236_v22, %v8175_v2  ;;  %v8286_v49 = vmul.f32 %v8236_v22, %v8212_v59  ;;  %v8319_v21 = vmul.f32 %v8289_v42, %v8194_v12 }
  0xc8   : > { %9614 = vst [vmem:[#allocation87_spill] sm:$0xff] %v8272_v38  ;;  %9616 = vst [vmem:[#allocation89_spill] sm:$0xff] %v8282_v13  ;;  %v8299_v38 = vld [vmem:[#allocation2 + $0x40] sm:$0xff]  ;;  %v6957_v13 = vpop.permute.xlu1 %6956  ;;  %v6952_v45 = vpop.permute.xlu0 %6951  ;;  %v8315_v0 = vmul.f32 %v8291_v35, %v8214_v6  ;;  %v8350_v62 = vmul.f32 %v8305_v25, %v8293_v61  ;;  %v2037_v47 = vmul.f32 %v8158_v28, %v8092_v56 }
  0xc9   : > { %9615 = vst [vmem:[#allocation88_spill] sm:$0xff] %v8276_v60  ;;  %9617 = vst [vmem:[#allocation90_spill] sm:$0xff] %v8286_v49  ;;  %v8295_v60 = vld [vmem:[#allocation2 + $0xb1] sm:$0xff]  ;;  %v8303_v49 = vunpack.i.h.bf16 %v6947_v51  ;;  %6465 = vmatmul.mubr.msk.f32.gmra.mrb[20].mxu0 %vm441_vm2, %v2033_v36  ;;  %v8322_v51 = vld [vmem:[#allocation2 + $0xc9] sm:$0xff]  ;;  %v8324_v57 = vunpack.i.h.bf16 %v6957_v13  ;;  %v8326_v24 = vunpack.i.l.bf16 %v6957_v13  ;;  %6418 = vmatmul.mubr.msk.f32.gmra.mrb[22].mxu1 %vm441_vm2, %v8299_v38  ;;  %v8371_v27 = vunpack.i.l.bf16 %v6952_v45 }
  0xca   : > { %9618 = vst [vmem:[#allocation91_spill] sm:$0xff] %v8315_v0  ;;  %9619 = vst [vmem:[#allocation92_spill] sm:$0xff] %v8319_v21  ;;  %v8334_v0 = vmul.f32 %v8291_v35, %v8293_v61  ;;  %v8338_v21 = vmul.f32 %v8289_v42, %v8295_v60  ;;  %v8342_v36 = vld [vmem:[#allocation2 + $0xd1] sm:$0xff]  ;;  %v8344_v13 = vld [vmem:[#allocation2 + $0xd9] sm:$0xff]  ;;  %6467 = vmatprep.mubr.msk.f32.mxu0 %vm441_vm2, %v2034_v48  ;;  %6420 = vmatprep.mubr.msk.f32.mxu1 %vm441_vm2, %v8328_v10 }
  0xcb   : > { %9623 = vst [vmem:[#allocation96_spill] sm:$0xff] %v8350_v62  ;;  %v8354_v53 = vmul.f32 %v8303_v49, %v8295_v60  ;;  %v8369_v62 = vunpack.i.h.bf16 %v6952_v45  ;;  %v8383_v48 = vmul.f32 %v8324_v57, %v8342_v36  ;;  %v8387_v29 = vmul.f32 %v8326_v24, %v8344_v13 }
  0xcc   : > { %9621 = vst [vmem:[#allocation94_spill] sm:$0xff] %v8334_v0  ;;  %9622 = vst [vmem:[#allocation95_spill] sm:$0xff] %v8338_v21  ;;  %v8358_v21 = vmul.f32 %v8305_v25, %v8307_v41  ;;  %v8362_v0 = vmul.f32 %v8303_v49, %v8309_v30  ;;  %v8391_v45 = vmul.f32 %v8324_v57, %v8346_v11  ;;  %v6967_v39 = vpop.permute.xlu1 %6966 }
  0xcd   : > { %9624 = vst [vmem:[#allocation97_spill] sm:$0xff] %v8354_v53  ;;  %v6962_v53 = vpop.permute.xlu0 %6961  ;;  %9630 = vst [vmem:[#allocation103_spill] sm:$0xff] %v8383_v48  ;;  %6468 = vmatmul.mubr.msk.f32.gmra.mrb[22].mxu0 %vm441_vm2, %v2035_v26  ;;  %v8402_v48 = vmul.f32 %v8369_v62, %v8309_v30  ;;  %6421 = vmatmul.mubr.msk.f32.gmra.mrb[24].mxu1 %vm441_vm2, %v8365_v37  ;;  %v8412_v26 = vmul.f32 %v8369_v62, %v8342_v36  ;;  %v8429_v40 = vunpack.i.l.bf16 %v6967_v39 }
  0xce   : > { %9625 = vst [vmem:[#allocation98_spill] sm:$0xff] %v8358_v21  ;;  %9626 = vst [vmem:[#allocation99_spill] sm:$0xff] %v8362_v0  ;;  %v8375_v21 = vld [vmem:[#allocation2 + $0x58] sm:$0xff]  ;;  %v8379_v0 = vmul.f32 %v8326_v24, %v8322_v51  ;;  %6470 = vmatprep.mubr.msk.f32.mxu0 %vm441_vm2, %v2036_v32  ;;  %v8415_v56 = vunpack.i.h.bf16 %v6962_v53  ;;  %v8417_v28 = vunpack.i.l.bf16 %v6962_v53  ;;  %v8433_v32 = vld [vmem:[#allocation2 + $0x101] sm:$0xff]  ;;  %v2038_v53 = vmul.f32 %v8171_v5, %v8094_v4 }
  0xcf   : > { %9628 = vst [vmem:[#allocation101_spill] sm:$0xff] %v8375_v21  ;;  %9631 = vst [vmem:[#allocation104_spill] sm:$0xff] %v8387_v29  ;;  %v8419_v29 = vld [vmem:[#allocation2 + $0xe9] sm:$0xff]  ;;  %6423 = vmatprep.mubr.msk.f32.mxu1 %vm441_vm2, %v8375_v21  ;;  %v2039_v10 = vmul.f32 %v8169_v23, %v8096_v9 }
  0xd0   : > { %9629 = vst [vmem:[#allocation102_spill] sm:$0xff] %v8379_v0  ;;  %9632 = vst [vmem:[#allocation105_spill] sm:$0xff] %v8391_v45  ;;  %v8398_v0 = vmul.f32 %v8371_v27, %v8307_v41  ;;  %v8408_v45 = vmul.f32 %v8371_v27, %v8322_v51  ;;  %v8439_v37 = vmul.f32 %v8417_v28, %v8344_v13 }
  0xd1   : > { %9634 = vst [vmem:[#allocation107_spill] sm:$0xff] %v8402_v48  ;;  %9636 = vst [vmem:[#allocation109_spill] sm:$0xff] %v8412_v26  ;;  %v8421_v48 = vld [vmem:[#allocation2 + $0xf1] sm:$0xff]  ;;  %v8431_v26 = vld [vmem:[#allocation2 + $0xf9] sm:$0xff]  ;;  %v8443_v21 = vmul.f32 %v8415_v56, %v8346_v11  ;;  %6471 = vmatmul.mubr.msk.f32.gmra.mrb[24].mxu0 %vm441_vm2, %v2037_v47  ;;  %v6972_v43 = vpop.permute.xlu0 %6971  ;;  %v8452_v15 = vmul.f32 %v8417_v28, %v8419_v29  ;;  %v8462_v47 = vmul.f32 %v8429_v40, %v8419_v29 }
  0xd2   : > { %9633 = vst [vmem:[#allocation106_spill] sm:$0xff] %v8398_v0  ;;  %9635 = vst [vmem:[#allocation108_spill] sm:$0xff] %v8408_v45  ;;  %v8425_v0 = vld [vmem:[#allocation2 + $0x60] sm:$0xff]  ;;  %v8427_v45 = vunpack.i.h.bf16 %v6967_v39  ;;  %v8446_v39 = vld [vmem:[#allocation2 + $0x68] sm:$0xff]  ;;  %v8456_v4 = vmul.f32 %v8415_v56, %v8421_v48  ;;  %v8470_v9 = vmul.f32 %v8429_v40, %v8431_v26  ;;  %6473 = vmatprep.mubr.msk.f32.mxu0 %vm441_vm2, %v2038_v53 }
  0xd3   : > { %9637 = vst [vmem:[#allocation110_spill] sm:$0xff] %v8443_v21  ;;  %9638 = vst [vmem:[#allocation111_spill] sm:$0xff] %v8452_v15  ;;  %6424 = vmatmul.mubr.msk.f32.gmra.mrb[26].mxu1 %vm441_vm2, %v8425_v0  ;;  %v8479_v15 = vunpack.i.h.bf16 %v6972_v43  ;;  %v8481_v21 = vunpack.i.l.bf16 %v6972_v43  ;;  %v2041_v43 = vmul.f32 %v8236_v22, %v8164_v14  ;;  %v2043_v14 = vmul.f32 %v8190_v34, %v8175_v2  ;;  %v8519_v22 = vld [vmem:[#allocation2 + $0x90] sm:$0xff]  ;;  %v8533_v34 = vld [vmem:[#allocation2 + $0xa0] sm:$0xff] }
  0xd4   : > { %9639 = vst [vmem:[#allocation112_spill] sm:$0xff] %v8456_v4  ;;  %v8466_v5 = vmul.f32 %v8427_v45, %v8421_v48  ;;  %9641 = vst [vmem:[#allocation114_spill] sm:$0xff] %v8470_v9  ;;  %v8474_v23 = vmul.f32 %v8427_v45, %v8433_v32  ;;  %v8477_v4 = vld [vmem:[#allocation2 + $0x70] sm:$0xff]  ;;  %6426 = vmatprep.mubr.msk.f32.mxu1 %vm441_vm2, %v8446_v39  ;;  %v2040_v9 = vmul.f32 %v8238_v3, %v8162_v31  ;;  %v8509_v31 = vld [vmem:[#allocation2 + $0x88] sm:$0xff] }
  0xd5   : > { %6474 = vmatmul.mubr.msk.f32.gmra.mrb[26].mxu0 %vm441_vm2, %v2039_v10  ;;  %v8496_v53 = vmul.f32 %v8479_v15, %v8433_v32  ;;  %v8505_v10 = vld [vmem:[#allocation2 + $0x80] sm:$0xff]  ;;  %v2042_v3 = vmul.f32 %v8192_v50, %v8173_v20  ;;  %v2044_v20 = vmul.f32 %v8291_v35, %v8210_v16  ;;  %v8523_v50 = vld [vmem:[#allocation2 + $0x98] sm:$0xff]  ;;  %v2045_v2 = vmul.f32 %v8289_v42, %v8212_v59  ;;  %v8537_v35 = vld [vmem:[#allocation2 + $0xa8] sm:$0xff] }
  0xd6   : > { %9640 = vst [vmem:[#allocation113_spill] sm:$0xff] %v8466_v5  ;;  %9642 = vst [vmem:[#allocation115_spill] sm:$0xff] %v8474_v23  ;;  %v8485_v5 = vld [vmem:[#allocation2 + $0x78] sm:$0xff]  ;;  %v8492_v23 = vmul.f32 %v8481_v21, %v8431_v26  ;;  %6476 = vmatprep.mubr.msk.f32.mxu0 %vm441_vm2, %v2040_v9  ;;  %v2046_v16 = vmul.f32 %v8305_v25, %v8214_v6  ;;  %v2047_v59 = vmul.f32 %v8303_v49, %v8194_v12  ;;  %v8547_v42 = vld [vmem:[#allocation2 + $0xb0] sm:$0xff]  ;;  %v6977_v9 = vpop.permute.xlu1 %6976 }
  0xd7   : > { %6427 = vmatmul.mubr.msk.f32.gmra.mrb[28].mxu1 %vm441_vm2, %v8477_v4  ;;  %v2048_v6 = vmul.f32 %v8371_v27, %v8293_v61  ;;  %v8551_v25 = vld [vmem:[#allocation2 + $0xb8] sm:$0xff]  ;;  %v2049_v12 = vmul.f32 %v8369_v62, %v8295_v60  ;;  %v8561_v49 = vld [vmem:[#allocation2 + $0xc0] sm:$0xff]  ;;  %v2050_v27 = vmul.f32 %v8326_v24, %v8307_v41  ;;  %v8565_v61 = vld [vmem:[#allocation2 + $0xc8] sm:$0xff]  ;;  %v2051_v60 = vmul.f32 %v8324_v57, %v8309_v30 }
  0xd8   : > { %6429 = vmatprep.mubr.msk.f32.mxu1 %vm441_vm2, %v8485_v5  ;;  %v8575_v62 = vld [vmem:[#allocation2 + $0xd0] sm:$0xff]  ;;  %v2052_v41 = vmul.f32 %v8417_v28, %v8322_v51  ;;  %v8579_v24 = vld [vmem:[#allocation2 + $0xd8] sm:$0xff]  ;;  %v2053_v30 = vmul.f32 %v8415_v56, %v8342_v36  ;;  %v8589_v57 = vld [vmem:[#allocation2 + $0xe0] sm:$0xff]  ;;  %v2054_v51 = vmul.f32 %v8429_v40, %v8344_v13  ;;  %v2055_v36 = vmul.f32 %v8427_v45, %v8346_v11 }
  0xd9   : > { %6477 = vmatmul.mubr.msk.f32.gmra.mrb[28].mxu0 %vm441_vm2, %v2041_v43  ;;  %v8593_v28 = vld [vmem:[#allocation2 + $0xe8] sm:$0xff]  ;;  %v8603_v56 = vld [vmem:[#allocation2 + $0xf0] sm:$0xff]  ;;  %v2056_v40 = vmul.f32 %v8481_v21, %v8419_v29  ;;  %v8607_v13 = vunpack.i.l.bf16 %v6977_v9  ;;  %v8609_v43 = vld [vmem:[#allocation2 + $0xf8] sm:$0xff]  ;;  %v2057_v11 = vmul.f32 %v8479_v15, %v8421_v48  ;;  %v8617_v45 = vunpack.i.h.bf16 %v6977_v9 }
  0xda   : > { %6479 = vmatprep.mubr.msk.f32.mxu0 %vm441_vm2, %v2042_v3  ;;  %v8621_v29 = vld [vmem:[#allocation2 + $0x100] sm:$0xff]  ;;  %v9666_v9 = vld [vmem:[#allocation31_spill] sm:$0xff] }
  0xdb   : > { %6430 = vmatmul.mubr.msk.f32.gmra.mrb[30].mxu1 %vm441_vm2, %v8505_v10  ;;  %v2058_v3 = vmul.f32 %v8607_v13, %v8431_v26  ;;  %v2059_v48 = vmul.f32 %v8617_v45, %v8433_v32  ;;  %v9653_v26 = vld [vmem:[#allocation51_spill] sm:$0xff]  ;;  %v9654_v32 = vld [vmem:[#allocation52_spill] sm:$0xff] }
  0xdc   : > { %6432 = vmatprep.mubr.msk.f32.mxu1 %vm441_vm2, %v8509_v31 }
  0xdd   : > { %6480 = vmatmul.mubr.msk.f32.gmra.mrb[30].mxu0 %vm441_vm2, %v2043_v14  ;;  %v8637_v14 = vld [vmem:[%s9513_s3 + $0x1c] sm:$0xf] }
  0xde   : > { %6482 = vmatprep.mubr.msk.f32.mxu0 %vm441_vm2, %v2044_v20  ;;  %v9655_v20 = vld [vmem:[#allocation8_spill] sm:$0xff] }
  0xdf   : > { %6433 = vmatmul.mubr.msk.f32.gmra.mrb[32].mxu1 %vm441_vm2, %v8519_v22 }
  0xe0   : > { %6435 = vmatprep.mubr.msk.f32.mxu1 %vm441_vm2, %v8523_v50 }
  0xe1   : > { %6483 = vmatmul.mubr.msk.f32.gmra.mrb[32].mxu0 %vm441_vm2, %v2045_v2  ;;  %v9656_v2 = vld [vmem:[#allocation9_spill] sm:$0xff] }
  0xe2   : > { %6485 = vmatprep.mubr.msk.f32.mxu0 %vm441_vm2, %v2046_v16  ;;  %v9657_v16 = vld [vmem:[#allocation13_spill] sm:$0xff] }
  0xe3   : > { %6436 = vmatmul.mubr.msk.f32.gmra.mrb[34].mxu1 %vm441_vm2, %v8533_v34 }
  0xe4   : > { %6438 = vmatprep.mubr.msk.f32.mxu1 %vm441_vm2, %v8537_v35 }
  0xe5   : > { %6486 = vmatmul.mubr.msk.f32.gmra.mrb[34].mxu0 %vm441_vm2, %v2047_v59  ;;  %v9658_v59 = vld [vmem:[#allocation14_spill] sm:$0xff] }
  0xe6   : > { %6488 = vmatprep.mubr.msk.f32.mxu0 %vm441_vm2, %v2048_v6  ;;  %v9659_v6 = vld [vmem:[#allocation4_spill] sm:$0xff] }
  0xe7   : > { %6439 = vmatmul.mubr.msk.f32.gmra.mrb[36].mxu1 %vm441_vm2, %v8547_v42 }
  0xe8   : > { %6441 = vmatprep.mubr.msk.f32.mxu1 %vm441_vm2, %v8551_v25 }
  0xe9   : > { %6489 = vmatmul.mubr.msk.f32.gmra.mrb[36].mxu0 %vm441_vm2, %v2049_v12  ;;  %v9660_v12 = vld [vmem:[#allocation5_spill] sm:$0xff] }
  0xea   : > { %6491 = vmatprep.mubr.msk.f32.mxu0 %vm441_vm2, %v2050_v27  ;;  %v9661_v27 = vld [vmem:[#allocation18_spill] sm:$0xff] }
  0xeb   : > { %6442 = vmatmul.mubr.msk.f32.gmra.mrb[38].mxu1 %vm441_vm2, %v8561_v49 }
  0xec   : > { %6444 = vmatprep.mubr.msk.f32.mxu1 %vm441_vm2, %v8565_v61 }
  0xed   : > { %6492 = vmatmul.mubr.msk.f32.gmra.mrb[38].mxu0 %vm441_vm2, %v2051_v60  ;;  %v9662_v60 = vld [vmem:[#allocation19_spill] sm:$0xff] }
  0xee   : > { %6494 = vmatprep.mubr.msk.f32.mxu0 %vm441_vm2, %v2052_v41  ;;  %v9663_v41 = vld [vmem:[#allocation24_spill] sm:$0xff] }
  0xef   : > { %6445 = vmatmul.mubr.msk.f32.gmra.mrb[40].mxu1 %vm441_vm2, %v8575_v62 }
  0xf0   : > { %6447 = vmatprep.mubr.msk.f32.mxu1 %vm441_vm2, %v8579_v24 }
  0xf1   : > { %6495 = vmatmul.mubr.msk.f32.gmra.mrb[40].mxu0 %vm441_vm2, %v2053_v30  ;;  %v9664_v30 = vld [vmem:[#allocation25_spill] sm:$0xff] }
  0xf2   : > { %6497 = vmatprep.mubr.msk.f32.mxu0 %vm441_vm2, %v2054_v51  ;;  %v9665_v51 = vld [vmem:[#allocation30_spill] sm:$0xff] }
  0xf3   : > { %6448 = vmatmul.mubr.msk.f32.gmra.mrb[42].mxu1 %vm441_vm2, %v8589_v57 }
  0xf4   : > { %6450 = vmatprep.mubr.msk.f32.mxu1 %vm441_vm2, %v8593_v28 }
  0xf5   : > { %6498 = vmatmul.mubr.msk.f32.gmra.mrb[42].mxu0 %vm441_vm2, %v2055_v36  ;;  %v9667_v36 = vld [vmem:[#allocation43_spill] sm:$0xff] }
  0xf6   : > { %6500 = vmatprep.mubr.msk.f32.mxu0 %vm441_vm2, %v2056_v40  ;;  %v8762_v40 = vld [vmem:[#allocation2 + $0x107] sm:$0xff] }
  0xf7   : > { %6451 = vmatmul.mubr.msk.f32.gmra.mrb[44].mxu1 %vm441_vm2, %v8603_v56 }
  0xf8   : > { %6453 = vmatprep.mubr.msk.f32.mxu1 %vm441_vm2, %v8609_v43 }
  0xf9   : > { %6501 = vmatmul.mubr.msk.f32.gmra.mrb[44].mxu0 %vm441_vm2, %v2057_v11  ;;  %v9668_v11 = vld [vmem:[#allocation45_spill] sm:$0xff] }
  0xfa   : > { %6503 = vmatprep.mubr.msk.f32.mxu0 %vm441_vm2, %v2058_v3  ;;  %v2544_v3 = vmul.f32 %v9668_v11, %v8762_v40 }
  0xfb   : > { %6454 = vmatmul.mubr.msk.f32.gmra.mrb[46].mxu1 %vm441_vm2, %v8621_v29 }
  0xfc   : > { %6508 = vmatprep.mubr.msk.f32.mxu1 %vm441_vm2, %v7850_v46  ;;  %v8654_v46 = vld [vmem:[%s9513_s3 + $0x20] sm:$0xf] }
  0xfd   : > { %6504 = vmatmul.mubr.msk.f32.gmra.mrb[46].mxu0 %vm441_vm2, %v2059_v48  ;;  %v9669_v48 = vld [vmem:[#allocation44_spill] sm:$0xff] }
  0xfe   : > { %6558 = vmatprep.mubr.msk.f32.mxu0 %vm441_vm2, %v8133_v44  ;;  %v9648_v44 = vld [vmem:[#allocation101_spill] sm:$0xff] }
  0xff   : > { %6509 = vmatmul.mubr.msk.f32.vlgmr.msra.gmra.mrb[48].mxu1 %vm441_vm2, %v7826_v54  ;;  %v9643_v54 = vld [vmem:[#allocation34_spill] sm:$0xff] }
 0x100   : > { %6607 = vmatpush3.msk.msra.mxu1 %vm1089_vm4, %v8138_v58  ;;  %6511 = vmatprep.mubr.msk.f32.mxu1 %vm441_vm2, %v7889_v19  ;;  %v9644_v19 = vld [vmem:[#allocation93_spill] sm:$0xff]  ;;  %v9650_v58 = vld [vmem:[#allocation47_spill] sm:$0xff] }
 0x101   : > { %6706 = vmatprep.subr.msk.mxu1 %vm1089_vm4, %v8637_v14  ;;  %6559 = vmatmul.mubr.msk.f32.vlgmr.msra.gmra.mrb[48].mxu0 %vm441_vm2, %v8166_v63  ;;  %v9651_v63 = vld [vmem:[#allocation55_spill] sm:$0xff] }
 0x102   : > { %6561 = vmatprep.mubr.msk.f32.mxu0 %vm441_vm2, %v8196_v52  ;;  %6657 = vmatpush3.msk.msra.mxu0 %vm1089_vm4, %v8266_v18  ;;  %v9652_v18 = vld [vmem:[#allocation56_spill] sm:$0xff] }
 0x103   : > { %6512 = vmatmul.mubr.msk.f32.gmra.mrb[50].mxu1 %vm441_vm2, %v7892_v55  ;;  %6756 = vmatprep.subr.msk.mxu0 %vm1089_vm4, %v8654_v46  ;;  %v9645_v55 = vld [vmem:[#allocation39_spill] sm:$0xff] }
 0x104   : > { %6514 = vmatprep.mubr.msk.f32.mxu1 %vm441_vm2, %v7936_v33  ;;  %v9646_v33 = vld [vmem:[#allocation100_spill] sm:$0xff] }
 0x105   : > { %6562 = vmatmul.mubr.msk.f32.gmra.mrb[50].mxu0 %vm441_vm2, %v8233_v17 }
 0x106   : > { %6564 = vmatprep.mubr.msk.f32.mxu0 %vm441_vm2, %v8244_v7 }
 0x107   : > { %6515 = vmatmul.mubr.msk.f32.gmra.mrb[52].mxu1 %vm441_vm2, %v7939_v8  ;;  %v9647_v8 = vld [vmem:[#allocation40_spill] sm:$0xff] }
 0x108   : > { %6517 = vmatprep.mubr.msk.f32.mxu1 %vm441_vm2, %v7973_v1  ;;  %v9649_v1 = vld [vmem:[#allocation46_spill] sm:$0xff] }
 0x109   : > { %6565 = vmatmul.mubr.msk.f32.gmra.mrb[52].mxu0 %vm441_vm2, %v8299_v38 }
 0x10a   : > { %6567 = vmatprep.mubr.msk.f32.mxu0 %vm441_vm2, %v9644_v19 }
 0x10b   : > { %6518 = vmatmul.mubr.msk.f32.gmra.mrb[54].mxu1 %vm441_vm2, %v9643_v54  ;;  %v8772_v54 = vld [vmem:[#allocation2 + $0x10f] sm:$0xff] }
 0x10c   : > { %6520 = vmatprep.mubr.msk.f32.mxu1 %vm441_vm2, %v9645_v55  ;;  %v8775_v55 = vld [vmem:[#allocation2 + $0x108] sm:$0xff] }
 0x10d   : > { %6568 = vmatmul.mubr.msk.f32.gmra.mrb[54].mxu0 %vm441_vm2, %v9646_v33 }
 0x10e   : > { %6570 = vmatprep.mubr.msk.f32.mxu0 %vm441_vm2, %v9648_v44 }
 0x10f   : > { %6521 = vmatmul.mubr.msk.f32.gmra.mrb[56].mxu1 %vm441_vm2, %v9647_v8  ;;  %v9670_v8 = vld [vmem:[#allocation50_spill] sm:$0xff] }
 0x110   : > { %6523 = vmatprep.mubr.msk.f32.mxu1 %vm441_vm2, %v9649_v1  ;;  %v2545_v1 = vmul.f32 %v9670_v8, %v8772_v54 }
 0x111   : > { %6571 = vmatmul.mubr.msk.f32.gmra.mrb[56].mxu0 %vm441_vm2, %v8425_v0 }
 0x112   : > { %6573 = vmatprep.mubr.msk.f32.mxu0 %vm441_vm2, %v8446_v39 }
 0x113   : > { %6524 = vmatmul.mubr.msk.f32.gmra.mrb[58].mxu1 %vm441_vm2, %v9650_v58  ;;  %v8784_v58 = vld [vmem:[#allocation2 + $0x110] sm:$0xff] }
 0x114   : > { %6526 = vmatprep.mubr.msk.f32.mxu1 %vm441_vm2, %v9651_v63  ;;  %v9671_v63 = vld [vmem:[#allocation59_spill] sm:$0xff] }
 0x115   : > { %6574 = vmatmul.mubr.msk.f32.gmra.mrb[58].mxu0 %vm441_vm2, %v8477_v4 }
 0x116   : > { %6576 = vmatprep.mubr.msk.f32.mxu0 %vm441_vm2, %v8485_v5 }
 0x117   : > { %6527 = vmatmul.mubr.msk.f32.gmra.mrb[60].mxu1 %vm441_vm2, %v9652_v18  ;;  %v9672_v18 = vld [vmem:[#allocation60_spill] sm:$0xff] }
 0x118   : > { %6529 = vmatprep.mubr.msk.f32.mxu1 %vm441_vm2, %v9653_v26  ;;  %v9673_v26 = vld [vmem:[#allocation17_spill] sm:$0xff] }
 0x119   : > { %6577 = vmatmul.mubr.msk.f32.gmra.mrb[60].mxu0 %vm441_vm2, %v8505_v10 }
 0x11a   : > { %6579 = vmatprep.mubr.msk.f32.mxu0 %vm441_vm2, %v8509_v31 }
 0x11b   : > { %6530 = vmatmul.mubr.msk.f32.gmra.mrb[62].mxu1 %vm441_vm2, %v9654_v32  ;;  %v9675_v32 = vld [vmem:[#allocation12_spill] sm:$0xff] }
 0x11c   : > { %6532 = vmatprep.mubr.msk.f32.mxu1 %vm441_vm2, %v9655_v20  ;;  %v9676_v20 = vld [vmem:[#allocation64_spill] sm:$0xff] }
 0x11d   : > { %6580 = vmatmul.mubr.msk.f32.gmra.mrb[62].mxu0 %vm441_vm2, %v8519_v22 }
 0x11e   : > { %6582 = vmatprep.mubr.msk.f32.mxu0 %vm441_vm2, %v8523_v50 }
 0x11f   : > { %6533 = vmatmul.mubr.msk.f32.gmra.mrb[64].mxu1 %vm441_vm2, %v9656_v2  ;;  %v9677_v2 = vld [vmem:[#allocation22_spill] sm:$0xff] }
 0x120   : > { %6535 = vmatprep.mubr.msk.f32.mxu1 %vm441_vm2, %v9657_v16  ;;  %v9678_v16 = vld [vmem:[#allocation71_spill] sm:$0xff] }
 0x121   : > { %6583 = vmatmul.mubr.msk.f32.gmra.mrb[64].mxu0 %vm441_vm2, %v8533_v34 }
 0x122   : > { %6585 = vmatprep.mubr.msk.f32.mxu0 %vm441_vm2, %v8537_v35 }
 0x123   : > { %6536 = vmatmul.mubr.msk.f32.gmra.mrb[66].mxu1 %vm441_vm2, %v9658_v59  ;;  %v9679_v59 = vld [vmem:[#allocation23_spill] sm:$0xff] }
 0x124   : > { %6538 = vmatprep.mubr.msk.f32.mxu1 %vm441_vm2, %v9659_v6  ;;  %v9681_v6 = vld [vmem:[#allocation28_spill] sm:$0xff] }
 0x125   : > { %6586 = vmatmul.mubr.msk.f32.gmra.mrb[66].mxu0 %vm441_vm2, %v8547_v42 }
 0x126   : > { %6588 = vmatprep.mubr.msk.f32.mxu0 %vm441_vm2, %v8551_v25 }
 0x127   : > { %6539 = vmatmul.mubr.msk.f32.gmra.mrb[68].mxu1 %vm441_vm2, %v9660_v12  ;;  %v9682_v12 = vld [vmem:[#allocation67_spill] sm:$0xff] }
 0x128   : > { %6541 = vmatprep.mubr.msk.f32.mxu1 %vm441_vm2, %v9661_v27  ;;  %v9683_v27 = vld [vmem:[#allocation29_spill] sm:$0xff] }
 0x129   : > { %6589 = vmatmul.mubr.msk.f32.gmra.mrb[68].mxu0 %vm441_vm2, %v8561_v49 }
 0x12a   : > { %6591 = vmatprep.mubr.msk.f32.mxu0 %vm441_vm2, %v8565_v61 }
 0x12b   : > { %6542 = vmatmul.mubr.msk.f32.gmra.mrb[70].mxu1 %vm441_vm2, %v9662_v60  ;;  %v9684_v60 = vld [vmem:[#allocation68_spill] sm:$0xff] }
 0x12c   : > { %6544 = vmatprep.mubr.msk.f32.mxu1 %vm441_vm2, %v9663_v41  ;;  %v9685_v41 = vld [vmem:[#allocation35_spill] sm:$0xff] }
 0x12d   : > { %6592 = vmatmul.mubr.msk.f32.gmra.mrb[70].mxu0 %vm441_vm2, %v8575_v62 }
 0x12e   : > { %6594 = vmatprep.mubr.msk.f32.mxu0 %vm441_vm2, %v8579_v24 }
 0x12f   : > { %6545 = vmatmul.mubr.msk.f32.gmra.mrb[72].mxu1 %vm441_vm2, %v9664_v30  ;;  %v9687_v30 = vld [vmem:[#allocation36_spill] sm:$0xff] }
 0x130   : > { %6547 = vmatprep.mubr.msk.f32.mxu1 %vm441_vm2, %v9665_v51  ;;  %v9688_v51 = vld [vmem:[#allocation76_spill] sm:$0xff] }
 0x131   : > { %6595 = vmatmul.mubr.msk.f32.gmra.mrb[72].mxu0 %vm441_vm2, %v8589_v57 }
 0x132   : > { %6597 = vmatprep.mubr.msk.f32.mxu0 %vm441_vm2, %v8593_v28 }
 0x133   : > { %6548 = vmatmul.mubr.msk.f32.gmra.mrb[74].mxu1 %vm441_vm2, %v9666_v9  ;;  %v9689_v9 = vld [vmem:[#allocation41_spill] sm:$0xff] }
 0x134   : > { %6550 = vmatprep.mubr.msk.f32.mxu1 %vm441_vm2, %v9667_v36  ;;  %v9690_v36 = vld [vmem:[#allocation79_spill] sm:$0xff] }
 0x135   : > { %6598 = vmatmul.mubr.msk.f32.gmra.mrb[74].mxu0 %vm441_vm2, %v8603_v56 }
 0x136   : > { %6600 = vmatprep.mubr.msk.f32.mxu0 %vm441_vm2, %v8609_v43 }
 0x137   : > { %6551 = vmatmul.mubr.msk.f32.gmra.mrb[76].mxu1 %vm441_vm2, %v9669_v48  ;;  %v9692_v48 = vld [vmem:[#allocation80_spill] sm:$0xff] }
 0x138   : > { %6553 = vmatprep.mubr.msk.f32.mxu1 %vm441_vm2, %v2544_v3  ;;  %v9691_v3 = vld [vmem:[#allocation42_spill] sm:$0xff] }
 0x139   : > { %6601 = vmatmul.mubr.msk.f32.gmra.mrb[76].mxu0 %vm441_vm2, %v8621_v29  ;;  %v9674_v29 = vld [vmem:[#allocation63_spill] sm:$0xff] }
 0x13a   : > { %6603 = vmatprep.mubr.msk.f32.mxu0 %vm441_vm2, %v8775_v55 }
 0x13b   : > { %6554 = vmatmul.mubr.msk.f32.gmra.mrb[78].mxu1 %vm441_vm2, %v2545_v1  ;;  %v9693_v1 = vld [vmem:[#allocation48_spill] sm:$0xff] }
 0x13c   : > { %6608 = vmatprep.mubr.msk.f32.mxu1 %vm441_vm2, %v9671_v63  ;;  %v9694_v63 = vld [vmem:[#allocation87_spill] sm:$0xff] }
 0x13d   : > { %6604 = vmatmul.mubr.msk.f32.gmra.mrb[78].mxu0 %vm441_vm2, %v8784_v58 }
 0x13e   : > { %6658 = vmatprep.mubr.msk.f32.mxu0 %vm441_vm2, %v9673_v26  ;;  %v9696_v26 = vld [vmem:[#allocation88_spill] sm:$0xff] }
 0x13f   : > { %6609 = vmatmul.mubr.msk.f32.vlgmr.msra.gmra.mrb[80].mxu1 %vm441_vm2, %v9672_v18  ;;  %v9695_v18 = vld [vmem:[#allocation49_spill] sm:$0xff] }
 0x140   : > { %6707 = vmatpush3.msk.msra.mxu1 %vm1089_vm4, %v8637_v14  ;;  %6611 = vmatprep.mubr.msk.f32.mxu1 %vm441_vm2, %v9674_v29  ;;  %v9680_v14 = vld [vmem:[#allocation72_spill] sm:$0xff]  ;;  %v9697_v29 = vld [vmem:[#allocation57_spill] sm:$0xff] }
 0x141   : > { %6659 = vmatmul.mubr.msk.f32.vlgmr.msra.gmra.mrb[80].mxu0 %vm441_vm2, %v9675_v32  ;;  %v9698_v32 = vld [vmem:[#allocation83_spill] sm:$0xff] }
 0x142   : > { %6661 = vmatprep.mubr.msk.f32.mxu0 %vm441_vm2, %v9677_v2  ;;  %6757 = vmatpush3.msk.msra.mxu0 %vm1089_vm4, %v8654_v46  ;;  %v9686_v46 = vld [vmem:[#allocation75_spill] sm:$0xff]  ;;  %v9700_v2 = vld [vmem:[#allocation84_spill] sm:$0xff] }
 0x143   : > { %6612 = vmatmul.mubr.msk.f32.gmra.mrb[82].mxu1 %vm441_vm2, %v9676_v20  ;;  %v9699_v20 = vld [vmem:[#allocation58_spill] sm:$0xff] }
 0x144   : > { %6614 = vmatprep.mubr.msk.f32.mxu1 %vm441_vm2, %v9678_v16  ;;  %v9701_v16 = vld [vmem:[#allocation53_spill] sm:$0xff] }
 0x145   : > { %6662 = vmatmul.mubr.msk.f32.gmra.mrb[82].mxu0 %vm441_vm2, %v9679_v59  ;;  %v9702_v59 = vld [vmem:[#allocation91_spill] sm:$0xff] }
 0x146   : > { %6664 = vmatprep.mubr.msk.f32.mxu0 %vm441_vm2, %v9681_v6  ;;  %v9704_v6 = vld [vmem:[#allocation92_spill] sm:$0xff] }
 0x147   : > { %6615 = vmatmul.mubr.msk.f32.gmra.mrb[84].mxu1 %vm441_vm2, %v9680_v14  ;;  %v9703_v14 = vld [vmem:[#allocation54_spill] sm:$0xff] }
 0x148   : > { %6617 = vmatprep.mubr.msk.f32.mxu1 %vm441_vm2, %v9682_v12  ;;  %v9705_v12 = vld [vmem:[#allocation10_spill] sm:$0xff] }
 0x149   : > { %6665 = vmatmul.mubr.msk.f32.gmra.mrb[84].mxu0 %vm441_vm2, %v9683_v27  ;;  %v9706_v27 = vld [vmem:[#allocation96_spill] sm:$0xff] }
 0x14a   : > { %6667 = vmatprep.mubr.msk.f32.mxu0 %vm441_vm2, %v9685_v41  ;;  %v9708_v41 = vld [vmem:[#allocation97_spill] sm:$0xff] }
 0x14b   : > { %6618 = vmatmul.mubr.msk.f32.gmra.mrb[86].mxu1 %vm441_vm2, %v9684_v60  ;;  %v9707_v60 = vld [vmem:[#allocation11_spill] sm:$0xff] }
 0x14c   : > { %6620 = vmatprep.mubr.msk.f32.mxu1 %vm441_vm2, %v9686_v46  ;;  %v9709_v46 = vld [vmem:[#allocation15_spill] sm:$0xff] }
 0x14d   : > { %6668 = vmatmul.mubr.msk.f32.gmra.mrb[86].mxu0 %vm441_vm2, %v9687_v30  ;;  %v9710_v30 = vld [vmem:[#allocation106_spill] sm:$0xff] }
 0x14e   : > { %6670 = vmatprep.mubr.msk.f32.mxu0 %vm441_vm2, %v9689_v9  ;;  %v9712_v9 = vld [vmem:[#allocation107_spill] sm:$0xff] }
 0x14f   : > { %6621 = vmatmul.mubr.msk.f32.gmra.mrb[88].mxu1 %vm441_vm2, %v9688_v51  ;;  %v9711_v51 = vld [vmem:[#allocation16_spill] sm:$0xff] }
 0x150   : > { %6623 = vmatprep.mubr.msk.f32.mxu1 %vm441_vm2, %v9690_v36  ;;  %v9713_v36 = vld [vmem:[#allocation6_spill] sm:$0xff] }
 0x151   : > { %6671 = vmatmul.mubr.msk.f32.gmra.mrb[88].mxu0 %vm441_vm2, %v9691_v3  ;;  %v9714_v3 = vld [vmem:[#allocation102_spill] sm:$0xff] }
 0x152   : > { %6673 = vmatprep.mubr.msk.f32.mxu0 %vm441_vm2, %v9693_v1  ;;  %v9716_v1 = vld [vmem:[#allocation103_spill] sm:$0xff] }
 0x153   : > { %6624 = vmatmul.mubr.msk.f32.gmra.mrb[90].mxu1 %vm441_vm2, %v9692_v48  ;;  %v9715_v48 = vld [vmem:[#allocation7_spill] sm:$0xff] }
 0x154   : > { %6626 = vmatprep.mubr.msk.f32.mxu1 %vm441_vm2, %v9694_v63  ;;  %v9717_v63 = vld [vmem:[#allocation20_spill] sm:$0xff] }
 0x155   : > { %6674 = vmatmul.mubr.msk.f32.gmra.mrb[90].mxu0 %vm441_vm2, %v9695_v18  ;;  %v9718_v18 = vld [vmem:[#allocation21_spill] sm:$0xff] }
 0x156   : > { %6676 = vmatprep.mubr.msk.f32.mxu0 %vm441_vm2, %v9697_v29  ;;  %v9719_v29 = vld [vmem:[#allocation110_spill] sm:$0xff] }
 0x157   : > { %6627 = vmatmul.mubr.msk.f32.gmra.mrb[92].mxu1 %vm441_vm2, %v9696_v26  ;;  %v977_v26 = vld [vmem:[#allocation3 + $0x88] sm:$0xff] }
 0x158   : > { %6629 = vmatprep.mubr.msk.f32.mxu1 %vm441_vm2, %v9698_v32  ;;  %v9720_v32 = vld [vmem:[#allocation26_spill] sm:$0xff] }
 0x159   : > { %6677 = vmatmul.mubr.msk.f32.gmra.mrb[92].mxu0 %vm441_vm2, %v9699_v20  ;;  %v976_v20 = vld [vmem:[#allocation3 + $0x80] sm:$0xff] }
 0x15a   : > { %6679 = vmatprep.mubr.msk.f32.mxu0 %vm441_vm2, %v9701_v16 }
 0x15b   : > { %6630 = vmatmul.mubr.msk.f32.gmra.mrb[94].mxu1 %vm441_vm2, %v9700_v2 }
 0x15c   : > { %6632 = vmatprep.mubr.msk.f32.mxu1 %vm441_vm2, %v9702_v59 }
 0x15d   : > { %6680 = vmatmul.mubr.msk.f32.gmra.mrb[94].mxu0 %vm441_vm2, %v9703_v14 }
 0x15e   : > { %6682 = vmatprep.mubr.msk.f32.mxu0 %vm441_vm2, %v9705_v12  ;;  %v9722_v12 = vld [vmem:[#allocation113_spill] sm:$0xff] }
 0x15f   : > { %6633 = vmatmul.mubr.msk.f32.gmra.mrb[96].mxu1 %vm441_vm2, %v9704_v6  ;;  %v9721_v6 = vld [vmem:[#allocation27_spill] sm:$0xff] }
 0x160   : > { %6635 = vmatprep.mubr.msk.f32.mxu1 %vm441_vm2, %v9706_v27  ;;  %v9723_v27 = vld [vmem:[#allocation32_spill] sm:$0xff] }
 0x161   : > { %6683 = vmatmul.mubr.msk.f32.gmra.mrb[96].mxu0 %vm441_vm2, %v9707_v60  ;;  %v961_v60 = vld [vmem:[#allocation3 + $0x8] sm:$0xff] }
 0x162   : > { %6685 = vmatprep.mubr.msk.f32.mxu0 %vm441_vm2, %v9709_v46  ;;  %v9724_v46 = vld [vmem:[#allocation38_spill] sm:$0xff] }
 0x163   : > { %6636 = vmatmul.mubr.msk.f32.gmra.mrb[98].mxu1 %vm441_vm2, %v9708_v41  ;;  %v960_v41 = vld [vmem:[#allocation3] sm:$0xff] }
 0x164   : > { %6638 = vmatprep.mubr.msk.f32.mxu1 %vm441_vm2, %v9710_v30  ;;  %v3968_v30 = vmul.f32 %v9724_v46, %v8762_v40  ;;  %v963_v40 = vld [vmem:[#allocation3 + $0x18] sm:$0xff] }
 0x165   : > { %6686 = vmatmul.mubr.msk.f32.gmra.mrb[98].mxu0 %vm441_vm2, %v9711_v51 }
 0x166   : > { %6688 = vmatprep.mubr.msk.f32.mxu0 %vm441_vm2, %v9713_v36  ;;  %v3938_v36 = vld [vmem:[#allocation2 + $0x117] sm:$0xff] }
 0x167   : > { %6639 = vmatmul.mubr.msk.f32.gmra.mrb[100].mxu1 %vm441_vm2, %v9712_v9  ;;  %v978_v9 = vld [vmem:[#allocation3 + $0x90] sm:$0xff] }
 0x168   : > { %6641 = vmatprep.mubr.msk.f32.mxu1 %vm441_vm2, %v9714_v3  ;;  %v8910_v3 = vld [vmem:[#allocation2 + $0x111] sm:$0xff] }
 0x169   : > { %6689 = vmatmul.mubr.msk.f32.gmra.mrb[100].mxu0 %vm441_vm2, %v9715_v48 }
 0x16a   : > { %6691 = vmatprep.mubr.msk.f32.mxu0 %vm441_vm2, %v9717_v63 }
 0x16b   : > { %6642 = vmatmul.mubr.msk.f32.gmra.mrb[102].mxu1 %vm441_vm2, %v9716_v1 }
 0x16c   : > { %6644 = vmatprep.mubr.msk.f32.mxu1 %vm441_vm2, %v8439_v37  ;;  %v6384_v2 = vpop.f32.mrb[0].mxu1  ;;  %v8898_v37 = vld [vmem:[#allocation2 + $0x109] sm:$0xff] }
 0x16d   : > { %6692 = vmatmul.mubr.msk.f32.gmra.mrb[102].mxu0 %vm441_vm2, %v9718_v18  ;;  %v1335_v16 = vadd.f32 %v6384_v2, %v977_v26  ;;  %v1239_v59 = vpop.f32.mrb[1].mxu1  ;;  %v3484_v48 = vmul.f32 %v8607_v13, %v8898_v37  ;;  %v9725_v26 = vld [vmem:[#allocation33_spill] sm:$0xff] }
 0x16e   : > { %6694 = vmatprep.mubr.msk.f32.mxu0 %vm441_vm2, %v9720_v32  ;;  %v1334_v14 = vadd.f32 %v1239_v59, %v976_v20  ;;  %v9726_v20 = vld [vmem:[#allocation37_spill] sm:$0xff] }
 0x16f   : > { %6645 = vmatmul.mubr.msk.f32.gmra.mrb[104].mxu1 %vm441_vm2, %v9719_v29  ;;  %1367 = vst.msk [vmem:[#allocation3 + $0x88] sm:$0xff] %vm441_vm2, %v1335_v16  ;;  %v3969_v2 = vmul.f32 %v9726_v20, %v8772_v54  ;;  %v981_v59 = vld [vmem:[#allocation3 + $0xa8] sm:$0xff]  ;;  %v967_v20 = vld [vmem:[#allocation3 + $0x38] sm:$0xff] }
 0x170   : > { %6647 = vmatprep.mubr.msk.f32.mxu1 %vm441_vm2, %v8462_v47  ;;  %1366 = vst.msk [vmem:[#allocation3 + $0x80] sm:$0xff] %vm441_vm2, %v1334_v14  ;;  %v979_v47 = vld [vmem:[#allocation3 + $0x98] sm:$0xff]  ;;  %v962_v14 = vld [vmem:[#allocation3 + $0x10] sm:$0xff] }
 0x171   : > { %6695 = vmatmul.mubr.msk.f32.gmra.mrb[104].mxu0 %vm441_vm2, %v9721_v6  ;;  %v3939_v6 = vld [vmem:[#allocation2 + $0x11f] sm:$0xff] }
 0x172   : > { %6697 = vmatprep.mubr.msk.f32.mxu0 %vm441_vm2, %v9723_v27  ;;  %v6360_v51 = vpop.f32.mrb[0].mxu0  ;;  %v6387_v63 = vpop.f32.mrb[2].mxu1  ;;  %v3485_v27 = vmul.f32 %v8617_v45, %v8910_v3 }
 0x173   : > { %6648 = vmatmul.mubr.msk.f32.gmra.mrb[106].mxu1 %vm441_vm2, %v9722_v12  ;;  %v1319_v1 = vadd.f32 %v6360_v51, %v961_v60  ;;  %v1159_v18 = vpop.f32.mrb[1].mxu0  ;;  %v1249_v32 = vpop.f32.mrb[3].mxu1  ;;  %v3970_v12 = vmul.f32 %v9668_v11, %v3938_v36  ;;  %v980_v60 = vld [vmem:[#allocation3 + $0xa0] sm:$0xff]  ;;  %v965_v11 = vld [vmem:[#allocation3 + $0x28] sm:$0xff] }
 0x174   : > { %6650 = vmatprep.mubr.msk.f32.mxu1 %vm441_vm2, %v8492_v23  ;;  %v1337_v23 = vadd.f32 %v6387_v63, %v979_v47  ;;  %v1318_v29 = vadd.f32 %v1159_v18, %v960_v41  ;;  %v1336_v16 = vadd.f32 %v1249_v32, %v978_v9  ;;  %v3971_v9 = vmul.f32 %v9670_v8, %v3939_v6  ;;  %v982_v18 = vld [vmem:[#allocation3 + $0xb0] sm:$0xff]  ;;  %v984_v6 = vld [vmem:[#allocation3 + $0xc0] sm:$0xff] }
 0x175   : > { %6698 = vmatmul.mubr.msk.f32.gmra.mrb[106].mxu0 %vm441_vm2, %v9725_v26  ;;  %1351 = vst.msk [vmem:[#allocation3 + $0x8] sm:$0xff] %vm441_vm2, %v1319_v1  ;;  %v964_v1 = vld [vmem:[#allocation3 + $0x20] sm:$0xff] }
 0x176   : > { %6700 = vmatprep.mubr.msk.f32.mxu0 %vm441_vm2, %v3968_v30  ;;  %1369 = vst.msk [vmem:[#allocation3 + $0x98] sm:$0xff] %vm441_vm2, %v1337_v23  ;;  %1350 = vst.msk [vmem:[#allocation3] sm:$0xff] %vm441_vm2, %v1318_v29 }
 0x177   : > { %6651 = vmatmul.mubr.msk.f32.gmra.mrb[108].mxu1 %vm441_vm2, %v8496_v53  ;;  %v6363_v53 = vpop.f32.mrb[2].mxu0  ;;  %1368 = vst.msk [vmem:[#allocation3 + $0x90] sm:$0xff] %vm441_vm2, %v1336_v16  ;;  %v6390_v47 = vpop.f32.mrb[4].mxu1  ;;  %v985_v16 = vld [vmem:[#allocation3 + $0xc8] sm:$0xff] }
 0x178   : > { %6653 = vmatprep.mubr.msk.f32.mxu1 %vm441_vm2, %v3484_v48  ;;  %v1321_v54 = vadd.f32 %v6363_v53, %v963_v40  ;;  %v1169_v41 = vpop.f32.mrb[3].mxu0  ;;  %v1339_v46 = vadd.f32 %v6390_v47, %v981_v59  ;;  %v1259_v51 = vpop.f32.mrb[5].mxu1  ;;  %v983_v48 = vld [vmem:[#allocation3 + $0xb8] sm:$0xff]  ;;  %v966_v59 = vld [vmem:[#allocation3 + $0x30] sm:$0xff] }
 0x179   : > { %6701 = vmatmul.mubr.msk.f32.gmra.mrb[108].mxu0 %vm441_vm2, %v3969_v2  ;;  %v1320_v30 = vadd.f32 %v1169_v41, %v962_v14  ;;  %v1338_v36 = vadd.f32 %v1259_v51, %v980_v60  ;;  %v9728_v53 = vld [vmem:[#allocation62_spill] sm:$0xff]  ;;  %v969_v41 = vld [vmem:[#allocation3 + $0x48] sm:$0xff]  ;;  %v968_v51 = vld [vmem:[#allocation3 + $0x40] sm:$0xff] }
 0x17a   : > { %6703 = vmatprep.mubr.msk.f32.mxu0 %vm441_vm2, %v3970_v12  ;;  %1353 = vst.msk [vmem:[#allocation3 + $0x18] sm:$0xff] %vm441_vm2, %v1321_v54  ;;  %1371 = vst.msk [vmem:[#allocation3 + $0xa8] sm:$0xff] %vm441_vm2, %v1339_v46  ;;  %v6366_v63 = vpop.f32.mrb[4].mxu0 }
 0x17b   : > { %6654 = vmatmul.mubr.msk.f32.gmra.mrb[110].mxu1 %vm441_vm2, %v3485_v27  ;;  %1352 = vst.msk [vmem:[#allocation3 + $0x10] sm:$0xff] %vm441_vm2, %v1320_v30  ;;  %1370 = vst.msk [vmem:[#allocation3 + $0xa0] sm:$0xff] %vm441_vm2, %v1338_v36  ;;  %v1323_v26 = vadd.f32 %v6366_v63, %v965_v11  ;;  %v6393_v23 = vpop.f32.mrb[6].mxu1  ;;  %v1179_v29 = vpop.f32.mrb[5].mxu0  ;;  %v987_v30 = vld [vmem:[#allocation3 + $0xd8] sm:$0xff] }
 0x17c   : > { %6708 = vmatprep.mubr.msk.f32.mxu1 %vm441_vm2, %v8196_v52  ;;  %v1341_v8 = vadd.f32 %v6393_v23, %v983_v48  ;;  %v1322_v32 = vadd.f32 %v1179_v29, %v964_v1  ;;  %v1269_v40 = vpop.f32.mrb[7].mxu1  ;;  %v9727_v52 = vld [vmem:[#allocation61_spill] sm:$0xff]  ;;  %v9730_v1 = vld [vmem:[#allocation66_spill] sm:$0xff]  ;;  %v971_v23 = vld [vmem:[#allocation3 + $0x58] sm:$0xff] }
 0x17d   : > { %6704 = vmatmul.mubr.msk.f32.gmra.mrb[110].mxu0 %vm441_vm2, %v3971_v9  ;;  %1355 = vst.msk [vmem:[#allocation3 + $0x28] sm:$0xff] %vm441_vm2, %v1323_v26  ;;  %v1340_v2 = vadd.f32 %v1269_v40, %v982_v18  ;;  %v986_v9 = vld [vmem:[#allocation3 + $0xd0] sm:$0xff] }
 0x17e   : > { %6758 = vmatprep.mubr.msk.f32.mxu0 %vm441_vm2, %v9727_v52  ;;  %1373 = vst.msk [vmem:[#allocation3 + $0xb8] sm:$0xff] %vm441_vm2, %v1341_v8  ;;  %1354 = vst.msk [vmem:[#allocation3 + $0x20] sm:$0xff] %vm441_vm2, %v1322_v32  ;;  %v6369_v14 = vpop.f32.mrb[6].mxu0  ;;  %v989_v8 = vld [vmem:[#allocation3 + $0xe8] sm:$0xff]  ;;  %v970_v32 = vld [vmem:[#allocation3 + $0x50] sm:$0xff] }
 0x17f   : > { %6709 = vmatmul.mubr.msk.f32.vlgmr.msra.gmra.mrb[112].mxu1 %vm441_vm2, %v8233_v17  ;;  %1372 = vst.msk [vmem:[#allocation3 + $0xb0] sm:$0xff] %vm441_vm2, %v1340_v2  ;;  %v1325_v17 = vadd.f32 %v6369_v14, %v967_v20  ;;  %v6396_v12 = vpop.f32.mrb[8].mxu1  ;;  %v1189_v27 = vpop.f32.mrb[7].mxu0  ;;  %v988_v52 = vld [vmem:[#allocation3 + $0xe0] sm:$0xff] }
 0x180   : > { %6711 = vmatprep.mubr.msk.f32.mxu1 %vm441_vm2, %v8244_v7  ;;  %v1343_v60 = vadd.f32 %v6396_v12, %v985_v16  ;;  %v1324_v54 = vadd.f32 %v1189_v27, %v966_v59  ;;  %v1279_v47 = vpop.f32.mrb[9].mxu1  ;;  %v9729_v7 = vld [vmem:[#allocation65_spill] sm:$0xff]  ;;  %v9732_v16 = vld [vmem:[#allocation74_spill] sm:$0xff]  ;;  %v991_v27 = vld [vmem:[#allocation3 + $0xf8] sm:$0xff] }
 0x181   : > { %6759 = vmatmul.mubr.msk.f32.vlgmr.msra.gmra.mrb[112].mxu0 %vm441_vm2, %v9728_v53  ;;  %1357 = vst.msk [vmem:[#allocation3 + $0x38] sm:$0xff] %vm441_vm2, %v1325_v17  ;;  %v1342_v46 = vadd.f32 %v1279_v47, %v984_v6  ;;  %v973_v17 = vld [vmem:[#allocation3 + $0x68] sm:$0xff]  ;;  %v972_v53 = vld [vmem:[#allocation3 + $0x60] sm:$0xff] }
 0x182   : > { %6761 = vmatprep.mubr.msk.f32.mxu0 %vm441_vm2, %v9729_v7  ;;  %1375 = vst.msk [vmem:[#allocation3 + $0xc8] sm:$0xff] %vm441_vm2, %v1343_v60  ;;  %1356 = vst.msk [vmem:[#allocation3 + $0x30] sm:$0xff] %vm441_vm2, %v1324_v54  ;;  %v6372_v11 = vpop.f32.mrb[8].mxu0  ;;  %v990_v54 = vld [vmem:[#allocation3 + $0xf0] sm:$0xff] }
 0x183   : > { %6712 = vmatmul.mubr.msk.f32.gmra.mrb[114].mxu1 %vm441_vm2, %v8299_v38  ;;  %1374 = vst.msk [vmem:[#allocation3 + $0xc0] sm:$0xff] %vm441_vm2, %v1342_v46  ;;  %v1327_v38 = vadd.f32 %v6372_v11, %v969_v41  ;;  %v6399_v36 = vpop.f32.mrb[10].mxu1  ;;  %v1199_v48 = vpop.f32.mrb[9].mxu0  ;;  %v9734_v41 = vld [vmem:[#allocation70_spill] sm:$0xff]  ;;  %v975_v11 = vld [vmem:[#allocation3 + $0x78] sm:$0xff] }
 0x184   : > { %6714 = vmatprep.mubr.msk.f32.mxu1 %vm441_vm2, %v9644_v19  ;;  %v1345_v63 = vadd.f32 %v6399_v36, %v987_v30  ;;  %v1326_v18 = vadd.f32 %v1199_v48, %v968_v51  ;;  %v1289_v26 = vpop.f32.mrb[11].mxu1  ;;  %v9731_v19 = vld [vmem:[#allocation73_spill] sm:$0xff] }
 0x185   : > { %6762 = vmatmul.mubr.msk.f32.gmra.mrb[114].mxu0 %vm441_vm2, %v9730_v1  ;;  %1359 = vst.msk [vmem:[#allocation3 + $0x48] sm:$0xff] %vm441_vm2, %v1327_v38  ;;  %v1344_v29 = vadd.f32 %v1289_v26, %v986_v9  ;;  %v974_v38 = vld [vmem:[#allocation3 + $0x70] sm:$0xff] }
 0x186   : > { %6764 = vmatprep.mubr.msk.f32.mxu0 %vm441_vm2, %v9731_v19  ;;  %1377 = vst.msk [vmem:[#allocation3 + $0xd8] sm:$0xff] %vm441_vm2, %v1345_v63  ;;  %1358 = vst.msk [vmem:[#allocation3 + $0x40] sm:$0xff] %vm441_vm2, %v1326_v18  ;;  %v6375_v40 = vpop.f32.mrb[10].mxu0  ;;  %v9736_v18 = vld [vmem:[#allocation78_spill] sm:$0xff] }
 0x187   : > { %6715 = vmatmul.mubr.msk.f32.gmra.mrb[116].mxu1 %vm441_vm2, %v9646_v33  ;;  %1376 = vst.msk [vmem:[#allocation3 + $0xd0] sm:$0xff] %vm441_vm2, %v1344_v29  ;;  %v1329_v33 = vadd.f32 %v6375_v40, %v971_v23  ;;  %v6402_v20 = vpop.f32.mrb[12].mxu1  ;;  %v1209_v2 = vpop.f32.mrb[11].mxu0  ;;  %v1414_v23 = vld [vmem:[#allocation3] sm:$0xff]  ;;  %v1417_v40 = vld [vmem:[#allocation3 + $0x18] sm:$0xff] }
 0x188   : > { %6717 = vmatprep.mubr.msk.f32.mxu1 %vm441_vm2, %v9648_v44  ;;  %v1347_v59 = vadd.f32 %v6402_v20, %v989_v8  ;;  %v1328_v14 = vadd.f32 %v1209_v2, %v970_v32  ;;  %v1299_v6 = vpop.f32.mrb[13].mxu1  ;;  %v9733_v44 = vld [vmem:[#allocation69_spill] sm:$0xff]  ;;  %v1416_v2 = vld [vmem:[#allocation3 + $0x10] sm:$0xff] }
 0x189   : > { %6765 = vmatmul.mubr.msk.f32.gmra.mrb[116].mxu0 %vm441_vm2, %v9732_v16  ;;  %1361 = vst.msk [vmem:[#allocation3 + $0x58] sm:$0xff] %vm441_vm2, %v1329_v33  ;;  %v1346_v12 = vadd.f32 %v1299_v6, %v988_v52  ;;  %v1419_v6 = vld [vmem:[#allocation3 + $0x28] sm:$0xff] }
 0x18a   : > { %6767 = vmatprep.mubr.msk.f32.mxu0 %vm441_vm2, %v9733_v44  ;;  %1379 = vst.msk [vmem:[#allocation3 + $0xe8] sm:$0xff] %vm441_vm2, %v1347_v59  ;;  %1360 = vst.msk [vmem:[#allocation3 + $0x50] sm:$0xff] %vm441_vm2, %v1328_v14  ;;  %v6378_v60 = vpop.f32.mrb[12].mxu0 }
 0x18b   : > { %6718 = vmatmul.mubr.msk.f32.gmra.mrb[118].mxu1 %vm441_vm2, %v8425_v0  ;;  %1378 = vst.msk [vmem:[#allocation3 + $0xe0] sm:$0xff] %vm441_vm2, %v1346_v12  ;;  %v1331_v0 = vadd.f32 %v6378_v60, %v973_v17  ;;  %v6405_v47 = vpop.f32.mrb[14].mxu1  ;;  %v1219_v7 = vpop.f32.mrb[13].mxu0  ;;  %v9740_v12 = vld [vmem:[#allocation90_spill] sm:$0xff]  ;;  %v9741_v60 = vld [vmem:[#allocation85_spill] sm:$0xff] }
 0x18c   : > { %6720 = vmatprep.mubr.msk.f32.mxu1 %vm441_vm2, %v8446_v39  ;;  %v1349_v46 = vadd.f32 %v6405_v47, %v991_v27  ;;  %v1330_v30 = vadd.f32 %v1219_v7, %v972_v53  ;;  %v1309_v51 = vpop.f32.mrb[15].mxu1  ;;  %v9735_v39 = vld [vmem:[#allocation77_spill] sm:$0xff] }
 0x18d   : > { %6768 = vmatmul.mubr.msk.f32.gmra.mrb[118].mxu0 %vm441_vm2, %v9734_v41  ;;  %1363 = vst.msk [vmem:[#allocation3 + $0x68] sm:$0xff] %vm441_vm2, %v1331_v0  ;;  %v1348_v9 = vadd.f32 %v1309_v51, %v990_v54 }
 0x18e   : > { %6770 = vmatprep.mubr.msk.f32.mxu0 %vm441_vm2, %v9735_v39  ;;  %1381 = vst.msk [vmem:[#allocation3 + $0xf8] sm:$0xff] %vm441_vm2, %v1349_v46  ;;  %1362 = vst.msk [vmem:[#allocation3 + $0x60] sm:$0xff] %vm441_vm2, %v1330_v30  ;;  %v6381_v36 = vpop.f32.mrb[14].mxu0  ;;  %v1421_v46 = vld [vmem:[#allocation3 + $0x38] sm:$0xff] }
 0x18f   : > { %6721 = vmatmul.mubr.msk.f32.gmra.mrb[120].mxu1 %vm441_vm2, %v8477_v4  ;;  %1380 = vst.msk [vmem:[#allocation3 + $0xf0] sm:$0xff] %vm441_vm2, %v1348_v9  ;;  %v1333_v48 = vadd.f32 %v6381_v36, %v975_v11  ;;  %v1415_v4 = vld [vmem:[#allocation3 + $0x8] sm:$0xff]  ;;  %v6410_v1 = vpop.f32.mrb[16].mxu1  ;;  %v1229_v63 = vpop.f32.mrb[15].mxu0  ;;  %v1420_v11 = vld [vmem:[#allocation3 + $0x30] sm:$0xff] }
 0x190   : > { %6723 = vmatprep.mubr.msk.f32.mxu1 %vm441_vm2, %v8485_v5  ;;  %v1773_v26 = vadd.f32 %v6410_v1, %v1415_v4  ;;  %v1332_v19 = vadd.f32 %v1229_v63, %v974_v38  ;;  %v1613_v29 = vpop.f32.mrb[17].mxu1  ;;  %v9737_v5 = vld [vmem:[#allocation81_spill] sm:$0xff] }
 0x191   : > { %6771 = vmatmul.mubr.msk.f32.gmra.mrb[120].mxu0 %vm441_vm2, %v9736_v18  ;;  %1365 = vst.msk [vmem:[#allocation3 + $0x78] sm:$0xff] %vm441_vm2, %v1333_v48  ;;  %v1772_v8 = vadd.f32 %v1613_v29, %v1414_v23  ;;  %v1423_v18 = vld [vmem:[#allocation3 + $0x48] sm:$0xff]  ;;  %v1422_v29 = vld [vmem:[#allocation3 + $0x40] sm:$0xff] }
 0x192   : > { %6773 = vmatprep.mubr.msk.f32.mxu0 %vm441_vm2, %v9737_v5  ;;  %1805 = vst.msk [vmem:[#allocation3 + $0x8] sm:$0xff] %vm441_vm2, %v1773_v26  ;;  %1364 = vst.msk [vmem:[#allocation3 + $0x70] sm:$0xff] %vm441_vm2, %v1332_v19  ;;  %v9744_v19 = vld [vmem:[#allocation95_spill] sm:$0xff] }
 0x193   : > { %6724 = vmatmul.mubr.msk.f32.gmra.mrb[122].mxu1 %vm441_vm2, %v8505_v10  ;;  %v6460_v32 = vpop.f32.mrb[16].mxu0  ;;  %1804 = vst.msk [vmem:[#allocation3] sm:$0xff] %vm441_vm2, %v1772_v8  ;;  %v6413_v52 = vpop.f32.mrb[18].mxu1  ;;  %v9738_v10 = vld [vmem:[#allocation82_spill] sm:$0xff] }
 0x194   : > { %6726 = vmatprep.mubr.msk.f32.mxu1 %vm441_vm2, %v8509_v31  ;;  %v2259_v33 = vpop.f32.mrb[17].mxu0  ;;  %v1775_v20 = vadd.f32 %v6413_v52, %v1417_v40  ;;  %v1623_v16 = vpop.f32.mrb[19].mxu1  ;;  %v9739_v31 = vld [vmem:[#allocation89_spill] sm:$0xff] }
 0x195   : > { %6774 = vmatmul.mubr.msk.f32.gmra.mrb[122].mxu0 %vm441_vm2, %v9738_v10  ;;  %v1774_v59 = vadd.f32 %v1623_v16, %v1416_v2  ;;  %v9746_v16 = vld [vmem:[#allocation99_spill] sm:$0xff] }
 0x196   : > { %6776 = vmatprep.mubr.msk.f32.mxu0 %vm441_vm2, %v9739_v31  ;;  %1807 = vst.msk [vmem:[#allocation3 + $0x18] sm:$0xff] %vm441_vm2, %v1775_v20  ;;  %v1425_v20 = vld [vmem:[#allocation3 + $0x58] sm:$0xff] }
 0x197   : > { %6727 = vmatmul.mubr.msk.f32.gmra.mrb[124].mxu1 %vm441_vm2, %v8519_v22  ;;  %1806 = vst.msk [vmem:[#allocation3 + $0x10] sm:$0xff] %vm441_vm2, %v1774_v59  ;;  %v1418_v22 = vld [vmem:[#allocation3 + $0x20] sm:$0xff]  ;;  %v1424_v59 = vld [vmem:[#allocation3 + $0x50] sm:$0xff] }
 0x198   : > { %6729 = vmatprep.mubr.msk.f32.mxu1 %vm441_vm2, %v8523_v50  ;;  %v6463_v14 = vpop.f32.mrb[18].mxu0  ;;  %v6416_v44 = vpop.f32.mrb[20].mxu1 }
 0x199   : > { %v2269_v17 = vpop.f32.mrb[19].mxu0  ;;  %6777 = vmatmul.mubr.msk.f32.gmra.mrb[124].mxu0 %vm441_vm2, %v9740_v12  ;;  %v1777_v27 = vadd.f32 %v6416_v44, %v1419_v6  ;;  %v1633_v53 = vpop.f32.mrb[21].mxu1  ;;  %v2061_v50 = vld [vmem:[#allocation3 + $0x8] sm:$0xff] }
 0x19a   : > { %6779 = vmatprep.mubr.msk.f32.mxu0 %vm441_vm2, %v9741_v60  ;;  %v1776_v54 = vadd.f32 %v1633_v53, %v1418_v22  ;;  %v2419_v0 = vadd.f32 %v6460_v32, %v2061_v50  ;;  %v2060_v47 = vld [vmem:[#allocation3] sm:$0xff]  ;;  %v1427_v53 = vld [vmem:[#allocation3 + $0x68] sm:$0xff] }
 0x19b   : > { %6730 = vmatmul.mubr.msk.f32.gmra.mrb[126].mxu1 %vm441_vm2, %v8533_v34  ;;  %1809 = vst.msk [vmem:[#allocation3 + $0x28] sm:$0xff] %vm441_vm2, %v1777_v27  ;;  %v2418_v41 = vadd.f32 %v2259_v33, %v2060_v47  ;;  %v9742_v34 = vld [vmem:[#allocation86_spill] sm:$0xff]  ;;  %v9748_v50 = vld [vmem:[#allocation109_spill] sm:$0xff] }
 0x19c   : > { %6732 = vmatprep.mubr.msk.f32.mxu1 %vm441_vm2, %v8537_v35  ;;  %v6466_v7 = vpop.f32.mrb[20].mxu0  ;;  %1808 = vst.msk [vmem:[#allocation3 + $0x20] sm:$0xff] %vm441_vm2, %v1776_v54  ;;  %v6419_v30 = vpop.f32.mrb[22].mxu1  ;;  %2451 = vst.msk [vmem:[#allocation3 + $0x8] sm:$0xff] %vm441_vm2, %v2419_v0  ;;  %v9743_v35 = vld [vmem:[#allocation94_spill] sm:$0xff]  ;;  %v1426_v0 = vld [vmem:[#allocation3 + $0x60] sm:$0xff] }
 0x19d   : > { %v2279_v51 = vpop.f32.mrb[21].mxu0  ;;  %6780 = vmatmul.mubr.msk.f32.gmra.mrb[126].mxu0 %vm441_vm2, %v9742_v34  ;;  %v1779_v39 = vadd.f32 %v6419_v30, %v1421_v46  ;;  %v1643_v9 = vpop.f32.mrb[23].mxu1  ;;  %2450 = vst.msk [vmem:[#allocation3] sm:$0xff] %vm441_vm2, %v2418_v41  ;;  %v2063_v38 = vld [vmem:[#allocation3 + $0x18] sm:$0xff] }
 0x19e   : > { %6782 = vmatprep.mubr.msk.f32.mxu0 %vm441_vm2, %v9743_v35  ;;  %v1778_v36 = vadd.f32 %v1643_v9, %v1420_v11  ;;  %v2421_v48 = vadd.f32 %v6463_v14, %v2063_v38  ;;  %v2062_v4 = vld [vmem:[#allocation3 + $0x10] sm:$0xff]  ;;  %v9750_v9 = vld [vmem:[#allocation105_spill] sm:$0xff] }
 0x19f   : > { %6733 = vmatmul.mubr.msk.f32.gmra.mrb[128].mxu1 %vm441_vm2, %v8547_v42  ;;  %1811 = vst.msk [vmem:[#allocation3 + $0x38] sm:$0xff] %vm441_vm2, %v1779_v39  ;;  %v2420_v63 = vadd.f32 %v2269_v17, %v2062_v4  ;;  %v1429_v39 = vld [vmem:[#allocation3 + $0x78] sm:$0xff]  ;;  %v1428_v38 = vld [vmem:[#allocation3 + $0x70] sm:$0xff] }
 0x1a0   : > { %6735 = vmatprep.mubr.msk.f32.mxu1 %vm441_vm2, %v8551_v25  ;;  %v6469_v1 = vpop.f32.mrb[22].mxu0  ;;  %1810 = vst.msk [vmem:[#allocation3 + $0x30] sm:$0xff] %vm441_vm2, %v1778_v36  ;;  %v6422_v42 = vpop.f32.mrb[24].mxu1  ;;  %2453 = vst.msk [vmem:[#allocation3 + $0x18] sm:$0xff] %vm441_vm2, %v2421_v48  ;;  %v9745_v25 = vld [vmem:[#allocation98_spill] sm:$0xff] }
 0x1a1   : > { %v2289_v26 = vpop.f32.mrb[23].mxu0  ;;  %6783 = vmatmul.mubr.msk.f32.gmra.mrb[128].mxu0 %vm441_vm2, %v9744_v19  ;;  %v1781_v23 = vadd.f32 %v6422_v42, %v1423_v18  ;;  %v1653_v5 = vpop.f32.mrb[25].mxu1  ;;  %2452 = vst.msk [vmem:[#allocation3 + $0x10] sm:$0xff] %vm441_vm2, %v2420_v63 }
 0x1a2   : > { %6785 = vmatprep.mubr.msk.f32.mxu0 %vm441_vm2, %v9745_v25  ;;  %v2065_v8 = vld [vmem:[#allocation3 + $0x28] sm:$0xff]  ;;  %v1780_v32 = vadd.f32 %v1653_v5, %v1422_v29  ;;  %v9752_v29 = vld [vmem:[#allocation112_spill] sm:$0xff] }
 0x1a3   : > { %6736 = vmatmul.mubr.msk.f32.gmra.mrb[130].mxu1 %vm441_vm2, %v8561_v49  ;;  %v2423_v40 = vadd.f32 %v6466_v7, %v2065_v8  ;;  %v2064_v52 = vld [vmem:[#allocation3 + $0x20] sm:$0xff]  ;;  %1813 = vst.msk [vmem:[#allocation3 + $0x48] sm:$0xff] %vm441_vm2, %v1781_v23  ;;  %v9753_v8 = vld [vmem:[#allocation114_spill] sm:$0xff] }
 0x1a4   : > { %6738 = vmatprep.mubr.msk.f32.mxu1 %vm441_vm2, %v8565_v61  ;;  %v6472_v33 = vpop.f32.mrb[24].mxu0  ;;  %v2422_v10 = vadd.f32 %v2279_v51, %v2064_v52  ;;  %1812 = vst.msk [vmem:[#allocation3 + $0x40] sm:$0xff] %vm441_vm2, %v1780_v32  ;;  %v9747_v61 = vld [vmem:[#allocation108_spill] sm:$0xff]  ;;  %v4908_v52 = vmul.f32 %v8481_v21, %v8898_v37  ;;  %v1432_v21 = vld [vmem:[#allocation3 + $0x90] sm:$0xff] }
 0x1a5   : > { %v2299_v2 = vpop.f32.mrb[25].mxu0  ;;  %6786 = vmatmul.mubr.msk.f32.gmra.mrb[130].mxu0 %vm441_vm2, %v9746_v16  ;;  %2455 = vst.msk [vmem:[#allocation3 + $0x28] sm:$0xff] %vm441_vm2, %v2423_v40  ;;  %v1430_v25 = vld [vmem:[#allocation3 + $0x80] sm:$0xff] }
 0x1a6   : > { %v6425_v49 = vpop.f32.mrb[26].mxu1  ;;  %6788 = vmatprep.mubr.msk.f32.mxu0 %vm441_vm2, %v9747_v61  ;;  %2454 = vst.msk [vmem:[#allocation3 + $0x20] sm:$0xff] %vm441_vm2, %v2422_v10  ;;  %v2067_v6 = vld [vmem:[#allocation3 + $0x38] sm:$0xff] }
 0x1a7   : > { %v1783_v31 = vadd.f32 %v6425_v49, %v1425_v20  ;;  %v1663_v14 = vpop.f32.mrb[27].mxu1  ;;  %6739 = vmatmul.mubr.msk.f32.gmra.mrb[132].mxu1 %vm441_vm2, %v8575_v62  ;;  %v2425_v17 = vadd.f32 %v6469_v1, %v2067_v6  ;;  %v2066_v12 = vld [vmem:[#allocation3 + $0x30] sm:$0xff]  ;;  %v4424_v49 = vld [vmem:[#allocation2 + $0x118] sm:$0xff]  ;;  %v9754_v61 = vld [vmem:[#allocation115_spill] sm:$0xff]  ;;  %v4909_v6 = vmul.f32 %v8479_v15, %v8910_v3 }
 0x1a8   : > { %v1782_v44 = vadd.f32 %v1663_v14, %v1424_v59  ;;  %6741 = vmatprep.mubr.msk.f32.mxu1 %vm441_vm2, %v8579_v24  ;;  %v6475_v27 = vpop.f32.mrb[26].mxu0  ;;  %v2424_v22 = vadd.f32 %v2289_v26, %v2066_v12  ;;  %v9749_v24 = vld [vmem:[#allocation104_spill] sm:$0xff]  ;;  %v4421_v1 = vld [vmem:[#allocation2 + $0x100] sm:$0xff] }
 0x1a9   : > { %1815 = vst.msk [vmem:[#allocation3 + $0x58] sm:$0xff] %vm441_vm2, %v1783_v31  ;;  %v2309_v60 = vpop.f32.mrb[27].mxu0  ;;  %6789 = vmatmul.mubr.msk.f32.gmra.mrb[132].mxu0 %vm441_vm2, %v9748_v50  ;;  %2457 = vst.msk [vmem:[#allocation3 + $0x38] sm:$0xff] %vm441_vm2, %v2425_v17  ;;  %v1433_v31 = vld [vmem:[#allocation3 + $0x98] sm:$0xff]  ;;  %v4425_v12 = vld [vmem:[#allocation2 + $0x120] sm:$0xff] }
 0x1aa   : > { %1814 = vst.msk [vmem:[#allocation3 + $0x50] sm:$0xff] %vm441_vm2, %v1782_v44  ;;  %v6428_v62 = vpop.f32.mrb[28].mxu1  ;;  %6791 = vmatprep.mubr.msk.f32.mxu0 %vm441_vm2, %v9749_v24  ;;  %2456 = vst.msk [vmem:[#allocation3 + $0x30] sm:$0xff] %vm441_vm2, %v2424_v22  ;;  %v2069_v7 = vld [vmem:[#allocation3 + $0x48] sm:$0xff] }
 0x1ab   : > { %v1785_v54 = vadd.f32 %v6428_v62, %v1427_v53  ;;  %v1673_v47 = vpop.f32.mrb[29].mxu1  ;;  %6742 = vmatmul.mubr.msk.f32.gmra.mrb[134].mxu1 %vm441_vm2, %v8589_v57  ;;  %v2427_v46 = vadd.f32 %v6472_v33, %v2069_v7  ;;  %v2068_v30 = vld [vmem:[#allocation3 + $0x40] sm:$0xff]  ;;  %v1435_v50 = vld [vmem:[#allocation3 + $0xa8] sm:$0xff] }
 0x1ac   : > { %v1784_v41 = vadd.f32 %v1673_v47, %v1426_v0  ;;  %6744 = vmatprep.mubr.msk.f32.mxu1 %vm441_vm2, %v8593_v28  ;;  %v6478_v51 = vpop.f32.mrb[28].mxu0  ;;  %v2426_v34 = vadd.f32 %v2299_v2, %v2068_v30  ;;  %v9751_v28 = vld [vmem:[#allocation111_spill] sm:$0xff]  ;;  %v4878_v2 = vld [vmem:[#allocation2 + $0x119] sm:$0xff]  ;;  %v1434_v0 = vld [vmem:[#allocation3 + $0xa0] sm:$0xff] }
 0x1ad   : > { %1817 = vst.msk [vmem:[#allocation3 + $0x68] sm:$0xff] %vm441_vm2, %v1785_v54  ;;  %v2319_v11 = vpop.f32.mrb[29].mxu0  ;;  %6792 = vmatmul.mubr.msk.f32.gmra.mrb[134].mxu0 %vm441_vm2, %v9750_v9  ;;  %2459 = vst.msk [vmem:[#allocation3 + $0x48] sm:$0xff] %vm441_vm2, %v2427_v46  ;;  %v4910_v22 = vmul.f32 %v8607_v13, %v4878_v2 }
 0x1ae   : > { %1816 = vst.msk [vmem:[#allocation3 + $0x60] sm:$0xff] %vm441_vm2, %v1784_v41  ;;  %v6431_v57 = vpop.f32.mrb[30].mxu1  ;;  %6794 = vmatprep.mubr.msk.f32.mxu0 %vm441_vm2, %v9751_v28  ;;  %2458 = vst.msk [vmem:[#allocation3 + $0x40] sm:$0xff] %vm441_vm2, %v2426_v34  ;;  %v1437_v34 = vld [vmem:[#allocation3 + $0xb8] sm:$0xff] }
 0x1af   : > { %v1787_v35 = vadd.f32 %v6431_v57, %v1429_v39  ;;  %v1683_v36 = vpop.f32.mrb[31].mxu1  ;;  %6745 = vmatmul.mubr.msk.f32.gmra.mrb[136].mxu1 %vm441_vm2, %v8603_v56  ;;  %v1431_v56 = vld [vmem:[#allocation3 + $0x88] sm:$0xff] }
 0x1b0   : > { %v2071_v48 = vld [vmem:[#allocation3 + $0x58] sm:$0xff]  ;;  %v1786_v4 = vadd.f32 %v1683_v36, %v1428_v38  ;;  %6747 = vmatprep.mubr.msk.f32.mxu1 %vm441_vm2, %v8609_v43  ;;  %v6481_v42 = vpop.f32.mrb[30].mxu0 }
 0x1b1   : > { %v2429_v63 = vadd.f32 %v6475_v27, %v2071_v48  ;;  %v2070_v18 = vld [vmem:[#allocation3 + $0x50] sm:$0xff]  ;;  %1819 = vst.msk [vmem:[#allocation3 + $0x78] sm:$0xff] %vm441_vm2, %v1787_v35  ;;  %v2329_v23 = vpop.f32.mrb[31].mxu0  ;;  %6795 = vmatmul.mubr.msk.f32.gmra.mrb[136].mxu0 %vm441_vm2, %v9752_v29 }
 0x1b2   : > { %v2428_v26 = vadd.f32 %v2309_v60, %v2070_v18  ;;  %1818 = vst.msk [vmem:[#allocation3 + $0x70] sm:$0xff] %vm441_vm2, %v1786_v4  ;;  %v6434_v19 = vpop.f32.mrb[32].mxu1  ;;  %6797 = vmatprep.mubr.msk.f32.mxu0 %vm441_vm2, %v9753_v8  ;;  %v4879_v27 = vld [vmem:[#allocation2 + $0x121] sm:$0xff] }
 0x1b3   : > { %2461 = vst.msk [vmem:[#allocation3 + $0x58] sm:$0xff] %vm441_vm2, %v2429_v63  ;;  %v1789_v5 = vadd.f32 %v6434_v19, %v1431_v56  ;;  %v1693_v43 = vpop.f32.mrb[33].mxu1  ;;  %6748 = vmatmul.mubr.msk.f32.gmra.mrb[138].mxu1 %vm441_vm2, %v4421_v1  ;;  %v4911_v13 = vmul.f32 %v8617_v45, %v4879_v27  ;;  %v1439_v1 = vld [vmem:[#allocation3 + $0xc8] sm:$0xff]  ;;  %v1441_v8 = vld [vmem:[#allocation3 + $0xd8] sm:$0xff] }
 0x1b4   : > { %2460 = vst.msk [vmem:[#allocation3 + $0x50] sm:$0xff] %vm441_vm2, %v2428_v26  ;;  %v2073_v32 = vld [vmem:[#allocation3 + $0x68] sm:$0xff]  ;;  %v1788_v40 = vadd.f32 %v1693_v43, %v1430_v25  ;;  %6750 = vmatprep.mubr.msk.f32.mxu1 %vm441_vm2, %v8775_v55  ;;  %v6484_v20 = vpop.f32.mrb[32].mxu0  ;;  %v1438_v26 = vld [vmem:[#allocation3 + $0xc0] sm:$0xff] }
 0x1b5   : > { %v2431_v33 = vadd.f32 %v6478_v51, %v2073_v32  ;;  %v2072_v10 = vld [vmem:[#allocation3 + $0x60] sm:$0xff]  ;;  %1821 = vst.msk [vmem:[#allocation3 + $0x88] sm:$0xff] %vm441_vm2, %v1789_v5  ;;  %v2339_v14 = vpop.f32.mrb[33].mxu0  ;;  %6798 = vmatmul.mubr.msk.f32.gmra.mrb[138].mxu0 %vm441_vm2, %v9754_v61 }
 0x1b6   : > { %v2430_v16 = vadd.f32 %v2319_v11, %v2072_v10  ;;  %1820 = vst.msk [vmem:[#allocation3 + $0x80] sm:$0xff] %vm441_vm2, %v1788_v40  ;;  %v6437_v59 = vpop.f32.mrb[34].mxu1  ;;  %6800 = vmatprep.mubr.msk.f32.mxu0 %vm441_vm2, %v4908_v52  ;;  %v1436_v11 = vld [vmem:[#allocation3 + $0xb0] sm:$0xff] }
 0x1b7   : > { %2463 = vst.msk [vmem:[#allocation3 + $0x68] sm:$0xff] %vm441_vm2, %v2431_v33  ;;  %v1791_v55 = vadd.f32 %v6437_v59, %v1433_v31  ;;  %v1703_v37 = vpop.f32.mrb[35].mxu1  ;;  %6751 = vmatmul.mubr.msk.f32.gmra.mrb[140].mxu1 %vm441_vm2, %v8784_v58  ;;  %v1440_v33 = vld [vmem:[#allocation3 + $0xd0] sm:$0xff] }
 0x1b8   : > { %2462 = vst.msk [vmem:[#allocation3 + $0x60] sm:$0xff] %vm441_vm2, %v2430_v16  ;;  %v2075_v44 = vld [vmem:[#allocation3 + $0x78] sm:$0xff]  ;;  %v1790_v17 = vadd.f32 %v1703_v37, %v1432_v21  ;;  %6753 = vmatprep.mubr.msk.f32.mxu1 %vm441_vm2, %v4424_v49  ;;  %v6487_v58 = vpop.f32.mrb[34].mxu0  ;;  %v1442_v37 = vld [vmem:[#allocation3 + $0xe0] sm:$0xff] }
 0x1b9   : > { %v2433_v53 = vadd.f32 %v6481_v42, %v2075_v44  ;;  %v2074_v62 = vld [vmem:[#allocation3 + $0x70] sm:$0xff]  ;;  %1823 = vst.msk [vmem:[#allocation3 + $0x98] sm:$0xff] %vm441_vm2, %v1791_v55  ;;  %v2349_v3 = vpop.f32.mrb[35].mxu0  ;;  %6801 = vmatmul.mubr.msk.f32.gmra.mrb[140].mxu0 %vm441_vm2, %v4909_v6 }
 0x1ba   : > { %v2432_v60 = vadd.f32 %v2329_v23, %v2074_v62  ;;  %1822 = vst.msk [vmem:[#allocation3 + $0x90] sm:$0xff] %vm441_vm2, %v1790_v17  ;;  %v6440_v15 = vpop.f32.mrb[36].mxu1  ;;  %6803 = vmatprep.mubr.msk.f32.mxu0 %vm441_vm2, %v4910_v22  ;;  %v1445_v62 = vld [vmem:[#allocation3 + $0xf8] sm:$0xff] }
 0x1bb   : > { %2465 = vst.msk [vmem:[#allocation3 + $0x78] sm:$0xff] %vm441_vm2, %v2433_v53  ;;  %v1793_v54 = vadd.f32 %v6440_v15, %v1435_v50  ;;  %v1713_v47 = vpop.f32.mrb[37].mxu1  ;;  %6754 = vmatmul.mubr.msk.f32.gmra.mrb[142].mxu1 %vm441_vm2, %v4425_v12  ;;  %v1444_v15 = vld [vmem:[#allocation3 + $0xf0] sm:$0xff] }
 0x1bc   : > { %2464 = vst.msk [vmem:[#allocation3 + $0x70] sm:$0xff] %vm441_vm2, %v2432_v60  ;;  %v2077_v24 = vld [vmem:[#allocation3 + $0x88] sm:$0xff]  ;;  %v1792_v7 = vadd.f32 %v1713_v47, %v1434_v0  ;;  %v6490_v30 = vpop.f32.mrb[36].mxu0 }
 0x1bd   : > { %v2435_v41 = vadd.f32 %v6484_v20, %v2077_v24  ;;  %v2076_v46 = vld [vmem:[#allocation3 + $0x80] sm:$0xff]  ;;  %1825 = vst.msk [vmem:[#allocation3 + $0xa8] sm:$0xff] %vm441_vm2, %v1793_v54  ;;  %v2359_v57 = vpop.f32.mrb[37].mxu0  ;;  %6804 = vmatmul.mubr.msk.f32.gmra.mrb[142].mxu0 %vm441_vm2, %v4911_v13 }
 0x1be   : > { %v2434_v51 = vadd.f32 %v2339_v14, %v2076_v46  ;;  %1824 = vst.msk [vmem:[#allocation3 + $0xa0] sm:$0xff] %vm441_vm2, %v1792_v7  ;;  %v6443_v39 = vpop.f32.mrb[38].mxu1  ;;  %v1443_v14 = vld [vmem:[#allocation3 + $0xe8] sm:$0xff] }
 0x1bf   : > { %2467 = vst.msk [vmem:[#allocation3 + $0x88] sm:$0xff] %vm441_vm2, %v2435_v41  ;;  %v1795_v45 = vadd.f32 %v6443_v39, %v1437_v34  ;;  %v1723_v9 = vpop.f32.mrb[39].mxu1  ;;  %v2547_v41 = vld [vmem:[#allocation3 + $0x8] sm:$0xff]  ;;  %v2546_v34 = vld [vmem:[#allocation3] sm:$0xff] }
 0x1c0   : > { %2466 = vst.msk [vmem:[#allocation3 + $0x80] sm:$0xff] %vm441_vm2, %v2434_v51  ;;  %v2079_v35 = vld [vmem:[#allocation3 + $0x98] sm:$0xff]  ;;  %v1794_v38 = vadd.f32 %v1723_v9, %v1436_v11  ;;  %v6493_v48 = vpop.f32.mrb[38].mxu0 }
 0x1c1   : > { %v2437_v36 = vadd.f32 %v6487_v58, %v2079_v35  ;;  %v2078_v28 = vld [vmem:[#allocation3 + $0x90] sm:$0xff]  ;;  %1827 = vst.msk [vmem:[#allocation3 + $0xb8] sm:$0xff] %vm441_vm2, %v1795_v45  ;;  %v2369_v18 = vpop.f32.mrb[39].mxu0 }
 0x1c2   : > { %v2436_v4 = vadd.f32 %v2349_v3, %v2078_v28  ;;  %1826 = vst.msk [vmem:[#allocation3 + $0xb0] sm:$0xff] %vm441_vm2, %v1794_v38  ;;  %v6446_v63 = vpop.f32.mrb[40].mxu1 }
 0x1c3   : > { %2469 = vst.msk [vmem:[#allocation3 + $0x98] sm:$0xff] %vm441_vm2, %v2437_v36  ;;  %v1797_v42 = vadd.f32 %v6446_v63, %v1439_v1  ;;  %v1733_v56 = vpop.f32.mrb[41].mxu1  ;;  %v2549_v36 = vld [vmem:[#allocation3 + $0x18] sm:$0xff]  ;;  %v2548_v1 = vld [vmem:[#allocation3 + $0x10] sm:$0xff] }
 0x1c4   : > { %2468 = vst.msk [vmem:[#allocation3 + $0x90] sm:$0xff] %vm441_vm2, %v2436_v4  ;;  %v2081_v19 = vld [vmem:[#allocation3 + $0xa8] sm:$0xff]  ;;  %v1796_v23 = vadd.f32 %v1733_v56, %v1438_v26  ;;  %v6496_v25 = vpop.f32.mrb[40].mxu0 }
 0x1c5   : > { %v2439_v29 = vadd.f32 %v6490_v30, %v2081_v19  ;;  %v2080_v5 = vld [vmem:[#allocation3 + $0xa0] sm:$0xff]  ;;  %1829 = vst.msk [vmem:[#allocation3 + $0xc8] sm:$0xff] %vm441_vm2, %v1797_v42  ;;  %v2379_v40 = vpop.f32.mrb[41].mxu0 }
 0x1c6   : > { %v2438_v43 = vadd.f32 %v2359_v57, %v2080_v5  ;;  %1828 = vst.msk [vmem:[#allocation3 + $0xc0] sm:$0xff] %vm441_vm2, %v1796_v23  ;;  %v6449_v32 = vpop.f32.mrb[42].mxu1 }
 0x1c7   : > { %2471 = vst.msk [vmem:[#allocation3 + $0xa8] sm:$0xff] %vm441_vm2, %v2439_v29  ;;  %v1799_v52 = vadd.f32 %v6449_v32, %v1441_v8  ;;  %v1743_v10 = vpop.f32.mrb[43].mxu1  ;;  %v2551_v29 = vld [vmem:[#allocation3 + $0x28] sm:$0xff]  ;;  %v2550_v8 = vld [vmem:[#allocation3 + $0x20] sm:$0xff] }
 0x1c8   : > { %2470 = vst.msk [vmem:[#allocation3 + $0xa0] sm:$0xff] %vm441_vm2, %v2438_v43  ;;  %v2083_v20 = vld [vmem:[#allocation3 + $0xb8] sm:$0xff]  ;;  %v1798_v49 = vadd.f32 %v1743_v10, %v1440_v33  ;;  %v6499_v31 = vpop.f32.mrb[42].mxu0 }
 0x1c9   : > { %v2441_v2 = vadd.f32 %v6493_v48, %v2083_v20  ;;  %v2082_v16 = vld [vmem:[#allocation3 + $0xb0] sm:$0xff]  ;;  %1831 = vst.msk [vmem:[#allocation3 + $0xd8] sm:$0xff] %vm441_vm2, %v1799_v52  ;;  %v2389_v55 = vpop.f32.mrb[43].mxu0 }
 0x1ca   : > { %v2440_v59 = vadd.f32 %v2369_v18, %v2082_v16  ;;  %1830 = vst.msk [vmem:[#allocation3 + $0xd0] sm:$0xff] %vm441_vm2, %v1798_v49  ;;  %v6452_v61 = vpop.f32.mrb[44].mxu1 }
 0x1cb   : > { %2473 = vst.msk [vmem:[#allocation3 + $0xb8] sm:$0xff] %vm441_vm2, %v2441_v2  ;;  %v1801_v21 = vadd.f32 %v6452_v61, %v1443_v14  ;;  %v1753_v6 = vpop.f32.mrb[45].mxu1  ;;  %v2553_v2 = vld [vmem:[#allocation3 + $0x38] sm:$0xff]  ;;  %v2552_v14 = vld [vmem:[#allocation3 + $0x30] sm:$0xff] }
 0x1cc   : > { %2472 = vst.msk [vmem:[#allocation3 + $0xb0] sm:$0xff] %vm441_vm2, %v2440_v59  ;;  %v2085_v44 = vld [vmem:[#allocation3 + $0xc8] sm:$0xff]  ;;  %v1800_v17 = vadd.f32 %v1753_v6, %v1442_v37  ;;  %v6502_v22 = vpop.f32.mrb[44].mxu0 }
 0x1cd   : > { %v2443_v12 = vadd.f32 %v6496_v25, %v2085_v44  ;;  %v2084_v27 = vld [vmem:[#allocation3 + $0xc0] sm:$0xff]  ;;  %1833 = vst.msk [vmem:[#allocation3 + $0xe8] sm:$0xff] %vm441_vm2, %v1801_v21  ;;  %v2399_v60 = vpop.f32.mrb[45].mxu0 }
 0x1ce   : > { %v2442_v53 = vadd.f32 %v2379_v40, %v2084_v27  ;;  %1832 = vst.msk [vmem:[#allocation3 + $0xe0] sm:$0xff] %vm441_vm2, %v1800_v17  ;;  %v6455_v58 = vpop.f32.mrb[46].mxu1 }
 0x1cf   : > { %2475 = vst.msk [vmem:[#allocation3 + $0xc8] sm:$0xff] %vm441_vm2, %v2443_v12  ;;  %v1803_v50 = vadd.f32 %v6455_v58, %v1445_v62  ;;  %v1763_v3 = vpop.f32.mrb[47].mxu1  ;;  %v2555_v12 = vld [vmem:[#allocation3 + $0x48] sm:$0xff]  ;;  %v2554_v62 = vld [vmem:[#allocation3 + $0x40] sm:$0xff] }
 0x1d0   : > { %2474 = vst.msk [vmem:[#allocation3 + $0xc0] sm:$0xff] %vm441_vm2, %v2442_v53  ;;  %v2087_v54 = vld [vmem:[#allocation3 + $0xd8] sm:$0xff]  ;;  %v1802_v0 = vadd.f32 %v1763_v3, %v1444_v15  ;;  %v6505_v24 = vpop.f32.mrb[46].mxu0 }
 0x1d1   : > { %v2445_v47 = vadd.f32 %v6499_v31, %v2087_v54  ;;  %v2086_v13 = vld [vmem:[#allocation3 + $0xd0] sm:$0xff]  ;;  %1835 = vst.msk [vmem:[#allocation3 + $0xf8] sm:$0xff] %vm441_vm2, %v1803_v50  ;;  %v2409_v30 = vpop.f32.mrb[47].mxu0 }
 0x1d2   : > { %v2444_v7 = vadd.f32 %v2389_v55, %v2086_v13  ;;  %1834 = vst.msk [vmem:[#allocation3 + $0xf0] sm:$0xff] %vm441_vm2, %v1802_v0  ;;  %v6510_v46 = vpop.f32.mrb[48].mxu1 }
 0x1d3   : > { %2477 = vst.msk [vmem:[#allocation3 + $0xd8] sm:$0xff] %vm441_vm2, %v2445_v47  ;;  %v2905_v51 = vadd.f32 %v6510_v46, %v2547_v41  ;;  %v2745_v39 = vpop.f32.mrb[49].mxu1  ;;  %v2557_v47 = vld [vmem:[#allocation3 + $0x58] sm:$0xff]  ;;  %v2556_v41 = vld [vmem:[#allocation3 + $0x50] sm:$0xff] }
 0x1d4   : > { %2476 = vst.msk [vmem:[#allocation3 + $0xd0] sm:$0xff] %vm441_vm2, %v2444_v7  ;;  %v2089_v57 = vld [vmem:[#allocation3 + $0xe8] sm:$0xff]  ;;  %v2904_v45 = vadd.f32 %v2745_v39, %v2546_v34  ;;  %v6560_v35 = vpop.f32.mrb[48].mxu0 }
 0x1d5   : > { %v2447_v11 = vadd.f32 %v6502_v22, %v2089_v57  ;;  %v2088_v9 = vld [vmem:[#allocation3 + $0xe0] sm:$0xff]  ;;  %2937 = vst.msk [vmem:[#allocation3 + $0x8] sm:$0xff] %vm441_vm2, %v2905_v51  ;;  %v3199_v48 = vpop.f32.mrb[49].mxu0 }
 0x1d6   : > { %v2446_v38 = vadd.f32 %v2399_v60, %v2088_v9  ;;  %2936 = vst.msk [vmem:[#allocation3] sm:$0xff] %vm441_vm2, %v2904_v45  ;;  %v6513_v28 = vpop.f32.mrb[50].mxu1 }
 0x1d7   : > { %2479 = vst.msk [vmem:[#allocation3 + $0xe8] sm:$0xff] %vm441_vm2, %v2447_v11  ;;  %v2907_v4 = vadd.f32 %v6513_v28, %v2549_v36  ;;  %v2755_v63 = vpop.f32.mrb[51].mxu1  ;;  %v2559_v11 = vld [vmem:[#allocation3 + $0x68] sm:$0xff]  ;;  %v2558_v36 = vld [vmem:[#allocation3 + $0x60] sm:$0xff] }
 0x1d8   : > { %2478 = vst.msk [vmem:[#allocation3 + $0xe0] sm:$0xff] %vm441_vm2, %v2446_v38  ;;  %v2091_v18 = vld [vmem:[#allocation3 + $0xf8] sm:$0xff]  ;;  %v2906_v42 = vadd.f32 %v2755_v63, %v2548_v1  ;;  %v6563_v19 = vpop.f32.mrb[50].mxu0 }
 0x1d9   : > { %v2449_v26 = vadd.f32 %v6505_v24, %v2091_v18  ;;  %v2090_v56 = vld [vmem:[#allocation3 + $0xf0] sm:$0xff]  ;;  %2939 = vst.msk [vmem:[#allocation3 + $0x18] sm:$0xff] %vm441_vm2, %v2907_v4  ;;  %v3209_v25 = vpop.f32.mrb[51].mxu0 }
 0x1da   : > { %v2448_v23 = vadd.f32 %v2409_v30, %v2090_v56  ;;  %2938 = vst.msk [vmem:[#allocation3 + $0x10] sm:$0xff] %vm441_vm2, %v2906_v42  ;;  %v6516_v5 = vpop.f32.mrb[52].mxu1 }
 0x1db   : > { %2481 = vst.msk [vmem:[#allocation3 + $0xf8] sm:$0xff] %vm441_vm2, %v2449_v26  ;;  %v2909_v43 = vadd.f32 %v6516_v5, %v2551_v29  ;;  %v2765_v32 = vpop.f32.mrb[53].mxu1  ;;  %v2561_v26 = vld [vmem:[#allocation3 + $0x78] sm:$0xff]  ;;  %v2560_v29 = vld [vmem:[#allocation3 + $0x70] sm:$0xff] }
 0x1dc   : > { %2480 = vst.msk [vmem:[#allocation3 + $0xf0] sm:$0xff] %vm441_vm2, %v2448_v23  ;;  %v2908_v40 = vadd.f32 %v2765_v32, %v2550_v8  ;;  %v3001_v52 = vld [vmem:[#allocation3 + $0x8] sm:$0xff]  ;;  %v6566_v20 = vpop.f32.mrb[52].mxu0 }
 0x1dd   : > { %2941 = vst.msk [vmem:[#allocation3 + $0x28] sm:$0xff] %vm441_vm2, %v2909_v43  ;;  %v3359_v33 = vadd.f32 %v6560_v35, %v3001_v52  ;;  %v3000_v10 = vld [vmem:[#allocation3] sm:$0xff]  ;;  %v3219_v31 = vpop.f32.mrb[53].mxu0 }
 0x1de   : > { %2940 = vst.msk [vmem:[#allocation3 + $0x20] sm:$0xff] %vm441_vm2, %v2908_v40  ;;  %v3358_v49 = vadd.f32 %v3199_v48, %v3000_v10  ;;  %v6519_v16 = vpop.f32.mrb[54].mxu1 }
 0x1df   : > { %3391 = vst.msk [vmem:[#allocation3 + $0x8] sm:$0xff] %vm441_vm2, %v3359_v33  ;;  %v2911_v59 = vadd.f32 %v6519_v16, %v2553_v2  ;;  %v2775_v61 = vpop.f32.mrb[55].mxu1  ;;  %v2563_v33 = vld [vmem:[#allocation3 + $0x88] sm:$0xff]  ;;  %v2562_v2 = vld [vmem:[#allocation3 + $0x80] sm:$0xff] }
 0x1e0   : > { %3390 = vst.msk [vmem:[#allocation3] sm:$0xff] %vm441_vm2, %v3358_v49  ;;  %v2910_v55 = vadd.f32 %v2775_v61, %v2552_v14  ;;  %v3003_v21 = vld [vmem:[#allocation3 + $0x18] sm:$0xff]  ;;  %v6569_v44 = vpop.f32.mrb[54].mxu0 }
 0x1e1   : > { %2943 = vst.msk [vmem:[#allocation3 + $0x38] sm:$0xff] %vm441_vm2, %v2911_v59  ;;  %v3361_v37 = vadd.f32 %v6563_v19, %v3003_v21  ;;  %v3002_v6 = vld [vmem:[#allocation3 + $0x10] sm:$0xff]  ;;  %v3229_v22 = vpop.f32.mrb[55].mxu0 }
 0x1e2   : > { %2942 = vst.msk [vmem:[#allocation3 + $0x30] sm:$0xff] %vm441_vm2, %v2910_v55  ;;  %v3360_v17 = vadd.f32 %v3209_v25, %v3002_v6  ;;  %v6522_v27 = vpop.f32.mrb[56].mxu1 }
 0x1e3   : > { %3393 = vst.msk [vmem:[#allocation3 + $0x18] sm:$0xff] %vm441_vm2, %v3361_v37  ;;  %v2913_v53 = vadd.f32 %v6522_v27, %v2555_v12  ;;  %v2785_v58 = vpop.f32.mrb[57].mxu1  ;;  %v2565_v37 = vld [vmem:[#allocation3 + $0x98] sm:$0xff]  ;;  %v2564_v12 = vld [vmem:[#allocation3 + $0x90] sm:$0xff] }
 0x1e4   : > { %3392 = vst.msk [vmem:[#allocation3 + $0x10] sm:$0xff] %vm441_vm2, %v3360_v17  ;;  %v2912_v60 = vadd.f32 %v2785_v58, %v2554_v62  ;;  %v3005_v50 = vld [vmem:[#allocation3 + $0x28] sm:$0xff]  ;;  %v6572_v54 = vpop.f32.mrb[56].mxu0 }
 0x1e5   : > { %2945 = vst.msk [vmem:[#allocation3 + $0x48] sm:$0xff] %vm441_vm2, %v2913_v53  ;;  %v3363_v15 = vadd.f32 %v6566_v20, %v3005_v50  ;;  %v3004_v3 = vld [vmem:[#allocation3 + $0x20] sm:$0xff]  ;;  %v3239_v24 = vpop.f32.mrb[57].mxu0 }
 0x1e6   : > { %2944 = vst.msk [vmem:[#allocation3 + $0x40] sm:$0xff] %vm441_vm2, %v2912_v60  ;;  %v3362_v0 = vadd.f32 %v3219_v31, %v3004_v3  ;;  %v6525_v13 = vpop.f32.mrb[58].mxu1 }
 0x1e7   : > { %3395 = vst.msk [vmem:[#allocation3 + $0x28] sm:$0xff] %vm441_vm2, %v3363_v15  ;;  %v2915_v7 = vadd.f32 %v6525_v13, %v2557_v47  ;;  %v2795_v46 = vpop.f32.mrb[59].mxu1  ;;  %v2567_v15 = vld [vmem:[#allocation3 + $0xa8] sm:$0xff]  ;;  %v2566_v47 = vld [vmem:[#allocation3 + $0xa0] sm:$0xff] }
 0x1e8   : > { %3394 = vst.msk [vmem:[#allocation3 + $0x20] sm:$0xff] %vm441_vm2, %v3362_v0  ;;  %v2914_v30 = vadd.f32 %v2795_v46, %v2556_v41  ;;  %v3007_v51 = vld [vmem:[#allocation3 + $0x38] sm:$0xff]  ;;  %v6575_v57 = vpop.f32.mrb[58].mxu0 }
 0x1e9   : > { %2947 = vst.msk [vmem:[#allocation3 + $0x58] sm:$0xff] %vm441_vm2, %v2915_v7  ;;  %v3365_v34 = vadd.f32 %v6569_v44, %v3007_v51  ;;  %v3006_v39 = vld [vmem:[#allocation3 + $0x30] sm:$0xff]  ;;  %v3249_v35 = vpop.f32.mrb[59].mxu0 }
 0x1ea   : > { %2946 = vst.msk [vmem:[#allocation3 + $0x50] sm:$0xff] %vm441_vm2, %v2914_v30  ;;  %v3364_v45 = vadd.f32 %v3229_v22, %v3006_v39  ;;  %v6528_v9 = vpop.f32.mrb[60].mxu1 }
 0x1eb   : > { %3397 = vst.msk [vmem:[#allocation3 + $0x38] sm:$0xff] %vm441_vm2, %v3365_v34  ;;  %v2917_v38 = vadd.f32 %v6528_v9, %v2559_v11  ;;  %v2805_v28 = vpop.f32.mrb[61].mxu1  ;;  %v2569_v34 = vld [vmem:[#allocation3 + $0xb8] sm:$0xff]  ;;  %v2568_v11 = vld [vmem:[#allocation3 + $0xb0] sm:$0xff] }
 0x1ec   : > { %3396 = vst.msk [vmem:[#allocation3 + $0x30] sm:$0xff] %vm441_vm2, %v3364_v45  ;;  %v2916_v48 = vadd.f32 %v2805_v28, %v2558_v36  ;;  %v3009_v4 = vld [vmem:[#allocation3 + $0x48] sm:$0xff]  ;;  %v6578_v18 = vpop.f32.mrb[60].mxu0 }
 0x1ed   : > { %2949 = vst.msk [vmem:[#allocation3 + $0x68] sm:$0xff] %vm441_vm2, %v2917_v38  ;;  %v3367_v1 = vadd.f32 %v6572_v54, %v3009_v4  ;;  %v3008_v63 = vld [vmem:[#allocation3 + $0x40] sm:$0xff]  ;;  %v3259_v19 = vpop.f32.mrb[61].mxu0 }
 0x1ee   : > { %2948 = vst.msk [vmem:[#allocation3 + $0x60] sm:$0xff] %vm441_vm2, %v2916_v48  ;;  %v3366_v42 = vadd.f32 %v3239_v24, %v3008_v63  ;;  %v6531_v56 = vpop.f32.mrb[62].mxu1 }
 0x1ef   : > { %3399 = vst.msk [vmem:[#allocation3 + $0x48] sm:$0xff] %vm441_vm2, %v3367_v1  ;;  %v2919_v23 = vadd.f32 %v6531_v56, %v2561_v26  ;;  %v2815_v5 = vpop.f32.mrb[63].mxu1  ;;  %v2571_v1 = vld [vmem:[#allocation3 + $0xc8] sm:$0xff]  ;;  %v2570_v26 = vld [vmem:[#allocation3 + $0xc0] sm:$0xff] }
 0x1f0   : > { %3398 = vst.msk [vmem:[#allocation3 + $0x40] sm:$0xff] %vm441_vm2, %v3366_v42  ;;  %v2918_v25 = vadd.f32 %v2815_v5, %v2560_v29  ;;  %v3011_v43 = vld [vmem:[#allocation3 + $0x58] sm:$0xff]  ;;  %v6581_v40 = vpop.f32.mrb[62].mxu0 }
 0x1f1   : > { %2951 = vst.msk [vmem:[#allocation3 + $0x78] sm:$0xff] %vm441_vm2, %v2919_v23  ;;  %v3369_v8 = vadd.f32 %v6575_v57, %v3011_v43  ;;  %v3010_v32 = vld [vmem:[#allocation3 + $0x50] sm:$0xff]  ;;  %v3269_v20 = vpop.f32.mrb[63].mxu0 }
 0x1f2   : > { %2950 = vst.msk [vmem:[#allocation3 + $0x70] sm:$0xff] %vm441_vm2, %v2918_v25  ;;  %v3368_v52 = vadd.f32 %v3249_v35, %v3010_v32  ;;  %v6534_v10 = vpop.f32.mrb[64].mxu1 }
 0x1f3   : > { %3401 = vst.msk [vmem:[#allocation3 + $0x58] sm:$0xff] %vm441_vm2, %v3369_v8  ;;  %v2921_v49 = vadd.f32 %v6534_v10, %v2563_v33  ;;  %v2825_v16 = vpop.f32.mrb[65].mxu1  ;;  %v2573_v8 = vld [vmem:[#allocation3 + $0xd8] sm:$0xff]  ;;  %v2572_v33 = vld [vmem:[#allocation3 + $0xd0] sm:$0xff] }
 0x1f4   : > { %3400 = vst.msk [vmem:[#allocation3 + $0x50] sm:$0xff] %vm441_vm2, %v3368_v52  ;;  %v2920_v31 = vadd.f32 %v2825_v16, %v2562_v2  ;;  %v3013_v59 = vld [vmem:[#allocation3 + $0x68] sm:$0xff]  ;;  %v6584_v55 = vpop.f32.mrb[64].mxu0 }
 0x1f5   : > { %2953 = vst.msk [vmem:[#allocation3 + $0x88] sm:$0xff] %vm441_vm2, %v2921_v49  ;;  %v3371_v14 = vadd.f32 %v6578_v18, %v3013_v59  ;;  %v3012_v61 = vld [vmem:[#allocation3 + $0x60] sm:$0xff]  ;;  %v3279_v44 = vpop.f32.mrb[65].mxu0 }
 0x1f6   : > { %2952 = vst.msk [vmem:[#allocation3 + $0x80] sm:$0xff] %vm441_vm2, %v2920_v31  ;;  %v3370_v21 = vadd.f32 %v3259_v19, %v3012_v61  ;;  %v6537_v6 = vpop.f32.mrb[66].mxu1 }
 0x1f7   : > { %3403 = vst.msk [vmem:[#allocation3 + $0x68] sm:$0xff] %vm441_vm2, %v3371_v14  ;;  %v2923_v17 = vadd.f32 %v6537_v6, %v2565_v37  ;;  %v2835_v27 = vpop.f32.mrb[67].mxu1  ;;  %v2575_v14 = vld [vmem:[#allocation3 + $0xe8] sm:$0xff]  ;;  %v2574_v37 = vld [vmem:[#allocation3 + $0xe0] sm:$0xff] }
 0x1f8   : > { %3402 = vst.msk [vmem:[#allocation3 + $0x60] sm:$0xff] %vm441_vm2, %v3370_v21  ;;  %v2922_v22 = vadd.f32 %v2835_v27, %v2564_v12  ;;  %v3015_v53 = vld [vmem:[#allocation3 + $0x78] sm:$0xff]  ;;  %v6587_v60 = vpop.f32.mrb[66].mxu0 }
 0x1f9   : > { %2955 = vst.msk [vmem:[#allocation3 + $0x98] sm:$0xff] %vm441_vm2, %v2923_v17  ;;  %v3373_v62 = vadd.f32 %v6581_v40, %v3015_v53  ;;  %v3014_v58 = vld [vmem:[#allocation3 + $0x70] sm:$0xff]  ;;  %v3289_v54 = vpop.f32.mrb[67].mxu0 }
 0x1fa   : > { %2954 = vst.msk [vmem:[#allocation3 + $0x90] sm:$0xff] %vm441_vm2, %v2922_v22  ;;  %v3372_v50 = vadd.f32 %v3269_v20, %v3014_v58  ;;  %v6540_v3 = vpop.f32.mrb[68].mxu1 }
 0x1fb   : > { %3405 = vst.msk [vmem:[#allocation3 + $0x78] sm:$0xff] %vm441_vm2, %v3373_v62  ;;  %v2925_v0 = vadd.f32 %v6540_v3, %v2567_v15  ;;  %v2845_v13 = vpop.f32.mrb[69].mxu1  ;;  %v2577_v62 = vld [vmem:[#allocation3 + $0xf8] sm:$0xff]  ;;  %v2576_v15 = vld [vmem:[#allocation3 + $0xf0] sm:$0xff] }
 0x1fc   : > { %3404 = vst.msk [vmem:[#allocation3 + $0x70] sm:$0xff] %vm441_vm2, %v3372_v50  ;;  %v2924_v24 = vadd.f32 %v2845_v13, %v2566_v47  ;;  %v3017_v7 = vld [vmem:[#allocation3 + $0x88] sm:$0xff]  ;;  %v6590_v30 = vpop.f32.mrb[68].mxu0 }
 0x1fd   : > { %2957 = vst.msk [vmem:[#allocation3 + $0xa8] sm:$0xff] %vm441_vm2, %v2925_v0  ;;  %v3375_v41 = vadd.f32 %v6584_v55, %v3017_v7  ;;  %v3016_v46 = vld [vmem:[#allocation3 + $0x80] sm:$0xff]  ;;  %v3299_v57 = vpop.f32.mrb[69].mxu0 }
 0x1fe   : > { %2956 = vst.msk [vmem:[#allocation3 + $0xa0] sm:$0xff] %vm441_vm2, %v2924_v24  ;;  %v3374_v51 = vadd.f32 %v3279_v44, %v3016_v46  ;;  %v6543_v39 = vpop.f32.mrb[70].mxu1 }
 0x1ff   : > { %3407 = vst.msk [vmem:[#allocation3 + $0x88] sm:$0xff] %vm441_vm2, %v3375_v41  ;;  %v2927_v45 = vadd.f32 %v6543_v39, %v2569_v34  ;;  %v2855_v9 = vpop.f32.mrb[71].mxu1  ;;  %v3487_v41 = vld [vmem:[#allocation3 + $0x8] sm:$0xff]  ;;  %v3486_v34 = vld [vmem:[#allocation3] sm:$0xff] }
 0x200   : > { %3406 = vst.msk [vmem:[#allocation3 + $0x80] sm:$0xff] %vm441_vm2, %v3374_v51  ;;  %v2926_v35 = vadd.f32 %v2855_v9, %v2568_v11  ;;  %v3019_v38 = vld [vmem:[#allocation3 + $0x98] sm:$0xff]  ;;  %v6593_v48 = vpop.f32.mrb[70].mxu0 }
 0x201   : > { %2959 = vst.msk [vmem:[#allocation3 + $0xb8] sm:$0xff] %vm441_vm2, %v2927_v45  ;;  %v3377_v36 = vadd.f32 %v6587_v60, %v3019_v38  ;;  %v3018_v28 = vld [vmem:[#allocation3 + $0x90] sm:$0xff]  ;;  %v3309_v18 = vpop.f32.mrb[71].mxu0 }
 0x202   : > { %2958 = vst.msk [vmem:[#allocation3 + $0xb0] sm:$0xff] %vm441_vm2, %v2926_v35  ;;  %v3376_v4 = vadd.f32 %v3289_v54, %v3018_v28  ;;  %v6546_v63 = vpop.f32.mrb[72].mxu1 }
 0x203   : > { %3409 = vst.msk [vmem:[#allocation3 + $0x98] sm:$0xff] %vm441_vm2, %v3377_v36  ;;  %v2929_v42 = vadd.f32 %v6546_v63, %v2571_v1  ;;  %v2865_v56 = vpop.f32.mrb[73].mxu1  ;;  %v3489_v36 = vld [vmem:[#allocation3 + $0x18] sm:$0xff]  ;;  %v3488_v1 = vld [vmem:[#allocation3 + $0x10] sm:$0xff] }
 0x204   : > { %3408 = vst.msk [vmem:[#allocation3 + $0x90] sm:$0xff] %vm441_vm2, %v3376_v4  ;;  %v2928_v19 = vadd.f32 %v2865_v56, %v2570_v26  ;;  %v3021_v23 = vld [vmem:[#allocation3 + $0xa8] sm:$0xff]  ;;  %v6596_v25 = vpop.f32.mrb[72].mxu0 }
 0x205   : > { %2961 = vst.msk [vmem:[#allocation3 + $0xc8] sm:$0xff] %vm441_vm2, %v2929_v42  ;;  %v3379_v29 = vadd.f32 %v6590_v30, %v3021_v23  ;;  %v3020_v5 = vld [vmem:[#allocation3 + $0xa0] sm:$0xff]  ;;  %v3319_v40 = vpop.f32.mrb[73].mxu0 }
 0x206   : > { %2960 = vst.msk [vmem:[#allocation3 + $0xc0] sm:$0xff] %vm441_vm2, %v2928_v19  ;;  %v3378_v43 = vadd.f32 %v3299_v57, %v3020_v5  ;;  %v6549_v32 = vpop.f32.mrb[74].mxu1 }
 0x207   : > { %3411 = vst.msk [vmem:[#allocation3 + $0xa8] sm:$0xff] %vm441_vm2, %v3379_v29  ;;  %v2931_v52 = vadd.f32 %v6549_v32, %v2573_v8  ;;  %v2875_v10 = vpop.f32.mrb[75].mxu1  ;;  %v3491_v29 = vld [vmem:[#allocation3 + $0x28] sm:$0xff]  ;;  %v3490_v8 = vld [vmem:[#allocation3 + $0x20] sm:$0xff] }
 0x208   : > { %3410 = vst.msk [vmem:[#allocation3 + $0xa0] sm:$0xff] %vm441_vm2, %v3378_v43  ;;  %v2930_v20 = vadd.f32 %v2875_v10, %v2572_v33  ;;  %v3023_v49 = vld [vmem:[#allocation3 + $0xb8] sm:$0xff]  ;;  %v6599_v31 = vpop.f32.mrb[74].mxu0 }
 0x209   : > { %2963 = vst.msk [vmem:[#allocation3 + $0xd8] sm:$0xff] %vm441_vm2, %v2931_v52  ;;  %v3381_v2 = vadd.f32 %v6593_v48, %v3023_v49  ;;  %v3022_v16 = vld [vmem:[#allocation3 + $0xb0] sm:$0xff]  ;;  %v3329_v55 = vpop.f32.mrb[75].mxu0 }
 0x20a   : > { %2962 = vst.msk [vmem:[#allocation3 + $0xd0] sm:$0xff] %vm441_vm2, %v2930_v20  ;;  %v3380_v59 = vadd.f32 %v3309_v18, %v3022_v16  ;;  %v6552_v61 = vpop.f32.mrb[76].mxu1 }
 0x20b   : > { %3413 = vst.msk [vmem:[#allocation3 + $0xb8] sm:$0xff] %vm441_vm2, %v3381_v2  ;;  %v2933_v21 = vadd.f32 %v6552_v61, %v2575_v14  ;;  %v2885_v6 = vpop.f32.mrb[77].mxu1  ;;  %v3493_v2 = vld [vmem:[#allocation3 + $0x38] sm:$0xff]  ;;  %v3492_v14 = vld [vmem:[#allocation3 + $0x30] sm:$0xff] }
 0x20c   : > { %3412 = vst.msk [vmem:[#allocation3 + $0xb0] sm:$0xff] %vm441_vm2, %v3380_v59  ;;  %v2932_v44 = vadd.f32 %v2885_v6, %v2574_v37  ;;  %v3025_v17 = vld [vmem:[#allocation3 + $0xc8] sm:$0xff]  ;;  %v6602_v22 = vpop.f32.mrb[76].mxu0 }
 0x20d   : > { %2965 = vst.msk [vmem:[#allocation3 + $0xe8] sm:$0xff] %vm441_vm2, %v2933_v21  ;;  %v3383_v12 = vadd.f32 %v6596_v25, %v3025_v17  ;;  %v3024_v27 = vld [vmem:[#allocation3 + $0xc0] sm:$0xff]  ;;  %v3339_v60 = vpop.f32.mrb[77].mxu0 }
 0x20e   : > { %2964 = vst.msk [vmem:[#allocation3 + $0xe0] sm:$0xff] %vm441_vm2, %v2932_v44  ;;  %v3382_v53 = vadd.f32 %v3319_v40, %v3024_v27  ;;  %v6555_v58 = vpop.f32.mrb[78].mxu1 }
 0x20f   : > { %3415 = vst.msk [vmem:[#allocation3 + $0xc8] sm:$0xff] %vm441_vm2, %v3383_v12  ;;  %v2935_v50 = vadd.f32 %v6555_v58, %v2577_v62  ;;  %v2895_v3 = vpop.f32.mrb[79].mxu1  ;;  %v3495_v12 = vld [vmem:[#allocation3 + $0x48] sm:$0xff]  ;;  %v3494_v62 = vld [vmem:[#allocation3 + $0x40] sm:$0xff] }
 0x210   : > { %3414 = vst.msk [vmem:[#allocation3 + $0xc0] sm:$0xff] %vm441_vm2, %v3382_v53  ;;  %v2934_v54 = vadd.f32 %v2895_v3, %v2576_v15  ;;  %v3027_v0 = vld [vmem:[#allocation3 + $0xd8] sm:$0xff]  ;;  %v6605_v24 = vpop.f32.mrb[78].mxu0 }
 0x211   : > { %2967 = vst.msk [vmem:[#allocation3 + $0xf8] sm:$0xff] %vm441_vm2, %v2935_v50  ;;  %v3385_v47 = vadd.f32 %v6599_v31, %v3027_v0  ;;  %v3026_v13 = vld [vmem:[#allocation3 + $0xd0] sm:$0xff]  ;;  %v3349_v30 = vpop.f32.mrb[79].mxu0 }
 0x212   : > { %2966 = vst.msk [vmem:[#allocation3 + $0xf0] sm:$0xff] %vm441_vm2, %v2934_v54  ;;  %v3384_v7 = vadd.f32 %v3329_v55, %v3026_v13  ;;  %v6610_v46 = vpop.f32.mrb[80].mxu1 }
 0x213   : > { %3417 = vst.msk [vmem:[#allocation3 + $0xd8] sm:$0xff] %vm441_vm2, %v3385_v47  ;;  %v3845_v51 = vadd.f32 %v6610_v46, %v3487_v41  ;;  %v3685_v39 = vpop.f32.mrb[81].mxu1  ;;  %v3497_v47 = vld [vmem:[#allocation3 + $0x58] sm:$0xff]  ;;  %v3496_v41 = vld [vmem:[#allocation3 + $0x50] sm:$0xff] }
 0x214   : > { %3416 = vst.msk [vmem:[#allocation3 + $0xd0] sm:$0xff] %vm441_vm2, %v3384_v7  ;;  %v3029_v57 = vld [vmem:[#allocation3 + $0xe8] sm:$0xff]  ;;  %v3844_v45 = vadd.f32 %v3685_v39, %v3486_v34  ;;  %v6660_v35 = vpop.f32.mrb[80].mxu0 }
 0x215   : > { %v3387_v11 = vadd.f32 %v6602_v22, %v3029_v57  ;;  %3877 = vst.msk [vmem:[#allocation3 + $0x8] sm:$0xff] %vm441_vm2, %v3845_v51  ;;  %v3028_v9 = vld [vmem:[#allocation3 + $0xe0] sm:$0xff]  ;;  %v4171_v48 = vpop.f32.mrb[81].mxu0 }
 0x216   : > { %v3386_v38 = vadd.f32 %v3339_v60, %v3028_v9  ;;  %3876 = vst.msk [vmem:[#allocation3] sm:$0xff] %vm441_vm2, %v3844_v45  ;;  %v6613_v28 = vpop.f32.mrb[82].mxu1 }
 0x217   : > { %3419 = vst.msk [vmem:[#allocation3 + $0xe8] sm:$0xff] %vm441_vm2, %v3387_v11  ;;  %v3847_v4 = vadd.f32 %v6613_v28, %v3489_v36  ;;  %v3695_v63 = vpop.f32.mrb[83].mxu1  ;;  %v3499_v11 = vld [vmem:[#allocation3 + $0x68] sm:$0xff]  ;;  %v3498_v36 = vld [vmem:[#allocation3 + $0x60] sm:$0xff] }
 0x218   : > { %3418 = vst.msk [vmem:[#allocation3 + $0xe0] sm:$0xff] %vm441_vm2, %v3386_v38  ;;  %v3031_v18 = vld [vmem:[#allocation3 + $0xf8] sm:$0xff]  ;;  %v3846_v42 = vadd.f32 %v3695_v63, %v3488_v1  ;;  %v6663_v19 = vpop.f32.mrb[82].mxu0 }
 0x219   : > { %v3389_v26 = vadd.f32 %v6605_v24, %v3031_v18  ;;  %v3030_v56 = vld [vmem:[#allocation3 + $0xf0] sm:$0xff]  ;;  %3879 = vst.msk [vmem:[#allocation3 + $0x18] sm:$0xff] %vm441_vm2, %v3847_v4  ;;  %v4181_v25 = vpop.f32.mrb[83].mxu0 }
 0x21a   : > { %v3388_v23 = vadd.f32 %v3349_v30, %v3030_v56  ;;  %3878 = vst.msk [vmem:[#allocation3 + $0x10] sm:$0xff] %vm441_vm2, %v3846_v42  ;;  %v6616_v5 = vpop.f32.mrb[84].mxu1 }
 0x21b   : > { %3421 = vst.msk [vmem:[#allocation3 + $0xf8] sm:$0xff] %vm441_vm2, %v3389_v26  ;;  %v3849_v43 = vadd.f32 %v6616_v5, %v3491_v29  ;;  %v3705_v32 = vpop.f32.mrb[85].mxu1  ;;  %v3501_v26 = vld [vmem:[#allocation3 + $0x78] sm:$0xff]  ;;  %v3500_v29 = vld [vmem:[#allocation3 + $0x70] sm:$0xff] }
 0x21c   : > { %3420 = vst.msk [vmem:[#allocation3 + $0xf0] sm:$0xff] %vm441_vm2, %v3388_v23  ;;  %v3973_v40 = vld [vmem:[#allocation3 + $0x8] sm:$0xff]  ;;  %v3848_v52 = vadd.f32 %v3705_v32, %v3490_v8  ;;  %v6666_v20 = vpop.f32.mrb[84].mxu0 }
 0x21d   : > { %v4331_v33 = vadd.f32 %v6660_v35, %v3973_v40  ;;  %v3972_v10 = vld [vmem:[#allocation3] sm:$0xff]  ;;  %3881 = vst.msk [vmem:[#allocation3 + $0x28] sm:$0xff] %vm441_vm2, %v3849_v43  ;;  %v4191_v31 = vpop.f32.mrb[85].mxu0 }
 0x21e   : > { %v4330_v49 = vadd.f32 %v4171_v48, %v3972_v10  ;;  %3880 = vst.msk [vmem:[#allocation3 + $0x20] sm:$0xff] %vm441_vm2, %v3848_v52  ;;  %v6619_v16 = vpop.f32.mrb[86].mxu1 }
 0x21f   : > { %4363 = vst.msk [vmem:[#allocation3 + $0x8] sm:$0xff] %vm441_vm2, %v4331_v33  ;;  %v3851_v59 = vadd.f32 %v6619_v16, %v3493_v2  ;;  %v3715_v61 = vpop.f32.mrb[87].mxu1  ;;  %v3503_v33 = vld [vmem:[#allocation3 + $0x88] sm:$0xff]  ;;  %v3502_v2 = vld [vmem:[#allocation3 + $0x80] sm:$0xff] }
 0x220   : > { %4362 = vst.msk [vmem:[#allocation3] sm:$0xff] %vm441_vm2, %v4330_v49  ;;  %v3975_v55 = vld [vmem:[#allocation3 + $0x18] sm:$0xff]  ;;  %v3850_v21 = vadd.f32 %v3715_v61, %v3492_v14  ;;  %v6669_v44 = vpop.f32.mrb[86].mxu0 }
 0x221   : > { %v4333_v37 = vadd.f32 %v6663_v19, %v3975_v55  ;;  %v3974_v6 = vld [vmem:[#allocation3 + $0x10] sm:$0xff]  ;;  %3883 = vst.msk [vmem:[#allocation3 + $0x38] sm:$0xff] %vm441_vm2, %v3851_v59  ;;  %v4201_v22 = vpop.f32.mrb[87].mxu0 }
 0x222   : > { %v4332_v17 = vadd.f32 %v4181_v25, %v3974_v6  ;;  %3882 = vst.msk [vmem:[#allocation3 + $0x30] sm:$0xff] %vm441_vm2, %v3850_v21  ;;  %v6622_v27 = vpop.f32.mrb[88].mxu1 }
 0x223   : > { %4365 = vst.msk [vmem:[#allocation3 + $0x18] sm:$0xff] %vm441_vm2, %v4333_v37  ;;  %v3853_v53 = vadd.f32 %v6622_v27, %v3495_v12  ;;  %v3725_v58 = vpop.f32.mrb[89].mxu1  ;;  %v3505_v37 = vld [vmem:[#allocation3 + $0x98] sm:$0xff]  ;;  %v3504_v12 = vld [vmem:[#allocation3 + $0x90] sm:$0xff] }
 0x224   : > { %4364 = vst.msk [vmem:[#allocation3 + $0x10] sm:$0xff] %vm441_vm2, %v4332_v17  ;;  %v3977_v60 = vld [vmem:[#allocation3 + $0x28] sm:$0xff]  ;;  %v3852_v50 = vadd.f32 %v3725_v58, %v3494_v62  ;;  %v6672_v54 = vpop.f32.mrb[88].mxu0 }
 0x225   : > { %v4335_v15 = vadd.f32 %v6666_v20, %v3977_v60  ;;  %v3976_v3 = vld [vmem:[#allocation3 + $0x20] sm:$0xff]  ;;  %3885 = vst.msk [vmem:[#allocation3 + $0x48] sm:$0xff] %vm441_vm2, %v3853_v53  ;;  %v4211_v24 = vpop.f32.mrb[89].mxu0 }
 0x226   : > { %v4334_v0 = vadd.f32 %v4191_v31, %v3976_v3  ;;  %3884 = vst.msk [vmem:[#allocation3 + $0x40] sm:$0xff] %vm441_vm2, %v3852_v50  ;;  %v6625_v13 = vpop.f32.mrb[90].mxu1 }
 0x227   : > { %4367 = vst.msk [vmem:[#allocation3 + $0x28] sm:$0xff] %vm441_vm2, %v4335_v15  ;;  %v3855_v7 = vadd.f32 %v6625_v13, %v3497_v47  ;;  %v3735_v46 = vpop.f32.mrb[91].mxu1  ;;  %v3507_v15 = vld [vmem:[#allocation3 + $0xa8] sm:$0xff]  ;;  %v3506_v47 = vld [vmem:[#allocation3 + $0xa0] sm:$0xff] }
 0x228   : > { %4366 = vst.msk [vmem:[#allocation3 + $0x20] sm:$0xff] %vm441_vm2, %v4334_v0  ;;  %v3979_v30 = vld [vmem:[#allocation3 + $0x38] sm:$0xff]  ;;  %v3854_v51 = vadd.f32 %v3735_v46, %v3496_v41  ;;  %v6675_v57 = vpop.f32.mrb[90].mxu0 }
 0x229   : > { %v4337_v34 = vadd.f32 %v6669_v44, %v3979_v30  ;;  %v3978_v39 = vld [vmem:[#allocation3 + $0x30] sm:$0xff]  ;;  %3887 = vst.msk [vmem:[#allocation3 + $0x58] sm:$0xff] %vm441_vm2, %v3855_v7  ;;  %v4221_v35 = vpop.f32.mrb[91].mxu0 }
 0x22a   : > { %v4336_v45 = vadd.f32 %v4201_v22, %v3978_v39  ;;  %3886 = vst.msk [vmem:[#allocation3 + $0x50] sm:$0xff] %vm441_vm2, %v3854_v51  ;;  %v6628_v9 = vpop.f32.mrb[92].mxu1 }
 0x22b   : > { %4369 = vst.msk [vmem:[#allocation3 + $0x38] sm:$0xff] %vm441_vm2, %v4337_v34  ;;  %v3857_v38 = vadd.f32 %v6628_v9, %v3499_v11  ;;  %v3745_v28 = vpop.f32.mrb[93].mxu1  ;;  %v3509_v34 = vld [vmem:[#allocation3 + $0xb8] sm:$0xff]  ;;  %v3508_v11 = vld [vmem:[#allocation3 + $0xb0] sm:$0xff] }
 0x22c   : > { %4368 = vst.msk [vmem:[#allocation3 + $0x30] sm:$0xff] %vm441_vm2, %v4336_v45  ;;  %v3981_v48 = vld [vmem:[#allocation3 + $0x48] sm:$0xff]  ;;  %v3856_v4 = vadd.f32 %v3745_v28, %v3498_v36  ;;  %v6678_v18 = vpop.f32.mrb[92].mxu0 }
 0x22d   : > { %v4339_v1 = vadd.f32 %v6672_v54, %v3981_v48  ;;  %v3980_v63 = vld [vmem:[#allocation3 + $0x40] sm:$0xff]  ;;  %3889 = vst.msk [vmem:[#allocation3 + $0x68] sm:$0xff] %vm441_vm2, %v3857_v38  ;;  %v4231_v19 = vpop.f32.mrb[93].mxu0 }
 0x22e   : > { %v4338_v42 = vadd.f32 %v4211_v24, %v3980_v63  ;;  %3888 = vst.msk [vmem:[#allocation3 + $0x60] sm:$0xff] %vm441_vm2, %v3856_v4  ;;  %v6631_v56 = vpop.f32.mrb[94].mxu1 }
 0x22f   : > { %4371 = vst.msk [vmem:[#allocation3 + $0x48] sm:$0xff] %vm441_vm2, %v4339_v1  ;;  %v3859_v23 = vadd.f32 %v6631_v56, %v3501_v26  ;;  %v3755_v5 = vpop.f32.mrb[95].mxu1  ;;  %v3511_v1 = vld [vmem:[#allocation3 + $0xc8] sm:$0xff]  ;;  %v3510_v26 = vld [vmem:[#allocation3 + $0xc0] sm:$0xff] }
 0x230   : > { %4370 = vst.msk [vmem:[#allocation3 + $0x40] sm:$0xff] %vm441_vm2, %v4338_v42  ;;  %v3983_v25 = vld [vmem:[#allocation3 + $0x58] sm:$0xff]  ;;  %v3858_v43 = vadd.f32 %v3755_v5, %v3500_v29  ;;  %v6681_v40 = vpop.f32.mrb[94].mxu0 }
 0x231   : > { %v4341_v8 = vadd.f32 %v6675_v57, %v3983_v25  ;;  %v3982_v32 = vld [vmem:[#allocation3 + $0x50] sm:$0xff]  ;;  %3891 = vst.msk [vmem:[#allocation3 + $0x78] sm:$0xff] %vm441_vm2, %v3859_v23  ;;  %v4241_v20 = vpop.f32.mrb[95].mxu0 }
 0x232   : > { %v4340_v52 = vadd.f32 %v4221_v35, %v3982_v32  ;;  %3890 = vst.msk [vmem:[#allocation3 + $0x70] sm:$0xff] %vm441_vm2, %v3858_v43  ;;  %v6634_v10 = vpop.f32.mrb[96].mxu1 }
 0x233   : > { %4373 = vst.msk [vmem:[#allocation3 + $0x58] sm:$0xff] %vm441_vm2, %v4341_v8  ;;  %v3861_v49 = vadd.f32 %v6634_v10, %v3503_v33  ;;  %v3765_v16 = vpop.f32.mrb[97].mxu1  ;;  %v3513_v8 = vld [vmem:[#allocation3 + $0xd8] sm:$0xff]  ;;  %v3512_v33 = vld [vmem:[#allocation3 + $0xd0] sm:$0xff] }
 0x234   : > { %4372 = vst.msk [vmem:[#allocation3 + $0x50] sm:$0xff] %vm441_vm2, %v4340_v52  ;;  %v3985_v31 = vld [vmem:[#allocation3 + $0x68] sm:$0xff]  ;;  %v3860_v59 = vadd.f32 %v3765_v16, %v3502_v2  ;;  %v6684_v55 = vpop.f32.mrb[96].mxu0 }
 0x235   : > { %v4343_v14 = vadd.f32 %v6678_v18, %v3985_v31  ;;  %v3984_v61 = vld [vmem:[#allocation3 + $0x60] sm:$0xff]  ;;  %3893 = vst.msk [vmem:[#allocation3 + $0x88] sm:$0xff] %vm441_vm2, %v3861_v49  ;;  %v4251_v44 = vpop.f32.mrb[97].mxu0 }
 0x236   : > { %v4342_v21 = vadd.f32 %v4231_v19, %v3984_v61  ;;  %3892 = vst.msk [vmem:[#allocation3 + $0x80] sm:$0xff] %vm441_vm2, %v3860_v59  ;;  %v6637_v6 = vpop.f32.mrb[98].mxu1 }
 0x237   : > { %4375 = vst.msk [vmem:[#allocation3 + $0x68] sm:$0xff] %vm441_vm2, %v4343_v14  ;;  %v3863_v17 = vadd.f32 %v6637_v6, %v3505_v37  ;;  %v3775_v27 = vpop.f32.mrb[99].mxu1  ;;  %v3515_v14 = vld [vmem:[#allocation3 + $0xe8] sm:$0xff]  ;;  %v3514_v37 = vld [vmem:[#allocation3 + $0xe0] sm:$0xff] }
 0x238   : > { %4374 = vst.msk [vmem:[#allocation3 + $0x60] sm:$0xff] %vm441_vm2, %v4342_v21  ;;  %v3987_v22 = vld [vmem:[#allocation3 + $0x78] sm:$0xff]  ;;  %v3862_v53 = vadd.f32 %v3775_v27, %v3504_v12  ;;  %v6687_v60 = vpop.f32.mrb[98].mxu0 }
 0x239   : > { %v4345_v62 = vadd.f32 %v6681_v40, %v3987_v22  ;;  %v3986_v58 = vld [vmem:[#allocation3 + $0x70] sm:$0xff]  ;;  %3895 = vst.msk [vmem:[#allocation3 + $0x98] sm:$0xff] %vm441_vm2, %v3863_v17  ;;  %v4261_v54 = vpop.f32.mrb[99].mxu0 }
 0x23a   : > { %v4344_v50 = vadd.f32 %v4241_v20, %v3986_v58  ;;  %3894 = vst.msk [vmem:[#allocation3 + $0x90] sm:$0xff] %vm441_vm2, %v3862_v53  ;;  %v6640_v3 = vpop.f32.mrb[100].mxu1 }
 0x23b   : > { %4377 = vst.msk [vmem:[#allocation3 + $0x78] sm:$0xff] %vm441_vm2, %v4345_v62  ;;  %v3865_v0 = vadd.f32 %v6640_v3, %v3507_v15  ;;  %v3785_v13 = vpop.f32.mrb[101].mxu1  ;;  %v3517_v62 = vld [vmem:[#allocation3 + $0xf8] sm:$0xff]  ;;  %v3516_v15 = vld [vmem:[#allocation3 + $0xf0] sm:$0xff] }
 0x23c   : > { %4376 = vst.msk [vmem:[#allocation3 + $0x70] sm:$0xff] %vm441_vm2, %v4344_v50  ;;  %v3989_v24 = vld [vmem:[#allocation3 + $0x88] sm:$0xff]  ;;  %v3864_v7 = vadd.f32 %v3785_v13, %v3506_v47  ;;  %v6690_v30 = vpop.f32.mrb[100].mxu0 }
 0x23d   : > { %v4347_v41 = vadd.f32 %v6684_v55, %v3989_v24  ;;  %v3988_v46 = vld [vmem:[#allocation3 + $0x80] sm:$0xff]  ;;  %3897 = vst.msk [vmem:[#allocation3 + $0xa8] sm:$0xff] %vm441_vm2, %v3865_v0  ;;  %v4271_v57 = vpop.f32.mrb[101].mxu0 }
 0x23e   : > { %v4346_v51 = vadd.f32 %v4251_v44, %v3988_v46  ;;  %3896 = vst.msk [vmem:[#allocation3 + $0xa0] sm:$0xff] %vm441_vm2, %v3864_v7  ;;  %v6643_v39 = vpop.f32.mrb[102].mxu1 }
 0x23f   : > { %4379 = vst.msk [vmem:[#allocation3 + $0x88] sm:$0xff] %vm441_vm2, %v4347_v41  ;;  %v3867_v45 = vadd.f32 %v6643_v39, %v3509_v34  ;;  %v3795_v9 = vpop.f32.mrb[103].mxu1  ;;  %v4427_v41 = vld [vmem:[#allocation3 + $0x8] sm:$0xff]  ;;  %v4426_v34 = vld [vmem:[#allocation3] sm:$0xff] }
 0x240   : > { %4378 = vst.msk [vmem:[#allocation3 + $0x80] sm:$0xff] %vm441_vm2, %v4346_v51  ;;  %v3991_v35 = vld [vmem:[#allocation3 + $0x98] sm:$0xff]  ;;  %v3866_v38 = vadd.f32 %v3795_v9, %v3508_v11  ;;  %v6693_v48 = vpop.f32.mrb[102].mxu0 }
 0x241   : > { %v4349_v36 = vadd.f32 %v6687_v60, %v3991_v35  ;;  %v3990_v28 = vld [vmem:[#allocation3 + $0x90] sm:$0xff]  ;;  %3899 = vst.msk [vmem:[#allocation3 + $0xb8] sm:$0xff] %vm441_vm2, %v3867_v45  ;;  %v4281_v18 = vpop.f32.mrb[103].mxu0 }
 0x242   : > { %v4348_v4 = vadd.f32 %v4261_v54, %v3990_v28  ;;  %3898 = vst.msk [vmem:[#allocation3 + $0xb0] sm:$0xff] %vm441_vm2, %v3866_v38  ;;  %v6646_v63 = vpop.f32.mrb[104].mxu1 }
 0x243   : > { %4381 = vst.msk [vmem:[#allocation3 + $0x98] sm:$0xff] %vm441_vm2, %v4349_v36  ;;  %v3869_v42 = vadd.f32 %v6646_v63, %v3511_v1  ;;  %v3805_v56 = vpop.f32.mrb[105].mxu1  ;;  %v4429_v36 = vld [vmem:[#allocation3 + $0x18] sm:$0xff]  ;;  %v4428_v1 = vld [vmem:[#allocation3 + $0x10] sm:$0xff] }
 0x244   : > { %4380 = vst.msk [vmem:[#allocation3 + $0x90] sm:$0xff] %vm441_vm2, %v4348_v4  ;;  %v3993_v19 = vld [vmem:[#allocation3 + $0xa8] sm:$0xff]  ;;  %v3868_v23 = vadd.f32 %v3805_v56, %v3510_v26  ;;  %v6696_v25 = vpop.f32.mrb[104].mxu0 }
 0x245   : > { %v4351_v29 = vadd.f32 %v6690_v30, %v3993_v19  ;;  %v3992_v5 = vld [vmem:[#allocation3 + $0xa0] sm:$0xff]  ;;  %3901 = vst.msk [vmem:[#allocation3 + $0xc8] sm:$0xff] %vm441_vm2, %v3869_v42  ;;  %v4291_v40 = vpop.f32.mrb[105].mxu0 }
 0x246   : > { %v4350_v43 = vadd.f32 %v4271_v57, %v3992_v5  ;;  %3900 = vst.msk [vmem:[#allocation3 + $0xc0] sm:$0xff] %vm441_vm2, %v3868_v23  ;;  %v6649_v32 = vpop.f32.mrb[106].mxu1 }
 0x247   : > { %4383 = vst.msk [vmem:[#allocation3 + $0xa8] sm:$0xff] %vm441_vm2, %v4351_v29  ;;  %v3871_v52 = vadd.f32 %v6649_v32, %v3513_v8  ;;  %v3815_v10 = vpop.f32.mrb[107].mxu1  ;;  %v4431_v29 = vld [vmem:[#allocation3 + $0x28] sm:$0xff]  ;;  %v4430_v8 = vld [vmem:[#allocation3 + $0x20] sm:$0xff] }
 0x248   : > { %4382 = vst.msk [vmem:[#allocation3 + $0xa0] sm:$0xff] %vm441_vm2, %v4350_v43  ;;  %v3995_v20 = vld [vmem:[#allocation3 + $0xb8] sm:$0xff]  ;;  %v3870_v49 = vadd.f32 %v3815_v10, %v3512_v33  ;;  %v6699_v31 = vpop.f32.mrb[106].mxu0 }
 0x249   : > { %v4353_v2 = vadd.f32 %v6693_v48, %v3995_v20  ;;  %v3994_v16 = vld [vmem:[#allocation3 + $0xb0] sm:$0xff]  ;;  %3903 = vst.msk [vmem:[#allocation3 + $0xd8] sm:$0xff] %vm441_vm2, %v3871_v52  ;;  %v4301_v55 = vpop.f32.mrb[107].mxu0 }
 0x24a   : > { %v4352_v59 = vadd.f32 %v4281_v18, %v3994_v16  ;;  %3902 = vst.msk [vmem:[#allocation3 + $0xd0] sm:$0xff] %vm441_vm2, %v3870_v49  ;;  %v6652_v61 = vpop.f32.mrb[108].mxu1 }
 0x24b   : > { %4385 = vst.msk [vmem:[#allocation3 + $0xb8] sm:$0xff] %vm441_vm2, %v4353_v2  ;;  %v3873_v21 = vadd.f32 %v6652_v61, %v3515_v14  ;;  %v3825_v6 = vpop.f32.mrb[109].mxu1  ;;  %v4433_v2 = vld [vmem:[#allocation3 + $0x38] sm:$0xff]  ;;  %v4432_v14 = vld [vmem:[#allocation3 + $0x30] sm:$0xff] }
 0x24c   : > { %4384 = vst.msk [vmem:[#allocation3 + $0xb0] sm:$0xff] %vm441_vm2, %v4352_v59  ;;  %v3997_v44 = vld [vmem:[#allocation3 + $0xc8] sm:$0xff]  ;;  %v3872_v17 = vadd.f32 %v3825_v6, %v3514_v37  ;;  %v6702_v22 = vpop.f32.mrb[108].mxu0 }
 0x24d   : > { %v4355_v12 = vadd.f32 %v6696_v25, %v3997_v44  ;;  %v3996_v27 = vld [vmem:[#allocation3 + $0xc0] sm:$0xff]  ;;  %3905 = vst.msk [vmem:[#allocation3 + $0xe8] sm:$0xff] %vm441_vm2, %v3873_v21  ;;  %v4311_v60 = vpop.f32.mrb[109].mxu0 }
 0x24e   : > { %v4354_v53 = vadd.f32 %v4291_v40, %v3996_v27  ;;  %3904 = vst.msk [vmem:[#allocation3 + $0xe0] sm:$0xff] %vm441_vm2, %v3872_v17  ;;  %v6655_v58 = vpop.f32.mrb[110].mxu1 }
 0x24f   : > { %4387 = vst.msk [vmem:[#allocation3 + $0xc8] sm:$0xff] %vm441_vm2, %v4355_v12  ;;  %v3875_v50 = vadd.f32 %v6655_v58, %v3517_v62  ;;  %v3835_v3 = vpop.f32.mrb[111].mxu1  ;;  %v4435_v12 = vld [vmem:[#allocation3 + $0x48] sm:$0xff]  ;;  %v4434_v62 = vld [vmem:[#allocation3 + $0x40] sm:$0xff] }
 0x250   : > { %4386 = vst.msk [vmem:[#allocation3 + $0xc0] sm:$0xff] %vm441_vm2, %v4354_v53  ;;  %v3999_v54 = vld [vmem:[#allocation3 + $0xd8] sm:$0xff]  ;;  %v3874_v0 = vadd.f32 %v3835_v3, %v3516_v15  ;;  %v6705_v24 = vpop.f32.mrb[110].mxu0 }
 0x251   : > { %v4357_v47 = vadd.f32 %v6699_v31, %v3999_v54  ;;  %v3998_v13 = vld [vmem:[#allocation3 + $0xd0] sm:$0xff]  ;;  %3907 = vst.msk [vmem:[#allocation3 + $0xf8] sm:$0xff] %vm441_vm2, %v3875_v50  ;;  %v4321_v30 = vpop.f32.mrb[111].mxu0 }
 0x252   : > { %v4356_v7 = vadd.f32 %v4301_v55, %v3998_v13  ;;  %3906 = vst.msk [vmem:[#allocation3 + $0xf0] sm:$0xff] %vm441_vm2, %v3874_v0  ;;  %v6710_v46 = vpop.f32.mrb[112].mxu1  ;;  %v4437_v13 = vld [vmem:[#allocation3 + $0x58] sm:$0xff] }
 0x253   : > { %4389 = vst.msk [vmem:[#allocation3 + $0xd8] sm:$0xff] %vm441_vm2, %v4357_v47  ;;  %v4785_v51 = vadd.f32 %v6710_v46, %v4427_v41  ;;  %v4625_v39 = vpop.f32.mrb[113].mxu1 }
 0x254   : > { %4388 = vst.msk [vmem:[#allocation3 + $0xd0] sm:$0xff] %vm441_vm2, %v4356_v7  ;;  %v4001_v57 = vld [vmem:[#allocation3 + $0xe8] sm:$0xff]  ;;  %v4784_v45 = vadd.f32 %v4625_v39, %v4426_v34  ;;  %v6760_v35 = vpop.f32.mrb[112].mxu0 }
 0x255   : > { %v4359_v11 = vadd.f32 %v6702_v22, %v4001_v57  ;;  %v4000_v9 = vld [vmem:[#allocation3 + $0xe0] sm:$0xff]  ;;  %4817 = vst.msk [vmem:[#allocation3 + $0x8] sm:$0xff] %vm441_vm2, %v4785_v51  ;;  %v5111_v48 = vpop.f32.mrb[113].mxu0  ;;  %v4436_v51 = vld [vmem:[#allocation3 + $0x50] sm:$0xff] }
 0x256   : > { %v4358_v38 = vadd.f32 %v4311_v60, %v4000_v9  ;;  %4816 = vst.msk [vmem:[#allocation3] sm:$0xff] %vm441_vm2, %v4784_v45  ;;  %v6713_v28 = vpop.f32.mrb[114].mxu1 }
 0x257   : > { %4391 = vst.msk [vmem:[#allocation3 + $0xe8] sm:$0xff] %vm441_vm2, %v4359_v11  ;;  %v4787_v4 = vadd.f32 %v6713_v28, %v4429_v36  ;;  %v4635_v63 = vpop.f32.mrb[115].mxu1 }
 0x258   : > { %4390 = vst.msk [vmem:[#allocation3 + $0xe0] sm:$0xff] %vm441_vm2, %v4358_v38  ;;  %v4003_v18 = vld [vmem:[#allocation3 + $0xf8] sm:$0xff]  ;;  %v4786_v42 = vadd.f32 %v4635_v63, %v4428_v1  ;;  %v6763_v19 = vpop.f32.mrb[114].mxu0  ;;  %v4439_v63 = vld [vmem:[#allocation3 + $0x68] sm:$0xff] }
 0x259   : > { %v4361_v26 = vadd.f32 %v6705_v24, %v4003_v18  ;;  %v4002_v56 = vld [vmem:[#allocation3 + $0xf0] sm:$0xff]  ;;  %4819 = vst.msk [vmem:[#allocation3 + $0x18] sm:$0xff] %vm441_vm2, %v4787_v4  ;;  %v5121_v25 = vpop.f32.mrb[115].mxu0 }
 0x25a   : > { %v4360_v23 = vadd.f32 %v4321_v30, %v4002_v56  ;;  %4818 = vst.msk [vmem:[#allocation3 + $0x10] sm:$0xff] %vm441_vm2, %v4786_v42  ;;  %v6716_v5 = vpop.f32.mrb[116].mxu1 }
 0x25b   : > { %4393 = vst.msk [vmem:[#allocation3 + $0xf8] sm:$0xff] %vm441_vm2, %v4361_v26  ;;  %v4789_v43 = vadd.f32 %v6716_v5, %v4431_v29  ;;  %v4645_v32 = vpop.f32.mrb[117].mxu1  ;;  %v4438_v29 = vld [vmem:[#allocation3 + $0x60] sm:$0xff] }
 0x25c   : > { %4392 = vst.msk [vmem:[#allocation3 + $0xf0] sm:$0xff] %vm441_vm2, %v4360_v23  ;;  %v4913_v40 = vld [vmem:[#allocation3 + $0x8] sm:$0xff]  ;;  %v4788_v52 = vadd.f32 %v4645_v32, %v4430_v8  ;;  %v6766_v20 = vpop.f32.mrb[116].mxu0 }
 0x25d   : > { %v5271_v33 = vadd.f32 %v6760_v35, %v4913_v40  ;;  %v4912_v10 = vld [vmem:[#allocation3] sm:$0xff]  ;;  %4821 = vst.msk [vmem:[#allocation3 + $0x28] sm:$0xff] %vm441_vm2, %v4789_v43  ;;  %v5131_v31 = vpop.f32.mrb[117].mxu0 }
 0x25e   : > { %v5270_v49 = vadd.f32 %v5111_v48, %v4912_v10  ;;  %4820 = vst.msk [vmem:[#allocation3 + $0x20] sm:$0xff] %vm441_vm2, %v4788_v52  ;;  %v6719_v16 = vpop.f32.mrb[118].mxu1 }
 0x25f   : > { %5303 = vst.msk [vmem:[#allocation3 + $0x8] sm:$0xff] %vm441_vm2, %v5271_v33  ;;  %v4791_v59 = vadd.f32 %v6719_v16, %v4433_v2  ;;  %v4655_v61 = vpop.f32.mrb[119].mxu1 }
 0x260   : > { %5302 = vst.msk [vmem:[#allocation3] sm:$0xff] %vm441_vm2, %v5270_v49  ;;  %v4915_v55 = vld [vmem:[#allocation3 + $0x18] sm:$0xff]  ;;  %v4790_v21 = vadd.f32 %v4655_v61, %v4432_v14  ;;  %v6769_v44 = vpop.f32.mrb[118].mxu0 }
 0x261   : > { %v5273_v37 = vadd.f32 %v6763_v19, %v4915_v55  ;;  %v4914_v6 = vld [vmem:[#allocation3 + $0x10] sm:$0xff]  ;;  %4823 = vst.msk [vmem:[#allocation3 + $0x38] sm:$0xff] %vm441_vm2, %v4791_v59  ;;  %v5141_v22 = vpop.f32.mrb[119].mxu0 }
 0x262   : > { %v5272_v17 = vadd.f32 %v5121_v25, %v4914_v6  ;;  %4822 = vst.msk [vmem:[#allocation3 + $0x30] sm:$0xff] %vm441_vm2, %v4790_v21  ;;  %v6722_v27 = vpop.f32.mrb[120].mxu1 }
 0x263   : > { %5305 = vst.msk [vmem:[#allocation3 + $0x18] sm:$0xff] %vm441_vm2, %v5273_v37  ;;  %v4793_v53 = vadd.f32 %v6722_v27, %v4435_v12  ;;  %v4665_v58 = vpop.f32.mrb[121].mxu1 }
 0x264   : > { %5304 = vst.msk [vmem:[#allocation3 + $0x10] sm:$0xff] %vm441_vm2, %v5272_v17  ;;  %v4917_v60 = vld [vmem:[#allocation3 + $0x28] sm:$0xff]  ;;  %v4792_v50 = vadd.f32 %v4665_v58, %v4434_v62  ;;  %v6772_v54 = vpop.f32.mrb[120].mxu0  ;;  %v4440_v17 = vld [vmem:[#allocation3 + $0x70] sm:$0xff] }
 0x265   : > { %v5275_v15 = vadd.f32 %v6766_v20, %v4917_v60  ;;  %v4916_v3 = vld [vmem:[#allocation3 + $0x20] sm:$0xff]  ;;  %4825 = vst.msk [vmem:[#allocation3 + $0x48] sm:$0xff] %vm441_vm2, %v4793_v53  ;;  %v5151_v7 = vpop.f32.mrb[121].mxu0 }
 0x266   : > { %v5335_v0 = vld [vmem:[#allocation3 + $0x8] sm:$0xff]  ;;  %v5274_v47 = vadd.f32 %v5131_v31, %v4916_v3  ;;  %4824 = vst.msk [vmem:[#allocation3 + $0x40] sm:$0xff] %vm441_vm2, %v4792_v50  ;;  %v6725_v24 = vpop.f32.mrb[122].mxu1 }
 0x267   : > { %5367 = vst.msk [vmem:[%s9295_s15 + $0x8] sm:$0xff] %vm441_vm2, %v5335_v0  ;;  %v5470_v41 = vmul.f32 %v5335_v0, %v5335_v0  ;;  %v5334_v46 = vld [vmem:[#allocation3] sm:$0xff]  ;;  %5307 = vst.msk [vmem:[#allocation3 + $0x28] sm:$0xff] %vm441_vm2, %v5275_v15  ;;  %v4795_v30 = vadd.f32 %v6725_v24, %v4437_v13  ;;  %v4675_v34 = vpop.f32.mrb[123].mxu1  ;;  %v5399_v39 = vsel %vm441_vm2, %v5335_v0, 0.0 }
 0x268   : > { %5366 = vst.msk [vmem:[%s9295_s15] sm:$0xff] %vm441_vm2, %v5334_v46  ;;  %v5398_v57 = vsel %vm441_vm2, %v5334_v46, 0.0  ;;  %v5469_v45 = vmul.f32 %v5334_v46, %v5334_v46  ;;  %5306 = vst.msk [vmem:[#allocation3 + $0x20] sm:$0xff] %vm441_vm2, %v5274_v47  ;;  %v4919_v11 = vld [vmem:[#allocation3 + $0x38] sm:$0xff]  ;;  %v4794_v9 = vadd.f32 %v4675_v34, %v4436_v51  ;;  %v6775_v36 = vpop.f32.mrb[122].mxu0 }
 0x269   : > { %v5277_v35 = vadd.f32 %v6769_v44, %v4919_v11  ;;  %v4918_v38 = vld [vmem:[#allocation3 + $0x30] sm:$0xff]  ;;  %4827 = vst.msk [vmem:[#allocation3 + $0x58] sm:$0xff] %vm441_vm2, %v4795_v30  ;;  %v5502_v28 = vsel %vm441_vm2, %v5470_v41, 0.0  ;;  %v5161_v42 = vpop.f32.mrb[123].mxu0  ;;  %v5400_v26 = vadd.f32 %v5399_v39, %v5398_v57  ;;  %v4441_v44 = vld [vmem:[#allocation3 + $0x78] sm:$0xff]  ;;  %v4443_v57 = vld [vmem:[#allocation3 + $0x88] sm:$0xff] }
 0x26a   : > { %v5501_v48 = vsel %vm441_vm2, %v5469_v45, 0.0  ;;  %v5337_v4 = vld [vmem:[#allocation3 + $0x18] sm:$0xff]  ;;  %v5276_v1 = vadd.f32 %v5141_v22, %v4918_v38  ;;  %4826 = vst.msk [vmem:[#allocation3 + $0x50] sm:$0xff] %vm441_vm2, %v4794_v9  ;;  %v6728_v18 = vpop.f32.mrb[124].mxu1  ;;  %v4442_v45 = vld [vmem:[#allocation3 + $0x80] sm:$0xff] }
 0x26b   : > { %5369 = vst.msk [vmem:[%s9295_s15 + $0x18] sm:$0xff] %vm441_vm2, %v5337_v4  ;;  %v5472_v56 = vmul.f32 %v5337_v4, %v5337_v4  ;;  %v5336_v19 = vld [vmem:[#allocation3 + $0x10] sm:$0xff]  ;;  %5309 = vst.msk [vmem:[#allocation3 + $0x38] sm:$0xff] %vm441_vm2, %v5277_v35  ;;  %v4797_v23 = vadd.f32 %v6728_v18, %v4439_v63  ;;  %v4685_v5 = vpop.f32.mrb[125].mxu1  ;;  %v5503_v40 = vadd.f32 %v5502_v28, %v5501_v48  ;;  %v5403_v49 = vsel %vm441_vm2, %v5337_v4, 0.0 }
 0x26c   : > { %5368 = vst.msk [vmem:[%s9295_s15 + $0x10] sm:$0xff] %vm441_vm2, %v5336_v19  ;;  %v5401_v25 = vsel %vm441_vm2, %v5336_v19, 0.0  ;;  %v5471_v43 = vmul.f32 %v5336_v19, %v5336_v19  ;;  %5308 = vst.msk [vmem:[#allocation3 + $0x30] sm:$0xff] %vm441_vm2, %v5276_v1  ;;  %v4921_v8 = vld [vmem:[#allocation3 + $0x48] sm:$0xff]  ;;  %v4796_v32 = vadd.f32 %v4685_v5, %v4438_v29  ;;  %v6778_v20 = vpop.f32.mrb[124].mxu0 }
 0x26d   : > { %v5402_v52 = vadd.f32 %v5401_v25, %v5400_v26  ;;  %v5279_v33 = vadd.f32 %v6772_v54, %v4921_v8  ;;  %v4920_v10 = vld [vmem:[#allocation3 + $0x40] sm:$0xff]  ;;  %4829 = vst.msk [vmem:[#allocation3 + $0x68] sm:$0xff] %vm441_vm2, %v4797_v23  ;;  %v5171_v14 = vpop.f32.mrb[125].mxu0  ;;  %v5506_v61 = vsel %vm441_vm2, %v5472_v56, 0.0 }
 0x26e   : > { %v5504_v2 = vsel %vm441_vm2, %v5471_v43, 0.0  ;;  %v5339_v16 = vld [vmem:[#allocation3 + $0x28] sm:$0xff]  ;;  %v5278_v31 = vadd.f32 %v5151_v7, %v4920_v10  ;;  %4828 = vst.msk [vmem:[#allocation3 + $0x60] sm:$0xff] %vm441_vm2, %v4796_v32  ;;  %v6731_v59 = vpop.f32.mrb[126].mxu1 }
 0x26f   : > { %v5505_v55 = vadd.f32 %v5504_v2, %v5503_v40  ;;  %5371 = vst.msk [vmem:[%s9295_s15 + $0x28] sm:$0xff] %vm441_vm2, %v5339_v16  ;;  %v5474_v21 = vmul.f32 %v5339_v16, %v5339_v16  ;;  %v5338_v37 = vld [vmem:[#allocation3 + $0x20] sm:$0xff]  ;;  %v5404_v6 = vadd.f32 %v5403_v49, %v5402_v52  ;;  %5311 = vst.msk [vmem:[#allocation3 + $0x48] sm:$0xff] %vm441_vm2, %v5279_v33  ;;  %v4695_v12 = vpop.f32.mrb[127].mxu1  ;;  %v5407_v0 = vsel %vm441_vm2, %v5339_v16, 0.0  ;;  %v4445_v40 = vld [vmem:[#allocation3 + $0x98] sm:$0xff] }
 0x270   : > { %5370 = vst.msk [vmem:[%s9295_s15 + $0x20] sm:$0xff] %vm441_vm2, %v5338_v37  ;;  %v5405_v27 = vsel %vm441_vm2, %v5338_v37, 0.0  ;;  %v5473_v22 = vmul.f32 %v5338_v37, %v5338_v37  ;;  %5310 = vst.msk [vmem:[#allocation3 + $0x40] sm:$0xff] %vm441_vm2, %v5278_v31  ;;  %v4923_v53 = vld [vmem:[#allocation3 + $0x58] sm:$0xff]  ;;  %v4799_v62 = vadd.f32 %v6731_v59, %v4441_v44  ;;  %v4798_v58 = vadd.f32 %v4695_v12, %v4440_v17  ;;  %v9331_v54 = vpop.f32.mrb[126].mxu0  ;;  %v4444_v52 = vld [vmem:[#allocation3 + $0x90] sm:$0xff] }
 0x271   : > { %v5406_v60 = vadd.f32 %v5405_v27, %v5404_v6  ;;  %v5507_v50 = vadd.f32 %v5506_v61, %v5505_v55  ;;  %v5281_v15 = vadd.f32 %v6775_v36, %v4923_v53  ;;  %v4922_v3 = vld [vmem:[#allocation3 + $0x50] sm:$0xff]  ;;  %v5181_v41 = vpop.f32.mrb[127].mxu0  ;;  %v5510_v46 = vsel %vm441_vm2, %v5474_v21, 0.0 }
 0x272   : > { %v5508_v47 = vsel %vm441_vm2, %v5473_v22, 0.0  ;;  %v5341_v13 = vld [vmem:[#allocation3 + $0x38] sm:$0xff]  ;;  %v5280_v24 = vadd.f32 %v5161_v42, %v4922_v3  ;;  %4831 = vst.msk [vmem:[#allocation3 + $0x78] sm:$0xff] %vm441_vm2, %v4799_v62  ;;  %4830 = vst.msk [vmem:[#allocation3 + $0x70] sm:$0xff] %vm441_vm2, %v4798_v58  ;;  %v6734_v7 = vpop.f32.mrb[128].mxu1 }
 0x273   : > { %v5509_v30 = vadd.f32 %v5508_v47, %v5507_v50  ;;  %5373 = vst.msk [vmem:[%s9295_s15 + $0x38] sm:$0xff] %vm441_vm2, %v5341_v13  ;;  %v5476_v51 = vmul.f32 %v5341_v13, %v5341_v13  ;;  %v5340_v34 = vld [vmem:[#allocation3 + $0x30] sm:$0xff]  ;;  %v5408_v39 = vadd.f32 %v5407_v0, %v5406_v60  ;;  %5313 = vst.msk [vmem:[#allocation3 + $0x58] sm:$0xff] %vm441_vm2, %v5281_v15  ;;  %v4705_v11 = vpop.f32.mrb[129].mxu1  ;;  %v5411_v42 = vsel %vm441_vm2, %v5341_v13, 0.0  ;;  %v4447_v60 = vld [vmem:[#allocation3 + $0xa8] sm:$0xff] }
 0x274   : > { %5372 = vst.msk [vmem:[%s9295_s15 + $0x30] sm:$0xff] %vm441_vm2, %v5340_v34  ;;  %v5409_v9 = vsel %vm441_vm2, %v5340_v34, 0.0  ;;  %v5475_v35 = vmul.f32 %v5340_v34, %v5340_v34  ;;  %5312 = vst.msk [vmem:[#allocation3 + $0x50] sm:$0xff] %vm441_vm2, %v5280_v24  ;;  %v4925_v38 = vld [vmem:[#allocation3 + $0x68] sm:$0xff]  ;;  %v4801_v36 = vadd.f32 %v6734_v7, %v4443_v57  ;;  %v4800_v28 = vadd.f32 %v4705_v11, %v4442_v45  ;;  %v9345_v18 = vpop.f32.mrb[128].mxu0  ;;  %v4446_v50 = vld [vmem:[#allocation3 + $0xa0] sm:$0xff] }
 0x275   : > { %v5410_v48 = vadd.f32 %v5409_v9, %v5408_v39  ;;  %v5511_v4 = vadd.f32 %v5510_v46, %v5509_v30  ;;  %v5283_v1 = vadd.f32 %v6778_v20, %v4925_v38  ;;  %v4924_v63 = vld [vmem:[#allocation3 + $0x60] sm:$0xff]  ;;  %v5191_v29 = vpop.f32.mrb[129].mxu0  ;;  %v5514_v5 = vsel %vm441_vm2, %v5476_v51, 0.0 }
 0x276   : > { %v5512_v26 = vsel %vm441_vm2, %v5475_v35, 0.0  ;;  %v5343_v56 = vld [vmem:[#allocation3 + $0x48] sm:$0xff]  ;;  %v5282_v19 = vadd.f32 %v5171_v14, %v4924_v63  ;;  %4833 = vst.msk [vmem:[#allocation3 + $0x88] sm:$0xff] %vm441_vm2, %v4801_v36  ;;  %4832 = vst.msk [vmem:[#allocation3 + $0x80] sm:$0xff] %vm441_vm2, %v4800_v28  ;;  %v6737_v23 = vpop.f32.mrb[130].mxu1 }
 0x277   : > { %v5513_v25 = vadd.f32 %v5512_v26, %v5511_v4  ;;  %5375 = vst.msk [vmem:[%s9295_s15 + $0x48] sm:$0xff] %vm441_vm2, %v5343_v56  ;;  %v5478_v43 = vmul.f32 %v5343_v56, %v5343_v56  ;;  %v5342_v8 = vld [vmem:[#allocation3 + $0x40] sm:$0xff]  ;;  %v5412_v32 = vadd.f32 %v5411_v42, %v5410_v48  ;;  %5315 = vst.msk [vmem:[#allocation3 + $0x68] sm:$0xff] %vm441_vm2, %v5283_v1  ;;  %v4715_v33 = vpop.f32.mrb[131].mxu1  ;;  %v5415_v55 = vsel %vm441_vm2, %v5343_v56, 0.0  ;;  %v4449_v48 = vld [vmem:[#allocation3 + $0xb8] sm:$0xff] }
 0x278   : > { %5374 = vst.msk [vmem:[%s9295_s15 + $0x40] sm:$0xff] %vm441_vm2, %v5342_v8  ;;  %v5413_v10 = vsel %vm441_vm2, %v5342_v8, 0.0  ;;  %v5477_v20 = vmul.f32 %v5342_v8, %v5342_v8  ;;  %5314 = vst.msk [vmem:[#allocation3 + $0x60] sm:$0xff] %vm441_vm2, %v5282_v19  ;;  %v4803_v49 = vadd.f32 %v6737_v23, %v4445_v40  ;;  %v4802_v2 = vadd.f32 %v4715_v33, %v4444_v52  ;;  %v9359_v61 = vpop.f32.mrb[130].mxu0  ;;  %v4448_v4 = vld [vmem:[#allocation3 + $0xb0] sm:$0xff]  ;;  %v4451_v40 = vld [vmem:[#allocation3 + $0xc8] sm:$0xff] }
 0x279   : > { %v5414_v16 = vadd.f32 %v5413_v10, %v5412_v32  ;;  %v5515_v31 = vadd.f32 %v5514_v5, %v5513_v25  ;;  %v4927_v59 = vld [vmem:[#allocation3 + $0x78] sm:$0xff]  ;;  %v4926_v14 = vld [vmem:[#allocation3 + $0x70] sm:$0xff]  ;;  %v5201_v12 = vpop.f32.mrb[131].mxu0  ;;  %v5518_v27 = vsel %vm441_vm2, %v5478_v43, 0.0 }
 0x27a   : > { %v5516_v21 = vsel %vm441_vm2, %v5477_v20, 0.0  ;;  %v5345_v37 = vld [vmem:[#allocation3 + $0x58] sm:$0xff]  ;;  %v5285_v6 = vadd.f32 %v9331_v54, %v4927_v59  ;;  %v5284_v44 = vadd.f32 %v5181_v41, %v4926_v14  ;;  %4835 = vst.msk [vmem:[#allocation3 + $0x98] sm:$0xff] %vm441_vm2, %v4803_v49  ;;  %4834 = vst.msk [vmem:[#allocation3 + $0x90] sm:$0xff] %vm441_vm2, %v4802_v2  ;;  %v6740_v17 = vpop.f32.mrb[132].mxu1 }
 0x27b   : > { %v5517_v22 = vadd.f32 %v5516_v21, %v5515_v31  ;;  %5377 = vst.msk [vmem:[%s9295_s15 + $0x58] sm:$0xff] %vm441_vm2, %v5345_v37  ;;  %v5480_v53 = vmul.f32 %v5345_v37, %v5345_v37  ;;  %v5344_v62 = vld [vmem:[#allocation3 + $0x50] sm:$0xff]  ;;  %v5416_v58 = vadd.f32 %v5415_v55, %v5414_v16  ;;  %v4725_v15 = vpop.f32.mrb[133].mxu1  ;;  %v4805_v0 = vadd.f32 %v6740_v17, %v4447_v60  ;;  %v4450_v21 = vld [vmem:[#allocation3 + $0xc0] sm:$0xff]  ;;  %v4453_v60 = vld [vmem:[#allocation3 + $0xd8] sm:$0xff] }
 0x27c   : > { %5376 = vst.msk [vmem:[%s9295_s15 + $0x50] sm:$0xff] %vm441_vm2, %v5344_v62  ;;  %v5417_v3 = vsel %vm441_vm2, %v5344_v62, 0.0  ;;  %v5479_v54 = vmul.f32 %v5344_v62, %v5344_v62  ;;  %5317 = vst.msk [vmem:[#allocation3 + $0x78] sm:$0xff] %vm441_vm2, %v5285_v6  ;;  %v4804_v47 = vadd.f32 %v4725_v15, %v4446_v50  ;;  %v9374_v46 = vpop.f32.mrb[132].mxu0  ;;  %v5419_v30 = vsel %vm441_vm2, %v5345_v37, 0.0 }
 0x27d   : > { %5316 = vst.msk [vmem:[#allocation3 + $0x70] sm:$0xff] %vm441_vm2, %v5284_v44  ;;  %v5418_v13 = vadd.f32 %v5417_v3, %v5416_v58  ;;  %v5519_v24 = vadd.f32 %v5518_v27, %v5517_v22  ;;  %v4929_v7 = vld [vmem:[#allocation3 + $0x88] sm:$0xff]  ;;  %v4928_v41 = vld [vmem:[#allocation3 + $0x80] sm:$0xff]  ;;  %4837 = vst.msk [vmem:[#allocation3 + $0xa8] sm:$0xff] %vm441_vm2, %v4805_v0  ;;  %v5211_v11 = vpop.f32.mrb[133].mxu0  ;;  %v5522_v9 = vsel %vm441_vm2, %v5480_v53, 0.0 }
 0x27e   : > { %v5520_v51 = vsel %vm441_vm2, %v5479_v54, 0.0  ;;  %v5347_v34 = vld [vmem:[#allocation3 + $0x68] sm:$0xff]  ;;  %v5287_v39 = vadd.f32 %v9345_v18, %v4929_v7  ;;  %v5286_v57 = vadd.f32 %v5191_v29, %v4928_v41  ;;  %4836 = vst.msk [vmem:[#allocation3 + $0xa0] sm:$0xff] %vm441_vm2, %v4804_v47  ;;  %v6743_v45 = vpop.f32.mrb[134].mxu1 }
 0x27f   : > { %v5521_v35 = vadd.f32 %v5520_v51, %v5519_v24  ;;  %5379 = vst.msk [vmem:[%s9295_s15 + $0x68] sm:$0xff] %vm441_vm2, %v5347_v34  ;;  %v5482_v38 = vmul.f32 %v5347_v34, %v5347_v34  ;;  %v5346_v36 = vld [vmem:[#allocation3 + $0x60] sm:$0xff]  ;;  %v5420_v28 = vadd.f32 %v5419_v30, %v5418_v13  ;;  %v4735_v1 = vpop.f32.mrb[135].mxu1  ;;  %v4807_v42 = vadd.f32 %v6743_v45, %v4449_v48  ;;  %v4452_v51 = vld [vmem:[#allocation3 + $0xd0] sm:$0xff]  ;;  %v4455_v48 = vld [vmem:[#allocation3 + $0xe8] sm:$0xff] }
 0x280   : > { %5378 = vst.msk [vmem:[%s9295_s15 + $0x60] sm:$0xff] %vm441_vm2, %v5346_v36  ;;  %v5421_v63 = vsel %vm441_vm2, %v5346_v36, 0.0  ;;  %v5481_v18 = vmul.f32 %v5346_v36, %v5346_v36  ;;  %5319 = vst.msk [vmem:[#allocation3 + $0x88] sm:$0xff] %vm441_vm2, %v5287_v39  ;;  %v4806_v26 = vadd.f32 %v4735_v1, %v4448_v4  ;;  %v9389_v5 = vpop.f32.mrb[134].mxu0  ;;  %v5423_v25 = vsel %vm441_vm2, %v5347_v34, 0.0 }
 0x281   : > { %5318 = vst.msk [vmem:[#allocation3 + $0x80] sm:$0xff] %vm441_vm2, %v5286_v57  ;;  %v5422_v56 = vadd.f32 %v5421_v63, %v5420_v28  ;;  %v5523_v19 = vadd.f32 %v5522_v9, %v5521_v35  ;;  %v4931_v23 = vld [vmem:[#allocation3 + $0x98] sm:$0xff]  ;;  %v4930_v29 = vld [vmem:[#allocation3 + $0x90] sm:$0xff]  ;;  %4839 = vst.msk [vmem:[#allocation3 + $0xb8] sm:$0xff] %vm441_vm2, %v4807_v42  ;;  %v5221_v33 = vpop.f32.mrb[135].mxu0  ;;  %v5526_v59 = vsel %vm441_vm2, %v5482_v38, 0.0 }
 0x282   : > { %v5524_v43 = vsel %vm441_vm2, %v5481_v18, 0.0  ;;  %v5289_v8 = vadd.f32 %v9359_v61, %v4931_v23  ;;  %v5288_v32 = vadd.f32 %v5201_v12, %v4930_v29  ;;  %4838 = vst.msk [vmem:[#allocation3 + $0xb0] sm:$0xff] %vm441_vm2, %v4806_v26  ;;  %v6746_v52 = vpop.f32.mrb[136].mxu1 }
 0x283   : > { %v5525_v10 = vadd.f32 %v5524_v43, %v5523_v19  ;;  %v5349_v20 = vld [vmem:[#allocation3 + $0x78] sm:$0xff]  ;;  %v5424_v2 = vadd.f32 %v5423_v25, %v5422_v56  ;;  %v4809_v16 = vadd.f32 %v6746_v52, %v4451_v40  ;;  %v4745_v31 = vpop.f32.mrb[137].mxu1 }
 0x284   : > { %v5348_v49 = vld [vmem:[#allocation3 + $0x70] sm:$0xff]  ;;  %5381 = vst.msk [vmem:[%s9295_s15 + $0x78] sm:$0xff] %vm441_vm2, %v5349_v20  ;;  %v5484_v14 = vmul.f32 %v5349_v20, %v5349_v20  ;;  %5321 = vst.msk [vmem:[#allocation3 + $0x98] sm:$0xff] %vm441_vm2, %v5289_v8  ;;  %v4933_v44 = vld [vmem:[#allocation3 + $0xa8] sm:$0xff]  ;;  %v4808_v12 = vadd.f32 %v4745_v31, %v4450_v21  ;;  %v6796_v27 = vpop.f32.mrb[136].mxu0  ;;  %v5427_v22 = vsel %vm441_vm2, %v5349_v20, 0.0 }
 0x285   : > { %5380 = vst.msk [vmem:[%s9295_s15 + $0x70] sm:$0xff] %vm441_vm2, %v5348_v49  ;;  %v5425_v61 = vsel %vm441_vm2, %v5348_v49, 0.0  ;;  %v5483_v55 = vmul.f32 %v5348_v49, %v5348_v49  ;;  %5320 = vst.msk [vmem:[#allocation3 + $0x90] sm:$0xff] %vm441_vm2, %v5288_v32  ;;  %v5527_v6 = vadd.f32 %v5526_v59, %v5525_v10  ;;  %v4932_v17 = vld [vmem:[#allocation3 + $0xa0] sm:$0xff]  ;;  %v5291_v62 = vadd.f32 %v9374_v46, %v4933_v44  ;;  %v9408_v15 = vpop.f32.mrb[137].mxu0 }
 0x286   : > { %v5426_v37 = vadd.f32 %v5425_v61, %v5424_v2  ;;  %4841 = vst.msk [vmem:[#allocation3 + $0xc8] sm:$0xff] %vm441_vm2, %v4809_v16  ;;  %v5290_v58 = vadd.f32 %v5211_v11, %v4932_v17  ;;  %v6749_v50 = vpop.f32.mrb[138].mxu1  ;;  %4840 = vst.msk [vmem:[#allocation3 + $0xc0] sm:$0xff] %vm441_vm2, %v4808_v12  ;;  %v5530_v7 = vsel %vm441_vm2, %v5484_v14, 0.0  ;;  %v4454_v8 = vld [vmem:[#allocation3 + $0xe0] sm:$0xff]  ;;  %v4457_v16 = vld [vmem:[#allocation3 + $0xf8] sm:$0xff] }
 0x287   : > { %v5528_v53 = vsel %vm441_vm2, %v5483_v55, 0.0  ;;  %v5351_v54 = vld [vmem:[#allocation3 + $0x88] sm:$0xff]  ;;  %v4811_v13 = vadd.f32 %v6749_v50, %v4453_v60  ;;  %v4755_v24 = vpop.f32.mrb[139].mxu1  ;;  %5323 = vst.msk [vmem:[#allocation3 + $0xa8] sm:$0xff] %vm441_vm2, %v5291_v62  ;;  %v4456_v62 = vld [vmem:[#allocation3 + $0xf0] sm:$0xff] }
 0x288   : > { %v5529_v3 = vadd.f32 %v5528_v53, %v5527_v6  ;;  %v5350_v0 = vld [vmem:[#allocation3 + $0x80] sm:$0xff]  ;;  %v5428_v47 = vadd.f32 %v5427_v22, %v5426_v37  ;;  %5383 = vst.msk [vmem:[%s9295_s15 + $0x88] sm:$0xff] %vm441_vm2, %v5351_v54  ;;  %v5486_v41 = vmul.f32 %v5351_v54, %v5351_v54  ;;  %5322 = vst.msk [vmem:[#allocation3 + $0xa0] sm:$0xff] %vm441_vm2, %v5290_v58  ;;  %v4935_v57 = vld [vmem:[#allocation3 + $0xb8] sm:$0xff]  ;;  %v6799_v9 = vpop.f32.mrb[138].mxu0  ;;  %v5431_v35 = vsel %vm441_vm2, %v5351_v54, 0.0 }
 0x289   : > { %5382 = vst.msk [vmem:[%s9295_s15 + $0x80] sm:$0xff] %vm441_vm2, %v5350_v0  ;;  %v5429_v46 = vsel %vm441_vm2, %v5350_v0, 0.0  ;;  %v5485_v30 = vmul.f32 %v5350_v0, %v5350_v0  ;;  %v4934_v45 = vld [vmem:[#allocation3 + $0xb0] sm:$0xff]  ;;  %4843 = vst.msk [vmem:[#allocation3 + $0xd8] sm:$0xff] %vm441_vm2, %v4811_v13  ;;  %v4810_v11 = vadd.f32 %v4755_v24, %v4452_v51  ;;  %v5293_v36 = vadd.f32 %v9389_v5, %v4935_v57  ;;  %v9423_v1 = vpop.f32.mrb[139].mxu0 }
 0x28a   : > { %v5430_v34 = vadd.f32 %v5429_v46, %v5428_v47  ;;  %v5531_v39 = vadd.f32 %v5530_v7, %v5529_v3  ;;  %v5292_v28 = vadd.f32 %v5221_v33, %v4934_v45  ;;  %v6752_v4 = vpop.f32.mrb[140].mxu1  ;;  %v5534_v23 = vsel %vm441_vm2, %v5486_v41, 0.0 }
 0x28b   : > { %v5532_v38 = vsel %vm441_vm2, %v5485_v30, 0.0  ;;  %v5353_v18 = vld [vmem:[#allocation3 + $0x98] sm:$0xff]  ;;  %4842 = vst.msk [vmem:[#allocation3 + $0xd0] sm:$0xff] %vm441_vm2, %v4810_v11  ;;  %v4813_v56 = vadd.f32 %v6752_v4, %v4455_v48  ;;  %v4765_v19 = vpop.f32.mrb[141].mxu1  ;;  %5325 = vst.msk [vmem:[#allocation3 + $0xb8] sm:$0xff] %vm441_vm2, %v5293_v36 }
 0x28c   : > { %v5533_v63 = vadd.f32 %v5532_v38, %v5531_v39  ;;  %v5352_v42 = vld [vmem:[#allocation3 + $0x90] sm:$0xff]  ;;  %v5432_v26 = vadd.f32 %v5431_v35, %v5430_v34  ;;  %5385 = vst.msk [vmem:[%s9295_s15 + $0x98] sm:$0xff] %vm441_vm2, %v5353_v18  ;;  %v5488_v29 = vmul.f32 %v5353_v18, %v5353_v18  ;;  %5324 = vst.msk [vmem:[#allocation3 + $0xb0] sm:$0xff] %vm441_vm2, %v5292_v28  ;;  %v6802_v10 = vpop.f32.mrb[140].mxu0  ;;  %v5435_v20 = vsel %vm441_vm2, %v5353_v18, 0.0 }
 0x28d   : > { %5384 = vst.msk [vmem:[%s9295_s15 + $0x90] sm:$0xff] %vm441_vm2, %v5352_v42  ;;  %v5433_v5 = vsel %vm441_vm2, %v5352_v42, 0.0  ;;  %v5487_v25 = vmul.f32 %v5352_v42, %v5352_v42  ;;  %v4937_v43 = vld [vmem:[#allocation3 + $0xc8] sm:$0xff]  ;;  %4845 = vst.msk [vmem:[#allocation3 + $0xe8] sm:$0xff] %vm441_vm2, %v4813_v56  ;;  %v4812_v33 = vadd.f32 %v4765_v19, %v4454_v8  ;;  %v4936_v2 = vld [vmem:[#allocation3 + $0xc0] sm:$0xff]  ;;  %v5251_v59 = vpop.f32.mrb[141].mxu0 }
 0x28e   : > { %v5434_v32 = vadd.f32 %v5433_v5, %v5432_v26  ;;  %v5535_v40 = vadd.f32 %v5534_v23, %v5533_v63  ;;  %v5295_v52 = vadd.f32 %v6796_v27, %v4937_v43  ;;  %v6755_v31 = vpop.f32.mrb[142].mxu1  ;;  %v5355_v61 = vld [vmem:[#allocation3 + $0xa8] sm:$0xff]  ;;  %v5294_v37 = vadd.f32 %v9408_v15, %v4936_v2 }
 0x28f   : > { %v5536_v49 = vsel %vm441_vm2, %v5487_v25, 0.0  ;;  %v5354_v55 = vld [vmem:[#allocation3 + $0xa0] sm:$0xff]  ;;  %4844 = vst.msk [vmem:[#allocation3 + $0xe0] sm:$0xff] %vm441_vm2, %v4812_v33  ;;  %v4815_v6 = vadd.f32 %v6755_v31, %v4457_v16  ;;  %v4775_v44 = vpop.f32.mrb[143].mxu1  ;;  %v5538_v17 = vsel %vm441_vm2, %v5488_v29, 0.0  ;;  %5387 = vst.msk [vmem:[%s9295_s15 + $0xa8] sm:$0xff] %vm441_vm2, %v5355_v61  ;;  %v5490_v12 = vmul.f32 %v5355_v61, %v5355_v61 }
 0x290   : > { %v5537_v14 = vadd.f32 %v5536_v49, %v5535_v40  ;;  %v5436_v21 = vadd.f32 %v5435_v20, %v5434_v32  ;;  %5327 = vst.msk [vmem:[#allocation3 + $0xc8] sm:$0xff] %vm441_vm2, %v5295_v52  ;;  %5386 = vst.msk [vmem:[%s9295_s15 + $0xa0] sm:$0xff] %vm441_vm2, %v5354_v55  ;;  %v5437_v27 = vsel %vm441_vm2, %v5354_v55, 0.0  ;;  %v5489_v22 = vmul.f32 %v5354_v55, %v5354_v55  ;;  %v4939_v53 = vld [vmem:[#allocation3 + $0xd8] sm:$0xff]  ;;  %v6805_v3 = vpop.f32.mrb[142].mxu0 }
 0x291   : > { %5326 = vst.msk [vmem:[#allocation3 + $0xc0] sm:$0xff] %vm441_vm2, %v5294_v37  ;;  %v5297_v50 = vadd.f32 %v6799_v9, %v4939_v53  ;;  %4847 = vst.msk [vmem:[#allocation3 + $0xf8] sm:$0xff] %vm441_vm2, %v4815_v6  ;;  %v4814_v15 = vadd.f32 %v4775_v44, %v4456_v62  ;;  %v5439_v54 = vsel %vm441_vm2, %v5355_v61, 0.0  ;;  %v5261_v13 = vpop.f32.mrb[143].mxu0  ;;  %v5542_v51 = vsel %vm441_vm2, %v5490_v12, 0.0 }
 0x292   : > { %v5438_v58 = vadd.f32 %v5437_v27, %v5436_v21  ;;  %v5539_v60 = vadd.f32 %v5538_v17, %v5537_v14  ;;  %v5540_v0 = vsel %vm441_vm2, %v5489_v22, 0.0  ;;  %v4938_v47 = vld [vmem:[#allocation3 + $0xd0] sm:$0xff]  ;;  %v5357_v7 = vld [vmem:[#allocation3 + $0xb8] sm:$0xff] }
 0x293   : > { %v5356_v41 = vld [vmem:[#allocation3 + $0xb0] sm:$0xff]  ;;  %5329 = vst.msk [vmem:[#allocation3 + $0xd8] sm:$0xff] %vm441_vm2, %v5297_v50  ;;  %v5296_v30 = vadd.f32 %v9423_v1, %v4938_v47  ;;  %4846 = vst.msk [vmem:[#allocation3 + $0xf0] sm:$0xff] %vm441_vm2, %v4814_v15  ;;  %v5492_v34 = vmul.f32 %v5357_v7, %v5357_v7  ;;  %v5443_v38 = vsel %vm441_vm2, %v5357_v7, 0.0 }
 0x294   : > { %v5541_v24 = vadd.f32 %v5540_v0, %v5539_v60  ;;  %v5440_v46 = vadd.f32 %v5439_v54, %v5438_v58  ;;  %5389 = vst.msk [vmem:[%s9295_s15 + $0xb8] sm:$0xff] %vm441_vm2, %v5357_v7  ;;  %5388 = vst.msk [vmem:[%s9295_s15 + $0xb0] sm:$0xff] %vm441_vm2, %v5356_v41  ;;  %v5441_v39 = vsel %vm441_vm2, %v5356_v41, 0.0  ;;  %v5491_v57 = vmul.f32 %v5356_v41, %v5356_v41  ;;  %v4941_v45 = vld [vmem:[#allocation3 + $0xe8] sm:$0xff] }
 0x295   : > { %5328 = vst.msk [vmem:[#allocation3 + $0xd0] sm:$0xff] %vm441_vm2, %v5296_v30  ;;  %v5299_v35 = vadd.f32 %v6802_v10, %v4941_v45  ;;  %v5546_v63 = vsel %vm441_vm2, %v5492_v34, 0.0 }
 0x296   : > { %v5442_v11 = vadd.f32 %v5441_v39, %v5440_v46  ;;  %v5543_v9 = vadd.f32 %v5542_v51, %v5541_v24  ;;  %v5544_v36 = vsel %vm441_vm2, %v5491_v57, 0.0  ;;  %v4940_v48 = vld [vmem:[#allocation3 + $0xe0] sm:$0xff] }
 0x297   : > { %v5359_v28 = vld [vmem:[#allocation3 + $0xc8] sm:$0xff]  ;;  %5331 = vst.msk [vmem:[#allocation3 + $0xe8] sm:$0xff] %vm441_vm2, %v5299_v35  ;;  %v5298_v42 = vadd.f32 %v5251_v59, %v4940_v48 }
 0x298   : > { %v5545_v4 = vadd.f32 %v5544_v36, %v5543_v9  ;;  %5391 = vst.msk [vmem:[%s9295_s15 + $0xc8] sm:$0xff] %vm441_vm2, %v5359_v28  ;;  %v5444_v1 = vadd.f32 %v5443_v38, %v5442_v11  ;;  %v5358_v18 = vld [vmem:[#allocation3 + $0xc0] sm:$0xff]  ;;  %v4943_v26 = vld [vmem:[#allocation3 + $0xf8] sm:$0xff]  ;;  %v5494_v56 = vmul.f32 %v5359_v28, %v5359_v28  ;;  %v5447_v32 = vsel %vm441_vm2, %v5359_v28, 0.0 }
 0x299   : > { %5390 = vst.msk [vmem:[%s9295_s15 + $0xc0] sm:$0xff] %vm441_vm2, %v5358_v18  ;;  %v5445_v19 = vsel %vm441_vm2, %v5358_v18, 0.0  ;;  %v5493_v23 = vmul.f32 %v5358_v18, %v5358_v18  ;;  %5330 = vst.msk [vmem:[#allocation3 + $0xe0] sm:$0xff] %vm441_vm2, %v5298_v42  ;;  %v5301_v43 = vadd.f32 %v6805_v3, %v4943_v26 }
 0x29a   : > { %v5547_v29 = vadd.f32 %v5546_v63, %v5545_v4  ;;  %v5446_v5 = vadd.f32 %v5445_v19, %v5444_v1  ;;  %v5361_v25 = vld [vmem:[#allocation3 + $0xd8] sm:$0xff]  ;;  %v4942_v8 = vld [vmem:[#allocation3 + $0xf0] sm:$0xff]  ;;  %v5550_v49 = vsel %vm441_vm2, %v5494_v56, 0.0 }
 0x29b   : > { %v5548_v40 = vsel %vm441_vm2, %v5493_v23, 0.0  ;;  %5393 = vst.msk [vmem:[%s9295_s15 + $0xd8] sm:$0xff] %vm441_vm2, %v5361_v25  ;;  %v5300_v52 = vadd.f32 %v5261_v13, %v4942_v8  ;;  %5333 = vst.msk [vmem:[#allocation3 + $0xf8] sm:$0xff] %vm441_vm2, %v5301_v43  ;;  %v5496_v2 = vmul.f32 %v5361_v25, %v5361_v25  ;;  %v5451_v55 = vsel %vm441_vm2, %v5361_v25, 0.0 }
 0x29c   : > { %v5549_v33 = vadd.f32 %v5548_v40, %v5547_v29  ;;  %v5360_v10 = vld [vmem:[#allocation3 + $0xd0] sm:$0xff]  ;;  %v5448_v20 = vadd.f32 %v5447_v32, %v5446_v5 }
 0x29d   : > { %5392 = vst.msk [vmem:[%s9295_s15 + $0xd0] sm:$0xff] %vm441_vm2, %v5360_v10  ;;  %v5449_v16 = vsel %vm441_vm2, %v5360_v10, 0.0  ;;  %v5495_v31 = vmul.f32 %v5360_v10, %v5360_v10  ;;  %5332 = vst.msk [vmem:[#allocation3 + $0xf0] sm:$0xff] %vm441_vm2, %v5300_v52  ;;  %v5554_v44 = vsel %vm441_vm2, %v5496_v2, 0.0 }
 0x29e   : > { %v5450_v59 = vadd.f32 %v5449_v16, %v5448_v20  ;;  %v5551_v14 = vadd.f32 %v5550_v49, %v5549_v33  ;;  %v5363_v61 = vld [vmem:[#allocation3 + $0xe8] sm:$0xff] }
 0x29f   : > { %v5552_v21 = vsel %vm441_vm2, %v5495_v31, 0.0  ;;  %5395 = vst.msk [vmem:[%s9295_s15 + $0xe8] sm:$0xff] %vm441_vm2, %v5363_v61  ;;  %v5498_v12 = vmul.f32 %v5363_v61, %v5363_v61  ;;  %v5455_v60 = vsel %vm441_vm2, %v5363_v61, 0.0 }
 0x2a0   : > { %v5553_v37 = vadd.f32 %v5552_v21, %v5551_v14  ;;  %v5452_v6 = vadd.f32 %v5451_v55, %v5450_v59  ;;  %v5362_v17 = vld [vmem:[#allocation3 + $0xe0] sm:$0xff] }
 0x2a1   : > { %5394 = vst.msk [vmem:[%s9295_s15 + $0xe0] sm:$0xff] %vm441_vm2, %v5362_v17  ;;  %v5453_v27 = vsel %vm441_vm2, %v5362_v17, 0.0  ;;  %v5497_v22 = vmul.f32 %v5362_v17, %v5362_v17  ;;  %v5558_v13 = vsel %vm441_vm2, %v5498_v12, 0.0 }
 0x2a2   : > { %v5555_v53 = vadd.f32 %v5554_v44, %v5553_v37  ;;  %v5454_v62 = vadd.f32 %v5453_v27, %v5452_v6  ;;  %v5365_v58 = vld [vmem:[#allocation3 + $0xf8] sm:$0xff] }
 0x2a3   : > { %v5556_v50 = vsel %vm441_vm2, %v5497_v22, 0.0  ;;  %5397 = vst.msk [vmem:[%s9295_s15 + $0xf8] sm:$0xff] %vm441_vm2, %v5365_v58  ;;  %v5500_v24 = vmul.f32 %v5365_v58, %v5365_v58  ;;  %v5459_v30 = vsel %vm441_vm2, %v5365_v58, 0.0 }
 0x2a4   : > { %v5364_v15 = vld [vmem:[#allocation3 + $0xf0] sm:$0xff]  ;;  %v5557_v3 = vadd.f32 %v5556_v50, %v5555_v53  ;;  %v5456_v54 = vadd.f32 %v5455_v60, %v5454_v62 }
 0x2a5   : > { %5396 = vst.msk [vmem:[%s9295_s15 + $0xf0] sm:$0xff] %vm441_vm2, %v5364_v15  ;;  %v5457_v0 = vsel %vm441_vm2, %v5364_v15, 0.0  ;;  %v5499_v47 = vmul.f32 %v5364_v15, %v5364_v15  ;;  %v5562_v39 = vsel %vm441_vm2, %v5500_v24, 0.0 }
 0x2a6   : > { %v5458_v7 = vadd.f32 %v5457_v0, %v5456_v54  ;;  %v5559_v41 = vadd.f32 %v5558_v13, %v5557_v3 }
 0x2a7   : > { %v5560_v46 = vsel %vm441_vm2, %v5499_v47, 0.0 }
 0x2a8   : > { %v5460_v51 = vadd.f32 %v5459_v30, %v5458_v7  ;;  %v5561_v34 = vadd.f32 %v5560_v46, %v5559_v41 }
 0x2aa   : > { %v5461_v57 = vrot.slane %v5460_v51, 4  ;;  %v5563_v45 = vadd.f32 %v5562_v39, %v5561_v34 }
 0x2ac   : > { %v5462_v11 = vadd.f32 %v5461_v57, %v5460_v51  ;;  %v5564_v9 = vrot.slane %v5563_v45, 4 }
 0x2ae   : > { %v5463_v35 = vrot.slane %v5462_v11, 2  ;;  %v5565_v38 = vadd.f32 %v5564_v9, %v5563_v45 }
 0x2b0   : > { %v5464_v36 = vadd.f32 %v5463_v35, %v5462_v11  ;;  %v5566_v28 = vrot.slane %v5565_v38, 2 }
 0x2b2   : > { %v5465_v48 = vrot.slane %v5464_v36, 1  ;;  %v5567_v4 = vadd.f32 %v5566_v28, %v5565_v38 }
 0x2b4   : > { %v5466_v1 = vadd.f32 %v5465_v48, %v5464_v36  ;;  %v5568_v63 = vrot.slane %v5567_v4, 1 }
 0x2b6   : > { %5468 = vst.msk [vmem:[%s295_s16] sm:$0x1] %vm5467_vm5, %v5466_v1  ;;  %v5569_v18 = vadd.f32 %v5568_v63, %v5567_v4 }
 0x2b8   : > { %5570 = vst.msk [vmem:[%s298_s19] sm:$0x1] %vm5467_vm5, %v5569_v18 }
 0x2b9 PF: > { %s18_s24 = sadd.s32 1, %s6986_s24  }
 0x2ba   : > { %p15_p5 = scmp.ge.s32.totalorder %s18_s24, 4  }
 0x2bc   :  { %17 = sbr.rel (!%p15_p5) target bundleno = 1 (0x1), region = 102 }

</bundles_post_ra>
